<compile_context>
chip_gen: v5e
topology: v5e:2x2
jax: 0.10.0
libtpu: 0.0.40
codegen_flags: <defaults>
</compile_context>

<pallas_src>
import functools
import math

import jax
import jax.numpy as jnp
from jax.experimental import pallas as pl
from jax.experimental.pallas import tpu as pltpu


# ----------------------------- fused whole-model kernel -----------------------------

def _fused_model_kernel(*refs, B, L, D, nhead, H, n_layers, Bp):
    o_ref, wih_buf, whh_buf, dma_sem = refs[-4:]
    it = iter(refs[:-4])
    x_ref = next(it)          # (B*L, D) f32, rows ordered (b, l)
    perm_ref = next(it)       # (L*Bp, B*L) pad+permute selector: padded (l, b) <- (b, l)
    hm_ref = next(it)         # (D, nhead) head-sum selector (1 where d // Dh == h)
    hmt_ref = next(it)        # (nhead, D) head-broadcast selector
    layers = [[next(it) for _ in range(12)] for _ in range(n_layers)]
    bl_ref = next(it)         # (1, 8H)   f32 combined LSTM biases (b_ih + b_hh), [fwd | bwd]
    wc_ref = next(it)         # (2H, O)   f32 classifier weights (compact, no kron)
    bc_ref = next(it)         # (1, O)
    wih_hbm = next(it)        # (D, 8H)   bf16, memory_space=ANY (manual DMA)
    whh_hbm = next(it)        # (2, H, 4H) bf16, memory_space=ANY (manual DMA)

    # Kick off the LSTM weight DMA now; it hides behind the transformer compute and is
    # waited on just before the recurrence.
    cp_wih = pltpu.make_async_copy(wih_hbm, wih_buf, dma_sem.at[0])
    cp_whh = pltpu.make_async_copy(whh_hbm, whh_buf, dma_sem.at[1])
    cp_wih.start()
    cp_whh.start()

    S, N = B, L               # attention: sequence axis = B, batch axis = L
    Dh = D // nhead
    scale = 1.0 / math.sqrt(Dh)
    f32 = jnp.float32

    def bf(v):                # matmul operands go through the MXU in bf16, f32 accumulate
        return v.astype(jnp.bfloat16)

    def layer_norm(v, g, b):
        mu = jnp.mean(v, axis=-1, keepdims=True)
        var = jnp.mean((v - mu) ** 2, axis=-1, keepdims=True)
        return (v - mu) * jax.lax.rsqrt(var + 1e-5) * g + b

    hm = hm_ref[...]
    hmt = hmt_ref[...]

    # -------- transformer encoder (post-norm, relu, eval mode) --------
    h = x_ref[...]            # (S*N, D) f32
    for (wqkv, bqkv, wo, bo, ln1g, ln1b, w1, b1, w2, b2, ln2g, ln2b) in layers:
        qkv = jnp.dot(bf(h), wqkv[...], preferred_element_type=f32) + bqkv[...]   # (S*N, 3D)
        q = qkv[:, 0:D]
        k = qkv[:, D:2 * D]
        v = qkv[:, 2 * D:3 * D]
        qs = [q[i * N:(i + 1) * N, :] for i in range(S)]
        ks = [k[i * N:(i + 1) * N, :] for i in range(S)]
        vs = [v[i * N:(i + 1) * N, :] for i in range(S)]

        # scores for every (query i, key j) pair: elementwise product (VPU), then one
        # (S*S*N, D) @ (D, nhead) matmul that sums within each head.
        prod = jnp.concatenate([qs[i] * ks[j] for i in range(S) for j in range(S)], axis=0)
        sc = jnp.dot(prod, hm, preferred_element_type=f32) * scale       # (S*S*N, nhead)
        s_ij = [[sc[(i * S + j) * N:(i * S + j + 1) * N, :] for j in range(S)] for i in range(S)]

        # softmax over the key index j (VPU/EUP only)
        p_list = []
        for i in range(S):
            m = s_ij[i][0]
            for j in range(1, S):
                m = jnp.maximum(m, s_ij[i][j])
            e = [jnp.exp(s_ij[i][j] - m) for j in range(S)]
            den = e[0]
            for j in range(1, S):
                den = den + e[j]
            inv = pl.reciprocal(den, approx=True)                        # EUP slot
            p_list.extend([e[j] * inv for j in range(S)])

        # broadcast each head's probability across its Dh lanes, then weight V (VPU)
        pb = jnp.dot(jnp.concatenate(p_list, axis=0), hmt,
                     preferred_element_type=f32)                         # (S*S*N, D)
        att = []
        for i in range(S):
            acc = pb[(i * S) * N:(i * S + 1) * N, :] * vs[0]
            for j in range(1, S):
                acc = acc + pb[(i * S + j) * N:(i * S + j + 1) * N, :] * vs[j]
            att.append(acc)
        a = jnp.concatenate(att, axis=0)                                 # (S*N, D)

        attn_out = jnp.dot(bf(a), wo[...], preferred_element_type=f32) + bo[...]
        h1 = layer_norm(h + attn_out, ln1g[...], ln1b[...])  # TODO(synk): dropout is identity (eval mode)
        ff = jnp.maximum(jnp.dot(bf(h1), w1[...], preferred_element_type=f32) + b1[...], 0.0)
        ff = jnp.dot(bf(ff), w2[...], preferred_element_type=f32) + b2[...]
        h = layer_norm(h1 + ff, ln2g[...], ln2b[...])

    # -------- BiLSTM (batch = B padded to Bp=8, time = L), both directions unrolled --------
    cp_wih.wait()
    cp_whh.wait()
    wih = wih_buf[...]                 # (D, 8H) bf16
    whh_f = whh_buf[0]                 # (H, 4H) bf16
    whh_b = whh_buf[1]                 # (H, 4H) bf16

    gx_bl = jnp.dot(bf(h), wih, preferred_element_type=f32)             # (B*L, 8H), rows (b, l)
    # pad+permute to 8-row-per-timestep layout so every step slice is tile-aligned
    gx = jnp.dot(perm_ref[...], gx_bl, preferred_element_type=f32) + bl_ref[...]   # (L*Bp, 8H)

    hf = jnp.zeros((Bp, H), f32); cf = jnp.zeros((Bp, H), f32)
    hb = jnp.zeros((Bp, H), f32); cb = jnp.zeros((Bp, H), f32)
    out_f = [None] * L
    out_b = [None] * L
    for s in range(L):                                   # fully unrolled: L is small & static
        rec_f = jnp.dot(bf(hf), whh_f, preferred_element_type=f32)      # (Bp, 4H)
        rec_b = jnp.dot(bf(hb), whh_b, preferred_element_type=f32)      # (Bp, 4H)
        gf = gx[s * Bp:(s + 1) * Bp, 0:4 * H] + rec_f                   # aligned 8-row slice
        gb = gx[(L - 1 - s) * Bp:(L - s) * Bp, 4 * H:8 * H] + rec_b

        i_f = jax.nn.sigmoid(gf[:, 0:H]); f_f = jax.nn.sigmoid(gf[:, H:2 * H])
        g_f = jnp.tanh(gf[:, 2 * H:3 * H]); o_f = jax.nn.sigmoid(gf[:, 3 * H:4 * H])
        cf = f_f * cf + i_f * g_f
        hf = o_f * jnp.tanh(cf)

        i_b = jax.nn.sigmoid(gb[:, 0:H]); f_b = jax.nn.sigmoid(gb[:, H:2 * H])
        g_b = jnp.tanh(gb[:, 2 * H:3 * H]); o_b = jax.nn.sigmoid(gb[:, 3 * H:4 * H])
        cb = f_b * cb + i_b * g_b
        hb = o_b * jnp.tanh(cb)

        out_f[s] = hf                                    # forward hidden at time s
        out_b[L - 1 - s] = hb                            # backward hidden at time L-1-s

    # -------- classifier: plain (L*Bp, 2H) @ (2H, O); regroup to (B, L*O) in the wrapper --------
    bilstm = jnp.concatenate(
        [jnp.concatenate([out_f[l], out_b[l]], axis=1) for l in range(L)], axis=0)   # (L*Bp, 2H)
    y = jnp.dot(bilstm, wc_ref[...], preferred_element_type=f32) + bc_ref[...]       # (L*Bp, O)
    o_ref[...] = y.astype(o_ref.dtype)


# ----------------------------- parameter repacking (done ONCE) -----------------------------

def prepare_params(params, B, L, nhead=4, hidden=128):
    D = params["layers"][0]["w_out"].shape[0]
    H = hidden
    O = params["w_cls"].shape[1]
    Dh = D // nhead
    Bp = 8                                               # LSTM batch padded to one sublane tile
    bf16 = jnp.bfloat16

    # padded (l, b) <- (b, l) row regroup selector (also does the batch padding)
    r = jnp.arange(L * Bp)
    l_idx, b_idx = r // Bp, r % Bp
    cols = b_idx * L + l_idx
    perm_pad = jnp.where((b_idx < B)[:, None],
                         jax.nn.one_hot(cols, B * L, dtype=jnp.float32), 0.0)     # (L*Bp, B*L)

    head_mat = jax.nn.one_hot(jnp.arange(D) // Dh, nhead, dtype=jnp.float32)      # (D, nhead)

    vmem = [perm_pad, head_mat, head_mat.T]
    for lp in params["layers"]:
        vmem += [
            lp["w_in"].astype(bf16), lp["b_in"].reshape(1, 3 * D).astype(jnp.float32),
            lp["w_out"].astype(bf16), lp["b_out"].reshape(1, D),
            lp["ln1_g"].reshape(1, D), lp["ln1_b"].reshape(1, D),
            lp["w_ff1"].astype(bf16), lp["b_ff1"].reshape(1, -1),
            lp["w_ff2"].astype(bf16), lp["b_ff2"].reshape(1, D),
            lp["ln2_g"].reshape(1, D), lp["ln2_b"].reshape(1, D),
        ]

    pf, pb = params["lstm_f"], params["lstm_b"]
    # NOTE: combined LSTM bias assumes b = b_ih + b_hh; sum them when importing real PyTorch weights.
    b_lstm = jnp.concatenate([pf["b"], pb["b"]]).reshape(1, 8 * H).astype(jnp.float32)
    vmem += [b_lstm, params["w_cls"].astype(jnp.float32), params["b_cls"].reshape(1, O)]

    hbm = [
        jnp.concatenate([pf["wih"], pb["wih"]], axis=1).astype(bf16),   # (D, 8H)  [fwd | bwd]
        jnp.stack([pf["whh"], pb["whh"]], axis=0).astype(bf16),         # (2, H, 4H) compact
    ]

    meta = dict(B=B, L=L, D=D, nhead=nhead, H=H, O=O,
                n_layers=len(params["layers"]), Bp=Bp)
    return dict(vmem=vmem, hbm=hbm), meta


# ----------------------------- wrapper -----------------------------

def _full_spec(shape):
    nd = len(shape)
    return pl.BlockSpec(tuple(shape), lambda i, _nd=nd: (0,) * _nd)


def backend_classifier(x, packed, *, meta):
    B, L, D = meta["B"], meta["L"], meta["D"]
    H, O, Bp = meta["H"], meta["O"], meta["Bp"]
    nhead, n_layers = meta["nhead"], meta["n_layers"]
    assert x.shape == (B, D, L), x.shape

    # permute(0,2,1) then flatten to (B*L, D) rows ordered (b, l) -- tiny plain-JAX glue.
    t2d = jnp.transpose(x, (0, 2, 1)).reshape(B * L, D).astype(jnp.float32)

    args = [t2d] + list(packed["vmem"]) + list(packed["hbm"])
    in_specs = ([_full_spec(t2d.shape)]
                + [_full_spec(a.shape) for a in packed["vmem"]]
                + [pl.BlockSpec(memory_space=pl.ANY)] * len(packed["hbm"]))

    kernel = functools.partial(_fused_model_kernel, B=B, L=L, D=D, nhead=nhead,
                               H=H, n_layers=n_layers, Bp=Bp)

    # TODO(synk): at these tiny shapes one grid=(1,) invocation is optimal; if B/L/dim_ff grow,
    # add a "parallel" token axis (second v7x TensorCore), mark stationary weight specs
    # pipeline_mode=pl.Buffered(1), and re-budget VMEM against v7x's 64 MiB.
    y = pl.pallas_call(
        kernel,
        out_shape=jax.ShapeDtypeStruct((L * Bp, O), jnp.float32),
        grid=(1,),
        in_specs=in_specs,
        out_specs=_full_spec((L * Bp, O)),
        scratch_shapes=[
            pltpu.VMEM((D, 8 * H), jnp.bfloat16),        # wih landing buffer
            pltpu.VMEM((2, H, 4 * H), jnp.bfloat16),     # compact whh landing buffer
            pltpu.SemaphoreType.DMA((2,)),
        ],
        compiler_params=pltpu.CompilerParams(dimension_semantics=("arbitrary",)),
    )(*args)

    # (L*Bp, O) rows ordered (l, padded b) -> (B, L*O), dropping the padding rows.
    out = y.reshape(L, Bp, O)[:, :B, :]
    return jnp.transpose(out, (1, 0, 2)).reshape(B, L * O)


# ----------------------------- deterministic parameter init -----------------------------

def init_params(key, input_dim, output_dim, nhead=4, dim_ff=1024, hidden=128, num_layers=2):
    D = input_dim
    keys = iter(jax.random.split(key, 64))

    def w(shape, scale=0.05):
        return (scale * jax.random.normal(next(keys), shape)).astype(jnp.float32)

    layers = []
    for _ in range(num_layers):
        layers.append(dict(
            w_in=w((D, 3 * D)), b_in=jnp.zeros((3 * D,), jnp.float32),
            w_out=w((D, D)), b_out=jnp.zeros((D,), jnp.float32),
            ln1_g=jnp.ones((D,), jnp.float32), ln1_b=jnp.zeros((D,), jnp.float32),
            w_ff1=w((D, dim_ff)), b_ff1=jnp.zeros((dim_ff,), jnp.float32),
            w_ff2=w((dim_ff, D)), b_ff2=jnp.zeros((D,), jnp.float32),
            ln2_g=jnp.ones((D,), jnp.float32), ln2_b=jnp.zeros((D,), jnp.float32),
        ))

    def lstm_dir():
        return dict(wih=w((D, 4 * hidden)), whh=w((hidden, 4 * hidden)),
                    b=jnp.zeros((4 * hidden,), jnp.float32))

    return dict(layers=layers, lstm_f=lstm_dir(), lstm_b=lstm_dir(),
                w_cls=w((2 * hidden, output_dim)),
                b_cls=jnp.zeros((output_dim,), jnp.float32))


# ----------------------------- pure-JAX reference (sanity check) -----------------------------

def _reference_forward(x, params, nhead=4, hidden=128):
    B, D, L = x.shape
    Dh = D // nhead
    H = hidden
    t = jnp.transpose(x, (0, 2, 1))             # (B, L, D); transformer sees (S=B, N=L, D)

    def ln(v, g, b):
        mu = v.mean(-1, keepdims=True)
        var = ((v - mu) ** 2).mean(-1, keepdims=True)
        return (v - mu) / jnp.sqrt(var + 1e-5) * g + b

    S, N = B, L
    h = t.reshape(S * N, D)
    for lp in params["layers"]:
        qkv = h @ lp["w_in"] + lp["b_in"]
        q, k, v = jnp.split(qkv, 3, axis=-1)

        def heads(a):
            return a.reshape(S, N, nhead, Dh).transpose(1, 2, 0, 3)   # (N, nh, S, Dh)

        qh, kh, vh = heads(q), heads(k), heads(v)
        s = jnp.einsum("nhsd,nhtd->nhst", qh, kh) / math.sqrt(Dh)
        p = jax.nn.softmax(s, axis=-1)
        a = jnp.einsum("nhst,nhtd->nhsd", p, vh).transpose(2, 0, 1, 3).reshape(S * N, D)
        h1 = ln(h + a @ lp["w_out"] + lp["b_out"], lp["ln1_g"], lp["ln1_b"])
        ff = jnp.maximum(h1 @ lp["w_ff1"] + lp["b_ff1"], 0.0) @ lp["w_ff2"] + lp["b_ff2"]
        h = ln(h1 + ff, lp["ln2_g"], lp["ln2_b"])
    t = h.reshape(B, L, D)

    def run_dir(p, xs):                          # xs: (L, B, D) time-major
        def step(carry, x_t):
            hh, cc = carry
            g = x_t @ p["wih"] + hh @ p["whh"] + p["b"]
            i = jax.nn.sigmoid(g[:, :H]); f = jax.nn.sigmoid(g[:, H:2 * H])
            gg = jnp.tanh(g[:, 2 * H:3 * H]); o = jax.nn.sigmoid(g[:, 3 * H:4 * H])
            cc = f * cc + i * gg
            hh = o * jnp.tanh(cc)
            return (hh, cc), hh

        h0 = jnp.zeros((xs.shape[1], H), jnp.float32)
        _, hs = jax.lax.scan(step, (h0, jnp.zeros_like(h0)), xs)
        return hs                                # (L, B, H)

    xl = jnp.transpose(t, (1, 0, 2))
    fwd = run_dir(params["lstm_f"], xl)
    bwd = jnp.flip(run_dir(params["lstm_b"], jnp.flip(xl, 0)), 0)
    bi = jnp.concatenate([fwd, bwd], axis=-1).transpose(1, 0, 2)    # (B, L, 2H)
    out = bi @ params["w_cls"] + params["b_cls"]
    return out.reshape(B, -1)


if __name__ == "__main__":
    input_dim, output_dim = 32, 4
    B, L = 2, 8                                 # x: (batch, input_dim, seq)
    key = jax.random.PRNGKey(0)
    kx, kp = jax.random.split(key)
    x = jax.random.normal(kx, (B, input_dim, L), dtype=jnp.float32)
    params = init_params(kp, input_dim, output_dim)

    packed, meta = prepare_params(params, B=B, L=L)      # repacked ONCE, reused every call
    fwd = jax.jit(functools.partial(backend_classifier, meta=meta))

    out = jax.block_until_ready(fwd(x, packed))
    assert out.shape == (B, L * output_dim), out.shape
    assert bool(jnp.all(jnp.isfinite(out)))

    ref = _reference_forward(x, params)
    err = float(jnp.max(jnp.abs(out - ref)))
    assert err < 5e-2, f"mismatch vs pure-JAX reference: max abs err {err}"
    print("KERNEL_OK")
</pallas_src>

<mosaic_0001>
module attributes {stable_mosaic.version = 11 : i64} {
  func.func @_fused_model_kernel(%arg0: i32, %arg1: memref<16x32xf32, #tpu.memory_space<vmem>>, %arg2: memref<64x16xf32, #tpu.memory_space<vmem>>, %arg3: memref<32x4xf32, #tpu.memory_space<vmem>>, %arg4: memref<4x32xf32, #tpu.memory_space<vmem>>, %arg5: memref<32x96xbf16, #tpu.memory_space<vmem>>, %arg6: memref<1x96xf32, #tpu.memory_space<vmem>>, %arg7: memref<32x32xbf16, #tpu.memory_space<vmem>>, %arg8: memref<1x32xf32, #tpu.memory_space<vmem>>, %arg9: memref<1x32xf32, #tpu.memory_space<vmem>>, %arg10: memref<1x32xf32, #tpu.memory_space<vmem>>, %arg11: memref<32x1024xbf16, #tpu.memory_space<vmem>>, %arg12: memref<1x1024xf32, #tpu.memory_space<vmem>>, %arg13: memref<1024x32xbf16, #tpu.memory_space<vmem>>, %arg14: memref<1x32xf32, #tpu.memory_space<vmem>>, %arg15: memref<1x32xf32, #tpu.memory_space<vmem>>, %arg16: memref<1x32xf32, #tpu.memory_space<vmem>>, %arg17: memref<32x96xbf16, #tpu.memory_space<vmem>>, %arg18: memref<1x96xf32, #tpu.memory_space<vmem>>, %arg19: memref<32x32xbf16, #tpu.memory_space<vmem>>, %arg20: memref<1x32xf32, #tpu.memory_space<vmem>>, %arg21: memref<1x32xf32, #tpu.memory_space<vmem>>, %arg22: memref<1x32xf32, #tpu.memory_space<vmem>>, %arg23: memref<32x1024xbf16, #tpu.memory_space<vmem>>, %arg24: memref<1x1024xf32, #tpu.memory_space<vmem>>, %arg25: memref<1024x32xbf16, #tpu.memory_space<vmem>>, %arg26: memref<1x32xf32, #tpu.memory_space<vmem>>, %arg27: memref<1x32xf32, #tpu.memory_space<vmem>>, %arg28: memref<1x32xf32, #tpu.memory_space<vmem>>, %arg29: memref<1x1024xf32, #tpu.memory_space<vmem>>, %arg30: memref<256x4xf32, #tpu.memory_space<vmem>>, %arg31: memref<1x4xf32, #tpu.memory_space<vmem>>, %arg32: memref<32x1024xbf16, #tpu.memory_space<any>>, %arg33: memref<2x128x512xbf16, #tpu.memory_space<any>>, %arg34: memref<64x4xf32, #tpu.memory_space<vmem>>, %arg35: memref<32x1024xbf16, #tpu.memory_space<vmem>>, %arg36: memref<2x128x512xbf16, #tpu.memory_space<vmem>>, %arg37: memref<2x!tpu.dma_semaphore, #tpu.memory_space<semaphore_mem>>) attributes {dimension_semantics = [#tpu.dimension_semantics<arbitrary>], iteration_bounds = array<i64: 1>, scalar_prefetch = 0 : i64, scratch_operands = 3 : i64, tpu.core_type = #tpu.core_type<tc>, window_params = [{pipeline_mode = #tpu.pipeline_mode<synchronous>, transform_indices = @transform_0, window_bounds = array<i64: 16, 32>}, {pipeline_mode = #tpu.pipeline_mode<synchronous>, transform_indices = @transform_1, window_bounds = array<i64: 64, 16>}, {pipeline_mode = #tpu.pipeline_mode<synchronous>, transform_indices = @transform_2, window_bounds = array<i64: 32, 4>}, {pipeline_mode = #tpu.pipeline_mode<synchronous>, transform_indices = @transform_3, window_bounds = array<i64: 4, 32>}, {pipeline_mode = #tpu.pipeline_mode<synchronous>, transform_indices = @transform_4, window_bounds = array<i64: 32, 96>}, {pipeline_mode = #tpu.pipeline_mode<synchronous>, transform_indices = @transform_5, window_bounds = array<i64: 1, 96>}, {pipeline_mode = #tpu.pipeline_mode<synchronous>, transform_indices = @transform_6, window_bounds = array<i64: 32, 32>}, {pipeline_mode = #tpu.pipeline_mode<synchronous>, transform_indices = @transform_7, window_bounds = array<i64: 1, 32>}, {pipeline_mode = #tpu.pipeline_mode<synchronous>, transform_indices = @transform_8, window_bounds = array<i64: 1, 32>}, {pipeline_mode = #tpu.pipeline_mode<synchronous>, transform_indices = @transform_9, window_bounds = array<i64: 1, 32>}, {pipeline_mode = #tpu.pipeline_mode<synchronous>, transform_indices = @transform_10, window_bounds = array<i64: 32, 1024>}, {pipeline_mode = #tpu.pipeline_mode<synchronous>, transform_indices = @transform_11, window_bounds = array<i64: 1, 1024>}, {pipeline_mode = #tpu.pipeline_mode<synchronous>, transform_indices = @transform_12, window_bounds = array<i64: 1024, 32>}, {pipeline_mode = #tpu.pipeline_mode<synchronous>, transform_indices = @transform_13, window_bounds = array<i64: 1, 32>}, {pipeline_mode = #tpu.pipeline_mode<synchronous>, transform_indices = @transform_14, window_bounds = array<i64: 1, 32>}, {pipeline_mode = #tpu.pipeline_mode<synchronous>, transform_indices = @transform_15, window_bounds = array<i64: 1, 32>}, {pipeline_mode = #tpu.pipeline_mode<synchronous>, transform_indices = @transform_16, window_bounds = array<i64: 32, 96>}, {pipeline_mode = #tpu.pipeline_mode<synchronous>, transform_indices = @transform_17, window_bounds = array<i64: 1, 96>}, {pipeline_mode = #tpu.pipeline_mode<synchronous>, transform_indices = @transform_18, window_bounds = array<i64: 32, 32>}, {pipeline_mode = #tpu.pipeline_mode<synchronous>, transform_indices = @transform_19, window_bounds = array<i64: 1, 32>}, {pipeline_mode = #tpu.pipeline_mode<synchronous>, transform_indices = @transform_20, window_bounds = array<i64: 1, 32>}, {pipeline_mode = #tpu.pipeline_mode<synchronous>, transform_indices = @transform_21, window_bounds = array<i64: 1, 32>}, {pipeline_mode = #tpu.pipeline_mode<synchronous>, transform_indices = @transform_22, window_bounds = array<i64: 32, 1024>}, {pipeline_mode = #tpu.pipeline_mode<synchronous>, transform_indices = @transform_23, window_bounds = array<i64: 1, 1024>}, {pipeline_mode = #tpu.pipeline_mode<synchronous>, transform_indices = @transform_24, window_bounds = array<i64: 1024, 32>}, {pipeline_mode = #tpu.pipeline_mode<synchronous>, transform_indices = @transform_25, window_bounds = array<i64: 1, 32>}, {pipeline_mode = #tpu.pipeline_mode<synchronous>, transform_indices = @transform_26, window_bounds = array<i64: 1, 32>}, {pipeline_mode = #tpu.pipeline_mode<synchronous>, transform_indices = @transform_27, window_bounds = array<i64: 1, 32>}, {pipeline_mode = #tpu.pipeline_mode<synchronous>, transform_indices = @transform_28, window_bounds = array<i64: 1, 1024>}, {pipeline_mode = #tpu.pipeline_mode<synchronous>, transform_indices = @transform_29, window_bounds = array<i64: 256, 4>}, {pipeline_mode = #tpu.pipeline_mode<synchronous>, transform_indices = @transform_30, window_bounds = array<i64: 1, 4>}, {}, {}, {pipeline_mode = #tpu.pipeline_mode<synchronous>, transform_indices = @transform_33, window_bounds = array<i64: 64, 4>}]} {
    %c0_i32 = arith.constant 0 : i32
    %0 = tpu.memref_slice %arg37[%c0_i32] : memref<2x!tpu.dma_semaphore, #tpu.memory_space<semaphore_mem>> -> memref<1x!tpu.dma_semaphore, #tpu.memory_space<semaphore_mem>>
    %1 = tpu.memref_squeeze %0 : memref<1x!tpu.dma_semaphore, #tpu.memory_space<semaphore_mem>> -> memref<!tpu.dma_semaphore, #tpu.memory_space<semaphore_mem>>
    tpu.enqueue_dma source(%arg32 : memref<32x1024xbf16, #tpu.memory_space<any>>) target(%arg35 : memref<32x1024xbf16, #tpu.memory_space<vmem>>) target_semaphore(%1 : memref<!tpu.dma_semaphore, #tpu.memory_space<semaphore_mem>>)
    %c1_i32 = arith.constant 1 : i32
    %2 = tpu.memref_slice %arg37[%c1_i32] : memref<2x!tpu.dma_semaphore, #tpu.memory_space<semaphore_mem>> -> memref<1x!tpu.dma_semaphore, #tpu.memory_space<semaphore_mem>>
    %3 = tpu.memref_squeeze %2 : memref<1x!tpu.dma_semaphore, #tpu.memory_space<semaphore_mem>> -> memref<!tpu.dma_semaphore, #tpu.memory_space<semaphore_mem>>
    tpu.enqueue_dma source(%arg33 : memref<2x128x512xbf16, #tpu.memory_space<any>>) target(%arg36 : memref<2x128x512xbf16, #tpu.memory_space<vmem>>) target_semaphore(%3 : memref<!tpu.dma_semaphore, #tpu.memory_space<semaphore_mem>>)
    %c0 = arith.constant 0 : index
    %c0_0 = arith.constant 0 : index
    %4 = vector.load %arg3[%c0, %c0_0] : memref<32x4xf32, #tpu.memory_space<vmem>>, vector<32x4xf32>
    %c0_1 = arith.constant 0 : index
    %c0_2 = arith.constant 0 : index
    %5 = vector.load %arg4[%c0_1, %c0_2] : memref<4x32xf32, #tpu.memory_space<vmem>>, vector<4x32xf32>
    %c0_3 = arith.constant 0 : index
    %c0_4 = arith.constant 0 : index
    %6 = vector.load %arg1[%c0_3, %c0_4] : memref<16x32xf32, #tpu.memory_space<vmem>>, vector<16x32xf32>
    %7 = arith.truncf %6 : vector<16x32xf32> to vector<16x32xbf16>
    %c0_5 = arith.constant 0 : index
    %c0_6 = arith.constant 0 : index
    %8 = vector.load %arg5[%c0_5, %c0_6] : memref<32x96xbf16, #tpu.memory_space<vmem>>, vector<32x96xbf16>
    %cst = arith.constant dense<0.000000e+00> : vector<16x96xf32>
    %9 = tpu.matmul %7, %8, %cst {dimension_numbers = #tpu.dot_dimension_numbers<[1], [0], [0], [1], [0, 0, 1, 1], [], []>} : vector<16x32xbf16>, vector<32x96xbf16>, vector<16x96xf32> -> vector<16x96xf32>
    %c0_7 = arith.constant 0 : index
    %c0_8 = arith.constant 0 : index
    %10 = vector.load %arg6[%c0_7, %c0_8] : memref<1x96xf32, #tpu.memory_space<vmem>>, vector<1x96xf32>
    %11 = vector.broadcast %10 : vector<1x96xf32> to vector<16x96xf32>
    %12 = arith.addf %9, %11 : vector<16x96xf32>
    %13 = vector.extract_strided_slice %12 {offsets = [0, 0], sizes = [16, 32], strides = [1, 1]} : vector<16x96xf32> to vector<16x32xf32>
    %14 = vector.extract_strided_slice %12 {offsets = [0, 32], sizes = [16, 32], strides = [1, 1]} : vector<16x96xf32> to vector<16x32xf32>
    %15 = vector.extract_strided_slice %12 {offsets = [0, 64], sizes = [16, 32], strides = [1, 1]} : vector<16x96xf32> to vector<16x32xf32>
    %16 = vector.extract_strided_slice %13 {offsets = [0, 0], sizes = [8, 32], strides = [1, 1]} : vector<16x32xf32> to vector<8x32xf32>
    %17 = vector.extract_strided_slice %13 {offsets = [8, 0], sizes = [8, 32], strides = [1, 1]} : vector<16x32xf32> to vector<8x32xf32>
    %18 = vector.extract_strided_slice %14 {offsets = [0, 0], sizes = [8, 32], strides = [1, 1]} : vector<16x32xf32> to vector<8x32xf32>
    %19 = vector.extract_strided_slice %14 {offsets = [8, 0], sizes = [8, 32], strides = [1, 1]} : vector<16x32xf32> to vector<8x32xf32>
    %20 = vector.extract_strided_slice %15 {offsets = [0, 0], sizes = [8, 32], strides = [1, 1]} : vector<16x32xf32> to vector<8x32xf32>
    %21 = vector.extract_strided_slice %15 {offsets = [8, 0], sizes = [8, 32], strides = [1, 1]} : vector<16x32xf32> to vector<8x32xf32>
    %22 = arith.mulf %16, %18 : vector<8x32xf32>
    %23 = arith.mulf %16, %19 : vector<8x32xf32>
    %24 = arith.mulf %17, %18 : vector<8x32xf32>
    %25 = arith.mulf %17, %19 : vector<8x32xf32>
    %26 = tpu.concatenate %22, %23, %24, %25 in 0 : vector<8x32xf32>, vector<8x32xf32>, vector<8x32xf32>, vector<8x32xf32> -> vector<32x32xf32>
    %cst_9 = arith.constant dense<0.000000e+00> : vector<32x4xf32>
    %27 = tpu.matmul %26, %4, %cst_9 {dimension_numbers = #tpu.dot_dimension_numbers<[1], [0], [0], [1], [0, 0, 1, 1], [], []>} : vector<32x32xf32>, vector<32x4xf32>, vector<32x4xf32> -> vector<32x4xf32>
    %cst_10 = arith.constant 0.353553385 : f32
    %28 = vector.broadcast %cst_10 : f32 to vector<32x4xf32>
    %29 = arith.mulf %27, %28 : vector<32x4xf32>
    %30 = vector.extract_strided_slice %29 {offsets = [0, 0], sizes = [8, 4], strides = [1, 1]} : vector<32x4xf32> to vector<8x4xf32>
    %31 = vector.extract_strided_slice %29 {offsets = [8, 0], sizes = [8, 4], strides = [1, 1]} : vector<32x4xf32> to vector<8x4xf32>
    %32 = vector.extract_strided_slice %29 {offsets = [16, 0], sizes = [8, 4], strides = [1, 1]} : vector<32x4xf32> to vector<8x4xf32>
    %33 = vector.extract_strided_slice %29 {offsets = [24, 0], sizes = [8, 4], strides = [1, 1]} : vector<32x4xf32> to vector<8x4xf32>
    %34 = arith.maximumf %30, %31 : vector<8x4xf32>
    %35 = arith.subf %30, %34 : vector<8x4xf32>
    %36 = math.exp %35 : vector<8x4xf32>
    %37 = arith.subf %31, %34 : vector<8x4xf32>
    %38 = math.exp %37 : vector<8x4xf32>
    %39 = arith.addf %36, %38 : vector<8x4xf32>
    %40 = tpu.reciprocal %39 {approx = true} : vector<8x4xf32> -> vector<8x4xf32>
    %41 = arith.mulf %36, %40 : vector<8x4xf32>
    %42 = arith.mulf %38, %40 : vector<8x4xf32>
    %43 = arith.maximumf %32, %33 : vector<8x4xf32>
    %44 = arith.subf %32, %43 : vector<8x4xf32>
    %45 = math.exp %44 : vector<8x4xf32>
    %46 = arith.subf %33, %43 : vector<8x4xf32>
    %47 = math.exp %46 : vector<8x4xf32>
    %48 = arith.addf %45, %47 : vector<8x4xf32>
    %49 = tpu.reciprocal %48 {approx = true} : vector<8x4xf32> -> vector<8x4xf32>
    %50 = arith.mulf %45, %49 : vector<8x4xf32>
    %51 = arith.mulf %47, %49 : vector<8x4xf32>
    %52 = tpu.concatenate %41, %42, %50, %51 in 0 : vector<8x4xf32>, vector<8x4xf32>, vector<8x4xf32>, vector<8x4xf32> -> vector<32x4xf32>
    %cst_11 = arith.constant dense<0.000000e+00> : vector<32x32xf32>
    %53 = tpu.matmul %52, %5, %cst_11 {dimension_numbers = #tpu.dot_dimension_numbers<[1], [0], [0], [1], [0, 0, 1, 1], [], []>} : vector<32x4xf32>, vector<4x32xf32>, vector<32x32xf32> -> vector<32x32xf32>
    %54 = vector.extract_strided_slice %53 {offsets = [0, 0], sizes = [8, 32], strides = [1, 1]} : vector<32x32xf32> to vector<8x32xf32>
    %55 = arith.mulf %54, %20 : vector<8x32xf32>
    %56 = vector.extract_strided_slice %53 {offsets = [8, 0], sizes = [8, 32], strides = [1, 1]} : vector<32x32xf32> to vector<8x32xf32>
    %57 = arith.mulf %56, %21 : vector<8x32xf32>
    %58 = arith.addf %55, %57 : vector<8x32xf32>
    %59 = vector.extract_strided_slice %53 {offsets = [16, 0], sizes = [8, 32], strides = [1, 1]} : vector<32x32xf32> to vector<8x32xf32>
    %60 = arith.mulf %59, %20 : vector<8x32xf32>
    %61 = vector.extract_strided_slice %53 {offsets = [24, 0], sizes = [8, 32], strides = [1, 1]} : vector<32x32xf32> to vector<8x32xf32>
    %62 = arith.mulf %61, %21 : vector<8x32xf32>
    %63 = arith.addf %60, %62 : vector<8x32xf32>
    %64 = tpu.concatenate %58, %63 in 0 : vector<8x32xf32>, vector<8x32xf32> -> vector<16x32xf32>
    %65 = arith.truncf %64 : vector<16x32xf32> to vector<16x32xbf16>
    %c0_12 = arith.constant 0 : index
    %c0_13 = arith.constant 0 : index
    %66 = vector.load %arg7[%c0_12, %c0_13] : memref<32x32xbf16, #tpu.memory_space<vmem>>, vector<32x32xbf16>
    %cst_14 = arith.constant dense<0.000000e+00> : vector<16x32xf32>
    %67 = tpu.matmul %65, %66, %cst_14 {dimension_numbers = #tpu.dot_dimension_numbers<[1], [0], [0], [1], [0, 0, 1, 1], [], []>} : vector<16x32xbf16>, vector<32x32xbf16>, vector<16x32xf32> -> vector<16x32xf32>
    %c0_15 = arith.constant 0 : index
    %c0_16 = arith.constant 0 : index
    %68 = vector.load %arg8[%c0_15, %c0_16] : memref<1x32xf32, #tpu.memory_space<vmem>>, vector<1x32xf32>
    %69 = vector.broadcast %68 : vector<1x32xf32> to vector<16x32xf32>
    %70 = arith.addf %67, %69 : vector<16x32xf32>
    %71 = arith.addf %6, %70 : vector<16x32xf32>
    %c0_17 = arith.constant 0 : index
    %c0_18 = arith.constant 0 : index
    %72 = vector.load %arg9[%c0_17, %c0_18] : memref<1x32xf32, #tpu.memory_space<vmem>>, vector<1x32xf32>
    %c0_19 = arith.constant 0 : index
    %c0_20 = arith.constant 0 : index
    %73 = vector.load %arg10[%c0_19, %c0_20] : memref<1x32xf32, #tpu.memory_space<vmem>>, vector<1x32xf32>
    %cst_21 = arith.constant dense<0.000000e+00> : vector<16xf32>
    %74 = vector.multi_reduction <add>, %71, %cst_21 [1] : vector<16x32xf32> to vector<16xf32>
    %75 = vector.shape_cast %74 : vector<16xf32> to vector<16x1xf32>
    %cst_22 = arith.constant 3.200000e+01 : f32
    %76 = vector.broadcast %cst_22 : f32 to vector<16x1xf32>
    %77 = arith.divf %75, %76 : vector<16x1xf32>
    %78 = vector.broadcast %77 : vector<16x1xf32> to vector<16x32xf32>
    %79 = arith.subf %71, %78 : vector<16x32xf32>
    %80 = arith.mulf %79, %79 : vector<16x32xf32>
    %cst_23 = arith.constant dense<0.000000e+00> : vector<16xf32>
    %81 = vector.multi_reduction <add>, %80, %cst_23 [1] : vector<16x32xf32> to vector<16xf32>
    %82 = vector.shape_cast %81 : vector<16xf32> to vector<16x1xf32>
    %cst_24 = arith.constant 3.200000e+01 : f32
    %83 = vector.broadcast %cst_24 : f32 to vector<16x1xf32>
    %84 = arith.divf %82, %83 : vector<16x1xf32>
    %85 = vector.broadcast %77 : vector<16x1xf32> to vector<16x32xf32>
    %86 = arith.subf %71, %85 : vector<16x32xf32>
    %cst_25 = arith.constant 9.99999974E-6 : f32
    %87 = vector.broadcast %cst_25 : f32 to vector<16x1xf32>
    %88 = arith.addf %84, %87 : vector<16x1xf32>
    %89 = math.rsqrt %88 : vector<16x1xf32>
    %90 = vector.broadcast %89 : vector<16x1xf32> to vector<16x32xf32>
    %91 = arith.mulf %86, %90 : vector<16x32xf32>
    %92 = vector.broadcast %72 : vector<1x32xf32> to vector<16x32xf32>
    %93 = arith.mulf %91, %92 : vector<16x32xf32>
    %94 = vector.broadcast %73 : vector<1x32xf32> to vector<16x32xf32>
    %95 = arith.addf %93, %94 : vector<16x32xf32>
    %96 = arith.truncf %95 : vector<16x32xf32> to vector<16x32xbf16>
    %c0_26 = arith.constant 0 : index
    %c0_27 = arith.constant 0 : index
    %97 = vector.load %arg11[%c0_26, %c0_27] : memref<32x1024xbf16, #tpu.memory_space<vmem>>, vector<32x1024xbf16>
    %cst_28 = arith.constant dense<0.000000e+00> : vector<16x1024xf32>
    %98 = tpu.matmul %96, %97, %cst_28 {dimension_numbers = #tpu.dot_dimension_numbers<[1], [0], [0], [1], [0, 0, 1, 1], [], []>} : vector<16x32xbf16>, vector<32x1024xbf16>, vector<16x1024xf32> -> vector<16x1024xf32>
    %c0_29 = arith.constant 0 : index
    %c0_30 = arith.constant 0 : index
    %99 = vector.load %arg12[%c0_29, %c0_30] : memref<1x1024xf32, #tpu.memory_space<vmem>>, vector<1x1024xf32>
    %100 = vector.broadcast %99 : vector<1x1024xf32> to vector<16x1024xf32>
    %101 = arith.addf %98, %100 : vector<16x1024xf32>
    %cst_31 = arith.constant 0.000000e+00 : f32
    %102 = vector.broadcast %cst_31 : f32 to vector<16x1024xf32>
    %103 = arith.maximumf %101, %102 : vector<16x1024xf32>
    %104 = arith.truncf %103 : vector<16x1024xf32> to vector<16x1024xbf16>
    %c0_32 = arith.constant 0 : index
    %c0_33 = arith.constant 0 : index
    %105 = vector.load %arg13[%c0_32, %c0_33] : memref<1024x32xbf16, #tpu.memory_space<vmem>>, vector<1024x32xbf16>
    %cst_34 = arith.constant dense<0.000000e+00> : vector<16x32xf32>
    %106 = tpu.matmul %104, %105, %cst_34 {dimension_numbers = #tpu.dot_dimension_numbers<[1], [0], [0], [1], [0, 0, 1, 1], [], []>} : vector<16x1024xbf16>, vector<1024x32xbf16>, vector<16x32xf32> -> vector<16x32xf32>
    %c0_35 = arith.constant 0 : index
    %c0_36 = arith.constant 0 : index
    %107 = vector.load %arg14[%c0_35, %c0_36] : memref<1x32xf32, #tpu.memory_space<vmem>>, vector<1x32xf32>
    %108 = vector.broadcast %107 : vector<1x32xf32> to vector<16x32xf32>
    %109 = arith.addf %106, %108 : vector<16x32xf32>
    %110 = arith.addf %95, %109 : vector<16x32xf32>
    %c0_37 = arith.constant 0 : index
    %c0_38 = arith.constant 0 : index
    %111 = vector.load %arg15[%c0_37, %c0_38] : memref<1x32xf32, #tpu.memory_space<vmem>>, vector<1x32xf32>
    %c0_39 = arith.constant 0 : index
    %c0_40 = arith.constant 0 : index
    %112 = vector.load %arg16[%c0_39, %c0_40] : memref<1x32xf32, #tpu.memory_space<vmem>>, vector<1x32xf32>
    %cst_41 = arith.constant dense<0.000000e+00> : vector<16xf32>
    %113 = vector.multi_reduction <add>, %110, %cst_41 [1] : vector<16x32xf32> to vector<16xf32>
    %114 = vector.shape_cast %113 : vector<16xf32> to vector<16x1xf32>
    %cst_42 = arith.constant 3.200000e+01 : f32
    %115 = vector.broadcast %cst_42 : f32 to vector<16x1xf32>
    %116 = arith.divf %114, %115 : vector<16x1xf32>
    %117 = vector.broadcast %116 : vector<16x1xf32> to vector<16x32xf32>
    %118 = arith.subf %110, %117 : vector<16x32xf32>
    %119 = arith.mulf %118, %118 : vector<16x32xf32>
    %cst_43 = arith.constant dense<0.000000e+00> : vector<16xf32>
    %120 = vector.multi_reduction <add>, %119, %cst_43 [1] : vector<16x32xf32> to vector<16xf32>
    %121 = vector.shape_cast %120 : vector<16xf32> to vector<16x1xf32>
    %cst_44 = arith.constant 3.200000e+01 : f32
    %122 = vector.broadcast %cst_44 : f32 to vector<16x1xf32>
    %123 = arith.divf %121, %122 : vector<16x1xf32>
    %124 = vector.broadcast %116 : vector<16x1xf32> to vector<16x32xf32>
    %125 = arith.subf %110, %124 : vector<16x32xf32>
    %cst_45 = arith.constant 9.99999974E-6 : f32
    %126 = vector.broadcast %cst_45 : f32 to vector<16x1xf32>
    %127 = arith.addf %123, %126 : vector<16x1xf32>
    %128 = math.rsqrt %127 : vector<16x1xf32>
    %129 = vector.broadcast %128 : vector<16x1xf32> to vector<16x32xf32>
    %130 = arith.mulf %125, %129 : vector<16x32xf32>
    %131 = vector.broadcast %111 : vector<1x32xf32> to vector<16x32xf32>
    %132 = arith.mulf %130, %131 : vector<16x32xf32>
    %133 = vector.broadcast %112 : vector<1x32xf32> to vector<16x32xf32>
    %134 = arith.addf %132, %133 : vector<16x32xf32>
    %135 = arith.truncf %134 : vector<16x32xf32> to vector<16x32xbf16>
    %c0_46 = arith.constant 0 : index
    %c0_47 = arith.constant 0 : index
    %136 = vector.load %arg17[%c0_46, %c0_47] : memref<32x96xbf16, #tpu.memory_space<vmem>>, vector<32x96xbf16>
    %cst_48 = arith.constant dense<0.000000e+00> : vector<16x96xf32>
    %137 = tpu.matmul %135, %136, %cst_48 {dimension_numbers = #tpu.dot_dimension_numbers<[1], [0], [0], [1], [0, 0, 1, 1], [], []>} : vector<16x32xbf16>, vector<32x96xbf16>, vector<16x96xf32> -> vector<16x96xf32>
    %c0_49 = arith.constant 0 : index
    %c0_50 = arith.constant 0 : index
    %138 = vector.load %arg18[%c0_49, %c0_50] : memref<1x96xf32, #tpu.memory_space<vmem>>, vector<1x96xf32>
    %139 = vector.broadcast %138 : vector<1x96xf32> to vector<16x96xf32>
    %140 = arith.addf %137, %139 : vector<16x96xf32>
    %141 = vector.extract_strided_slice %140 {offsets = [0, 0], sizes = [16, 32], strides = [1, 1]} : vector<16x96xf32> to vector<16x32xf32>
    %142 = vector.extract_strided_slice %140 {offsets = [0, 32], sizes = [16, 32], strides = [1, 1]} : vector<16x96xf32> to vector<16x32xf32>
    %143 = vector.extract_strided_slice %140 {offsets = [0, 64], sizes = [16, 32], strides = [1, 1]} : vector<16x96xf32> to vector<16x32xf32>
    %144 = vector.extract_strided_slice %141 {offsets = [0, 0], sizes = [8, 32], strides = [1, 1]} : vector<16x32xf32> to vector<8x32xf32>
    %145 = vector.extract_strided_slice %141 {offsets = [8, 0], sizes = [8, 32], strides = [1, 1]} : vector<16x32xf32> to vector<8x32xf32>
    %146 = vector.extract_strided_slice %142 {offsets = [0, 0], sizes = [8, 32], strides = [1, 1]} : vector<16x32xf32> to vector<8x32xf32>
    %147 = vector.extract_strided_slice %142 {offsets = [8, 0], sizes = [8, 32], strides = [1, 1]} : vector<16x32xf32> to vector<8x32xf32>
    %148 = vector.extract_strided_slice %143 {offsets = [0, 0], sizes = [8, 32], strides = [1, 1]} : vector<16x32xf32> to vector<8x32xf32>
    %149 = vector.extract_strided_slice %143 {offsets = [8, 0], sizes = [8, 32], strides = [1, 1]} : vector<16x32xf32> to vector<8x32xf32>
    %150 = arith.mulf %144, %146 : vector<8x32xf32>
    %151 = arith.mulf %144, %147 : vector<8x32xf32>
    %152 = arith.mulf %145, %146 : vector<8x32xf32>
    %153 = arith.mulf %145, %147 : vector<8x32xf32>
    %154 = tpu.concatenate %150, %151, %152, %153 in 0 : vector<8x32xf32>, vector<8x32xf32>, vector<8x32xf32>, vector<8x32xf32> -> vector<32x32xf32>
    %cst_51 = arith.constant dense<0.000000e+00> : vector<32x4xf32>
    %155 = tpu.matmul %154, %4, %cst_51 {dimension_numbers = #tpu.dot_dimension_numbers<[1], [0], [0], [1], [0, 0, 1, 1], [], []>} : vector<32x32xf32>, vector<32x4xf32>, vector<32x4xf32> -> vector<32x4xf32>
    %cst_52 = arith.constant 0.353553385 : f32
    %156 = vector.broadcast %cst_52 : f32 to vector<32x4xf32>
    %157 = arith.mulf %155, %156 : vector<32x4xf32>
    %158 = vector.extract_strided_slice %157 {offsets = [0, 0], sizes = [8, 4], strides = [1, 1]} : vector<32x4xf32> to vector<8x4xf32>
    %159 = vector.extract_strided_slice %157 {offsets = [8, 0], sizes = [8, 4], strides = [1, 1]} : vector<32x4xf32> to vector<8x4xf32>
    %160 = vector.extract_strided_slice %157 {offsets = [16, 0], sizes = [8, 4], strides = [1, 1]} : vector<32x4xf32> to vector<8x4xf32>
    %161 = vector.extract_strided_slice %157 {offsets = [24, 0], sizes = [8, 4], strides = [1, 1]} : vector<32x4xf32> to vector<8x4xf32>
    %162 = arith.maximumf %158, %159 : vector<8x4xf32>
    %163 = arith.subf %158, %162 : vector<8x4xf32>
    %164 = math.exp %163 : vector<8x4xf32>
    %165 = arith.subf %159, %162 : vector<8x4xf32>
    %166 = math.exp %165 : vector<8x4xf32>
    %167 = arith.addf %164, %166 : vector<8x4xf32>
    %168 = tpu.reciprocal %167 {approx = true} : vector<8x4xf32> -> vector<8x4xf32>
    %169 = arith.mulf %164, %168 : vector<8x4xf32>
    %170 = arith.mulf %166, %168 : vector<8x4xf32>
    %171 = arith.maximumf %160, %161 : vector<8x4xf32>
    %172 = arith.subf %160, %171 : vector<8x4xf32>
    %173 = math.exp %172 : vector<8x4xf32>
    %174 = arith.subf %161, %171 : vector<8x4xf32>
    %175 = math.exp %174 : vector<8x4xf32>
    %176 = arith.addf %173, %175 : vector<8x4xf32>
    %177 = tpu.reciprocal %176 {approx = true} : vector<8x4xf32> -> vector<8x4xf32>
    %178 = arith.mulf %173, %177 : vector<8x4xf32>
    %179 = arith.mulf %175, %177 : vector<8x4xf32>
    %180 = tpu.concatenate %169, %170, %178, %179 in 0 : vector<8x4xf32>, vector<8x4xf32>, vector<8x4xf32>, vector<8x4xf32> -> vector<32x4xf32>
    %cst_53 = arith.constant dense<0.000000e+00> : vector<32x32xf32>
    %181 = tpu.matmul %180, %5, %cst_53 {dimension_numbers = #tpu.dot_dimension_numbers<[1], [0], [0], [1], [0, 0, 1, 1], [], []>} : vector<32x4xf32>, vector<4x32xf32>, vector<32x32xf32> -> vector<32x32xf32>
    %182 = vector.extract_strided_slice %181 {offsets = [0, 0], sizes = [8, 32], strides = [1, 1]} : vector<32x32xf32> to vector<8x32xf32>
    %183 = arith.mulf %182, %148 : vector<8x32xf32>
    %184 = vector.extract_strided_slice %181 {offsets = [8, 0], sizes = [8, 32], strides = [1, 1]} : vector<32x32xf32> to vector<8x32xf32>
    %185 = arith.mulf %184, %149 : vector<8x32xf32>
    %186 = arith.addf %183, %185 : vector<8x32xf32>
    %187 = vector.extract_strided_slice %181 {offsets = [16, 0], sizes = [8, 32], strides = [1, 1]} : vector<32x32xf32> to vector<8x32xf32>
    %188 = arith.mulf %187, %148 : vector<8x32xf32>
    %189 = vector.extract_strided_slice %181 {offsets = [24, 0], sizes = [8, 32], strides = [1, 1]} : vector<32x32xf32> to vector<8x32xf32>
    %190 = arith.mulf %189, %149 : vector<8x32xf32>
    %191 = arith.addf %188, %190 : vector<8x32xf32>
    %192 = tpu.concatenate %186, %191 in 0 : vector<8x32xf32>, vector<8x32xf32> -> vector<16x32xf32>
    %193 = arith.truncf %192 : vector<16x32xf32> to vector<16x32xbf16>
    %c0_54 = arith.constant 0 : index
    %c0_55 = arith.constant 0 : index
    %194 = vector.load %arg19[%c0_54, %c0_55] : memref<32x32xbf16, #tpu.memory_space<vmem>>, vector<32x32xbf16>
    %cst_56 = arith.constant dense<0.000000e+00> : vector<16x32xf32>
    %195 = tpu.matmul %193, %194, %cst_56 {dimension_numbers = #tpu.dot_dimension_numbers<[1], [0], [0], [1], [0, 0, 1, 1], [], []>} : vector<16x32xbf16>, vector<32x32xbf16>, vector<16x32xf32> -> vector<16x32xf32>
    %c0_57 = arith.constant 0 : index
    %c0_58 = arith.constant 0 : index
    %196 = vector.load %arg20[%c0_57, %c0_58] : memref<1x32xf32, #tpu.memory_space<vmem>>, vector<1x32xf32>
    %197 = vector.broadcast %196 : vector<1x32xf32> to vector<16x32xf32>
    %198 = arith.addf %195, %197 : vector<16x32xf32>
    %199 = arith.addf %134, %198 : vector<16x32xf32>
    %c0_59 = arith.constant 0 : index
    %c0_60 = arith.constant 0 : index
    %200 = vector.load %arg21[%c0_59, %c0_60] : memref<1x32xf32, #tpu.memory_space<vmem>>, vector<1x32xf32>
    %c0_61 = arith.constant 0 : index
    %c0_62 = arith.constant 0 : index
    %201 = vector.load %arg22[%c0_61, %c0_62] : memref<1x32xf32, #tpu.memory_space<vmem>>, vector<1x32xf32>
    %cst_63 = arith.constant dense<0.000000e+00> : vector<16xf32>
    %202 = vector.multi_reduction <add>, %199, %cst_63 [1] : vector<16x32xf32> to vector<16xf32>
    %203 = vector.shape_cast %202 : vector<16xf32> to vector<16x1xf32>
    %cst_64 = arith.constant 3.200000e+01 : f32
    %204 = vector.broadcast %cst_64 : f32 to vector<16x1xf32>
    %205 = arith.divf %203, %204 : vector<16x1xf32>
    %206 = vector.broadcast %205 : vector<16x1xf32> to vector<16x32xf32>
    %207 = arith.subf %199, %206 : vector<16x32xf32>
    %208 = arith.mulf %207, %207 : vector<16x32xf32>
    %cst_65 = arith.constant dense<0.000000e+00> : vector<16xf32>
    %209 = vector.multi_reduction <add>, %208, %cst_65 [1] : vector<16x32xf32> to vector<16xf32>
    %210 = vector.shape_cast %209 : vector<16xf32> to vector<16x1xf32>
    %cst_66 = arith.constant 3.200000e+01 : f32
    %211 = vector.broadcast %cst_66 : f32 to vector<16x1xf32>
    %212 = arith.divf %210, %211 : vector<16x1xf32>
    %213 = vector.broadcast %205 : vector<16x1xf32> to vector<16x32xf32>
    %214 = arith.subf %199, %213 : vector<16x32xf32>
    %cst_67 = arith.constant 9.99999974E-6 : f32
    %215 = vector.broadcast %cst_67 : f32 to vector<16x1xf32>
    %216 = arith.addf %212, %215 : vector<16x1xf32>
    %217 = math.rsqrt %216 : vector<16x1xf32>
    %218 = vector.broadcast %217 : vector<16x1xf32> to vector<16x32xf32>
    %219 = arith.mulf %214, %218 : vector<16x32xf32>
    %220 = vector.broadcast %200 : vector<1x32xf32> to vector<16x32xf32>
    %221 = arith.mulf %219, %220 : vector<16x32xf32>
    %222 = vector.broadcast %201 : vector<1x32xf32> to vector<16x32xf32>
    %223 = arith.addf %221, %222 : vector<16x32xf32>
    %224 = arith.truncf %223 : vector<16x32xf32> to vector<16x32xbf16>
    %c0_68 = arith.constant 0 : index
    %c0_69 = arith.constant 0 : index
    %225 = vector.load %arg23[%c0_68, %c0_69] : memref<32x1024xbf16, #tpu.memory_space<vmem>>, vector<32x1024xbf16>
    %cst_70 = arith.constant dense<0.000000e+00> : vector<16x1024xf32>
    %226 = tpu.matmul %224, %225, %cst_70 {dimension_numbers = #tpu.dot_dimension_numbers<[1], [0], [0], [1], [0, 0, 1, 1], [], []>} : vector<16x32xbf16>, vector<32x1024xbf16>, vector<16x1024xf32> -> vector<16x1024xf32>
    %c0_71 = arith.constant 0 : index
    %c0_72 = arith.constant 0 : index
    %227 = vector.load %arg24[%c0_71, %c0_72] : memref<1x1024xf32, #tpu.memory_space<vmem>>, vector<1x1024xf32>
    %228 = vector.broadcast %227 : vector<1x1024xf32> to vector<16x1024xf32>
    %229 = arith.addf %226, %228 : vector<16x1024xf32>
    %cst_73 = arith.constant 0.000000e+00 : f32
    %230 = vector.broadcast %cst_73 : f32 to vector<16x1024xf32>
    %231 = arith.maximumf %229, %230 : vector<16x1024xf32>
    %232 = arith.truncf %231 : vector<16x1024xf32> to vector<16x1024xbf16>
    %c0_74 = arith.constant 0 : index
    %c0_75 = arith.constant 0 : index
    %233 = vector.load %arg25[%c0_74, %c0_75] : memref<1024x32xbf16, #tpu.memory_space<vmem>>, vector<1024x32xbf16>
    %cst_76 = arith.constant dense<0.000000e+00> : vector<16x32xf32>
    %234 = tpu.matmul %232, %233, %cst_76 {dimension_numbers = #tpu.dot_dimension_numbers<[1], [0], [0], [1], [0, 0, 1, 1], [], []>} : vector<16x1024xbf16>, vector<1024x32xbf16>, vector<16x32xf32> -> vector<16x32xf32>
    %c0_77 = arith.constant 0 : index
    %c0_78 = arith.constant 0 : index
    %235 = vector.load %arg26[%c0_77, %c0_78] : memref<1x32xf32, #tpu.memory_space<vmem>>, vector<1x32xf32>
    %236 = vector.broadcast %235 : vector<1x32xf32> to vector<16x32xf32>
    %237 = arith.addf %234, %236 : vector<16x32xf32>
    %238 = arith.addf %223, %237 : vector<16x32xf32>
    %c0_79 = arith.constant 0 : index
    %c0_80 = arith.constant 0 : index
    %239 = vector.load %arg27[%c0_79, %c0_80] : memref<1x32xf32, #tpu.memory_space<vmem>>, vector<1x32xf32>
    %c0_81 = arith.constant 0 : index
    %c0_82 = arith.constant 0 : index
    %240 = vector.load %arg28[%c0_81, %c0_82] : memref<1x32xf32, #tpu.memory_space<vmem>>, vector<1x32xf32>
    %cst_83 = arith.constant dense<0.000000e+00> : vector<16xf32>
    %241 = vector.multi_reduction <add>, %238, %cst_83 [1] : vector<16x32xf32> to vector<16xf32>
    %242 = vector.shape_cast %241 : vector<16xf32> to vector<16x1xf32>
    %cst_84 = arith.constant 3.200000e+01 : f32
    %243 = vector.broadcast %cst_84 : f32 to vector<16x1xf32>
    %244 = arith.divf %242, %243 : vector<16x1xf32>
    %245 = vector.broadcast %244 : vector<16x1xf32> to vector<16x32xf32>
    %246 = arith.subf %238, %245 : vector<16x32xf32>
    %247 = arith.mulf %246, %246 : vector<16x32xf32>
    %cst_85 = arith.constant dense<0.000000e+00> : vector<16xf32>
    %248 = vector.multi_reduction <add>, %247, %cst_85 [1] : vector<16x32xf32> to vector<16xf32>
    %249 = vector.shape_cast %248 : vector<16xf32> to vector<16x1xf32>
    %cst_86 = arith.constant 3.200000e+01 : f32
    %250 = vector.broadcast %cst_86 : f32 to vector<16x1xf32>
    %251 = arith.divf %249, %250 : vector<16x1xf32>
    %252 = vector.broadcast %244 : vector<16x1xf32> to vector<16x32xf32>
    %253 = arith.subf %238, %252 : vector<16x32xf32>
    %cst_87 = arith.constant 9.99999974E-6 : f32
    %254 = vector.broadcast %cst_87 : f32 to vector<16x1xf32>
    %255 = arith.addf %251, %254 : vector<16x1xf32>
    %256 = math.rsqrt %255 : vector<16x1xf32>
    %257 = vector.broadcast %256 : vector<16x1xf32> to vector<16x32xf32>
    %258 = arith.mulf %253, %257 : vector<16x32xf32>
    %259 = vector.broadcast %239 : vector<1x32xf32> to vector<16x32xf32>
    %260 = arith.mulf %258, %259 : vector<16x32xf32>
    %261 = vector.broadcast %240 : vector<1x32xf32> to vector<16x32xf32>
    %262 = arith.addf %260, %261 : vector<16x32xf32>
    %c0_i32_88 = arith.constant 0 : i32
    %263 = tpu.memref_slice %arg37[%c0_i32_88] : memref<2x!tpu.dma_semaphore, #tpu.memory_space<semaphore_mem>> -> memref<1x!tpu.dma_semaphore, #tpu.memory_space<semaphore_mem>>
    %264 = tpu.memref_squeeze %263 : memref<1x!tpu.dma_semaphore, #tpu.memory_space<semaphore_mem>> -> memref<!tpu.dma_semaphore, #tpu.memory_space<semaphore_mem>>
    tpu.wait_dma2 semaphore(%264 : memref<!tpu.dma_semaphore, #tpu.memory_space<semaphore_mem>>) src(%arg32 : memref<32x1024xbf16, #tpu.memory_space<any>>) dst(%arg35 : memref<32x1024xbf16, #tpu.memory_space<vmem>>)
    %c1_i32_89 = arith.constant 1 : i32
    %265 = tpu.memref_slice %arg37[%c1_i32_89] : memref<2x!tpu.dma_semaphore, #tpu.memory_space<semaphore_mem>> -> memref<1x!tpu.dma_semaphore, #tpu.memory_space<semaphore_mem>>
    %266 = tpu.memref_squeeze %265 : memref<1x!tpu.dma_semaphore, #tpu.memory_space<semaphore_mem>> -> memref<!tpu.dma_semaphore, #tpu.memory_space<semaphore_mem>>
    tpu.wait_dma2 semaphore(%266 : memref<!tpu.dma_semaphore, #tpu.memory_space<semaphore_mem>>) src(%arg33 : memref<2x128x512xbf16, #tpu.memory_space<any>>) dst(%arg36 : memref<2x128x512xbf16, #tpu.memory_space<vmem>>)
    %c0_90 = arith.constant 0 : index
    %c0_91 = arith.constant 0 : index
    %267 = vector.load %arg35[%c0_90, %c0_91] : memref<32x1024xbf16, #tpu.memory_space<vmem>>, vector<32x1024xbf16>
    %c0_92 = arith.constant 0 : index
    %c0_93 = arith.constant 0 : index
    %c0_94 = arith.constant 0 : index
    %268 = vector.load %arg36[%c0_92, %c0_93, %c0_94] : memref<2x128x512xbf16, #tpu.memory_space<vmem>>, vector<1x128x512xbf16>
    %269 = vector.shape_cast %268 : vector<1x128x512xbf16> to vector<128x512xbf16>
    %c1 = arith.constant 1 : index
    %c0_95 = arith.constant 0 : index
    %c0_96 = arith.constant 0 : index
    %270 = vector.load %arg36[%c1, %c0_95, %c0_96] : memref<2x128x512xbf16, #tpu.memory_space<vmem>>, vector<1x128x512xbf16>
    %271 = vector.shape_cast %270 : vector<1x128x512xbf16> to vector<128x512xbf16>
    %272 = arith.truncf %262 : vector<16x32xf32> to vector<16x32xbf16>
    %cst_97 = arith.constant dense<0.000000e+00> : vector<16x1024xf32>
    %273 = tpu.matmul %272, %267, %cst_97 {dimension_numbers = #tpu.dot_dimension_numbers<[1], [0], [0], [1], [0, 0, 1, 1], [], []>} : vector<16x32xbf16>, vector<32x1024xbf16>, vector<16x1024xf32> -> vector<16x1024xf32>
    %c0_98 = arith.constant 0 : index
    %c0_99 = arith.constant 0 : index
    %274 = vector.load %arg2[%c0_98, %c0_99] : memref<64x16xf32, #tpu.memory_space<vmem>>, vector<64x16xf32>
    %cst_100 = arith.constant dense<0.000000e+00> : vector<64x1024xf32>
    %275 = tpu.matmul %274, %273, %cst_100 {dimension_numbers = #tpu.dot_dimension_numbers<[1], [0], [0], [1], [0, 0, 1, 1], [], []>} : vector<64x16xf32>, vector<16x1024xf32>, vector<64x1024xf32> -> vector<64x1024xf32>
    %c0_101 = arith.constant 0 : index
    %c0_102 = arith.constant 0 : index
    %276 = vector.load %arg29[%c0_101, %c0_102] : memref<1x1024xf32, #tpu.memory_space<vmem>>, vector<1x1024xf32>
    %277 = vector.broadcast %276 : vector<1x1024xf32> to vector<64x1024xf32>
    %278 = arith.addf %275, %277 : vector<64x1024xf32>
    %cst_103 = arith.constant 0.000000e+00 : f32
    %279 = vector.broadcast %cst_103 : f32 to vector<8x128xf32>
    %cst_104 = arith.constant 0.000000e+00 : f32
    %280 = vector.broadcast %cst_104 : f32 to vector<8x128xf32>
    %cst_105 = arith.constant 0.000000e+00 : f32
    %281 = vector.broadcast %cst_105 : f32 to vector<8x128xf32>
    %cst_106 = arith.constant 0.000000e+00 : f32
    %282 = vector.broadcast %cst_106 : f32 to vector<8x128xf32>
    %283 = arith.truncf %279 : vector<8x128xf32> to vector<8x128xbf16>
    %cst_107 = arith.constant dense<0.000000e+00> : vector<8x512xf32>
    %284 = tpu.matmul %283, %269, %cst_107 {dimension_numbers = #tpu.dot_dimension_numbers<[1], [0], [0], [1], [0, 0, 1, 1], [], []>} : vector<8x128xbf16>, vector<128x512xbf16>, vector<8x512xf32> -> vector<8x512xf32>
    %285 = arith.truncf %281 : vector<8x128xf32> to vector<8x128xbf16>
    %cst_108 = arith.constant dense<0.000000e+00> : vector<8x512xf32>
    %286 = tpu.matmul %285, %271, %cst_108 {dimension_numbers = #tpu.dot_dimension_numbers<[1], [0], [0], [1], [0, 0, 1, 1], [], []>} : vector<8x128xbf16>, vector<128x512xbf16>, vector<8x512xf32> -> vector<8x512xf32>
    %287 = vector.extract_strided_slice %278 {offsets = [0, 0], sizes = [8, 512], strides = [1, 1]} : vector<64x1024xf32> to vector<8x512xf32>
    %288 = arith.addf %287, %284 : vector<8x512xf32>
    %289 = vector.extract_strided_slice %278 {offsets = [56, 512], sizes = [8, 512], strides = [1, 1]} : vector<64x1024xf32> to vector<8x512xf32>
    %290 = arith.addf %289, %286 : vector<8x512xf32>
    %291 = vector.extract_strided_slice %288 {offsets = [0, 0], sizes = [8, 128], strides = [1, 1]} : vector<8x512xf32> to vector<8x128xf32>
    %292 = arith.negf %291 : vector<8x128xf32>
    %293 = math.exp %292 : vector<8x128xf32>
    %cst_109 = arith.constant 1.000000e+00 : f32
    %294 = vector.broadcast %cst_109 : f32 to vector<8x128xf32>
    %295 = arith.addf %294, %293 : vector<8x128xf32>
    %296 = arith.divf %294, %295 : vector<8x128xf32>
    %297 = vector.extract_strided_slice %288 {offsets = [0, 128], sizes = [8, 128], strides = [1, 1]} : vector<8x512xf32> to vector<8x128xf32>
    %298 = arith.negf %297 : vector<8x128xf32>
    %299 = math.exp %298 : vector<8x128xf32>
    %cst_110 = arith.constant 1.000000e+00 : f32
    %300 = vector.broadcast %cst_110 : f32 to vector<8x128xf32>
    %301 = arith.addf %300, %299 : vector<8x128xf32>
    %302 = arith.divf %300, %301 : vector<8x128xf32>
    %303 = vector.extract_strided_slice %288 {offsets = [0, 256], sizes = [8, 128], strides = [1, 1]} : vector<8x512xf32> to vector<8x128xf32>
    %304 = math.tanh %303 : vector<8x128xf32>
    %305 = vector.extract_strided_slice %288 {offsets = [0, 384], sizes = [8, 128], strides = [1, 1]} : vector<8x512xf32> to vector<8x128xf32>
    %306 = arith.negf %305 : vector<8x128xf32>
    %307 = math.exp %306 : vector<8x128xf32>
    %cst_111 = arith.constant 1.000000e+00 : f32
    %308 = vector.broadcast %cst_111 : f32 to vector<8x128xf32>
    %309 = arith.addf %308, %307 : vector<8x128xf32>
    %310 = arith.divf %308, %309 : vector<8x128xf32>
    %311 = arith.mulf %302, %280 : vector<8x128xf32>
    %312 = arith.mulf %296, %304 : vector<8x128xf32>
    %313 = arith.addf %311, %312 : vector<8x128xf32>
    %314 = math.tanh %313 : vector<8x128xf32>
    %315 = arith.mulf %310, %314 : vector<8x128xf32>
    %316 = vector.extract_strided_slice %290 {offsets = [0, 0], sizes = [8, 128], strides = [1, 1]} : vector<8x512xf32> to vector<8x128xf32>
    %317 = arith.negf %316 : vector<8x128xf32>
    %318 = math.exp %317 : vector<8x128xf32>
    %cst_112 = arith.constant 1.000000e+00 : f32
    %319 = vector.broadcast %cst_112 : f32 to vector<8x128xf32>
    %320 = arith.addf %319, %318 : vector<8x128xf32>
    %321 = arith.divf %319, %320 : vector<8x128xf32>
    %322 = vector.extract_strided_slice %290 {offsets = [0, 128], sizes = [8, 128], strides = [1, 1]} : vector<8x512xf32> to vector<8x128xf32>
    %323 = arith.negf %322 : vector<8x128xf32>
    %324 = math.exp %323 : vector<8x128xf32>
    %cst_113 = arith.constant 1.000000e+00 : f32
    %325 = vector.broadcast %cst_113 : f32 to vector<8x128xf32>
    %326 = arith.addf %325, %324 : vector<8x128xf32>
    %327 = arith.divf %325, %326 : vector<8x128xf32>
    %328 = vector.extract_strided_slice %290 {offsets = [0, 256], sizes = [8, 128], strides = [1, 1]} : vector<8x512xf32> to vector<8x128xf32>
    %329 = math.tanh %328 : vector<8x128xf32>
    %330 = vector.extract_strided_slice %290 {offsets = [0, 384], sizes = [8, 128], strides = [1, 1]} : vector<8x512xf32> to vector<8x128xf32>
    %331 = arith.negf %330 : vector<8x128xf32>
    %332 = math.exp %331 : vector<8x128xf32>
    %cst_114 = arith.constant 1.000000e+00 : f32
    %333 = vector.broadcast %cst_114 : f32 to vector<8x128xf32>
    %334 = arith.addf %333, %332 : vector<8x128xf32>
    %335 = arith.divf %333, %334 : vector<8x128xf32>
    %336 = arith.mulf %327, %282 : vector<8x128xf32>
    %337 = arith.mulf %321, %329 : vector<8x128xf32>
    %338 = arith.addf %336, %337 : vector<8x128xf32>
    %339 = math.tanh %338 : vector<8x128xf32>
    %340 = arith.mulf %335, %339 : vector<8x128xf32>
    %341 = arith.truncf %315 : vector<8x128xf32> to vector<8x128xbf16>
    %cst_115 = arith.constant dense<0.000000e+00> : vector<8x512xf32>
    %342 = tpu.matmul %341, %269, %cst_115 {dimension_numbers = #tpu.dot_dimension_numbers<[1], [0], [0], [1], [0, 0, 1, 1], [], []>} : vector<8x128xbf16>, vector<128x512xbf16>, vector<8x512xf32> -> vector<8x512xf32>
    %343 = arith.truncf %340 : vector<8x128xf32> to vector<8x128xbf16>
    %cst_116 = arith.constant dense<0.000000e+00> : vector<8x512xf32>
    %344 = tpu.matmul %343, %271, %cst_116 {dimension_numbers = #tpu.dot_dimension_numbers<[1], [0], [0], [1], [0, 0, 1, 1], [], []>} : vector<8x128xbf16>, vector<128x512xbf16>, vector<8x512xf32> -> vector<8x512xf32>
    %345 = vector.extract_strided_slice %278 {offsets = [8, 0], sizes = [8, 512], strides = [1, 1]} : vector<64x1024xf32> to vector<8x512xf32>
    %346 = arith.addf %345, %342 : vector<8x512xf32>
    %347 = vector.extract_strided_slice %278 {offsets = [48, 512], sizes = [8, 512], strides = [1, 1]} : vector<64x1024xf32> to vector<8x512xf32>
    %348 = arith.addf %347, %344 : vector<8x512xf32>
    %349 = vector.extract_strided_slice %346 {offsets = [0, 0], sizes = [8, 128], strides = [1, 1]} : vector<8x512xf32> to vector<8x128xf32>
    %350 = arith.negf %349 : vector<8x128xf32>
    %351 = math.exp %350 : vector<8x128xf32>
    %cst_117 = arith.constant 1.000000e+00 : f32
    %352 = vector.broadcast %cst_117 : f32 to vector<8x128xf32>
    %353 = arith.addf %352, %351 : vector<8x128xf32>
    %354 = arith.divf %352, %353 : vector<8x128xf32>
    %355 = vector.extract_strided_slice %346 {offsets = [0, 128], sizes = [8, 128], strides = [1, 1]} : vector<8x512xf32> to vector<8x128xf32>
    %356 = arith.negf %355 : vector<8x128xf32>
    %357 = math.exp %356 : vector<8x128xf32>
    %cst_118 = arith.constant 1.000000e+00 : f32
    %358 = vector.broadcast %cst_118 : f32 to vector<8x128xf32>
    %359 = arith.addf %358, %357 : vector<8x128xf32>
    %360 = arith.divf %358, %359 : vector<8x128xf32>
    %361 = vector.extract_strided_slice %346 {offsets = [0, 256], sizes = [8, 128], strides = [1, 1]} : vector<8x512xf32> to vector<8x128xf32>
    %362 = math.tanh %361 : vector<8x128xf32>
    %363 = vector.extract_strided_slice %346 {offsets = [0, 384], sizes = [8, 128], strides = [1, 1]} : vector<8x512xf32> to vector<8x128xf32>
    %364 = arith.negf %363 : vector<8x128xf32>
    %365 = math.exp %364 : vector<8x128xf32>
    %cst_119 = arith.constant 1.000000e+00 : f32
    %366 = vector.broadcast %cst_119 : f32 to vector<8x128xf32>
    %367 = arith.addf %366, %365 : vector<8x128xf32>
    %368 = arith.divf %366, %367 : vector<8x128xf32>
    %369 = arith.mulf %360, %313 : vector<8x128xf32>
    %370 = arith.mulf %354, %362 : vector<8x128xf32>
    %371 = arith.addf %369, %370 : vector<8x128xf32>
    %372 = math.tanh %371 : vector<8x128xf32>
    %373 = arith.mulf %368, %372 : vector<8x128xf32>
    %374 = vector.extract_strided_slice %348 {offsets = [0, 0], sizes = [8, 128], strides = [1, 1]} : vector<8x512xf32> to vector<8x128xf32>
    %375 = arith.negf %374 : vector<8x128xf32>
    %376 = math.exp %375 : vector<8x128xf32>
    %cst_120 = arith.constant 1.000000e+00 : f32
    %377 = vector.broadcast %cst_120 : f32 to vector<8x128xf32>
    %378 = arith.addf %377, %376 : vector<8x128xf32>
    %379 = arith.divf %377, %378 : vector<8x128xf32>
    %380 = vector.extract_strided_slice %348 {offsets = [0, 128], sizes = [8, 128], strides = [1, 1]} : vector<8x512xf32> to vector<8x128xf32>
    %381 = arith.negf %380 : vector<8x128xf32>
    %382 = math.exp %381 : vector<8x128xf32>
    %cst_121 = arith.constant 1.000000e+00 : f32
    %383 = vector.broadcast %cst_121 : f32 to vector<8x128xf32>
    %384 = arith.addf %383, %382 : vector<8x128xf32>
    %385 = arith.divf %383, %384 : vector<8x128xf32>
    %386 = vector.extract_strided_slice %348 {offsets = [0, 256], sizes = [8, 128], strides = [1, 1]} : vector<8x512xf32> to vector<8x128xf32>
    %387 = math.tanh %386 : vector<8x128xf32>
    %388 = vector.extract_strided_slice %348 {offsets = [0, 384], sizes = [8, 128], strides = [1, 1]} : vector<8x512xf32> to vector<8x128xf32>
    %389 = arith.negf %388 : vector<8x128xf32>
    %390 = math.exp %389 : vector<8x128xf32>
    %cst_122 = arith.constant 1.000000e+00 : f32
    %391 = vector.broadcast %cst_122 : f32 to vector<8x128xf32>
    %392 = arith.addf %391, %390 : vector<8x128xf32>
    %393 = arith.divf %391, %392 : vector<8x128xf32>
    %394 = arith.mulf %385, %338 : vector<8x128xf32>
    %395 = arith.mulf %379, %387 : vector<8x128xf32>
    %396 = arith.addf %394, %395 : vector<8x128xf32>
    %397 = math.tanh %396 : vector<8x128xf32>
    %398 = arith.mulf %393, %397 : vector<8x128xf32>
    %399 = arith.truncf %373 : vector<8x128xf32> to vector<8x128xbf16>
    %cst_123 = arith.constant dense<0.000000e+00> : vector<8x512xf32>
    %400 = tpu.matmul %399, %269, %cst_123 {dimension_numbers = #tpu.dot_dimension_numbers<[1], [0], [0], [1], [0, 0, 1, 1], [], []>} : vector<8x128xbf16>, vector<128x512xbf16>, vector<8x512xf32> -> vector<8x512xf32>
    %401 = arith.truncf %398 : vector<8x128xf32> to vector<8x128xbf16>
    %cst_124 = arith.constant dense<0.000000e+00> : vector<8x512xf32>
    %402 = tpu.matmul %401, %271, %cst_124 {dimension_numbers = #tpu.dot_dimension_numbers<[1], [0], [0], [1], [0, 0, 1, 1], [], []>} : vector<8x128xbf16>, vector<128x512xbf16>, vector<8x512xf32> -> vector<8x512xf32>
    %403 = vector.extract_strided_slice %278 {offsets = [16, 0], sizes = [8, 512], strides = [1, 1]} : vector<64x1024xf32> to vector<8x512xf32>
    %404 = arith.addf %403, %400 : vector<8x512xf32>
    %405 = vector.extract_strided_slice %278 {offsets = [40, 512], sizes = [8, 512], strides = [1, 1]} : vector<64x1024xf32> to vector<8x512xf32>
    %406 = arith.addf %405, %402 : vector<8x512xf32>
    %407 = vector.extract_strided_slice %404 {offsets = [0, 0], sizes = [8, 128], strides = [1, 1]} : vector<8x512xf32> to vector<8x128xf32>
    %408 = arith.negf %407 : vector<8x128xf32>
    %409 = math.exp %408 : vector<8x128xf32>
    %cst_125 = arith.constant 1.000000e+00 : f32
    %410 = vector.broadcast %cst_125 : f32 to vector<8x128xf32>
    %411 = arith.addf %410, %409 : vector<8x128xf32>
    %412 = arith.divf %410, %411 : vector<8x128xf32>
    %413 = vector.extract_strided_slice %404 {offsets = [0, 128], sizes = [8, 128], strides = [1, 1]} : vector<8x512xf32> to vector<8x128xf32>
    %414 = arith.negf %413 : vector<8x128xf32>
    %415 = math.exp %414 : vector<8x128xf32>
    %cst_126 = arith.constant 1.000000e+00 : f32
    %416 = vector.broadcast %cst_126 : f32 to vector<8x128xf32>
    %417 = arith.addf %416, %415 : vector<8x128xf32>
    %418 = arith.divf %416, %417 : vector<8x128xf32>
    %419 = vector.extract_strided_slice %404 {offsets = [0, 256], sizes = [8, 128], strides = [1, 1]} : vector<8x512xf32> to vector<8x128xf32>
    %420 = math.tanh %419 : vector<8x128xf32>
    %421 = vector.extract_strided_slice %404 {offsets = [0, 384], sizes = [8, 128], strides = [1, 1]} : vector<8x512xf32> to vector<8x128xf32>
    %422 = arith.negf %421 : vector<8x128xf32>
    %423 = math.exp %422 : vector<8x128xf32>
    %cst_127 = arith.constant 1.000000e+00 : f32
    %424 = vector.broadcast %cst_127 : f32 to vector<8x128xf32>
    %425 = arith.addf %424, %423 : vector<8x128xf32>
    %426 = arith.divf %424, %425 : vector<8x128xf32>
    %427 = arith.mulf %418, %371 : vector<8x128xf32>
    %428 = arith.mulf %412, %420 : vector<8x128xf32>
    %429 = arith.addf %427, %428 : vector<8x128xf32>
    %430 = math.tanh %429 : vector<8x128xf32>
    %431 = arith.mulf %426, %430 : vector<8x128xf32>
    %432 = vector.extract_strided_slice %406 {offsets = [0, 0], sizes = [8, 128], strides = [1, 1]} : vector<8x512xf32> to vector<8x128xf32>
    %433 = arith.negf %432 : vector<8x128xf32>
    %434 = math.exp %433 : vector<8x128xf32>
    %cst_128 = arith.constant 1.000000e+00 : f32
    %435 = vector.broadcast %cst_128 : f32 to vector<8x128xf32>
    %436 = arith.addf %435, %434 : vector<8x128xf32>
    %437 = arith.divf %435, %436 : vector<8x128xf32>
    %438 = vector.extract_strided_slice %406 {offsets = [0, 128], sizes = [8, 128], strides = [1, 1]} : vector<8x512xf32> to vector<8x128xf32>
    %439 = arith.negf %438 : vector<8x128xf32>
    %440 = math.exp %439 : vector<8x128xf32>
    %cst_129 = arith.constant 1.000000e+00 : f32
    %441 = vector.broadcast %cst_129 : f32 to vector<8x128xf32>
    %442 = arith.addf %441, %440 : vector<8x128xf32>
    %443 = arith.divf %441, %442 : vector<8x128xf32>
    %444 = vector.extract_strided_slice %406 {offsets = [0, 256], sizes = [8, 128], strides = [1, 1]} : vector<8x512xf32> to vector<8x128xf32>
    %445 = math.tanh %444 : vector<8x128xf32>
    %446 = vector.extract_strided_slice %406 {offsets = [0, 384], sizes = [8, 128], strides = [1, 1]} : vector<8x512xf32> to vector<8x128xf32>
    %447 = arith.negf %446 : vector<8x128xf32>
    %448 = math.exp %447 : vector<8x128xf32>
    %cst_130 = arith.constant 1.000000e+00 : f32
    %449 = vector.broadcast %cst_130 : f32 to vector<8x128xf32>
    %450 = arith.addf %449, %448 : vector<8x128xf32>
    %451 = arith.divf %449, %450 : vector<8x128xf32>
    %452 = arith.mulf %443, %396 : vector<8x128xf32>
    %453 = arith.mulf %437, %445 : vector<8x128xf32>
    %454 = arith.addf %452, %453 : vector<8x128xf32>
    %455 = math.tanh %454 : vector<8x128xf32>
    %456 = arith.mulf %451, %455 : vector<8x128xf32>
    %457 = arith.truncf %431 : vector<8x128xf32> to vector<8x128xbf16>
    %cst_131 = arith.constant dense<0.000000e+00> : vector<8x512xf32>
    %458 = tpu.matmul %457, %269, %cst_131 {dimension_numbers = #tpu.dot_dimension_numbers<[1], [0], [0], [1], [0, 0, 1, 1], [], []>} : vector<8x128xbf16>, vector<128x512xbf16>, vector<8x512xf32> -> vector<8x512xf32>
    %459 = arith.truncf %456 : vector<8x128xf32> to vector<8x128xbf16>
    %cst_132 = arith.constant dense<0.000000e+00> : vector<8x512xf32>
    %460 = tpu.matmul %459, %271, %cst_132 {dimension_numbers = #tpu.dot_dimension_numbers<[1], [0], [0], [1], [0, 0, 1, 1], [], []>} : vector<8x128xbf16>, vector<128x512xbf16>, vector<8x512xf32> -> vector<8x512xf32>
    %461 = vector.extract_strided_slice %278 {offsets = [24, 0], sizes = [8, 512], strides = [1, 1]} : vector<64x1024xf32> to vector<8x512xf32>
    %462 = arith.addf %461, %458 : vector<8x512xf32>
    %463 = vector.extract_strided_slice %278 {offsets = [32, 512], sizes = [8, 512], strides = [1, 1]} : vector<64x1024xf32> to vector<8x512xf32>
    %464 = arith.addf %463, %460 : vector<8x512xf32>
    %465 = vector.extract_strided_slice %462 {offsets = [0, 0], sizes = [8, 128], strides = [1, 1]} : vector<8x512xf32> to vector<8x128xf32>
    %466 = arith.negf %465 : vector<8x128xf32>
    %467 = math.exp %466 : vector<8x128xf32>
    %cst_133 = arith.constant 1.000000e+00 : f32
    %468 = vector.broadcast %cst_133 : f32 to vector<8x128xf32>
    %469 = arith.addf %468, %467 : vector<8x128xf32>
    %470 = arith.divf %468, %469 : vector<8x128xf32>
    %471 = vector.extract_strided_slice %462 {offsets = [0, 128], sizes = [8, 128], strides = [1, 1]} : vector<8x512xf32> to vector<8x128xf32>
    %472 = arith.negf %471 : vector<8x128xf32>
    %473 = math.exp %472 : vector<8x128xf32>
    %cst_134 = arith.constant 1.000000e+00 : f32
    %474 = vector.broadcast %cst_134 : f32 to vector<8x128xf32>
    %475 = arith.addf %474, %473 : vector<8x128xf32>
    %476 = arith.divf %474, %475 : vector<8x128xf32>
    %477 = vector.extract_strided_slice %462 {offsets = [0, 256], sizes = [8, 128], strides = [1, 1]} : vector<8x512xf32> to vector<8x128xf32>
    %478 = math.tanh %477 : vector<8x128xf32>
    %479 = vector.extract_strided_slice %462 {offsets = [0, 384], sizes = [8, 128], strides = [1, 1]} : vector<8x512xf32> to vector<8x128xf32>
    %480 = arith.negf %479 : vector<8x128xf32>
    %481 = math.exp %480 : vector<8x128xf32>
    %cst_135 = arith.constant 1.000000e+00 : f32
    %482 = vector.broadcast %cst_135 : f32 to vector<8x128xf32>
    %483 = arith.addf %482, %481 : vector<8x128xf32>
    %484 = arith.divf %482, %483 : vector<8x128xf32>
    %485 = arith.mulf %476, %429 : vector<8x128xf32>
    %486 = arith.mulf %470, %478 : vector<8x128xf32>
    %487 = arith.addf %485, %486 : vector<8x128xf32>
    %488 = math.tanh %487 : vector<8x128xf32>
    %489 = arith.mulf %484, %488 : vector<8x128xf32>
    %490 = vector.extract_strided_slice %464 {offsets = [0, 0], sizes = [8, 128], strides = [1, 1]} : vector<8x512xf32> to vector<8x128xf32>
    %491 = arith.negf %490 : vector<8x128xf32>
    %492 = math.exp %491 : vector<8x128xf32>
    %cst_136 = arith.constant 1.000000e+00 : f32
    %493 = vector.broadcast %cst_136 : f32 to vector<8x128xf32>
    %494 = arith.addf %493, %492 : vector<8x128xf32>
    %495 = arith.divf %493, %494 : vector<8x128xf32>
    %496 = vector.extract_strided_slice %464 {offsets = [0, 128], sizes = [8, 128], strides = [1, 1]} : vector<8x512xf32> to vector<8x128xf32>
    %497 = arith.negf %496 : vector<8x128xf32>
    %498 = math.exp %497 : vector<8x128xf32>
    %cst_137 = arith.constant 1.000000e+00 : f32
    %499 = vector.broadcast %cst_137 : f32 to vector<8x128xf32>
    %500 = arith.addf %499, %498 : vector<8x128xf32>
    %501 = arith.divf %499, %500 : vector<8x128xf32>
    %502 = vector.extract_strided_slice %464 {offsets = [0, 256], sizes = [8, 128], strides = [1, 1]} : vector<8x512xf32> to vector<8x128xf32>
    %503 = math.tanh %502 : vector<8x128xf32>
    %504 = vector.extract_strided_slice %464 {offsets = [0, 384], sizes = [8, 128], strides = [1, 1]} : vector<8x512xf32> to vector<8x128xf32>
    %505 = arith.negf %504 : vector<8x128xf32>
    %506 = math.exp %505 : vector<8x128xf32>
    %cst_138 = arith.constant 1.000000e+00 : f32
    %507 = vector.broadcast %cst_138 : f32 to vector<8x128xf32>
    %508 = arith.addf %507, %506 : vector<8x128xf32>
    %509 = arith.divf %507, %508 : vector<8x128xf32>
    %510 = arith.mulf %501, %454 : vector<8x128xf32>
    %511 = arith.mulf %495, %503 : vector<8x128xf32>
    %512 = arith.addf %510, %511 : vector<8x128xf32>
    %513 = math.tanh %512 : vector<8x128xf32>
    %514 = arith.mulf %509, %513 : vector<8x128xf32>
    %515 = arith.truncf %489 : vector<8x128xf32> to vector<8x128xbf16>
    %cst_139 = arith.constant dense<0.000000e+00> : vector<8x512xf32>
    %516 = tpu.matmul %515, %269, %cst_139 {dimension_numbers = #tpu.dot_dimension_numbers<[1], [0], [0], [1], [0, 0, 1, 1], [], []>} : vector<8x128xbf16>, vector<128x512xbf16>, vector<8x512xf32> -> vector<8x512xf32>
    %517 = arith.truncf %514 : vector<8x128xf32> to vector<8x128xbf16>
    %cst_140 = arith.constant dense<0.000000e+00> : vector<8x512xf32>
    %518 = tpu.matmul %517, %271, %cst_140 {dimension_numbers = #tpu.dot_dimension_numbers<[1], [0], [0], [1], [0, 0, 1, 1], [], []>} : vector<8x128xbf16>, vector<128x512xbf16>, vector<8x512xf32> -> vector<8x512xf32>
    %519 = vector.extract_strided_slice %278 {offsets = [32, 0], sizes = [8, 512], strides = [1, 1]} : vector<64x1024xf32> to vector<8x512xf32>
    %520 = arith.addf %519, %516 : vector<8x512xf32>
    %521 = vector.extract_strided_slice %278 {offsets = [24, 512], sizes = [8, 512], strides = [1, 1]} : vector<64x1024xf32> to vector<8x512xf32>
    %522 = arith.addf %521, %518 : vector<8x512xf32>
    %523 = vector.extract_strided_slice %520 {offsets = [0, 0], sizes = [8, 128], strides = [1, 1]} : vector<8x512xf32> to vector<8x128xf32>
    %524 = arith.negf %523 : vector<8x128xf32>
    %525 = math.exp %524 : vector<8x128xf32>
    %cst_141 = arith.constant 1.000000e+00 : f32
    %526 = vector.broadcast %cst_141 : f32 to vector<8x128xf32>
    %527 = arith.addf %526, %525 : vector<8x128xf32>
    %528 = arith.divf %526, %527 : vector<8x128xf32>
    %529 = vector.extract_strided_slice %520 {offsets = [0, 128], sizes = [8, 128], strides = [1, 1]} : vector<8x512xf32> to vector<8x128xf32>
    %530 = arith.negf %529 : vector<8x128xf32>
    %531 = math.exp %530 : vector<8x128xf32>
    %cst_142 = arith.constant 1.000000e+00 : f32
    %532 = vector.broadcast %cst_142 : f32 to vector<8x128xf32>
    %533 = arith.addf %532, %531 : vector<8x128xf32>
    %534 = arith.divf %532, %533 : vector<8x128xf32>
    %535 = vector.extract_strided_slice %520 {offsets = [0, 256], sizes = [8, 128], strides = [1, 1]} : vector<8x512xf32> to vector<8x128xf32>
    %536 = math.tanh %535 : vector<8x128xf32>
    %537 = vector.extract_strided_slice %520 {offsets = [0, 384], sizes = [8, 128], strides = [1, 1]} : vector<8x512xf32> to vector<8x128xf32>
    %538 = arith.negf %537 : vector<8x128xf32>
    %539 = math.exp %538 : vector<8x128xf32>
    %cst_143 = arith.constant 1.000000e+00 : f32
    %540 = vector.broadcast %cst_143 : f32 to vector<8x128xf32>
    %541 = arith.addf %540, %539 : vector<8x128xf32>
    %542 = arith.divf %540, %541 : vector<8x128xf32>
    %543 = arith.mulf %534, %487 : vector<8x128xf32>
    %544 = arith.mulf %528, %536 : vector<8x128xf32>
    %545 = arith.addf %543, %544 : vector<8x128xf32>
    %546 = math.tanh %545 : vector<8x128xf32>
    %547 = arith.mulf %542, %546 : vector<8x128xf32>
    %548 = vector.extract_strided_slice %522 {offsets = [0, 0], sizes = [8, 128], strides = [1, 1]} : vector<8x512xf32> to vector<8x128xf32>
    %549 = arith.negf %548 : vector<8x128xf32>
    %550 = math.exp %549 : vector<8x128xf32>
    %cst_144 = arith.constant 1.000000e+00 : f32
    %551 = vector.broadcast %cst_144 : f32 to vector<8x128xf32>
    %552 = arith.addf %551, %550 : vector<8x128xf32>
    %553 = arith.divf %551, %552 : vector<8x128xf32>
    %554 = vector.extract_strided_slice %522 {offsets = [0, 128], sizes = [8, 128], strides = [1, 1]} : vector<8x512xf32> to vector<8x128xf32>
    %555 = arith.negf %554 : vector<8x128xf32>
    %556 = math.exp %555 : vector<8x128xf32>
    %cst_145 = arith.constant 1.000000e+00 : f32
    %557 = vector.broadcast %cst_145 : f32 to vector<8x128xf32>
    %558 = arith.addf %557, %556 : vector<8x128xf32>
    %559 = arith.divf %557, %558 : vector<8x128xf32>
    %560 = vector.extract_strided_slice %522 {offsets = [0, 256], sizes = [8, 128], strides = [1, 1]} : vector<8x512xf32> to vector<8x128xf32>
    %561 = math.tanh %560 : vector<8x128xf32>
    %562 = vector.extract_strided_slice %522 {offsets = [0, 384], sizes = [8, 128], strides = [1, 1]} : vector<8x512xf32> to vector<8x128xf32>
    %563 = arith.negf %562 : vector<8x128xf32>
    %564 = math.exp %563 : vector<8x128xf32>
    %cst_146 = arith.constant 1.000000e+00 : f32
    %565 = vector.broadcast %cst_146 : f32 to vector<8x128xf32>
    %566 = arith.addf %565, %564 : vector<8x128xf32>
    %567 = arith.divf %565, %566 : vector<8x128xf32>
    %568 = arith.mulf %559, %512 : vector<8x128xf32>
    %569 = arith.mulf %553, %561 : vector<8x128xf32>
    %570 = arith.addf %568, %569 : vector<8x128xf32>
    %571 = math.tanh %570 : vector<8x128xf32>
    %572 = arith.mulf %567, %571 : vector<8x128xf32>
    %573 = arith.truncf %547 : vector<8x128xf32> to vector<8x128xbf16>
    %cst_147 = arith.constant dense<0.000000e+00> : vector<8x512xf32>
    %574 = tpu.matmul %573, %269, %cst_147 {dimension_numbers = #tpu.dot_dimension_numbers<[1], [0], [0], [1], [0, 0, 1, 1], [], []>} : vector<8x128xbf16>, vector<128x512xbf16>, vector<8x512xf32> -> vector<8x512xf32>
    %575 = arith.truncf %572 : vector<8x128xf32> to vector<8x128xbf16>
    %cst_148 = arith.constant dense<0.000000e+00> : vector<8x512xf32>
    %576 = tpu.matmul %575, %271, %cst_148 {dimension_numbers = #tpu.dot_dimension_numbers<[1], [0], [0], [1], [0, 0, 1, 1], [], []>} : vector<8x128xbf16>, vector<128x512xbf16>, vector<8x512xf32> -> vector<8x512xf32>
    %577 = vector.extract_strided_slice %278 {offsets = [40, 0], sizes = [8, 512], strides = [1, 1]} : vector<64x1024xf32> to vector<8x512xf32>
    %578 = arith.addf %577, %574 : vector<8x512xf32>
    %579 = vector.extract_strided_slice %278 {offsets = [16, 512], sizes = [8, 512], strides = [1, 1]} : vector<64x1024xf32> to vector<8x512xf32>
    %580 = arith.addf %579, %576 : vector<8x512xf32>
    %581 = vector.extract_strided_slice %578 {offsets = [0, 0], sizes = [8, 128], strides = [1, 1]} : vector<8x512xf32> to vector<8x128xf32>
    %582 = arith.negf %581 : vector<8x128xf32>
    %583 = math.exp %582 : vector<8x128xf32>
    %cst_149 = arith.constant 1.000000e+00 : f32
    %584 = vector.broadcast %cst_149 : f32 to vector<8x128xf32>
    %585 = arith.addf %584, %583 : vector<8x128xf32>
    %586 = arith.divf %584, %585 : vector<8x128xf32>
    %587 = vector.extract_strided_slice %578 {offsets = [0, 128], sizes = [8, 128], strides = [1, 1]} : vector<8x512xf32> to vector<8x128xf32>
    %588 = arith.negf %587 : vector<8x128xf32>
    %589 = math.exp %588 : vector<8x128xf32>
    %cst_150 = arith.constant 1.000000e+00 : f32
    %590 = vector.broadcast %cst_150 : f32 to vector<8x128xf32>
    %591 = arith.addf %590, %589 : vector<8x128xf32>
    %592 = arith.divf %590, %591 : vector<8x128xf32>
    %593 = vector.extract_strided_slice %578 {offsets = [0, 256], sizes = [8, 128], strides = [1, 1]} : vector<8x512xf32> to vector<8x128xf32>
    %594 = math.tanh %593 : vector<8x128xf32>
    %595 = vector.extract_strided_slice %578 {offsets = [0, 384], sizes = [8, 128], strides = [1, 1]} : vector<8x512xf32> to vector<8x128xf32>
    %596 = arith.negf %595 : vector<8x128xf32>
    %597 = math.exp %596 : vector<8x128xf32>
    %cst_151 = arith.constant 1.000000e+00 : f32
    %598 = vector.broadcast %cst_151 : f32 to vector<8x128xf32>
    %599 = arith.addf %598, %597 : vector<8x128xf32>
    %600 = arith.divf %598, %599 : vector<8x128xf32>
    %601 = arith.mulf %592, %545 : vector<8x128xf32>
    %602 = arith.mulf %586, %594 : vector<8x128xf32>
    %603 = arith.addf %601, %602 : vector<8x128xf32>
    %604 = math.tanh %603 : vector<8x128xf32>
    %605 = arith.mulf %600, %604 : vector<8x128xf32>
    %606 = vector.extract_strided_slice %580 {offsets = [0, 0], sizes = [8, 128], strides = [1, 1]} : vector<8x512xf32> to vector<8x128xf32>
    %607 = arith.negf %606 : vector<8x128xf32>
    %608 = math.exp %607 : vector<8x128xf32>
    %cst_152 = arith.constant 1.000000e+00 : f32
    %609 = vector.broadcast %cst_152 : f32 to vector<8x128xf32>
    %610 = arith.addf %609, %608 : vector<8x128xf32>
    %611 = arith.divf %609, %610 : vector<8x128xf32>
    %612 = vector.extract_strided_slice %580 {offsets = [0, 128], sizes = [8, 128], strides = [1, 1]} : vector<8x512xf32> to vector<8x128xf32>
    %613 = arith.negf %612 : vector<8x128xf32>
    %614 = math.exp %613 : vector<8x128xf32>
    %cst_153 = arith.constant 1.000000e+00 : f32
    %615 = vector.broadcast %cst_153 : f32 to vector<8x128xf32>
    %616 = arith.addf %615, %614 : vector<8x128xf32>
    %617 = arith.divf %615, %616 : vector<8x128xf32>
    %618 = vector.extract_strided_slice %580 {offsets = [0, 256], sizes = [8, 128], strides = [1, 1]} : vector<8x512xf32> to vector<8x128xf32>
    %619 = math.tanh %618 : vector<8x128xf32>
    %620 = vector.extract_strided_slice %580 {offsets = [0, 384], sizes = [8, 128], strides = [1, 1]} : vector<8x512xf32> to vector<8x128xf32>
    %621 = arith.negf %620 : vector<8x128xf32>
    %622 = math.exp %621 : vector<8x128xf32>
    %cst_154 = arith.constant 1.000000e+00 : f32
    %623 = vector.broadcast %cst_154 : f32 to vector<8x128xf32>
    %624 = arith.addf %623, %622 : vector<8x128xf32>
    %625 = arith.divf %623, %624 : vector<8x128xf32>
    %626 = arith.mulf %617, %570 : vector<8x128xf32>
    %627 = arith.mulf %611, %619 : vector<8x128xf32>
    %628 = arith.addf %626, %627 : vector<8x128xf32>
    %629 = math.tanh %628 : vector<8x128xf32>
    %630 = arith.mulf %625, %629 : vector<8x128xf32>
    %631 = arith.truncf %605 : vector<8x128xf32> to vector<8x128xbf16>
    %cst_155 = arith.constant dense<0.000000e+00> : vector<8x512xf32>
    %632 = tpu.matmul %631, %269, %cst_155 {dimension_numbers = #tpu.dot_dimension_numbers<[1], [0], [0], [1], [0, 0, 1, 1], [], []>} : vector<8x128xbf16>, vector<128x512xbf16>, vector<8x512xf32> -> vector<8x512xf32>
    %633 = arith.truncf %630 : vector<8x128xf32> to vector<8x128xbf16>
    %cst_156 = arith.constant dense<0.000000e+00> : vector<8x512xf32>
    %634 = tpu.matmul %633, %271, %cst_156 {dimension_numbers = #tpu.dot_dimension_numbers<[1], [0], [0], [1], [0, 0, 1, 1], [], []>} : vector<8x128xbf16>, vector<128x512xbf16>, vector<8x512xf32> -> vector<8x512xf32>
    %635 = vector.extract_strided_slice %278 {offsets = [48, 0], sizes = [8, 512], strides = [1, 1]} : vector<64x1024xf32> to vector<8x512xf32>
    %636 = arith.addf %635, %632 : vector<8x512xf32>
    %637 = vector.extract_strided_slice %278 {offsets = [8, 512], sizes = [8, 512], strides = [1, 1]} : vector<64x1024xf32> to vector<8x512xf32>
    %638 = arith.addf %637, %634 : vector<8x512xf32>
    %639 = vector.extract_strided_slice %636 {offsets = [0, 0], sizes = [8, 128], strides = [1, 1]} : vector<8x512xf32> to vector<8x128xf32>
    %640 = arith.negf %639 : vector<8x128xf32>
    %641 = math.exp %640 : vector<8x128xf32>
    %cst_157 = arith.constant 1.000000e+00 : f32
    %642 = vector.broadcast %cst_157 : f32 to vector<8x128xf32>
    %643 = arith.addf %642, %641 : vector<8x128xf32>
    %644 = arith.divf %642, %643 : vector<8x128xf32>
    %645 = vector.extract_strided_slice %636 {offsets = [0, 128], sizes = [8, 128], strides = [1, 1]} : vector<8x512xf32> to vector<8x128xf32>
    %646 = arith.negf %645 : vector<8x128xf32>
    %647 = math.exp %646 : vector<8x128xf32>
    %cst_158 = arith.constant 1.000000e+00 : f32
    %648 = vector.broadcast %cst_158 : f32 to vector<8x128xf32>
    %649 = arith.addf %648, %647 : vector<8x128xf32>
    %650 = arith.divf %648, %649 : vector<8x128xf32>
    %651 = vector.extract_strided_slice %636 {offsets = [0, 256], sizes = [8, 128], strides = [1, 1]} : vector<8x512xf32> to vector<8x128xf32>
    %652 = math.tanh %651 : vector<8x128xf32>
    %653 = vector.extract_strided_slice %636 {offsets = [0, 384], sizes = [8, 128], strides = [1, 1]} : vector<8x512xf32> to vector<8x128xf32>
    %654 = arith.negf %653 : vector<8x128xf32>
    %655 = math.exp %654 : vector<8x128xf32>
    %cst_159 = arith.constant 1.000000e+00 : f32
    %656 = vector.broadcast %cst_159 : f32 to vector<8x128xf32>
    %657 = arith.addf %656, %655 : vector<8x128xf32>
    %658 = arith.divf %656, %657 : vector<8x128xf32>
    %659 = arith.mulf %650, %603 : vector<8x128xf32>
    %660 = arith.mulf %644, %652 : vector<8x128xf32>
    %661 = arith.addf %659, %660 : vector<8x128xf32>
    %662 = math.tanh %661 : vector<8x128xf32>
    %663 = arith.mulf %658, %662 : vector<8x128xf32>
    %664 = vector.extract_strided_slice %638 {offsets = [0, 0], sizes = [8, 128], strides = [1, 1]} : vector<8x512xf32> to vector<8x128xf32>
    %665 = arith.negf %664 : vector<8x128xf32>
    %666 = math.exp %665 : vector<8x128xf32>
    %cst_160 = arith.constant 1.000000e+00 : f32
    %667 = vector.broadcast %cst_160 : f32 to vector<8x128xf32>
    %668 = arith.addf %667, %666 : vector<8x128xf32>
    %669 = arith.divf %667, %668 : vector<8x128xf32>
    %670 = vector.extract_strided_slice %638 {offsets = [0, 128], sizes = [8, 128], strides = [1, 1]} : vector<8x512xf32> to vector<8x128xf32>
    %671 = arith.negf %670 : vector<8x128xf32>
    %672 = math.exp %671 : vector<8x128xf32>
    %cst_161 = arith.constant 1.000000e+00 : f32
    %673 = vector.broadcast %cst_161 : f32 to vector<8x128xf32>
    %674 = arith.addf %673, %672 : vector<8x128xf32>
    %675 = arith.divf %673, %674 : vector<8x128xf32>
    %676 = vector.extract_strided_slice %638 {offsets = [0, 256], sizes = [8, 128], strides = [1, 1]} : vector<8x512xf32> to vector<8x128xf32>
    %677 = math.tanh %676 : vector<8x128xf32>
    %678 = vector.extract_strided_slice %638 {offsets = [0, 384], sizes = [8, 128], strides = [1, 1]} : vector<8x512xf32> to vector<8x128xf32>
    %679 = arith.negf %678 : vector<8x128xf32>
    %680 = math.exp %679 : vector<8x128xf32>
    %cst_162 = arith.constant 1.000000e+00 : f32
    %681 = vector.broadcast %cst_162 : f32 to vector<8x128xf32>
    %682 = arith.addf %681, %680 : vector<8x128xf32>
    %683 = arith.divf %681, %682 : vector<8x128xf32>
    %684 = arith.mulf %675, %628 : vector<8x128xf32>
    %685 = arith.mulf %669, %677 : vector<8x128xf32>
    %686 = arith.addf %684, %685 : vector<8x128xf32>
    %687 = math.tanh %686 : vector<8x128xf32>
    %688 = arith.mulf %683, %687 : vector<8x128xf32>
    %689 = arith.truncf %663 : vector<8x128xf32> to vector<8x128xbf16>
    %cst_163 = arith.constant dense<0.000000e+00> : vector<8x512xf32>
    %690 = tpu.matmul %689, %269, %cst_163 {dimension_numbers = #tpu.dot_dimension_numbers<[1], [0], [0], [1], [0, 0, 1, 1], [], []>} : vector<8x128xbf16>, vector<128x512xbf16>, vector<8x512xf32> -> vector<8x512xf32>
    %691 = arith.truncf %688 : vector<8x128xf32> to vector<8x128xbf16>
    %cst_164 = arith.constant dense<0.000000e+00> : vector<8x512xf32>
    %692 = tpu.matmul %691, %271, %cst_164 {dimension_numbers = #tpu.dot_dimension_numbers<[1], [0], [0], [1], [0, 0, 1, 1], [], []>} : vector<8x128xbf16>, vector<128x512xbf16>, vector<8x512xf32> -> vector<8x512xf32>
    %693 = vector.extract_strided_slice %278 {offsets = [56, 0], sizes = [8, 512], strides = [1, 1]} : vector<64x1024xf32> to vector<8x512xf32>
    %694 = arith.addf %693, %690 : vector<8x512xf32>
    %695 = vector.extract_strided_slice %278 {offsets = [0, 512], sizes = [8, 512], strides = [1, 1]} : vector<64x1024xf32> to vector<8x512xf32>
    %696 = arith.addf %695, %692 : vector<8x512xf32>
    %697 = vector.extract_strided_slice %694 {offsets = [0, 0], sizes = [8, 128], strides = [1, 1]} : vector<8x512xf32> to vector<8x128xf32>
    %698 = arith.negf %697 : vector<8x128xf32>
    %699 = math.exp %698 : vector<8x128xf32>
    %cst_165 = arith.constant 1.000000e+00 : f32
    %700 = vector.broadcast %cst_165 : f32 to vector<8x128xf32>
    %701 = arith.addf %700, %699 : vector<8x128xf32>
    %702 = arith.divf %700, %701 : vector<8x128xf32>
    %703 = vector.extract_strided_slice %694 {offsets = [0, 128], sizes = [8, 128], strides = [1, 1]} : vector<8x512xf32> to vector<8x128xf32>
    %704 = arith.negf %703 : vector<8x128xf32>
    %705 = math.exp %704 : vector<8x128xf32>
    %cst_166 = arith.constant 1.000000e+00 : f32
    %706 = vector.broadcast %cst_166 : f32 to vector<8x128xf32>
    %707 = arith.addf %706, %705 : vector<8x128xf32>
    %708 = arith.divf %706, %707 : vector<8x128xf32>
    %709 = vector.extract_strided_slice %694 {offsets = [0, 256], sizes = [8, 128], strides = [1, 1]} : vector<8x512xf32> to vector<8x128xf32>
    %710 = math.tanh %709 : vector<8x128xf32>
    %711 = vector.extract_strided_slice %694 {offsets = [0, 384], sizes = [8, 128], strides = [1, 1]} : vector<8x512xf32> to vector<8x128xf32>
    %712 = arith.negf %711 : vector<8x128xf32>
    %713 = math.exp %712 : vector<8x128xf32>
    %cst_167 = arith.constant 1.000000e+00 : f32
    %714 = vector.broadcast %cst_167 : f32 to vector<8x128xf32>
    %715 = arith.addf %714, %713 : vector<8x128xf32>
    %716 = arith.divf %714, %715 : vector<8x128xf32>
    %717 = arith.mulf %708, %661 : vector<8x128xf32>
    %718 = arith.mulf %702, %710 : vector<8x128xf32>
    %719 = arith.addf %717, %718 : vector<8x128xf32>
    %720 = math.tanh %719 : vector<8x128xf32>
    %721 = arith.mulf %716, %720 : vector<8x128xf32>
    %722 = vector.extract_strided_slice %696 {offsets = [0, 0], sizes = [8, 128], strides = [1, 1]} : vector<8x512xf32> to vector<8x128xf32>
    %723 = arith.negf %722 : vector<8x128xf32>
    %724 = math.exp %723 : vector<8x128xf32>
    %cst_168 = arith.constant 1.000000e+00 : f32
    %725 = vector.broadcast %cst_168 : f32 to vector<8x128xf32>
    %726 = arith.addf %725, %724 : vector<8x128xf32>
    %727 = arith.divf %725, %726 : vector<8x128xf32>
    %728 = vector.extract_strided_slice %696 {offsets = [0, 128], sizes = [8, 128], strides = [1, 1]} : vector<8x512xf32> to vector<8x128xf32>
    %729 = arith.negf %728 : vector<8x128xf32>
    %730 = math.exp %729 : vector<8x128xf32>
    %cst_169 = arith.constant 1.000000e+00 : f32
    %731 = vector.broadcast %cst_169 : f32 to vector<8x128xf32>
    %732 = arith.addf %731, %730 : vector<8x128xf32>
    %733 = arith.divf %731, %732 : vector<8x128xf32>
    %734 = vector.extract_strided_slice %696 {offsets = [0, 256], sizes = [8, 128], strides = [1, 1]} : vector<8x512xf32> to vector<8x128xf32>
    %735 = math.tanh %734 : vector<8x128xf32>
    %736 = vector.extract_strided_slice %696 {offsets = [0, 384], sizes = [8, 128], strides = [1, 1]} : vector<8x512xf32> to vector<8x128xf32>
    %737 = arith.negf %736 : vector<8x128xf32>
    %738 = math.exp %737 : vector<8x128xf32>
    %cst_170 = arith.constant 1.000000e+00 : f32
    %739 = vector.broadcast %cst_170 : f32 to vector<8x128xf32>
    %740 = arith.addf %739, %738 : vector<8x128xf32>
    %741 = arith.divf %739, %740 : vector<8x128xf32>
    %742 = arith.mulf %733, %686 : vector<8x128xf32>
    %743 = arith.mulf %727, %735 : vector<8x128xf32>
    %744 = arith.addf %742, %743 : vector<8x128xf32>
    %745 = math.tanh %744 : vector<8x128xf32>
    %746 = arith.mulf %741, %745 : vector<8x128xf32>
    %747 = tpu.concatenate %315, %746 in 1 : vector<8x128xf32>, vector<8x128xf32> -> vector<8x256xf32>
    %748 = tpu.concatenate %373, %688 in 1 : vector<8x128xf32>, vector<8x128xf32> -> vector<8x256xf32>
    %749 = tpu.concatenate %431, %630 in 1 : vector<8x128xf32>, vector<8x128xf32> -> vector<8x256xf32>
    %750 = tpu.concatenate %489, %572 in 1 : vector<8x128xf32>, vector<8x128xf32> -> vector<8x256xf32>
    %751 = tpu.concatenate %547, %514 in 1 : vector<8x128xf32>, vector<8x128xf32> -> vector<8x256xf32>
    %752 = tpu.concatenate %605, %456 in 1 : vector<8x128xf32>, vector<8x128xf32> -> vector<8x256xf32>
    %753 = tpu.concatenate %663, %398 in 1 : vector<8x128xf32>, vector<8x128xf32> -> vector<8x256xf32>
    %754 = tpu.concatenate %721, %340 in 1 : vector<8x128xf32>, vector<8x128xf32> -> vector<8x256xf32>
    %755 = tpu.concatenate %747, %748, %749, %750, %751, %752, %753, %754 in 0 : vector<8x256xf32>, vector<8x256xf32>, vector<8x256xf32>, vector<8x256xf32>, vector<8x256xf32>, vector<8x256xf32>, vector<8x256xf32>, vector<8x256xf32> -> vector<64x256xf32>
    %c0_171 = arith.constant 0 : index
    %c0_172 = arith.constant 0 : index
    %756 = vector.load %arg30[%c0_171, %c0_172] : memref<256x4xf32, #tpu.memory_space<vmem>>, vector<256x4xf32>
    %cst_173 = arith.constant dense<0.000000e+00> : vector<64x4xf32>
    %757 = tpu.matmul %755, %756, %cst_173 {dimension_numbers = #tpu.dot_dimension_numbers<[1], [0], [0], [1], [0, 0, 1, 1], [], []>} : vector<64x256xf32>, vector<256x4xf32>, vector<64x4xf32> -> vector<64x4xf32>
    %c0_174 = arith.constant 0 : index
    %c0_175 = arith.constant 0 : index
    %758 = vector.load %arg31[%c0_174, %c0_175] : memref<1x4xf32, #tpu.memory_space<vmem>>, vector<1x4xf32>
    %759 = vector.broadcast %758 : vector<1x4xf32> to vector<64x4xf32>
    %760 = arith.addf %757, %759 : vector<64x4xf32>
    %c0_176 = arith.constant 0 : index
    %c0_177 = arith.constant 0 : index
    %761 = vector.load %arg34[%c0_176, %c0_177] : memref<64x4xf32, #tpu.memory_space<vmem>>, vector<64x4xf32>
    tpu.vector_store %arg34[%c0_176, %c0_177], %760 {strides = array<i32>} : memref<64x4xf32, #tpu.memory_space<vmem>>, vector<64x4xf32>,
    return
  }
  func.func @transform_0(%arg0: i32) -> (i32, i32) {
    %c0_i32 = arith.constant 0 : i32
    %c0_i32_0 = arith.constant 0 : i32
    %c0_i32_1 = arith.constant 0 : i32
    return %c0_i32, %c0_i32_0 : i32, i32
  }
  func.func @transform_1(%arg0: i32) -> (i32, i32) {
    %c0_i32 = arith.constant 0 : i32
    %c0_i32_0 = arith.constant 0 : i32
    %c0_i32_1 = arith.constant 0 : i32
    return %c0_i32, %c0_i32_0 : i32, i32
  }
  func.func @transform_2(%arg0: i32) -> (i32, i32) {
    %c0_i32 = arith.constant 0 : i32
    %c0_i32_0 = arith.constant 0 : i32
    %c0_i32_1 = arith.constant 0 : i32
    return %c0_i32, %c0_i32_0 : i32, i32
  }
  func.func @transform_3(%arg0: i32) -> (i32, i32) {
    %c0_i32 = arith.constant 0 : i32
    %c0_i32_0 = arith.constant 0 : i32
    %c0_i32_1 = arith.constant 0 : i32
    return %c0_i32, %c0_i32_0 : i32, i32
  }
  func.func @transform_4(%arg0: i32) -> (i32, i32) {
    %c0_i32 = arith.constant 0 : i32
    %c0_i32_0 = arith.constant 0 : i32
    %c0_i32_1 = arith.constant 0 : i32
    return %c0_i32, %c0_i32_0 : i32, i32
  }
  func.func @transform_5(%arg0: i32) -> (i32, i32) {
    %c0_i32 = arith.constant 0 : i32
    %c0_i32_0 = arith.constant 0 : i32
    %c0_i32_1 = arith.constant 0 : i32
    return %c0_i32, %c0_i32_0 : i32, i32
  }
  func.func @transform_6(%arg0: i32) -> (i32, i32) {
    %c0_i32 = arith.constant 0 : i32
    %c0_i32_0 = arith.constant 0 : i32
    %c0_i32_1 = arith.constant 0 : i32
    return %c0_i32, %c0_i32_0 : i32, i32
  }
  func.func @transform_7(%arg0: i32) -> (i32, i32) {
    %c0_i32 = arith.constant 0 : i32
    %c0_i32_0 = arith.constant 0 : i32
    %c0_i32_1 = arith.constant 0 : i32
    return %c0_i32, %c0_i32_0 : i32, i32
  }
  func.func @transform_8(%arg0: i32) -> (i32, i32) {
    %c0_i32 = arith.constant 0 : i32
    %c0_i32_0 = arith.constant 0 : i32
    %c0_i32_1 = arith.constant 0 : i32
    return %c0_i32, %c0_i32_0 : i32, i32
  }
  func.func @transform_9(%arg0: i32) -> (i32, i32) {
    %c0_i32 = arith.constant 0 : i32
    %c0_i32_0 = arith.constant 0 : i32
    %c0_i32_1 = arith.constant 0 : i32
    return %c0_i32, %c0_i32_0 : i32, i32
  }
  func.func @transform_10(%arg0: i32) -> (i32, i32) {
    %c0_i32 = arith.constant 0 : i32
    %c0_i32_0 = arith.constant 0 : i32
    %c0_i32_1 = arith.constant 0 : i32
    return %c0_i32, %c0_i32_0 : i32, i32
  }
  func.func @transform_11(%arg0: i32) -> (i32, i32) {
    %c0_i32 = arith.constant 0 : i32
    %c0_i32_0 = arith.constant 0 : i32
    %c0_i32_1 = arith.constant 0 : i32
    return %c0_i32, %c0_i32_0 : i32, i32
  }
  func.func @transform_12(%arg0: i32) -> (i32, i32) {
    %c0_i32 = arith.constant 0 : i32
    %c0_i32_0 = arith.constant 0 : i32
    %c0_i32_1 = arith.constant 0 : i32
    return %c0_i32, %c0_i32_0 : i32, i32
  }
  func.func @transform_13(%arg0: i32) -> (i32, i32) {
    %c0_i32 = arith.constant 0 : i32
    %c0_i32_0 = arith.constant 0 : i32
    %c0_i32_1 = arith.constant 0 : i32
    return %c0_i32, %c0_i32_0 : i32, i32
  }
  func.func @transform_14(%arg0: i32) -> (i32, i32) {
    %c0_i32 = arith.constant 0 : i32
    %c0_i32_0 = arith.constant 0 : i32
    %c0_i32_1 = arith.constant 0 : i32
    return %c0_i32, %c0_i32_0 : i32, i32
  }
  func.func @transform_15(%arg0: i32) -> (i32, i32) {
    %c0_i32 = arith.constant 0 : i32
    %c0_i32_0 = arith.constant 0 : i32
    %c0_i32_1 = arith.constant 0 : i32
    return %c0_i32, %c0_i32_0 : i32, i32
  }
  func.func @transform_16(%arg0: i32) -> (i32, i32) {
    %c0_i32 = arith.constant 0 : i32
    %c0_i32_0 = arith.constant 0 : i32
    %c0_i32_1 = arith.constant 0 : i32
    return %c0_i32, %c0_i32_0 : i32, i32
  }
  func.func @transform_17(%arg0: i32) -> (i32, i32) {
    %c0_i32 = arith.constant 0 : i32
    %c0_i32_0 = arith.constant 0 : i32
    %c0_i32_1 = arith.constant 0 : i32
    return %c0_i32, %c0_i32_0 : i32, i32
  }
  func.func @transform_18(%arg0: i32) -> (i32, i32) {
    %c0_i32 = arith.constant 0 : i32
    %c0_i32_0 = arith.constant 0 : i32
    %c0_i32_1 = arith.constant 0 : i32
    return %c0_i32, %c0_i32_0 : i32, i32
  }
  func.func @transform_19(%arg0: i32) -> (i32, i32) {
    %c0_i32 = arith.constant 0 : i32
    %c0_i32_0 = arith.constant 0 : i32
    %c0_i32_1 = arith.constant 0 : i32
    return %c0_i32, %c0_i32_0 : i32, i32
  }
  func.func @transform_20(%arg0: i32) -> (i32, i32) {
    %c0_i32 = arith.constant 0 : i32
    %c0_i32_0 = arith.constant 0 : i32
    %c0_i32_1 = arith.constant 0 : i32
    return %c0_i32, %c0_i32_0 : i32, i32
  }
  func.func @transform_21(%arg0: i32) -> (i32, i32) {
    %c0_i32 = arith.constant 0 : i32
    %c0_i32_0 = arith.constant 0 : i32
    %c0_i32_1 = arith.constant 0 : i32
    return %c0_i32, %c0_i32_0 : i32, i32
  }
  func.func @transform_22(%arg0: i32) -> (i32, i32) {
    %c0_i32 = arith.constant 0 : i32
    %c0_i32_0 = arith.constant 0 : i32
    %c0_i32_1 = arith.constant 0 : i32
    return %c0_i32, %c0_i32_0 : i32, i32
  }
  func.func @transform_23(%arg0: i32) -> (i32, i32) {
    %c0_i32 = arith.constant 0 : i32
    %c0_i32_0 = arith.constant 0 : i32
    %c0_i32_1 = arith.constant 0 : i32
    return %c0_i32, %c0_i32_0 : i32, i32
  }
  func.func @transform_24(%arg0: i32) -> (i32, i32) {
    %c0_i32 = arith.constant 0 : i32
    %c0_i32_0 = arith.constant 0 : i32
    %c0_i32_1 = arith.constant 0 : i32
    return %c0_i32, %c0_i32_0 : i32, i32
  }
  func.func @transform_25(%arg0: i32) -> (i32, i32) {
    %c0_i32 = arith.constant 0 : i32
    %c0_i32_0 = arith.constant 0 : i32
    %c0_i32_1 = arith.constant 0 : i32
    return %c0_i32, %c0_i32_0 : i32, i32
  }
  func.func @transform_26(%arg0: i32) -> (i32, i32) {
    %c0_i32 = arith.constant 0 : i32
    %c0_i32_0 = arith.constant 0 : i32
    %c0_i32_1 = arith.constant 0 : i32
    return %c0_i32, %c0_i32_0 : i32, i32
  }
  func.func @transform_27(%arg0: i32) -> (i32, i32) {
    %c0_i32 = arith.constant 0 : i32
    %c0_i32_0 = arith.constant 0 : i32
    %c0_i32_1 = arith.constant 0 : i32
    return %c0_i32, %c0_i32_0 : i32, i32
  }
  func.func @transform_28(%arg0: i32) -> (i32, i32) {
    %c0_i32 = arith.constant 0 : i32
    %c0_i32_0 = arith.constant 0 : i32
    %c0_i32_1 = arith.constant 0 : i32
    return %c0_i32, %c0_i32_0 : i32, i32
  }
  func.func @transform_29(%arg0: i32) -> (i32, i32) {
    %c0_i32 = arith.constant 0 : i32
    %c0_i32_0 = arith.constant 0 : i32
    %c0_i32_1 = arith.constant 0 : i32
    return %c0_i32, %c0_i32_0 : i32, i32
  }
  func.func @transform_30(%arg0: i32) -> (i32, i32) {
    %c0_i32 = arith.constant 0 : i32
    %c0_i32_0 = arith.constant 0 : i32
    %c0_i32_1 = arith.constant 0 : i32
    return %c0_i32, %c0_i32_0 : i32, i32
  }
  func.func @transform_33(%arg0: i32) -> (i32, i32) {
    %c0_i32 = arith.constant 0 : i32
    %c0_i32_0 = arith.constant 0 : i32
    %c0_i32_1 = arith.constant 0 : i32
    return %c0_i32, %c0_i32_0 : i32, i32
  }
}

</mosaic_0001>

<bundles_post_ra>
// kernel: backend_classifier.1
= control target key start
LH: loop header
LB: loop body
LE: loop exit
PB: predicated region body
PF: predicated region fallthrough
CT: control target
= control target key end

     0   :  { %s7603_s6 = smov 1   ;;  %s7604_s10 = smov 2   ;;  %s10072_s0 = inlined_call_operand.smem [shape: u32[34], index: -1, kind: input, shape index: {}] }
   0x1   :  { %s7648_s5 = sld [smem:[%s10072_s0]]   ;;  %s7605_s14 = smov 3  }
   0x2   :  { %s7653_s9 = sld [smem:[%s10072_s0 + %s7603_s6]]   ;;  %s7606_s18 = smov 4  }
   0x3   :  { %s7658_s13 = sld [smem:[%s10072_s0 + %s7604_s10]]   ;;  %s7607_s22 = smov 5  }
   0x4   :  { %s7663_s17 = sld [smem:[%s10072_s0 + %s7605_s14]]   ;;  %s7608_s26 = smov 6  }
   0x5   :  { %s7668_s21 = sld [smem:[%s10072_s0 + %s7606_s18]]   ;;  %s7609_s30 = smov 7  }
   0x6   :  { %s7673_s25 = sld [smem:[%s10072_s0 + %s7607_s22]]   ;;  %s7610_s4 = smov 8  }
   0x7   :  { %s7678_s29 = sld [smem:[%s10072_s0 + %s7608_s26]]   ;;  %s7611_s10 = smov 9  }
   0x8   :  { %10186 = sst [smem:[#allocation9_spill]] %s7653_s9  ;;  %s7612_s15 = smov 10  }
   0x9   :  { %s7683_s3 = sld [smem:[%s10072_s0 + %s7609_s30]]   ;;  %s7613_s20 = smov 11  }
   0xa   :  { %s7688_s8 = sld [smem:[%s10072_s0 + %s7610_s4]]   ;;  %s7614_s26 = smov 12  }
   0xb   :  { %s7693_s14 = sld [smem:[%s10072_s0 + %s7611_s10]]   ;;  %s7615_s1 = smov 13  }
   0xc   :  { %s7698_s19 = sld [smem:[%s10072_s0 + %s7612_s15]]   ;;  %s7616_s7 = smov 14  }
   0xd   :  { %s7703_s24 = sld [smem:[%s10072_s0 + %s7613_s20]]   ;;  %s7617_s15 = smov 15  }
   0xe   :  { %s7708_s30 = sld [smem:[%s10072_s0 + %s7614_s26]]   ;;  %s7618_s22 = smov 16  }
   0xf   :  { %s7713_s6 = sld [smem:[%s10072_s0 + %s7615_s1]]   ;;  %s7619_s28 = smov 17  }
  0x10   :  { %s7718_s12 = sld [smem:[%s10072_s0 + %s7616_s7]]   ;;  %s7620_s7 = smov 18  }
  0x11   :  { %s7723_s20 = sld [smem:[%s10072_s0 + %s7617_s15]]   ;;  %s7621_s15 = smov 19  }
  0x12   :  { %s7728_s27 = sld [smem:[%s10072_s0 + %s7618_s22]]   ;;  %s7622_s22 = smov 20  }
  0x13   :  { %s7733_s4 = sld [smem:[%s10072_s0 + %s7619_s28]]   ;;  %s7623_s28 = smov 21  }
  0x14   :  { %s7738_s9 = sld [smem:[%s10072_s0 + %s7620_s7]]   ;;  %s7624_s7 = smov 22  }
  0x15   :  { %s7635_s1 = smov 33  }
  0x16   :  { %10187 = sst [smem:[#allocation10_spill]] %s7718_s12 }
  0x17   :  { %10188 = sst [smem:[#allocation11_spill]] %s7723_s20 }
  0x18   :  { %s7743_s20 = sld [smem:[%s10072_s0 + %s7621_s15]]   ;;  %s7625_s15 = smov 23  }
  0x19   :  { %10189 = sst [smem:[#allocation12_spill]] %s7733_s4 }
  0x1a   :  { %10190 = sst [smem:[#allocation13_spill]] %s7738_s9 }
  0x1b   :  { %s7748_s12 = sld [smem:[%s10072_s0 + %s7622_s22]]   ;;  %s7626_s22 = smov 24  }
  0x1c   :  { %s7753_s4 = sld [smem:[%s10072_s0 + %s7623_s28]]   ;;  %s7627_s28 = smov 25  }
  0x1d   :  { %s7758_s9 = sld [smem:[%s10072_s0 + %s7624_s7]]   ;;  %s7628_s7 = smov 26  }
  0x1e   :  { %10191 = sst [smem:[#allocation14_spill]] %s7743_s20 }
  0x1f   :  { %s7763_s20 = sld [smem:[%s10072_s0 + %s7625_s15]]   ;;  %s7629_s15 = smov 27  }
  0x20   :  { %s7813_s10 = sld [smem:[%s10072_s0 + %s7635_s1]]  }
  0x21   :  { %10192 = sst [smem:[#allocation15_spill]] %s7748_s12 }
  0x22   :  { %10193 = sst [smem:[#allocation16_spill]] %s7753_s4 }
  0x23   :  { %10194 = sst [smem:[#allocation17_spill]] %s7758_s9 }
  0x24   :  { %s7768_s12 = sld [smem:[%s10072_s0 + %s7626_s22]]   ;;  %s7630_s22 = smov 28  }
  0x25   :  { %10195 = sst [smem:[#allocation18_spill]] %s7763_s20 }
  0x26   :  { %s7773_s4 = sld [smem:[%s10072_s0 + %s7627_s28]]   ;;  %s7631_s28 = smov 29  }
  0x27   :  { %s7778_s9 = sld [smem:[%s10072_s0 + %s7628_s7]]   ;;  %s7632_s7 = smov 30  }
  0x28   :  { %s7783_s20 = sld [smem:[%s10072_s0 + %s7629_s15]]   ;;  %s7633_s15 = smov 31  }
  0x2a   :  { %10196 = sst [smem:[#allocation19_spill]] %s7768_s12 }
  0x2b   :  { %s7788_s12 = sld [smem:[%s10072_s0 + %s7630_s22]]   ;;  %s7634_s22 = smov 32  }
  0x2c   :  { %10197 = sst [smem:[#allocation20_spill]] %s7773_s4 }
  0x2d   :  { %10198 = sst [smem:[#allocation21_spill]] %s7778_s9 }
  0x2e   :  { %10199 = sst [smem:[#allocation22_spill]] %s7783_s20 }
  0x2f   :  { %s7793_s4 = sld [smem:[%s10072_s0 + %s7631_s28]]  }
  0x30   :  { %s7798_s9 = sld [smem:[%s10072_s0 + %s7632_s7]]  }
  0x31   :  { %s7803_s20 = sld [smem:[%s10072_s0 + %s7633_s15]]  }
  0x32   :  { %s7808_s28 = sld [smem:[%s10072_s0 + %s7634_s22]]  }
  0x37   :  { %v145_v0 = vld [vmem:[%s7803_s20] sm:$0xff]  ;;  %v147_v1 = vld [vmem:[%s7803_s20 + $0x8] sm:$0xff]  ;;  %v149_v2 = vld [vmem:[%s7803_s20 + $0x10] sm:$0xff] }
  0x38   :  { %146 = vst [vmem:[#allocation2] sm:$0xff] %v145_v0  ;;  %v151_v3 = vld [vmem:[%s7803_s20 + $0x18] sm:$0xff]  ;;  %v153_v4 = vld [vmem:[%s7803_s20 + $0x20] sm:$0xff]  ;;  %v155_v5 = vld [vmem:[%s7803_s20 + $0x28] sm:$0xff] }
  0x39   :  { %148 = vst [vmem:[#allocation2 + $0x8] sm:$0xff] %v147_v1  ;;  %v157_v6 = vld [vmem:[%s7803_s20 + $0x30] sm:$0xff]  ;;  %v159_v7 = vld [vmem:[%s7803_s20 + $0x38] sm:$0xff]  ;;  %v161_v8 = vld [vmem:[%s7803_s20 + $0x40] sm:$0xff] }
  0x3a   :  { %150 = vst [vmem:[#allocation2 + $0x10] sm:$0xff] %v149_v2  ;;  %v163_v9 = vld [vmem:[%s7803_s20 + $0x48] sm:$0xff]  ;;  %v165_v10 = vld [vmem:[%s7803_s20 + $0x50] sm:$0xff]  ;;  %v167_v11 = vld [vmem:[%s7803_s20 + $0x58] sm:$0xff] }
  0x3b   :  { %152 = vst [vmem:[#allocation2 + $0x18] sm:$0xff] %v151_v3  ;;  %v169_v12 = vld [vmem:[%s7803_s20 + $0x60] sm:$0xff]  ;;  %v171_v13 = vld [vmem:[%s7803_s20 + $0x68] sm:$0xff]  ;;  %v173_v14 = vld [vmem:[%s7803_s20 + $0x70] sm:$0xff] }
  0x3c   :  { %154 = vst [vmem:[#allocation2 + $0x20] sm:$0xff] %v153_v4  ;;  %v175_v15 = vld [vmem:[%s7803_s20 + $0x78] sm:$0xff] }
  0x3d   :  { %156 = vst [vmem:[#allocation2 + $0x28] sm:$0xff] %v155_v5 }
  0x3e   :  { %158 = vst [vmem:[#allocation2 + $0x30] sm:$0xff] %v157_v6 }
  0x3f   :  { %160 = vst [vmem:[#allocation2 + $0x38] sm:$0xff] %v159_v7 }
  0x40   :  { %162 = vst [vmem:[#allocation2 + $0x40] sm:$0xff] %v161_v8 }
  0x41   :  { %164 = vst [vmem:[#allocation2 + $0x48] sm:$0xff] %v163_v9 }
  0x42   :  { %166 = vst [vmem:[#allocation2 + $0x50] sm:$0xff] %v165_v10 }
  0x43   :  { %168 = vst [vmem:[#allocation2 + $0x58] sm:$0xff] %v167_v11 }
  0x44   :  { %170 = vst [vmem:[#allocation2 + $0x60] sm:$0xff] %v169_v12 }
  0x45   :  { %172 = vst [vmem:[#allocation2 + $0x68] sm:$0xff] %v171_v13 }
  0x46   :  { %174 = vst [vmem:[#allocation2 + $0x70] sm:$0xff] %v173_v14 }
  0x47   :  { %176 = vst [vmem:[#allocation2 + $0x78] sm:$0xff] %v175_v15 }
  0x48   :  { %182 = vsyncadd [#allocation4], 2048  ;;  %v194_v16 = vld [vmem:[%s7808_s28] sm:$0xff]  ;;  %v196_v17 = vld [vmem:[%s7808_s28 + $0x8] sm:$0xff] }
  0x49   :  { %195 = vst [vmem:[#allocation3] sm:$0xff] %v194_v16  ;;  %v198_v18 = vld [vmem:[%s7808_s28 + $0x10] sm:$0xff]  ;;  %v200_v19 = vld [vmem:[%s7808_s28 + $0x18] sm:$0xff]  ;;  %v202_v20 = vld [vmem:[%s7808_s28 + $0x20] sm:$0xff] }
  0x4a   :  { %197 = vst [vmem:[#allocation3 + $0x8] sm:$0xff] %v196_v17  ;;  %v204_v21 = vld [vmem:[%s7808_s28 + $0x28] sm:$0xff]  ;;  %v206_v22 = vld [vmem:[%s7808_s28 + $0x30] sm:$0xff]  ;;  %v208_v23 = vld [vmem:[%s7808_s28 + $0x38] sm:$0xff] }
  0x4b   :  { %199 = vst [vmem:[#allocation3 + $0x10] sm:$0xff] %v198_v18  ;;  %v210_v24 = vld [vmem:[%s7808_s28 + $0x40] sm:$0xff]  ;;  %v212_v25 = vld [vmem:[%s7808_s28 + $0x48] sm:$0xff]  ;;  %v214_v26 = vld [vmem:[%s7808_s28 + $0x50] sm:$0xff] }
  0x4c   :  { %201 = vst [vmem:[#allocation3 + $0x18] sm:$0xff] %v200_v19  ;;  %v216_v27 = vld [vmem:[%s7808_s28 + $0x58] sm:$0xff]  ;;  %v218_v28 = vld [vmem:[%s7808_s28 + $0x60] sm:$0xff]  ;;  %v220_v29 = vld [vmem:[%s7808_s28 + $0x68] sm:$0xff] }
  0x4d   :  { %203 = vst [vmem:[#allocation3 + $0x20] sm:$0xff] %v202_v20  ;;  %v222_v30 = vld [vmem:[%s7808_s28 + $0x70] sm:$0xff]  ;;  %v224_v31 = vld [vmem:[%s7808_s28 + $0x78] sm:$0xff]  ;;  %v226_v32 = vld [vmem:[%s7808_s28 + $0x80] sm:$0xff] }
  0x4e   :  { %205 = vst [vmem:[#allocation3 + $0x28] sm:$0xff] %v204_v21  ;;  %v228_v33 = vld [vmem:[%s7808_s28 + $0x88] sm:$0xff]  ;;  %v230_v34 = vld [vmem:[%s7808_s28 + $0x90] sm:$0xff]  ;;  %v232_v35 = vld [vmem:[%s7808_s28 + $0x98] sm:$0xff] }
  0x4f   :  { %207 = vst [vmem:[#allocation3 + $0x30] sm:$0xff] %v206_v22  ;;  %v234_v36 = vld [vmem:[%s7808_s28 + $0xa0] sm:$0xff]  ;;  %v236_v37 = vld [vmem:[%s7808_s28 + $0xa8] sm:$0xff]  ;;  %v238_v38 = vld [vmem:[%s7808_s28 + $0xb0] sm:$0xff] }
  0x50   :  { %209 = vst [vmem:[#allocation3 + $0x38] sm:$0xff] %v208_v23  ;;  %v240_v39 = vld [vmem:[%s7808_s28 + $0xb8] sm:$0xff]  ;;  %v242_v40 = vld [vmem:[%s7808_s28 + $0xc0] sm:$0xff]  ;;  %v244_v41 = vld [vmem:[%s7808_s28 + $0xc8] sm:$0xff] }
  0x51   :  { %211 = vst [vmem:[#allocation3 + $0x40] sm:$0xff] %v210_v24  ;;  %v246_v42 = vld [vmem:[%s7808_s28 + $0xd0] sm:$0xff]  ;;  %v248_v43 = vld [vmem:[%s7808_s28 + $0xd8] sm:$0xff]  ;;  %v250_v44 = vld [vmem:[%s7808_s28 + $0xe0] sm:$0xff] }
  0x52   :  { %213 = vst [vmem:[#allocation3 + $0x48] sm:$0xff] %v212_v25  ;;  %v252_v45 = vld [vmem:[%s7808_s28 + $0xe8] sm:$0xff]  ;;  %v254_v46 = vld [vmem:[%s7808_s28 + $0xf0] sm:$0xff]  ;;  %v256_v47 = vld [vmem:[%s7808_s28 + $0xf8] sm:$0xff] }
  0x53   :  { %215 = vst [vmem:[#allocation3 + $0x50] sm:$0xff] %v214_v26  ;;  %v258_v48 = vld [vmem:[%s7808_s28 + $0x100] sm:$0xff]  ;;  %v260_v49 = vld [vmem:[%s7808_s28 + $0x108] sm:$0xff]  ;;  %v262_v50 = vld [vmem:[%s7808_s28 + $0x110] sm:$0xff] }
  0x54   :  { %217 = vst [vmem:[#allocation3 + $0x58] sm:$0xff] %v216_v27  ;;  %v264_v51 = vld [vmem:[%s7808_s28 + $0x118] sm:$0xff]  ;;  %v266_v52 = vld [vmem:[%s7808_s28 + $0x120] sm:$0xff]  ;;  %v268_v53 = vld [vmem:[%s7808_s28 + $0x128] sm:$0xff] }
  0x55   :  { %219 = vst [vmem:[#allocation3 + $0x60] sm:$0xff] %v218_v28  ;;  %v270_v54 = vld [vmem:[%s7808_s28 + $0x130] sm:$0xff]  ;;  %v272_v55 = vld [vmem:[%s7808_s28 + $0x138] sm:$0xff]  ;;  %v274_v56 = vld [vmem:[%s7808_s28 + $0x140] sm:$0xff] }
  0x56   :  { %221 = vst [vmem:[#allocation3 + $0x68] sm:$0xff] %v220_v29  ;;  %v276_v57 = vld [vmem:[%s7808_s28 + $0x148] sm:$0xff]  ;;  %v278_v58 = vld [vmem:[%s7808_s28 + $0x150] sm:$0xff]  ;;  %v280_v59 = vld [vmem:[%s7808_s28 + $0x158] sm:$0xff] }
  0x57   :  { %223 = vst [vmem:[#allocation3 + $0x70] sm:$0xff] %v222_v30  ;;  %v282_v60 = vld [vmem:[%s7808_s28 + $0x160] sm:$0xff]  ;;  %v284_v61 = vld [vmem:[%s7808_s28 + $0x168] sm:$0xff]  ;;  %v286_v62 = vld [vmem:[%s7808_s28 + $0x170] sm:$0xff] }
  0x58   :  { %225 = vst [vmem:[#allocation3 + $0x78] sm:$0xff] %v224_v31  ;;  %v288_v63 = vld [vmem:[%s7808_s28 + $0x178] sm:$0xff]  ;;  %v290_v0 = vld [vmem:[%s7808_s28 + $0x180] sm:$0xff]  ;;  %v292_v1 = vld [vmem:[%s7808_s28 + $0x188] sm:$0xff] }
  0x59   :  { %227 = vst [vmem:[#allocation3 + $0x80] sm:$0xff] %v226_v32  ;;  %v294_v2 = vld [vmem:[%s7808_s28 + $0x190] sm:$0xff]  ;;  %v296_v3 = vld [vmem:[%s7808_s28 + $0x198] sm:$0xff]  ;;  %v298_v4 = vld [vmem:[%s7808_s28 + $0x1a0] sm:$0xff] }
  0x5a   :  { %229 = vst [vmem:[#allocation3 + $0x88] sm:$0xff] %v228_v33  ;;  %v300_v5 = vld [vmem:[%s7808_s28 + $0x1a8] sm:$0xff]  ;;  %v302_v6 = vld [vmem:[%s7808_s28 + $0x1b0] sm:$0xff]  ;;  %v304_v7 = vld [vmem:[%s7808_s28 + $0x1b8] sm:$0xff] }
  0x5b   :  { %231 = vst [vmem:[#allocation3 + $0x90] sm:$0xff] %v230_v34  ;;  %v306_v8 = vld [vmem:[%s7808_s28 + $0x1c0] sm:$0xff]  ;;  %v308_v9 = vld [vmem:[%s7808_s28 + $0x1c8] sm:$0xff]  ;;  %v310_v10 = vld [vmem:[%s7808_s28 + $0x1d0] sm:$0xff] }
  0x5c   :  { %233 = vst [vmem:[#allocation3 + $0x98] sm:$0xff] %v232_v35  ;;  %v312_v11 = vld [vmem:[%s7808_s28 + $0x1d8] sm:$0xff]  ;;  %v314_v12 = vld [vmem:[%s7808_s28 + $0x1e0] sm:$0xff]  ;;  %v316_v13 = vld [vmem:[%s7808_s28 + $0x1e8] sm:$0xff] }
  0x5d   :  { %235 = vst [vmem:[#allocation3 + $0xa0] sm:$0xff] %v234_v36  ;;  %v318_v14 = vld [vmem:[%s7808_s28 + $0x1f0] sm:$0xff]  ;;  %v320_v15 = vld [vmem:[%s7808_s28 + $0x1f8] sm:$0xff] }
  0x5e   :  { %237 = vst [vmem:[#allocation3 + $0xa8] sm:$0xff] %v236_v37 }
  0x5f   :  { %239 = vst [vmem:[#allocation3 + $0xb0] sm:$0xff] %v238_v38 }
  0x60   :  { %241 = vst [vmem:[#allocation3 + $0xb8] sm:$0xff] %v240_v39 }
  0x61   :  { %243 = vst [vmem:[#allocation3 + $0xc0] sm:$0xff] %v242_v40 }
  0x62   :  { %245 = vst [vmem:[#allocation3 + $0xc8] sm:$0xff] %v244_v41 }
  0x63   :  { %247 = vst [vmem:[#allocation3 + $0xd0] sm:$0xff] %v246_v42 }
  0x64   :  { %249 = vst [vmem:[#allocation3 + $0xd8] sm:$0xff] %v248_v43 }
  0x65   :  { %251 = vst [vmem:[#allocation3 + $0xe0] sm:$0xff] %v250_v44 }
  0x66   :  { %253 = vst [vmem:[#allocation3 + $0xe8] sm:$0xff] %v252_v45 }
  0x67   :  { %255 = vst [vmem:[#allocation3 + $0xf0] sm:$0xff] %v254_v46 }
  0x68   :  { %257 = vst [vmem:[#allocation3 + $0xf8] sm:$0xff] %v256_v47 }
  0x69   :  { %259 = vst [vmem:[#allocation3 + $0x100] sm:$0xff] %v258_v48 }
  0x6a   :  { %261 = vst [vmem:[#allocation3 + $0x108] sm:$0xff] %v260_v49 }
  0x6b   :  { %263 = vst [vmem:[#allocation3 + $0x110] sm:$0xff] %v262_v50 }
  0x6c   :  { %265 = vst [vmem:[#allocation3 + $0x118] sm:$0xff] %v264_v51 }
  0x6d   :  { %267 = vst [vmem:[#allocation3 + $0x120] sm:$0xff] %v266_v52 }
  0x6e   :  { %269 = vst [vmem:[#allocation3 + $0x128] sm:$0xff] %v268_v53 }
  0x6f   :  { %271 = vst [vmem:[#allocation3 + $0x130] sm:$0xff] %v270_v54 }
  0x70   :  { %273 = vst [vmem:[#allocation3 + $0x138] sm:$0xff] %v272_v55 }
  0x71   :  { %275 = vst [vmem:[#allocation3 + $0x140] sm:$0xff] %v274_v56 }
  0x72   :  { %277 = vst [vmem:[#allocation3 + $0x148] sm:$0xff] %v276_v57 }
  0x73   :  { %279 = vst [vmem:[#allocation3 + $0x150] sm:$0xff] %v278_v58 }
  0x74   :  { %281 = vst [vmem:[#allocation3 + $0x158] sm:$0xff] %v280_v59 }
  0x75   :  { %283 = vst [vmem:[#allocation3 + $0x160] sm:$0xff] %v282_v60 }
  0x76   :  { %285 = vst [vmem:[#allocation3 + $0x168] sm:$0xff] %v284_v61 }
  0x77   :  { %287 = vst [vmem:[#allocation3 + $0x170] sm:$0xff] %v286_v62 }
  0x78   :  { %289 = vst [vmem:[#allocation3 + $0x178] sm:$0xff] %v288_v63 }
  0x79   :  { %291 = vst [vmem:[#allocation3 + $0x180] sm:$0xff] %v290_v0 }
  0x7a   :  { %293 = vst [vmem:[#allocation3 + $0x188] sm:$0xff] %v292_v1 }
  0x7b   :  { %295 = vst [vmem:[#allocation3 + $0x190] sm:$0xff] %v294_v2 }
  0x7c   :  { %297 = vst [vmem:[#allocation3 + $0x198] sm:$0xff] %v296_v3 }
  0x7d   :  { %299 = vst [vmem:[#allocation3 + $0x1a0] sm:$0xff] %v298_v4 }
  0x7e   :  { %301 = vst [vmem:[#allocation3 + $0x1a8] sm:$0xff] %v300_v5 }
  0x7f   :  { %303 = vst [vmem:[#allocation3 + $0x1b0] sm:$0xff] %v302_v6 }
  0x80   :  { %305 = vst [vmem:[#allocation3 + $0x1b8] sm:$0xff] %v304_v7 }
  0x81   :  { %307 = vst [vmem:[#allocation3 + $0x1c0] sm:$0xff] %v306_v8 }
  0x82   :  { %309 = vst [vmem:[#allocation3 + $0x1c8] sm:$0xff] %v308_v9 }
  0x83   :  { %311 = vst [vmem:[#allocation3 + $0x1d0] sm:$0xff] %v310_v10 }
  0x84   :  { %313 = vst [vmem:[#allocation3 + $0x1d8] sm:$0xff] %v312_v11 }
  0x85   :  { %315 = vst [vmem:[#allocation3 + $0x1e0] sm:$0xff] %v314_v12 }
  0x86   :  { %317 = vst [vmem:[#allocation3 + $0x1e8] sm:$0xff] %v316_v13 }
  0x87   :  { %319 = vst [vmem:[#allocation3 + $0x1f0] sm:$0xff] %v318_v14 }
  0x88   :  { %321 = vst [vmem:[#allocation3 + $0x1f8] sm:$0xff] %v320_v15 }
  0x89   :  { %327 = vsyncadd [#allocation4 + $0x1], 8192  ;;  %v7000_v16 = vld [vmem:[%s7668_s21 + $0x8] sm:$0xff]  ;;  %v6999_v17 = vld [vmem:[%s7668_s21] sm:$0xff]  ;;  %vm356_vm0 = vcmask 261120   ;;  %s7636_s0 = smov 64  }
  0x8a   :  { %v7898_v18 = vld [vmem:[%s7648_s5] sm:$0xff]  ;;  %366 = vmatpush.bf16.msra.mxu0 %v7000_v16  ;;  %v7901_v19 = vld [vmem:[%s7648_s5 + $0x8] sm:$0xff]  ;;  %v7907_v21 = vld [vmem:[%s7658_s13 + $0x18] sm:$0xff]  ;;  %s7637_s5 = smov 96   ;;  %vm466_vm1 = vcmask 1043456   ;;  %vm453_vm2 = vcmask 31744  }
  0x8b   :  { %v335_v20 = vpack.c.bf16 %v7901_v19, %v7898_v18  ;;  %v7910_v22 = vld [vmem:[%s7658_s13 + $0x10] sm:$0xff]  ;;  %410 = vmatpush.msra.mxu1 %v7907_v21  ;;  %v7286_v23 = vld [vmem:[%s7673_s25] ss:$0 sm:$0xff]  ;;  %v7920_v28 = vld [vmem:[%s7658_s13 + $0x8] sm:$0xff]  ;;  %s10202_s21 = sld [smem:[#allocation12_spill]] }
  0x8c   :  { %v7924_v29 = vld [vmem:[%s7658_s13] sm:$0xff]  ;;  %v7002_v3 = vld [vmem:[%s7678_s29 + $0x8] sm:$0xff]  ;;  %s10200_s13 = sld [smem:[#allocation10_spill]] }
  0x8d   :  { %411 = vmatpush.msra.mxu1 %v7910_v22  ;;  %v7932_v37 = vld [vmem:[%s7663_s17] sm:$0xf]  ;;  %541 = vmatpush.bf16.msra.mxu3 %v7002_v3  ;;  %s10201_s17 = sld [smem:[#allocation11_spill]] }
  0x8e   :  { %367 = vmatpush.bf16.msra.mxu0 %v6999_v17  ;;  %5860 = vmatpush.msk.msra.mxu2 %vm466_vm1, %v7932_v37  ;;  %v7001_v4 = vld [vmem:[%s7678_s29] sm:$0xff]  ;;  %s10203_s25 = sld [smem:[#allocation13_spill]] }
  0x8f   :  { %412 = vmatpush.msra.mxu1 %v7920_v28  ;;  %v7007_v3 = vld [vmem:[%s7698_s19 + $0x1c] sm:$0xf0]  ;;  %s10204_s29 = sld [smem:[#allocation14_spill]] }
  0x90   :  { %s10212_s20 = sld [smem:[#allocation22_spill]] }
  0x91   :  { %5855 = vmatmul.msk.bf16.vlgmr.msra.gmra.mxu0 %vm356_vm0, %v335_v20  ;;  %413 = vmatpush.msra.mxu1 %v7924_v29  ;;  %v7287_v20 = vld [vmem:[%s7683_s3] ss:$0 sm:$0xff]  ;;  %s10205_s3 = sld [smem:[#allocation17_spill]] }
  0x92   :  { %542 = vmatpush.bf16.msra.mxu3 %v7001_v4  ;;  %v5884_v4 = vld [vmem:[%s7698_s19 + $0x8] sm:$0xf] }
 0x10e   :  { %v369_v24 = vpop.f32.mrf.mxu0 }
 0x10f   :  { %v370_v25 = vadd.f32 %v7286_v23, %v369_v24 }
 0x111   :  { %499 = vrot.lane.b32.xlu1 %v370_v25, %s7636_s0  ;;  %375 = vrot.lane.b32.xlu0 %v370_v25, %s7637_s5 }
 0x116   :  { %v371_v26 = vpop.f32.mrf.mxu0 }
 0x117   :  { %v372_v27 = vadd.f32 %v7286_v23, %v371_v26 }
 0x119   :  { %503 = vrot.lane.b32.xlu1 %v372_v27, %s7636_s0  ;;  %380 = vrot.lane.b32.xlu0 %v372_v27, %s7637_s5 }
 0x183   :  { %v376_v30 = vpop.permute.xlu0 %375  ;;  %v500_v7 = vpop.permute.xlu1 %499 }
 0x184   :  { %v378_v31 = vmul.f32 %v376_v30, %v370_v25  ;;  %v384_v34 = vmul.f32 %v376_v30, %v372_v27 }
 0x186   :  { %5856 = vmatmul.msk.f32.vlgmr.msra.gmra.mxu1 %vm356_vm0, %v378_v31 }
 0x18b   :  { %v381_v32 = vpop.permute.xlu0 %380  ;;  %v504_v9 = vpop.permute.xlu1 %503 }
 0x18c   :  { %v383_v33 = vmul.f32 %v381_v32, %v370_v25  ;;  %v385_v35 = vmul.f32 %v381_v32, %v372_v27 }
 0x18e   :  { %5857 = vmatmul.msk.f32.gmra.mxu1 %vm356_vm0, %v383_v33  ;;  %v7638_v33 = vmov 32.0  }
 0x196   :  { %5858 = vmatmul.msk.f32.gmra.mxu1 %vm356_vm0, %v384_v34 }
 0x19e   :  { %5859 = vmatmul.msk.f32.gmra.mxu1 %vm356_vm0, %v385_v35 }
 0x203   :  { %v415_v36 = vpop.f32.mrf.mxu1 }
 0x204   :  { %v427_v39 = vmul.f32 0.35355338, %v415_v36 }
 0x20b   :  { %v418_v38 = vpop.f32.mrf.mxu1 }
 0x20c   :  { %v428_v40 = vmul.f32 0.35355338, %v418_v38 }
 0x20e   :  { %v431_v41 = vmax.f32 %v427_v39, %v428_v40 }
 0x210   :  { %v432_v42 = vsub.f32 %v427_v39, %v431_v41  ;;  %v435_v43 = vsub.f32 %v428_v40, %v431_v41 }
 0x212   :  { %v433_v44 = vmul.f32 1.442695, %v432_v42  ;;  %v436_v45 = vmul.f32 1.442695, %v435_v43 }
 0x213   :  { %v421_v46 = vpop.f32.mrf.mxu1 }
 0x214   :  { %7300 = vpow2.f32 %v433_v44  ;;  %v429_v51 = vmul.f32 0.35355338, %v421_v46 }
 0x215   :  { %7302 = vpow2.f32 %v436_v45 }
 0x21a   :  { %v7301_v47 = vpop.eup %7300 }
 0x21b   :  { %v7303_v48 = vpop.eup %7302  ;;  %v424_v49 = vpop.f32.mrf.mxu1 }
 0x21c   :  { %v438_v50 = vadd.f32 %v7303_v48, %v7301_v47  ;;  %v430_v52 = vmul.f32 0.35355338, %v424_v49  ;;  %v7011_v49 = vld [vmem:[%s7698_s19 + $0x44] sm:$0xf] }
 0x21e   :  { %v442_v53 = vmax.f32 %v429_v51, %v430_v52  ;;  %7304 = vrcp.f32 %v438_v50  ;;  %v5910_v50 = vld [vmem:[%s7698_s19 + $0x60] sm:$0xf0] }
 0x220   :  { %v443_v54 = vsub.f32 %v429_v51, %v442_v53  ;;  %v446_v55 = vsub.f32 %v430_v52, %v442_v53  ;;  %v5916_v51 = vld [vmem:[%s7698_s19 + $0x48] sm:$0xf]  ;;  %v5913_v52 = vor.u32 %v7011_v49, %v5910_v50 }
 0x221   :  { %v7016_v53 = vld [vmem:[%s7698_s19 + $0x64] sm:$0xf0] }
 0x222   :  { %v444_v56 = vmul.f32 1.442695, %v443_v54  ;;  %v447_v57 = vmul.f32 1.442695, %v446_v55  ;;  %v5908_v54 = vld [vmem:[%s7698_s19 + $0x40] sm:$0xf]  ;;  %752 = vmatpush.bf16.msrb.mxu3 %v5913_v52 }
 0x223   :  { %v7015_v55 = vld [vmem:[%s7698_s19 + $0x5c] sm:$0xf0] }
 0x224   :  { %v7305_v58 = vpop.eup %7304  ;;  %7306 = vpow2.f32 %v444_v56  ;;  %v5917_v56 = vor.u32 %v7016_v53, %v5916_v51  ;;  %v7288_v53 = vld [vmem:[%s7688_s8] ss:$0 sm:$0xff]  ;;  %s10206_s8 = sld [smem:[#allocation15_spill]] }
 0x225   :  { %7308 = vpow2.f32 %v447_v57  ;;  %v440_v59 = vmul.f32 %v7305_v58, %v7301_v47  ;;  %v441_v63 = vmul.f32 %v7305_v58, %v7303_v48  ;;  %v5909_v57 = vor.u32 %v7015_v55, %v5908_v54  ;;  %v5924_v58 = vld [vmem:[%s7698_s19 + $0x50] sm:$0xf] }
 0x226   :  { %766 = vmatpush.bf16.msrb.mxu2 %v5917_v56 }
 0x227   :  { %5861 = vmatmul.msk.f32.vlgmr.msra.gmra.mxu2 %vm453_vm2, %v440_v59  ;;  %v7017_v59 = vld [vmem:[%s7698_s19 + $0x6c] sm:$0xf0]  ;;  %738 = vmatpush.bf16.msrb.mxu0 %v5909_v57  ;;  %v7289_v57 = vld [vmem:[%s7693_s14] ss:$0 sm:$0xff]  ;;  %s10207_s14 = sld [smem:[#allocation16_spill]] }
 0x22a   :  { %v7307_v60 = vpop.eup %7306 }
 0x22b   :  { %v7309_v61 = vpop.eup %7308 }
 0x22c   :  { %v449_v62 = vadd.f32 %v7309_v61, %v7307_v60 }
 0x22e   :  { %7310 = vrcp.f32 %v449_v62 }
 0x22f   :  { %5862 = vmatmul.msk.f32.gmra.mxu2 %vm453_vm2, %v441_v63  ;;  %7312 = vrcp.f32 %v7638_v33  ;;  %v7003_v63 = vld [vmem:[%s7698_s19 + $0x4] sm:$0xf] }
 0x234   :  { %v7311_v0 = vpop.eup %7310 }
 0x235   :  { %v451_v1 = vmul.f32 %v7311_v0, %v7307_v60  ;;  %v452_v2 = vmul.f32 %v7311_v0, %v7309_v61  ;;  %v7313_v34 = vpop.eup %7312  ;;  %v5925_v61 = vor.u32 %v7017_v59, %v5924_v58  ;;  %v5878_v0 = vld [vmem:[%s7698_s19 + $0x20] sm:$0xf0] }
 0x236   :  { %v560_v35 = vmul.f32 32.0, %v7313_v34  ;;  %vm564_vm3 = vweird.f32 %v7313_v34 }
 0x237   :  { %5863 = vmatmul.msk.f32.gmra.mxu2 %vm453_vm2, %v451_v1  ;;  %v5876_v1 = vld [vmem:[%s7698_s19] sm:$0xf]  ;;  %794 = vmatpush.bf16.msrb.mxu1 %v5925_v61  ;;  %v7014_v61 = vld [vmem:[%s7698_s19 + $0x5c] sm:$0xf] }
 0x238   :  { %v561_v36 = vsub.f32 1.0, %v560_v35  ;;  %v5894_v35 = vld [vmem:[%s7698_s19 + $0x30] sm:$0xf0] }
 0x23a   :  { %v562_v38 = vmul.f32 %v7313_v34, %v561_v36  ;;  %v5900_v36 = vld [vmem:[%s7698_s19 + $0x18] sm:$0xf] }
 0x23c   :  { %v563_v39 = vadd.f32 %v7313_v34, %v562_v38 }
 0x23f   :  { %5864 = vmatmul.msk.f32.gmra.mxu2 %vm453_vm2, %v452_v2  ;;  %v5881_v2 = vor.u32 %v7003_v63, %v5878_v0 }
 0x241   :  { %753 = vmatpush.bf16.msrb.mxu3 %v5881_v2  ;;  %v7006_v2 = vld [vmem:[%s7698_s19 + $0x1c] sm:$0xf] }
 0x2aa   :  { %v487_v5 = vpop.f32.mrf.mxu2 }
 0x2ab   :  { %v502_v12 = vmul.f32 %v500_v7, %v487_v5  ;;  %v7008_v5 = vld [vmem:[%s7698_s19 + $0x24] sm:$0xf0] }
 0x2b2   :  { %v490_v6 = vpop.f32.mrf.mxu2 }
 0x2b3   :  { %v506_v10 = vmul.f32 %v504_v9, %v490_v6 }
 0x2b5   :  { %v507_v15 = vadd.f32 %v506_v10, %v502_v12  ;;  %v7009_v10 = vld [vmem:[%s7698_s19 + $0x2c] sm:$0xf0] }
 0x2ba   :  { %v493_v8 = vpop.f32.mrf.mxu2 }
 0x2bb   :  { %v508_v13 = vmul.f32 %v500_v7, %v493_v8  ;;  %v5877_v7 = vor.u32 %v7007_v3, %v5876_v1  ;;  %v5885_v8 = vor.u32 %v7008_v5, %v5884_v4  ;;  %v5902_v3 = vld [vmem:[%s7698_s19 + $0x38] sm:$0xf0] }
 0x2bc   :  { %v7026_v4 = vld [vmem:[%s7708_s30 + $0x38] sm:$0xff]  ;;  %v5905_v5 = vor.u32 %v7006_v2, %v5902_v3  ;;  %v7067_v3 = vld [vmem:[%s7708_s30 + $0x180] sm:$0xff] }
 0x2bd   :  { %739 = vmatpush.bf16.msrb.mxu0 %v5877_v7  ;;  %767 = vmatpush.bf16.msrb.mxu2 %v5885_v8  ;;  %v7025_v7 = vld [vmem:[%s7708_s30 + $0x30] sm:$0xff]  ;;  %v7032_v8 = vld [vmem:[%s7708_s30 + $0x68] sm:$0xff] }
 0x2c2   :  { %v496_v11 = vpop.f32.mrf.mxu2 }
 0x2c3   :  { %v509_v14 = vmul.f32 %v504_v9, %v496_v11  ;;  %v5892_v9 = vld [vmem:[%s7698_s19 + $0x10] sm:$0xf] }
 0x2c4   :  { %v5893_v11 = vor.u32 %v7009_v10, %v5892_v9  ;;  %v7024_v9 = vld [vmem:[%s7708_s30 + $0x28] sm:$0xff]  ;;  %v7031_v10 = vld [vmem:[%s7708_s30 + $0x60] sm:$0xff] }
 0x2c5   :  { %v510_v16 = vadd.f32 %v509_v14, %v508_v13  ;;  %v7012_v13 = vld [vmem:[%s7698_s19 + $0x4c] sm:$0xf] }
 0x2c6   :  { %795 = vmatpush.bf16.msrb.mxu1 %v5893_v11  ;;  %v5918_v14 = vld [vmem:[%s7698_s19 + $0x68] sm:$0xf0]  ;;  %v7023_v11 = vld [vmem:[%s7708_s30 + $0x20] sm:$0xff] }
 0x2c7   :  { %v511_v17 = vpack.c.bf16 %v510_v16, %v507_v15  ;;  %v7013_v15 = vld [vmem:[%s7698_s19 + $0x54] sm:$0xf] }
 0x2c9   :  { %5873 = vmatmul.msk.bf16.vlgmr.msra.gmra.mxu3 %vm356_vm0, %v511_v17  ;;  %v5921_v17 = vor.u32 %v7012_v13, %v5918_v14  ;;  %v7030_v13 = vld [vmem:[%s7708_s30 + $0x58] sm:$0xff] }
 0x2ca   :  { %1384 = vmatpush.bf16.msra.mxu1 %v7026_v4  ;;  %v7022_v14 = vld [vmem:[%s7708_s30 + $0x18] sm:$0xff]  ;;  %v7077_v4 = vld [vmem:[%s7708_s30 + $0x1d0] sm:$0xff] }
 0x2cb   :  { %780 = vmatpush.bf16.msra.mxu0 %v5921_v17  ;;  %v7021_v17 = vld [vmem:[%s7708_s30 + $0x10] sm:$0xff] }
 0x2ce   :  { %1385 = vmatpush.bf16.msra.mxu1 %v7025_v7 }
 0x2d2   :  { %1386 = vmatpush.bf16.msra.mxu1 %v7024_v9 }
 0x2d6   :  { %1387 = vmatpush.bf16.msra.mxu1 %v7023_v11 }
 0x2da   :  { %1388 = vmatpush.bf16.msra.mxu1 %v7022_v14 }
 0x2de   :  { %1389 = vmatpush.bf16.msra.mxu1 %v7021_v17 }
 0x34c   :  { %v544_v23 = vpop.f32.mrf.mxu3 }
 0x34d   :  { %v545_v24 = vadd.f32 %v7287_v20, %v544_v23  ;;  %v5932_v23 = vld [vmem:[%s7698_s19 + $0x58] sm:$0xf] }
 0x34f   :  { %v549_v25 = vadd.f32 %v545_v24, %v7898_v18  ;;  %v7948_v18 = vsel %vm564_vm3, %v7313_v34, %v563_v39  ;;  %v7018_v24 = vld [vmem:[%s7698_s19 + $0x74] sm:$0xf0] }
 0x351   :  { %v553_v26 = vsel %vm356_vm0, %v549_v25, 0.0 }
 0x352   :  { %554 = vadd.xlane.f32.xlu2 %v553_v26  ;;  %v5933_v26 = vor.u32 %v7018_v24, %v5932_v23  ;;  %v7028_v23 = vld [vmem:[%s7708_s30 + $0x48] sm:$0xff] }
 0x353   :  { %v7020_v24 = vld [vmem:[%s7708_s30 + $0x8] sm:$0xff] }
 0x354   :  { %v546_v27 = vpop.f32.mrf.mxu3  ;;  %822 = vmatpush.bf16.msra.mxu2 %v5933_v26  ;;  %v7027_v26 = vld [vmem:[%s7708_s30 + $0x40] sm:$0xff]  ;;  %1390 = vmatpush.bf16.msra.mxu1 %v7020_v24 }
 0x355   :  { %v547_v30 = vadd.f32 %v7287_v20, %v546_v27  ;;  %v5926_v20 = vld [vmem:[%s7698_s19 + $0x70] sm:$0xf0]  ;;  %v7004_v27 = vld [vmem:[%s7698_s19 + $0xc] sm:$0xf] }
 0x357   :  { %v550_v31 = vadd.f32 %v547_v30, %v7901_v19  ;;  %v5886_v30 = vld [vmem:[%s7698_s19 + $0x28] sm:$0xf0] }
 0x358   :  { %v5889_v34 = vor.u32 %v7004_v27, %v5886_v30  ;;  %v7042_v27 = vld [vmem:[%s7708_s30 + $0xb8] sm:$0xff]  ;;  %v7019_v30 = vld [vmem:[%s7708_s30] sm:$0xff] }
 0x359   :  { %v556_v32 = vsel %vm356_vm0, %v550_v31, 0.0  ;;  %1391 = vmatpush.bf16.msra.mxu1 %v7019_v30  ;;  %v7066_v30 = vld [vmem:[%s7708_s30 + $0x178] sm:$0xff] }
 0x35a   :  { %557 = vadd.xlane.f32.xlu2 %v556_v32  ;;  %781 = vmatpush.bf16.msra.mxu0 %v5889_v34  ;;  %v7046_v34 = vld [vmem:[%s7708_s30 + $0xd8] sm:$0xff] }
 0x3c5   :  { %v555_v40 = vpop.xlane.xlu2 %554 }
 0x3c6   :  { %v566_v19 = vmul.f32 %v7948_v18, %v555_v40  ;;  %v7010_v40 = vld [vmem:[%s7698_s19 + $0x34] sm:$0xf0] }
 0x3c8   :  { %v7951_v41 = vsub.f32 %v549_v25, %v566_v19  ;;  %v5929_v25 = vor.u32 %v7013_v15, %v5926_v20  ;;  %v5901_v19 = vor.u32 %v7010_v40, %v5900_v36  ;;  %v7049_v15 = vld [vmem:[%s7708_s30 + $0xf0] sm:$0xff]  ;;  %v7048_v20 = vld [vmem:[%s7708_s30 + $0xe8] sm:$0xff]  ;;  %v7039_v36 = vld [vmem:[%s7708_s30 + $0xa0] sm:$0xff] }
 0x3c9   :  { %v7056_v40 = vld [vmem:[%s7708_s30 + $0x128] sm:$0xff] }
 0x3ca   :  { %v570_v42 = vmul.f32 %v7951_v41, %v7951_v41  ;;  %808 = vmatpush.bf16.msra.mxu3 %v5929_v25  ;;  %823 = vmatpush.bf16.msra.mxu2 %v5901_v19  ;;  %v7047_v25 = vld [vmem:[%s7708_s30 + $0xe0] sm:$0xff]  ;;  %v7038_v19 = vld [vmem:[%s7708_s30 + $0x98] sm:$0xff] }
 0x3cc   :  { %v572_v43 = vsel %vm356_vm0, %v570_v42, 0.0 }
 0x3cd   :  { %573 = vadd.xlane.f32.xlu0 %v572_v43  ;;  %v558_v44 = vpop.xlane.xlu2 %557 }
 0x3ce   :  { %v567_v45 = vmul.f32 %v7948_v18, %v558_v44 }
 0x3d0   :  { %v7957_v46 = vsub.f32 %v550_v31, %v567_v45  ;;  %v7005_v31 = vld [vmem:[%s7698_s19 + $0x14] sm:$0xf] }
 0x3d1   :  { %v5897_v39 = vor.u32 %v7005_v31, %v5894_v35  ;;  %v7041_v31 = vld [vmem:[%s7708_s30 + $0xb0] sm:$0xff] }
 0x3d2   :  { %v571_v47 = vmul.f32 %v7957_v46, %v7957_v46  ;;  %v7057_v35 = vld [vmem:[%s7708_s30 + $0x130] sm:$0xff] }
 0x3d3   :  { %809 = vmatpush.bf16.msra.mxu3 %v5897_v39  ;;  %v7045_v39 = vld [vmem:[%s7708_s30 + $0xd0] sm:$0xff] }
 0x3d4   :  { %v575_v48 = vsel %vm356_vm0, %v571_v47, 0.0 }
 0x3d5   :  { %576 = vadd.xlane.f32.xlu1 %v575_v48 }
 0x440   :  { %v574_v60 = vpop.xlane.xlu0 %573 }
 0x441   :  { %v578_v62 = vmul.f32 %v574_v60, %v7948_v18 }
 0x443   :  { %v580_v6 = vadd.f32 1e-05, %v578_v62  ;;  %v5934_v62 = vld [vmem:[%s7698_s19 + $0x78] sm:$0xf0]  ;;  %s10208_s19 = sld [smem:[#allocation19_spill]] }
 0x444   :  { %v5937_v1 = vor.u32 %v7014_v61, %v5934_v62  ;;  %v7079_v61 = vld [vmem:[%s7708_s30 + $0x1e0] sm:$0xff]  ;;  %v7068_v62 = vld [vmem:[%s7708_s30 + $0x188] sm:$0xff] }
 0x445   :  { %7314 = vrsqrt.f32 %v580_v6  ;;  %vm588_vm5 = vweird.f32 %v580_v6 }
 0x448   :  { %v577_v12 = vpop.xlane.xlu1 %576 }
 0x449   :  { %v579_v16 = vmul.f32 %v577_v12, %v7948_v18  ;;  %v7050_v12 = vld [vmem:[%s7708_s30 + $0xf8] sm:$0xff] }
 0x44b   :  { %v7315_v32 = vpop.eup %7314  ;;  %v581_v33 = vadd.f32 1e-05, %v579_v16  ;;  %v7029_v16 = vld [vmem:[%s7708_s30 + $0x50] sm:$0xff] }
 0x44c   :  { %v583_v38 = vmul.f32 %v7315_v32, %v580_v6  ;;  %vm589_vm4 = vweird.f32 %v7315_v32  ;;  %v7033_v6 = vld [vmem:[%s7708_s30 + $0x70] sm:$0xff] }
 0x44d   :  { %7316 = vrsqrt.f32 %v581_v33  ;;  %vm590_vm6 = vmor %vm588_vm5, %vm589_vm4  ;;  %vm598_vm8 = vweird.f32 %v581_v33 }
 0x44e   :  { %v584_v42 = vmul.f32 %v7315_v32, %v583_v38  ;;  %v7074_v38 = vld [vmem:[%s7708_s30 + $0x1b8] sm:$0xff] }
 0x450   :  { %v585_v43 = vmul.f32 0.5, %v584_v42  ;;  %v7073_v42 = vld [vmem:[%s7708_s30 + $0x1b0] sm:$0xff] }
 0x452   :  { %v586_v44 = vsub.f32 1.5, %v585_v43  ;;  %v7044_v43 = vld [vmem:[%s7708_s30 + $0xc8] sm:$0xff] }
 0x453   :  { %v7317_v45 = vpop.eup %7316 }
 0x454   :  { %v587_v47 = vmul.f32 %v7315_v32, %v586_v44  ;;  %v593_v48 = vmul.f32 %v7317_v45, %v581_v33  ;;  %vm599_vm7 = vweird.f32 %v7317_v45  ;;  %v7040_v33 = vld [vmem:[%s7708_s30 + $0xa8] sm:$0xff]  ;;  %v7055_v44 = vld [vmem:[%s7708_s30 + $0x120] sm:$0xff] }
 0x455   :  { %vm600_vm9 = vmor %vm598_vm8, %vm599_vm7 }
 0x456   :  { %v594_v49 = vmul.f32 %v7317_v45, %v593_v48  ;;  %v591_v50 = vsel %vm590_vm6, %v7315_v32, %v587_v47  ;;  %v7058_v32 = vld [vmem:[%s7708_s30 + $0x138] sm:$0xff]  ;;  %v7072_v47 = vld [vmem:[%s7708_s30 + $0x1a8] sm:$0xff]  ;;  %v7043_v48 = vld [vmem:[%s7708_s30 + $0xc0] sm:$0xff] }
 0x457   :  { %v602_v54 = vmul.f32 %v591_v50, %v7951_v41  ;;  %v7082_v50 = vld [vmem:[%s7708_s30 + $0x1f8] sm:$0xff] }
 0x458   :  { %v595_v51 = vmul.f32 0.5, %v594_v49  ;;  %v7054_v49 = vld [vmem:[%s7708_s30 + $0x118] sm:$0xff] }
 0x459   :  { %v607_v58 = vmul.f32 %v7288_v53, %v602_v54  ;;  %v7081_v54 = vld [vmem:[%s7708_s30 + $0x1f0] sm:$0xff] }
 0x45a   :  { %v596_v52 = vsub.f32 1.5, %v595_v51  ;;  %v7036_v51 = vld [vmem:[%s7708_s30 + $0x88] sm:$0xff] }
 0x45b   :  { %v7998_v63 = vadd.f32 %v7289_v57, %v607_v58  ;;  %v7080_v58 = vld [vmem:[%s7708_s30 + $0x1e8] sm:$0xff] }
 0x45c   :  { %v597_v55 = vmul.f32 %v7317_v45, %v596_v52  ;;  %v7071_v52 = vld [vmem:[%s7708_s30 + $0x1a0] sm:$0xff] }
 0x45e   :  { %v601_v56 = vsel %vm600_vm9, %v7317_v45, %v597_v55  ;;  %v7037_v45 = vld [vmem:[%s7708_s30 + $0x90] sm:$0xff]  ;;  %v7035_v55 = vld [vmem:[%s7708_s30 + $0x80] sm:$0xff] }
 0x45f   :  { %v603_v59 = vmul.f32 %v601_v56, %v7957_v46  ;;  %v7034_v46 = vld [vmem:[%s7708_s30 + $0x78] sm:$0xff] }
 0x460   :  { %v7070_v56 = vld [vmem:[%s7708_s30 + $0x198] sm:$0xff] }
 0x461   :  { %v608_v60 = vmul.f32 %v7288_v53, %v603_v59  ;;  %v7053_v53 = vld [vmem:[%s7708_s30 + $0x110] sm:$0xff] }
 0x462   :  { %v7069_v59 = vld [vmem:[%s7708_s30 + $0x190] sm:$0xff] }
 0x463   :  { %v8000_v0 = vadd.f32 %v7289_v57, %v608_v60  ;;  %v7052_v57 = vld [vmem:[%s7708_s30 + $0x108] sm:$0xff]  ;;  %v7051_v60 = vld [vmem:[%s7708_s30 + $0x100] sm:$0xff] }
 0x465   :  { %v614_v41 = vpack.c.bf16 %v8000_v0, %v7998_v63 }
 0x467   :  { %5938 = vmatmul.msk.bf16.vlgmr.msrb.gmra.mxu0 %vm356_vm0, %v614_v41  ;;  %5939 = vmatmul.msk.bf16.vlgmr.msrb.gmra.mxu3 %vm356_vm0, %v614_v41 }
 0x468   :  { %5940 = vmatmul.msk.bf16.vlgmr.msrb.gmra.mxu2 %vm356_vm0, %v614_v41  ;;  %5942 = vmatmul.msk.bf16.vlgmr.msrb.gmra.mxu1 %vm356_vm0, %v614_v41 }
 0x469   :  { %836 = vmatpush.bf16.msrb.mxu0 %v5937_v1  ;;  %1398 = vmatpush.bf16.msrb.mxu3 %v7034_v46  ;;  %v8067_v1 = vld [vmem:[%s7703_s24] sm:$0xff]  ;;  %s10209_s24 = sld [smem:[#allocation18_spill]] }
 0x46a   :  { %1440 = vmatpush.bf16.msrb.mxu1 %v7058_v32  ;;  %1468 = vmatpush.bf16.msrb.mxu2 %v7074_v38  ;;  %v633_v46 = vperm.slane %v8067_v1, 0  ;;  %v634_v11 = vperm.slane %v8067_v1, 1 }
 0x46d   :  { %837 = vmatpush.bf16.msrb.mxu0 %v5905_v5  ;;  %1399 = vmatpush.bf16.msrb.mxu3 %v7033_v6 }
 0x46e   :  { %1441 = vmatpush.bf16.msrb.mxu1 %v7057_v35  ;;  %1469 = vmatpush.bf16.msrb.mxu2 %v7073_v42  ;;  %v7065_v35 = vld [vmem:[%s7708_s30 + $0x170] sm:$0xff] }
 0x471   :  { %1400 = vmatpush.bf16.msrb.mxu3 %v7032_v8  ;;  %v7076_v8 = vld [vmem:[%s7708_s30 + $0x1c8] sm:$0xff] }
 0x472   :  { %1442 = vmatpush.bf16.msrb.mxu1 %v7056_v40  ;;  %1470 = vmatpush.bf16.msrb.mxu2 %v7072_v47 }
 0x475   :  { %1401 = vmatpush.bf16.msrb.mxu3 %v7031_v10 }
 0x476   :  { %1443 = vmatpush.bf16.msrb.mxu1 %v7055_v44  ;;  %1471 = vmatpush.bf16.msrb.mxu2 %v7071_v52  ;;  %v639_v44 = vperm.slane %v8067_v1, 6 }
 0x477   :  { %5941 = vmatmul.msk.bf16.vlgmr.msra.gmra.mxu0 %vm356_vm0, %v614_v41  ;;  %5943 = vmatmul.msk.bf16.vlgmr.msra.gmra.mxu3 %vm356_vm0, %v614_v41 }
 0x478   :  { %5944 = vmatmul.msk.bf16.vlgmr.msra.gmra.mxu2 %vm356_vm0, %v614_v41  ;;  %1426 = vmatpush.bf16.msra.mxu0 %v7050_v12 }
 0x479   :  { %1402 = vmatpush.bf16.msrb.mxu3 %v7030_v13 }
 0x47a   :  { %1444 = vmatpush.bf16.msrb.mxu1 %v7054_v49  ;;  %1472 = vmatpush.bf16.msrb.mxu2 %v7070_v56  ;;  %v7063_v56 = vld [vmem:[%s7708_s30 + $0x160] sm:$0xff] }
 0x47c   :  { %1427 = vmatpush.bf16.msra.mxu0 %v7049_v15  ;;  %v7075_v15 = vld [vmem:[%s7708_s30 + $0x1c0] sm:$0xff] }
 0x47d   :  { %1403 = vmatpush.bf16.msrb.mxu3 %v7029_v16 }
 0x47e   :  { %1445 = vmatpush.bf16.msrb.mxu1 %v7053_v53  ;;  %1473 = vmatpush.bf16.msrb.mxu2 %v7069_v59 }
 0x480   :  { %1428 = vmatpush.bf16.msra.mxu0 %v7048_v20 }
 0x481   :  { %1404 = vmatpush.bf16.msrb.mxu3 %v7028_v23 }
 0x482   :  { %1446 = vmatpush.bf16.msrb.mxu1 %v7052_v57  ;;  %1474 = vmatpush.bf16.msrb.mxu2 %v7068_v62 }
 0x484   :  { %1429 = vmatpush.bf16.msra.mxu0 %v7047_v25 }
 0x485   :  { %1405 = vmatpush.bf16.msrb.mxu3 %v7027_v26 }
 0x486   :  { %1447 = vmatpush.bf16.msrb.mxu1 %v7051_v60  ;;  %1475 = vmatpush.bf16.msrb.mxu2 %v7067_v3 }
 0x487   :  { %5945 = vmatmul.msk.bf16.vlgmr.msrb.gmra.mxu0 %vm356_vm0, %v614_v41  ;;  %v7078_v41 = vld [vmem:[%s7708_s30 + $0x1d8] sm:$0xff] }
 0x488   :  { %1430 = vmatpush.bf16.msra.mxu0 %v7046_v34 }
 0x489   :  { %1412 = vmatpush.bf16.msra.mxu3 %v7042_v27 }
 0x48a   :  { %6215 = vmatpush.msk.msra.mxu2 %vm466_vm1, %v7932_v37 }
 0x48c   :  { %1431 = vmatpush.bf16.msra.mxu0 %v7045_v39 }
 0x48d   :  { %1413 = vmatpush.bf16.msra.mxu3 %v7041_v31  ;;  %v637_v31 = vperm.slane %v8067_v1, 4 }
 0x490   :  { %1432 = vmatpush.bf16.msra.mxu0 %v7044_v43 }
 0x491   :  { %1414 = vmatpush.bf16.msra.mxu3 %v7040_v33  ;;  %v636_v33 = vperm.slane %v8067_v1, 3 }
 0x494   :  { %1433 = vmatpush.bf16.msra.mxu0 %v7043_v48 }
 0x495   :  { %1415 = vmatpush.bf16.msra.mxu3 %v7039_v36 }
 0x498   :  { %1482 = vmatpush.bf16.msrb.mxu0 %v7082_v50 }
 0x499   :  { %1416 = vmatpush.bf16.msra.mxu3 %v7038_v19  ;;  %v635_v19 = vperm.slane %v8067_v1, 2 }
 0x49c   :  { %1483 = vmatpush.bf16.msrb.mxu0 %v7081_v54 }
 0x49d   :  { %1417 = vmatpush.bf16.msra.mxu3 %v7037_v45  ;;  %v7064_v45 = vld [vmem:[%s7708_s30 + $0x168] sm:$0xff] }
 0x4a0   :  { %1484 = vmatpush.bf16.msrb.mxu0 %v7080_v58 }
 0x4a1   :  { %1418 = vmatpush.bf16.msra.mxu3 %v7036_v51 }
 0x4a4   :  { %1485 = vmatpush.bf16.msrb.mxu0 %v7079_v61 }
 0x4a5   :  { %1419 = vmatpush.bf16.msra.mxu3 %v7035_v55 }
 0x4a8   :  { %1486 = vmatpush.bf16.msrb.mxu0 %v7078_v41 }
 0x4ac   :  { %1487 = vmatpush.bf16.msrb.mxu0 %v7077_v4 }
 0x4b0   :  { %1488 = vmatpush.bf16.msrb.mxu0 %v7076_v8 }
 0x4b4   :  { %1489 = vmatpush.bf16.msrb.mxu0 %v7075_v15 }
 0x4e4   :  { %v741_v2 = vpop.f32.mrf.mxu0 }
 0x4e5   :  { %v742_v6 = vadd.f32 %v741_v2, %v633_v46  ;;  %v797_v9 = vpop.f32.mrf.mxu1  ;;  %v7062_v2 = vld [vmem:[%s7708_s30 + $0x158] sm:$0xff] }
 0x4e6   :  { %v798_v36 = vadd.f32 %v797_v9, %v637_v31  ;;  %v638_v9 = vperm.slane %v8067_v1, 5 }
 0x4e7   :  { %v844_v13 = vmax.f32 %v742_v6, 0.0 }
 0x4e8   :  { %v848_v47 = vmax.f32 %v798_v36, 0.0 }
 0x4ea   :  { %v755_v5 = vpop.f32.mrf.mxu3 }
 0x4eb   :  { %v769_v7 = vpop.f32.mrf.mxu2  ;;  %v756_v16 = vadd.f32 %v755_v5, %v634_v11  ;;  %v7061_v5 = vld [vmem:[%s7708_s30 + $0x150] sm:$0xff] }
 0x4ec   :  { %v743_v10 = vpop.f32.mrf.mxu0  ;;  %v770_v51 = vadd.f32 %v769_v7, %v635_v19 }
 0x4ed   :  { %v744_v12 = vadd.f32 %v743_v10, %v633_v46  ;;  %v845_v25 = vmax.f32 %v756_v16, 0.0  ;;  %v799_v27 = vpop.f32.mrf.mxu1  ;;  %v640_v46 = vperm.slane %v8067_v1, 7 }
 0x4ee   :  { %v800_v34 = vadd.f32 %v799_v27, %v637_v31  ;;  %v846_v61 = vmax.f32 %v770_v51, 0.0  ;;  %v7290_v27 = vld [vmem:[%s7713_s6] ss:$0 sm:$0xff]  ;;  %s10211_s6 = sld [smem:[#allocation21_spill]] }
 0x4ef   :  { %v852_v14 = vmax.f32 %v744_v12, 0.0 }
 0x4f0   :  { %v856_v42 = vmax.f32 %v800_v34, 0.0 }
 0x4f1   :  { %v860_v17 = vpack.c.bf16 %v852_v14, %v844_v13 }
 0x4f2   :  { %v757_v37 = vpop.f32.mrf.mxu3  ;;  %v864_v52 = vpack.c.bf16 %v856_v42, %v848_v47 }
 0x4f3   :  { %v758_v20 = vadd.f32 %v757_v37, %v634_v11  ;;  %v771_v23 = vpop.f32.mrf.mxu2  ;;  %1392 = vmatmul.bf16.vlgmr.msra.gmra.mxu1 %v860_v17  ;;  %v7060_v11 = vld [vmem:[%s7708_s30 + $0x148] sm:$0xff]  ;;  %v7059_v17 = vld [vmem:[%s7708_s30 + $0x140] sm:$0xff]  ;;  %s10210_s30 = sld [smem:[#allocation20_spill]] }
 0x4f4   :  { %v783_v24 = vpop.f32.mrf.mxu0  ;;  %v772_v48 = vadd.f32 %v771_v23, %v635_v19 }
 0x4f5   :  { %v853_v26 = vmax.f32 %v758_v20, 0.0  ;;  %v784_v38 = vadd.f32 %v783_v24, %v636_v33 }
 0x4f6   :  { %v854_v57 = vmax.f32 %v772_v48, 0.0 }
 0x4f7   :  { %v861_v32 = vpack.c.bf16 %v853_v26, %v845_v25  ;;  %v847_v49 = vmax.f32 %v784_v38, 0.0 }
 0x4f8   :  { %v862_v3 = vpack.c.bf16 %v854_v57, %v846_v61 }
 0x4f9   :  { %1406 = vmatmul.bf16.vlgmr.msrb.gmra.mxu3 %v861_v32 }
 0x4fa   :  { %1454 = vmatpush.bf16.msrb.mxu3 %v7066_v30  ;;  %v811_v54 = vpop.f32.mrf.mxu3 }
 0x4fb   :  { %v825_v39 = vpop.f32.mrf.mxu2  ;;  %v812_v15 = vadd.f32 %v811_v54, %v638_v9 }
 0x4fc   :  { %v785_v40 = vpop.f32.mrf.mxu0  ;;  %v826_v55 = vadd.f32 %v825_v39, %v639_v44 }
 0x4fd   :  { %v786_v43 = vadd.f32 %v785_v40, %v636_v33  ;;  %v849_v20 = vmax.f32 %v812_v15, 0.0 }
 0x4fe   :  { %1455 = vmatpush.bf16.msrb.mxu3 %v7065_v35  ;;  %v850_v62 = vmax.f32 %v826_v55, 0.0 }
 0x4ff   :  { %v855_v50 = vmax.f32 %v786_v43, 0.0 }
 0x501   :  { %v863_v53 = vpack.c.bf16 %v855_v50, %v847_v49 }
 0x502   :  { %1456 = vmatpush.bf16.msrb.mxu3 %v7064_v45  ;;  %v813_v7 = vpop.f32.mrf.mxu3 }
 0x503   :  { %v827_v58 = vpop.f32.mrf.mxu2  ;;  %1434 = vmatmul.bf16.vlgmr.msra.gmra.mxu0 %v863_v53  ;;  %1448 = vmatmul.bf16.vlgmr.msrb.gmra.mxu1 %v864_v52  ;;  %v814_v12 = vadd.f32 %v813_v7, %v638_v9  ;;  %v7083_v9 = vld [vmem:[%s7728_s27] sm:$0xff] }
 0x504   :  { %v828_v59 = vadd.f32 %v827_v58, %v639_v44  ;;  %v839_v60 = vpop.f32.mrf.mxu0 }
 0x505   :  { %v840_v6 = vadd.f32 %v839_v60, %v640_v46  ;;  %v857_v37 = vmax.f32 %v814_v12, 0.0 }
 0x506   :  { %v858_v41 = vmax.f32 %v828_v59, 0.0  ;;  %1457 = vmatpush.bf16.msrb.mxu3 %v7063_v56 }
 0x507   :  { %v851_v13 = vmax.f32 %v840_v6, 0.0  ;;  %v865_v23 = vpack.c.bf16 %v857_v37, %v849_v20 }
 0x508   :  { %v866_v4 = vpack.c.bf16 %v858_v41, %v850_v62 }
 0x509   :  { %1420 = vmatmul.bf16.vlgmr.msra.gmra.mxu3 %v862_v3 }
 0x50a   :  { %1476 = vmatmul.bf16.vlgmr.msrb.gmra.mxu2 %v866_v4  ;;  %1458 = vmatpush.bf16.msrb.mxu3 %v7062_v2 }
 0x50c   :  { %v841_v8 = vpop.f32.mrf.mxu0 }
 0x50d   :  { %v842_v10 = vadd.f32 %v841_v8, %v640_v46 }
 0x50e   :  { %1459 = vmatpush.bf16.msrb.mxu3 %v7061_v5 }
 0x50f   :  { %v859_v14 = vmax.f32 %v842_v10, 0.0 }
 0x511   :  { %v867_v16 = vpack.c.bf16 %v859_v14, %v851_v13 }
 0x512   :  { %1460 = vmatpush.bf16.msrb.mxu3 %v7060_v11 }
 0x513   :  { %1490 = vmatmul.bf16.vlgmr.msrb.gmra.mxu0 %v867_v16 }
 0x516   :  { %1461 = vmatpush.bf16.msrb.mxu3 %v7059_v17 }
 0x519   :  { %1462 = vmatmul.bf16.vlgmr.msrb.gmra.mxu3 %v865_v23 }
 0x51a   :  { %1628 = vmatpush.msra.mxu3 %v7907_v21 }
 0x51c   :  { %1629 = vmatpush.msra.mxu3 %v7910_v22 }
 0x51e   :  { %1630 = vmatpush.msra.mxu3 %v7920_v28 }
 0x520   :  { %1631 = vmatpush.msra.mxu3 %v7924_v29 }
 0x570   :  { %v1393_v24 = vpop.f32.mrf.mxu1 }
 0x571   :  { %v1394_v32 = vadd.f32 %v7290_v27, %v1393_v24 }
 0x578   :  { %v1395_v31 = vpop.f32.mrf.mxu1 }
 0x579   :  { %v1396_v21 = vadd.f32 %v7290_v27, %v1395_v31  ;;  %v7291_v27 = vld [vmem:[%s10200_s13] ss:$0 sm:$0xff] }
 0x57c   :  { %v1407_v1 = vpop.f32.mrf.mxu3 }
 0x57d   :  { %v1408_v33 = vadd.f32 %v1407_v1, %v1394_v32 }
 0x580   :  { %v1435_v26 = vpop.f32.mrf.mxu0  ;;  %v1449_v39 = vpop.f32.mrf.mxu1 }
 0x584   :  { %v1409_v25 = vpop.f32.mrf.mxu3 }
 0x585   :  { %v1410_v22 = vadd.f32 %v1409_v25, %v1396_v21 }
 0x588   :  { %v1437_v35 = vpop.f32.mrf.mxu0  ;;  %v1451_v48 = vpop.f32.mrf.mxu1 }
 0x58c   :  { %v1421_v30 = vpop.f32.mrf.mxu3 }
 0x58d   :  { %v1422_v34 = vadd.f32 %v1421_v30, %v1408_v33  ;;  %v1477_v19 = vpop.f32.mrf.mxu2  ;;  %v7292_v33 = vld [vmem:[%s10201_s17] ss:$0 sm:$0xff] }
 0x58f   :  { %v1436_v38 = vadd.f32 %v1435_v26, %v1422_v34 }
 0x590   :  { %v1491_v43 = vpop.f32.mrf.mxu0 }
 0x591   :  { %v1450_v28 = vadd.f32 %v1449_v39, %v1436_v38 }
 0x594   :  { %v1423_v36 = vpop.f32.mrf.mxu3 }
 0x595   :  { %v1424_v40 = vadd.f32 %v1423_v36, %v1410_v22  ;;  %v1479_v54 = vpop.f32.mrf.mxu2  ;;  %v7293_v22 = vld [vmem:[%s10202_s21] ss:$0 sm:$0xff] }
 0x597   :  { %v1438_v44 = vadd.f32 %v1437_v35, %v1424_v40 }
 0x598   :  { %v1493_v56 = vpop.f32.mrf.mxu0 }
 0x599   :  { %v1452_v49 = vadd.f32 %v1451_v48, %v1438_v44 }
 0x59c   :  { %v1463_v29 = vpop.f32.mrf.mxu3 }
 0x59d   :  { %v1464_v42 = vadd.f32 %v1463_v29, %v1450_v28 }
 0x59f   :  { %v1478_v45 = vadd.f32 %v1477_v19, %v1464_v42 }
 0x5a1   :  { %v1492_v47 = vadd.f32 %v1491_v43, %v1478_v45 }
 0x5a3   :  { %v1496_v50 = vadd.f32 %v1492_v47, %v7998_v63 }
 0x5a4   :  { %v1465_v51 = vpop.f32.mrf.mxu3 }
 0x5a5   :  { %v1466_v52 = vadd.f32 %v1465_v51, %v1452_v49  ;;  %v1500_v53 = vsel %vm356_vm0, %v1496_v50, 0.0 }
 0x5a6   :  { %1501 = vadd.xlane.f32.xlu2 %v1500_v53 }
 0x5a7   :  { %v1480_v55 = vadd.f32 %v1479_v54, %v1466_v52 }
 0x5a9   :  { %v1494_v57 = vadd.f32 %v1493_v56, %v1480_v55 }
 0x5ab   :  { %v1497_v58 = vadd.f32 %v1494_v57, %v8000_v0  ;;  %v7084_v0 = vld [vmem:[%s7728_s27 + $0x8] sm:$0xff] }
 0x5ac   :  { %1584 = vmatpush.bf16.msra.mxu1 %v7084_v0 }
 0x5ad   :  { %v1503_v59 = vsel %vm356_vm0, %v1497_v58, 0.0 }
 0x5ae   :  { %1504 = vadd.xlane.f32.xlu2 %v1503_v59 }
 0x5b0   :  { %1585 = vmatpush.bf16.msra.mxu1 %v7083_v9 }
 0x619   :  { %v1502_v60 = vpop.xlane.xlu2 %1501 }
 0x61a   :  { %v1506_v61 = vmul.f32 %v1502_v60, %v7948_v18 }
 0x61c   :  { %v1508_v63 = vsub.f32 %v1496_v50, %v1506_v61 }
 0x61e   :  { %v1510_v62 = vmul.f32 %v1508_v63, %v1508_v63 }
 0x620   :  { %v1512_v41 = vsel %vm356_vm0, %v1510_v62, 0.0 }
 0x621   :  { %1513 = vadd.xlane.f32.xlu2 %v1512_v41  ;;  %v1505_v2 = vpop.xlane.xlu2 %1504 }
 0x622   :  { %v1507_v3 = vmul.f32 %v1505_v2, %v7948_v18 }
 0x624   :  { %v1509_v46 = vsub.f32 %v1497_v58, %v1507_v3 }
 0x626   :  { %v1511_v4 = vmul.f32 %v1509_v46, %v1509_v46 }
 0x628   :  { %v1515_v5 = vsel %vm356_vm0, %v1511_v4, 0.0 }
 0x629   :  { %1516 = vadd.xlane.f32.xlu2 %v1515_v5 }
 0x694   :  { %v1514_v6 = vpop.xlane.xlu2 %1513 }
 0x695   :  { %v1518_v7 = vmul.f32 %v1514_v6, %v7948_v18 }
 0x697   :  { %v1520_v8 = vadd.f32 1e-05, %v1518_v7 }
 0x699   :  { %7318 = vrsqrt.f32 %v1520_v8  ;;  %vm1528_vm11 = vweird.f32 %v1520_v8 }
 0x69c   :  { %v1517_v10 = vpop.xlane.xlu2 %1516 }
 0x69d   :  { %v1519_v11 = vmul.f32 %v1517_v10, %v7948_v18 }
 0x69f   :  { %v7319_v12 = vpop.eup %7318  ;;  %v1521_v13 = vadd.f32 1e-05, %v1519_v11 }
 0x6a0   :  { %v1523_v14 = vmul.f32 %v7319_v12, %v1520_v8  ;;  %vm1529_vm10 = vweird.f32 %v7319_v12 }
 0x6a1   :  { %7320 = vrsqrt.f32 %v1521_v13  ;;  %vm1530_vm12 = vmor %vm1528_vm11, %vm1529_vm10  ;;  %vm1538_vm14 = vweird.f32 %v1521_v13 }
 0x6a2   :  { %v1524_v15 = vmul.f32 %v7319_v12, %v1523_v14  ;;  %v7086_v14 = vld [vmem:[%s10203_s25 + $0x8] sm:$0xff] }
 0x6a3   :  { %1754 = vmatpush.bf16.msra.mxu0 %v7086_v14 }
 0x6a4   :  { %v1525_v16 = vmul.f32 0.5, %v1524_v15  ;;  %v7085_v15 = vld [vmem:[%s10203_s25] sm:$0xff] }
 0x6a6   :  { %v1526_v17 = vsub.f32 1.5, %v1525_v16 }
 0x6a7   :  { %v7321_v37 = vpop.eup %7320  ;;  %1755 = vmatpush.bf16.msra.mxu0 %v7085_v15 }
 0x6a8   :  { %v1527_v20 = vmul.f32 %v7319_v12, %v1526_v17  ;;  %v1533_v23 = vmul.f32 %v7321_v37, %v1521_v13  ;;  %vm1539_vm13 = vweird.f32 %v7321_v37 }
 0x6a9   :  { %vm1540_vm15 = vmor %vm1538_vm14, %vm1539_vm13 }
 0x6aa   :  { %v1534_v1 = vmul.f32 %v7321_v37, %v1533_v23  ;;  %v1531_v24 = vsel %vm1530_vm12, %v7319_v12, %v1527_v20 }
 0x6ab   :  { %v1542_v30 = vmul.f32 %v1531_v24, %v1508_v63 }
 0x6ac   :  { %v1535_v25 = vmul.f32 0.5, %v1534_v1 }
 0x6ad   :  { %v1547_v34 = vmul.f32 %v7291_v27, %v1542_v30 }
 0x6ae   :  { %v1536_v26 = vsub.f32 1.5, %v1535_v25 }
 0x6af   :  { %v8110_v21 = vadd.f32 %v7292_v33, %v1547_v34 }
 0x6b0   :  { %v1537_v31 = vmul.f32 %v7321_v37, %v1536_v26 }
 0x6b2   :  { %v1541_v32 = vsel %vm1540_vm15, %v7321_v37, %v1537_v31 }
 0x6b3   :  { %v1543_v35 = vmul.f32 %v1541_v32, %v1509_v46 }
 0x6b5   :  { %v1548_v36 = vmul.f32 %v7291_v27, %v1543_v35 }
 0x6b7   :  { %v8112_v38 = vadd.f32 %v7292_v33, %v1548_v36  ;;  %v7294_v33 = vld [vmem:[%s10204_s29] ss:$0 sm:$0xff] }
 0x6b9   :  { %v1554_v39 = vpack.c.bf16 %v8112_v38, %v8110_v21 }
 0x6bb   :  { %6210 = vmatmul.msk.bf16.vlgmr.msra.gmra.mxu1 %vm356_vm0, %v1554_v39 }
 0x738   :  { %v1587_v40 = vpop.f32.mrf.mxu1 }
 0x739   :  { %v1588_v28 = vadd.f32 %v7293_v22, %v1587_v40 }
 0x73b   :  { %1712 = vrot.lane.b32.xlu1 %v1588_v28, %s7636_s0  ;;  %1593 = vrot.lane.b32.xlu2 %v1588_v28, %s7637_s5 }
 0x740   :  { %v1589_v19 = vpop.f32.mrf.mxu1 }
 0x741   :  { %v1590_v29 = vadd.f32 %v7293_v22, %v1589_v19 }
 0x743   :  { %1598 = vrot.lane.b32.xlu0 %v1590_v29, %s7637_s5  ;;  %1716 = vrot.lane.b32.xlu2 %v1590_v29, %s7636_s0 }
 0x795   :  { %v1594_v42 = vpop.permute.xlu2 %1593 }
 0x796   :  { %v1596_v43 = vmul.f32 %v1594_v42, %v1588_v28  ;;  %v1602_v47 = vmul.f32 %v1594_v42, %v1590_v29 }
 0x798   :  { %6211 = vmatmul.msk.f32.vlgmr.msra.gmra.mxu3 %vm356_vm0, %v1596_v43 }
 0x79d   :  { %v1717_v20 = vpop.permute.xlu2 %1716 }
 0x7ad   :  { %v1713_v1 = vpop.permute.xlu1 %1712 }
 0x7b5   :  { %v1599_v44 = vpop.permute.xlu0 %1598 }
 0x7b6   :  { %v1601_v45 = vmul.f32 %v1599_v44, %v1588_v28  ;;  %v1603_v48 = vmul.f32 %v1599_v44, %v1590_v29 }
 0x7b8   :  { %6212 = vmatmul.msk.f32.gmra.mxu3 %vm356_vm0, %v1601_v45 }
 0x7c0   :  { %6213 = vmatmul.msk.f32.gmra.mxu3 %vm356_vm0, %v1602_v47 }
 0x7c8   :  { %6214 = vmatmul.msk.f32.gmra.mxu3 %vm356_vm0, %v1603_v48 }
 0x81b   :  { %v1633_v49 = vpop.f32.mrf.mxu3 }
 0x81c   :  { %v1645_v51 = vmul.f32 0.35355338, %v1633_v49 }
 0x83b   :  { %v1636_v50 = vpop.f32.mrf.mxu3 }
 0x83c   :  { %v1646_v52 = vmul.f32 0.35355338, %v1636_v50  ;;  %v7096_v50 = vld [vmem:[%s10205_s3 + $0x4c] sm:$0xf] }
 0x83e   :  { %v1649_v53 = vmax.f32 %v1645_v51, %v1646_v52 }
 0x840   :  { %v1650_v54 = vsub.f32 %v1645_v51, %v1649_v53  ;;  %v1653_v55 = vsub.f32 %v1646_v52, %v1649_v53  ;;  %v6273_v51 = vld [vmem:[%s10205_s3 + $0x68] sm:$0xf0]  ;;  %v6263_v52 = vld [vmem:[%s10205_s3 + $0x40] sm:$0xf] }
 0x841   :  { %v6276_v53 = vor.u32 %v7096_v50, %v6273_v51 }
 0x842   :  { %v1651_v56 = vmul.f32 1.442695, %v1650_v54  ;;  %v1654_v57 = vmul.f32 1.442695, %v1653_v55  ;;  %v7099_v54 = vld [vmem:[%s10205_s3 + $0x5c] sm:$0xf0] }
 0x843   :  { %v1639_v58 = vpop.f32.mrf.mxu3  ;;  %v6279_v55 = vld [vmem:[%s10205_s3 + $0x50] sm:$0xf]  ;;  %1986 = vmatpush.bf16.msrb.mxu3 %v6276_v53  ;;  %v7296_v53 = vld [vmem:[%s10207_s14] ss:$0 sm:$0xff] }
 0x844   :  { %7322 = vpow2.f32 %v1651_v56  ;;  %v1647_v62 = vmul.f32 0.35355338, %v1639_v58  ;;  %v7101_v56 = vld [vmem:[%s10205_s3 + $0x6c] sm:$0xf0] }
 0x845   :  { %7324 = vpow2.f32 %v1654_v57  ;;  %v6264_v57 = vor.u32 %v7099_v54, %v6263_v52  ;;  %v6280_v58 = vor.u32 %v7101_v56, %v6279_v55 }
 0x847   :  { %1944 = vmatpush.bf16.msrb.mxu1 %v6264_v57  ;;  %2000 = vmatpush.bf16.msrb.mxu2 %v6280_v58  ;;  %v6287_v57 = vld [vmem:[%s10205_s3 + $0x58] sm:$0xf] }
 0x848   :  { %v7102_v58 = vld [vmem:[%s10205_s3 + $0x74] sm:$0xf0] }
 0x84a   :  { %v7323_v59 = vpop.eup %7322 }
 0x84b   :  { %v7325_v60 = vpop.eup %7324  ;;  %v1642_v61 = vpop.f32.mrf.mxu3 }
 0x84c   :  { %v1656_v63 = vadd.f32 %v7325_v60, %v7323_v59  ;;  %v1648_v41 = vmul.f32 0.35355338, %v1642_v61 }
 0x84e   :  { %7326 = vrcp.f32 %v1656_v63  ;;  %v1660_v2 = vmax.f32 %v1647_v62, %v1648_v41 }
 0x850   :  { %v1661_v3 = vsub.f32 %v1647_v62, %v1660_v2  ;;  %v1664_v46 = vsub.f32 %v1648_v41, %v1660_v2  ;;  %v7088_v41 = vld [vmem:[%s10205_s3 + $0xc] sm:$0xf] }
 0x851   :  { %v6241_v2 = vld [vmem:[%s10205_s3 + $0x28] sm:$0xf0] }
 0x852   :  { %v1662_v4 = vmul.f32 1.442695, %v1661_v3  ;;  %v1665_v5 = vmul.f32 1.442695, %v1664_v46  ;;  %v6231_v3 = vld [vmem:[%s10205_s3] sm:$0xf]  ;;  %v6244_v46 = vor.u32 %v7088_v41, %v6241_v2 }
 0x853   :  { %v7118_v41 = vld [vmem:[%s10208_s19 + $0x78] sm:$0xff] }
 0x854   :  { %v7327_v0 = vpop.eup %7326  ;;  %7328 = vpow2.f32 %v1662_v4  ;;  %v7091_v4 = vld [vmem:[%s10205_s3 + $0x1c] sm:$0xf0]  ;;  %1987 = vmatpush.bf16.msrb.mxu3 %v6244_v46  ;;  %v7134_v2 = vld [vmem:[%s10208_s19 + $0xf8] sm:$0xff]  ;;  %v7109_v46 = vld [vmem:[%s10208_s19 + $0x30] sm:$0xff] }
 0x855   :  { %7330 = vpow2.f32 %v1665_v5  ;;  %v1658_v6 = vmul.f32 %v7327_v0, %v7323_v59  ;;  %v1659_v10 = vmul.f32 %v7327_v0, %v7325_v60  ;;  %v7095_v59 = vld [vmem:[%s10205_s3 + $0x44] sm:$0xf] }
 0x856   :  { %v6265_v60 = vld [vmem:[%s10205_s3 + $0x60] sm:$0xf0] }
 0x857   :  { %6216 = vmatmul.msk.f32.vlgmr.msra.gmra.mxu2 %vm453_vm2, %v1658_v6  ;;  %v6268_v63 = vor.u32 %v7095_v59, %v6265_v60  ;;  %v7087_v5 = vld [vmem:[%s10205_s3 + $0x4] sm:$0xf] }
 0x858   :  { %v6233_v0 = vld [vmem:[%s10205_s3 + $0x20] sm:$0xf0] }
 0x859   :  { %1958 = vmatpush.bf16.msrb.mxu0 %v6268_v63  ;;  %v6255_v63 = vld [vmem:[%s10205_s3 + $0x18] sm:$0xf] }
 0x85a   :  { %v7329_v7 = vpop.eup %7328 }
 0x85b   :  { %v7331_v8 = vpop.eup %7330 }
 0x85c   :  { %v1667_v9 = vadd.f32 %v7331_v8, %v7329_v7 }
 0x85e   :  { %7332 = vrcp.f32 %v1667_v9  ;;  %v6247_v9 = vld [vmem:[%s10205_s3 + $0x10] sm:$0xf] }
 0x85f   :  { %6217 = vmatmul.msk.f32.gmra.mxu2 %vm453_vm2, %v1659_v10  ;;  %v7093_v10 = vld [vmem:[%s10205_s3 + $0x2c] sm:$0xf0] }
 0x864   :  { %v7333_v11 = vpop.eup %7332 }
 0x865   :  { %v1669_v12 = vmul.f32 %v7333_v11, %v7329_v7  ;;  %v1670_v13 = vmul.f32 %v7333_v11, %v7331_v8  ;;  %v6232_v7 = vor.u32 %v7091_v4, %v6231_v3  ;;  %v6236_v8 = vor.u32 %v7087_v5, %v6233_v0  ;;  %v7117_v4 = vld [vmem:[%s10208_s19 + $0x70] sm:$0xff]  ;;  %v7108_v0 = vld [vmem:[%s10208_s19 + $0x28] sm:$0xff] }
 0x866   :  { %v6248_v11 = vor.u32 %v7093_v10, %v6247_v9  ;;  %v7133_v5 = vld [vmem:[%s10208_s19 + $0xf0] sm:$0xff]  ;;  %v7115_v9 = vld [vmem:[%s10208_s19 + $0x60] sm:$0xff] }
 0x867   :  { %6218 = vmatmul.msk.f32.gmra.mxu2 %vm453_vm2, %v1669_v12  ;;  %1945 = vmatpush.bf16.msrb.mxu1 %v6232_v7  ;;  %v6271_v12 = vld [vmem:[%s10205_s3 + $0x48] sm:$0xf]  ;;  %v7131_v10 = vld [vmem:[%s10208_s19 + $0xe0] sm:$0xff] }
 0x868   :  { %1959 = vmatpush.bf16.msrb.mxu0 %v6236_v8  ;;  %2001 = vmatpush.bf16.msrb.mxu2 %v6248_v11  ;;  %v7132_v7 = vld [vmem:[%s10208_s19 + $0xe8] sm:$0xff]  ;;  %v7107_v8 = vld [vmem:[%s10208_s19 + $0x20] sm:$0xff]  ;;  %v7126_v11 = vld [vmem:[%s10208_s19 + $0xb8] sm:$0xff] }
 0x86f   :  { %6219 = vmatmul.msk.f32.gmra.mxu2 %vm453_vm2, %v1670_v13  ;;  %v7100_v13 = vld [vmem:[%s10205_s3 + $0x64] sm:$0xf0] }
 0x870   :  { %v6272_v15 = vor.u32 %v7100_v13, %v6271_v12  ;;  %v7106_v12 = vld [vmem:[%s10208_s19 + $0x18] sm:$0xff] }
 0x871   :  { %v7114_v13 = vld [vmem:[%s10208_s19 + $0x58] sm:$0xff] }
 0x872   :  { %1972 = vmatpush.bf16.msra.mxu1 %v6272_v15  ;;  %v7125_v15 = vld [vmem:[%s10208_s19 + $0xb0] sm:$0xff] }
 0x8da   :  { %v1700_v16 = vpop.f32.mrf.mxu2 }
 0x8db   :  { %v1715_v25 = vmul.f32 %v1713_v1, %v1700_v16  ;;  %v7098_v16 = vld [vmem:[%s10205_s3 + $0x5c] sm:$0xf] }
 0x8e2   :  { %v1703_v17 = vpop.f32.mrf.mxu2 }
 0x8e3   :  { %v1719_v23 = vmul.f32 %v1717_v20, %v1703_v17  ;;  %v6289_v17 = vld [vmem:[%s10205_s3 + $0x78] sm:$0xf0] }
 0x8e5   :  { %v1720_v30 = vadd.f32 %v1719_v23, %v1715_v25  ;;  %v6292_v23 = vor.u32 %v7098_v16, %v6289_v17  ;;  %v6281_v25 = vld [vmem:[%s10205_s3 + $0x70] sm:$0xf0] }
 0x8e6   :  { %v7105_v16 = vld [vmem:[%s10208_s19 + $0x10] sm:$0xff] }
 0x8e7   :  { %2042 = vmatpush.bf16.msra.mxu3 %v6292_v23  ;;  %v7113_v17 = vld [vmem:[%s10208_s19 + $0x50] sm:$0xff]  ;;  %v7104_v23 = vld [vmem:[%s10208_s19 + $0x8] sm:$0xff] }
 0x8ea   :  { %v1706_v37 = vpop.f32.mrf.mxu2 }
 0x8eb   :  { %v1721_v26 = vmul.f32 %v1713_v1, %v1706_v37  ;;  %v6239_v37 = vld [vmem:[%s10205_s3 + $0x8] sm:$0xf] }
 0x8ec   :  { %v7092_v1 = vld [vmem:[%s10205_s3 + $0x24] sm:$0xf0] }
 0x8f2   :  { %v1709_v24 = vpop.f32.mrf.mxu2 }
 0x8f3   :  { %v1722_v27 = vmul.f32 %v1717_v20, %v1709_v24  ;;  %v7097_v24 = vld [vmem:[%s10205_s3 + $0x54] sm:$0xf] }
 0x8f5   :  { %v1723_v31 = vadd.f32 %v1722_v27, %v1721_v26  ;;  %v6240_v26 = vor.u32 %v7092_v1, %v6239_v37  ;;  %v6284_v27 = vor.u32 %v7097_v24, %v6281_v25  ;;  %v7129_v37 = vld [vmem:[%s10208_s19 + $0xd0] sm:$0xff]  ;;  %v7112_v1 = vld [vmem:[%s10208_s19 + $0x48] sm:$0xff]  ;;  %v7123_v24 = vld [vmem:[%s10208_s19 + $0xa0] sm:$0xff] }
 0x8f6   :  { %v7103_v25 = vld [vmem:[%s10208_s19] sm:$0xff] }
 0x8f7   :  { %v1724_v32 = vpack.c.bf16 %v1723_v31, %v1720_v30  ;;  %v7089_v30 = vld [vmem:[%s10205_s3 + $0x14] sm:$0xf]  ;;  %1973 = vmatpush.bf16.msra.mxu1 %v6240_v26  ;;  %v7111_v26 = vld [vmem:[%s10208_s19 + $0x40] sm:$0xff] }
 0x8f8   :  { %v6249_v31 = vld [vmem:[%s10205_s3 + $0x30] sm:$0xf0] }
 0x8f9   :  { %6228 = vmatmul.msk.bf16.vlgmr.msra.gmra.mxu0 %vm356_vm0, %v1724_v32  ;;  %v7090_v32 = vld [vmem:[%s10205_s3 + $0x1c] sm:$0xf] }
 0x8fa   :  { %2014 = vmatpush.bf16.msra.mxu0 %v6284_v27  ;;  %v7142_v27 = vld [vmem:[%s10208_s19 + $0x138] sm:$0xff] }
 0x976   :  { %v1757_v34 = vpop.f32.mrf.mxu0 }
 0x977   :  { %v1758_v35 = vadd.f32 %v7294_v33, %v1757_v34 }
 0x979   :  { %v1762_v36 = vadd.f32 %v1758_v35, %v8110_v21  ;;  %v6257_v35 = vld [vmem:[%s10205_s3 + $0x38] sm:$0xf0] }
 0x97b   :  { %v1766_v39 = vsel %vm356_vm0, %v1762_v36, 0.0 }
 0x97c   :  { %1767 = vadd.xlane.f32.xlu0 %v1766_v39  ;;  %v6252_v39 = vor.u32 %v7089_v30, %v6249_v31  ;;  %v7150_v30 = vld [vmem:[%s10208_s19 + $0x178] sm:$0xff]  ;;  %v7128_v31 = vld [vmem:[%s10208_s19 + $0xc8] sm:$0xff] }
 0x97e   :  { %v1759_v22 = vpop.f32.mrf.mxu0  ;;  %2015 = vmatpush.bf16.msra.mxu0 %v6252_v39  ;;  %v7121_v39 = vld [vmem:[%s10208_s19 + $0x90] sm:$0xff] }
 0x97f   :  { %v1760_v40 = vadd.f32 %v7294_v33, %v1759_v22  ;;  %v6260_v22 = vor.u32 %v7090_v32, %v6257_v35  ;;  %v7122_v32 = vld [vmem:[%s10208_s19 + $0x98] sm:$0xff]  ;;  %v7127_v35 = vld [vmem:[%s10208_s19 + $0xc0] sm:$0xff] }
 0x981   :  { %v1763_v28 = vadd.f32 %v1760_v40, %v8112_v38  ;;  %2043 = vmatpush.bf16.msra.mxu3 %v6260_v22  ;;  %v7140_v22 = vld [vmem:[%s10208_s19 + $0x128] sm:$0xff] }
 0x983   :  { %v1769_v19 = vsel %vm356_vm0, %v1763_v28, 0.0 }
 0x984   :  { %1770 = vadd.xlane.f32.xlu2 %v1769_v19 }
 0x9ef   :  { %v1768_v29 = vpop.xlane.xlu0 %1767 }
 0x9f0   :  { %v1772_v42 = vmul.f32 %v1768_v29, %v7948_v18 }
 0x9f2   :  { %v8139_v43 = vsub.f32 %v1762_v36, %v1772_v42 }
 0x9f4   :  { %v1776_v21 = vmul.f32 %v8139_v43, %v8139_v43 }
 0x9f6   :  { %v1778_v44 = vsel %vm356_vm0, %v1776_v21, 0.0 }
 0x9f7   :  { %v1771_v45 = vpop.xlane.xlu2 %1770  ;;  %1779 = vadd.xlane.f32.xlu1 %v1778_v44 }
 0x9f8   :  { %v1773_v38 = vmul.f32 %v1771_v45, %v7948_v18 }
 0x9fa   :  { %v8145_v47 = vsub.f32 %v1763_v28, %v1773_v38 }
 0x9fc   :  { %v1777_v48 = vmul.f32 %v8145_v47, %v8145_v47 }
 0x9fe   :  { %v1781_v49 = vsel %vm356_vm0, %v1777_v48, 0.0 }
 0x9ff   :  { %1782 = vadd.xlane.f32.xlu0 %v1781_v49  ;;  %v7295_v49 = vld [vmem:[%s10206_s8] ss:$0 sm:$0xff] }
 0xa6a   :  { %v1780_v61 = vpop.xlane.xlu1 %1779 }
 0xa6b   :  { %v1784_v62 = vmul.f32 %v1780_v61, %v7948_v18  ;;  %v6288_v61 = vor.u32 %v7102_v58, %v6287_v57  ;;  %v7161_v57 = vld [vmem:[%s10208_s19 + $0x1d0] sm:$0xff]  ;;  %v7135_v58 = vld [vmem:[%s10208_s19 + $0x100] sm:$0xff] }
 0xa6d   :  { %v1786_v6 = vadd.f32 1e-05, %v1784_v62  ;;  %v7094_v62 = vld [vmem:[%s10205_s3 + $0x34] sm:$0xf0] }
 0xa6e   :  { %v6256_v3 = vor.u32 %v7094_v62, %v6255_v63  ;;  %v7160_v63 = vld [vmem:[%s10208_s19 + $0x1c8] sm:$0xff]  ;;  %v7154_v62 = vld [vmem:[%s10208_s19 + $0x198] sm:$0xff] }
 0xa6f   :  { %7334 = vrsqrt.f32 %v1786_v6  ;;  %vm1794_vm3 = vweird.f32 %v1786_v6 }
 0xa72   :  { %v1783_v14 = vpop.xlane.xlu0 %1782 }
 0xa73   :  { %v1785_v20 = vmul.f32 %v1783_v14, %v7948_v18  ;;  %v7130_v14 = vld [vmem:[%s10208_s19 + $0xd8] sm:$0xff] }
 0xa75   :  { %v7335_v33 = vpop.eup %7334  ;;  %v1787_v34 = vadd.f32 1e-05, %v1785_v20  ;;  %v7124_v20 = vld [vmem:[%s10208_s19 + $0xa8] sm:$0xff] }
 0xa76   :  { %v1789_v36 = vmul.f32 %v7335_v33, %v1786_v6  ;;  %vm1795_vm1 = vweird.f32 %v7335_v33  ;;  %v7116_v6 = vld [vmem:[%s10208_s19 + $0x68] sm:$0xff] }
 0xa77   :  { %7336 = vrsqrt.f32 %v1787_v34  ;;  %vm1796_vm4 = vmor %vm1794_vm3, %vm1795_vm1  ;;  %vm1804_vm6 = vweird.f32 %v1787_v34 }
 0xa78   :  { %v1790_v40 = vmul.f32 %v7335_v33, %v1789_v36  ;;  %v7166_v36 = vld [vmem:[%s10208_s19 + $0x1f8] sm:$0xff] }
 0xa7a   :  { %v1791_v28 = vmul.f32 0.5, %v1790_v40  ;;  %v7148_v40 = vld [vmem:[%s10208_s19 + $0x168] sm:$0xff] }
 0xa7c   :  { %v1792_v19 = vsub.f32 1.5, %v1791_v28  ;;  %v7165_v28 = vld [vmem:[%s10208_s19 + $0x1f0] sm:$0xff] }
 0xa7d   :  { %v7337_v29 = vpop.eup %7336 }
 0xa7e   :  { %v1793_v42 = vmul.f32 %v7335_v33, %v1792_v19  ;;  %v1799_v21 = vmul.f32 %v7337_v29, %v1787_v34  ;;  %vm1805_vm5 = vweird.f32 %v7337_v29  ;;  %v7149_v34 = vld [vmem:[%s10208_s19 + $0x170] sm:$0xff]  ;;  %v7120_v19 = vld [vmem:[%s10208_s19 + $0x88] sm:$0xff] }
 0xa7f   :  { %vm1806_vm7 = vmor %vm1804_vm6, %vm1805_vm5 }
 0xa80   :  { %v1800_v44 = vmul.f32 %v7337_v29, %v1799_v21  ;;  %v1797_v45 = vsel %vm1796_vm4, %v7335_v33, %v1793_v42  ;;  %v7141_v33 = vld [vmem:[%s10208_s19 + $0x130] sm:$0xff]  ;;  %v7147_v42 = vld [vmem:[%s10208_s19 + $0x160] sm:$0xff]  ;;  %v7164_v21 = vld [vmem:[%s10208_s19 + $0x1e8] sm:$0xff] }
 0xa81   :  { %v1808_v50 = vmul.f32 %v1797_v45, %v8139_v43  ;;  %v7138_v45 = vld [vmem:[%s10208_s19 + $0x118] sm:$0xff] }
 0xa82   :  { %v1801_v38 = vmul.f32 0.5, %v1800_v44  ;;  %v7119_v44 = vld [vmem:[%s10208_s19 + $0x80] sm:$0xff] }
 0xa83   :  { %v1813_v54 = vmul.f32 %v7295_v49, %v1808_v50  ;;  %v7137_v50 = vld [vmem:[%s10208_s19 + $0x110] sm:$0xff] }
 0xa84   :  { %v1802_v48 = vsub.f32 1.5, %v1801_v38  ;;  %v7146_v38 = vld [vmem:[%s10208_s19 + $0x158] sm:$0xff] }
 0xa85   :  { %v8186_v59 = vadd.f32 %v7296_v53, %v1813_v54  ;;  %v7136_v54 = vld [vmem:[%s10208_s19 + $0x108] sm:$0xff] }
 0xa86   :  { %v1803_v51 = vmul.f32 %v7337_v29, %v1802_v48  ;;  %v7158_v48 = vld [vmem:[%s10208_s19 + $0x1b8] sm:$0xff] }
 0xa88   :  { %v1807_v52 = vsel %vm1806_vm7, %v7337_v29, %v1803_v51  ;;  %v7139_v29 = vld [vmem:[%s10208_s19 + $0x120] sm:$0xff]  ;;  %v7145_v51 = vld [vmem:[%s10208_s19 + $0x150] sm:$0xff] }
 0xa89   :  { %v1809_v55 = vmul.f32 %v1807_v52, %v8145_v47  ;;  %v7110_v47 = vld [vmem:[%s10208_s19 + $0x38] sm:$0xff]  ;;  %v7157_v52 = vld [vmem:[%s10208_s19 + $0x1b0] sm:$0xff] }
 0xa8a   :  { %2590 = vmatpush.bf16.msra.mxu2 %v7110_v47  ;;  %v8273_v47 = vld [vmem:[%s10209_s24] sm:$0xff] }
 0xa8b   :  { %v1814_v56 = vmul.f32 %v7295_v49, %v1809_v55  ;;  %v7163_v49 = vld [vmem:[%s10208_s19 + $0x1e0] sm:$0xff]  ;;  %v7144_v55 = vld [vmem:[%s10208_s19 + $0x148] sm:$0xff] }
 0xa8d   :  { %v8188_v60 = vadd.f32 %v7296_v53, %v1814_v56  ;;  %v7162_v53 = vld [vmem:[%s10208_s19 + $0x1d8] sm:$0xff]  ;;  %v7156_v56 = vld [vmem:[%s10208_s19 + $0x1a8] sm:$0xff] }
 0xa8e   :  { %2591 = vmatpush.bf16.msra.mxu2 %v7109_v46  ;;  %v1839_v46 = vperm.slane %v8273_v47, 0 }
 0xa8f   :  { %v8192_v43 = vpack.c.bf16 %v8188_v60, %v8186_v59 }
 0xa91   :  { %6293 = vmatmul.msk.bf16.vlgmr.msrb.gmra.mxu1 %vm356_vm0, %v8192_v43  ;;  %6294 = vmatmul.msk.bf16.vlgmr.msrb.gmra.mxu0 %vm356_vm0, %v8192_v43 }
 0xa92   :  { %6296 = vmatmul.msk.bf16.vlgmr.msrb.gmra.mxu3 %vm356_vm0, %v8192_v43  ;;  %6297 = vmatmul.msk.bf16.vlgmr.msrb.gmra.mxu2 %vm356_vm0, %v8192_v43 }
 0xa93   :  { %2028 = vmatpush.bf16.msrb.mxu1 %v6288_v61  ;;  %2604 = vmatpush.bf16.msrb.mxu0 %v7118_v41  ;;  %v7155_v61 = vld [vmem:[%s10208_s19 + $0x1a0] sm:$0xff] }
 0xa94   :  { %2632 = vmatpush.bf16.msrb.mxu3 %v7134_v2  ;;  %2592 = vmatpush.bf16.msra.mxu2 %v7108_v0 }
 0xa97   :  { %2029 = vmatpush.bf16.msrb.mxu1 %v6256_v3  ;;  %2605 = vmatpush.bf16.msrb.mxu0 %v7117_v4  ;;  %v7159_v3 = vld [vmem:[%s10208_s19 + $0x1c0] sm:$0xff]  ;;  %v1840_v4 = vperm.slane %v8273_v47, 1 }
 0xa98   :  { %2633 = vmatpush.bf16.msrb.mxu3 %v7133_v5  ;;  %2593 = vmatpush.bf16.msra.mxu2 %v7107_v8  ;;  %v7153_v5 = vld [vmem:[%s10208_s19 + $0x190] sm:$0xff] }
 0xa9b   :  { %2606 = vmatpush.bf16.msrb.mxu0 %v7116_v6 }
 0xa9c   :  { %2634 = vmatpush.bf16.msrb.mxu3 %v7132_v7  ;;  %2594 = vmatpush.bf16.msra.mxu2 %v7106_v12 }
 0xa9f   :  { %2607 = vmatpush.bf16.msrb.mxu0 %v7115_v9  ;;  %v7152_v9 = vld [vmem:[%s10208_s19 + $0x188] sm:$0xff] }
 0xaa0   :  { %2635 = vmatpush.bf16.msrb.mxu3 %v7131_v10  ;;  %2595 = vmatpush.bf16.msra.mxu2 %v7105_v16 }
 0xaa1   :  { %6295 = vmatmul.msk.bf16.vlgmr.msra.gmra.mxu1 %vm356_vm0, %v8192_v43  ;;  %6298 = vmatmul.msk.bf16.vlgmr.msra.gmra.mxu0 %vm356_vm0, %v8192_v43 }
 0xaa2   :  { %6300 = vmatmul.msk.bf16.vlgmr.msra.gmra.mxu3 %vm356_vm0, %v8192_v43  ;;  %2618 = vmatpush.bf16.msra.mxu1 %v7126_v11 }
 0xaa3   :  { %2608 = vmatpush.bf16.msrb.mxu0 %v7114_v13 }
 0xaa4   :  { %2636 = vmatpush.bf16.msrb.mxu3 %v7130_v14  ;;  %2596 = vmatpush.bf16.msra.mxu2 %v7104_v23  ;;  %v1842_v14 = vperm.slane %v8273_v47, 3 }
 0xaa6   :  { %2619 = vmatpush.bf16.msra.mxu1 %v7125_v15 }
 0xaa7   :  { %2609 = vmatpush.bf16.msrb.mxu0 %v7113_v17 }
 0xaa8   :  { %2637 = vmatpush.bf16.msrb.mxu3 %v7129_v37  ;;  %2597 = vmatpush.bf16.msra.mxu2 %v7103_v25 }
 0xaaa   :  { %2620 = vmatpush.bf16.msra.mxu1 %v7124_v20  ;;  %v7151_v20 = vld [vmem:[%s10208_s19 + $0x180] sm:$0xff] }
 0xaab   :  { %2610 = vmatpush.bf16.msrb.mxu0 %v7112_v1 }
 0xaac   :  { %2646 = vmatpush.bf16.msrb.mxu2 %v7142_v27  ;;  %2638 = vmatpush.bf16.msrb.mxu3 %v7128_v31 }
 0xaae   :  { %2621 = vmatpush.bf16.msra.mxu1 %v7123_v24 }
 0xaaf   :  { %2611 = vmatpush.bf16.msrb.mxu0 %v7111_v26 }
 0xab0   :  { %2647 = vmatpush.bf16.msrb.mxu2 %v7141_v33  ;;  %2639 = vmatpush.bf16.msrb.mxu3 %v7127_v35  ;;  %v1841_v35 = vperm.slane %v8273_v47, 2 }
 0xab1   :  { %6299 = vmatmul.msk.bf16.vlgmr.msrb.gmra.mxu1 %vm356_vm0, %v8192_v43  ;;  %v7143_v43 = vld [vmem:[%s10208_s19 + $0x140] sm:$0xff] }
 0xab2   :  { %2622 = vmatpush.bf16.msra.mxu1 %v7122_v32  ;;  %v1843_v32 = vperm.slane %v8273_v47, 4 }
 0xab3   :  { %2660 = vmatpush.bf16.msra.mxu0 %v7150_v30 }
 0xab4   :  { %2688 = vmatpush.bf16.msra.mxu3 %v7166_v36  ;;  %2648 = vmatpush.bf16.msrb.mxu2 %v7140_v22  ;;  %v1844_v36 = vperm.slane %v8273_v47, 5 }
 0xab6   :  { %2623 = vmatpush.bf16.msra.mxu1 %v7121_v39 }
 0xab7   :  { %2661 = vmatpush.bf16.msra.mxu0 %v7149_v34 }
 0xab8   :  { %2689 = vmatpush.bf16.msra.mxu3 %v7165_v28  ;;  %2649 = vmatpush.bf16.msrb.mxu2 %v7139_v29 }
 0xaba   :  { %2624 = vmatpush.bf16.msra.mxu1 %v7120_v19 }
 0xabb   :  { %2662 = vmatpush.bf16.msra.mxu0 %v7148_v40 }
 0xabc   :  { %2690 = vmatpush.bf16.msra.mxu3 %v7164_v21  ;;  %2650 = vmatpush.bf16.msrb.mxu2 %v7138_v45 }
 0xabe   :  { %2625 = vmatpush.bf16.msra.mxu1 %v7119_v44 }
 0xabf   :  { %2663 = vmatpush.bf16.msra.mxu0 %v7147_v42 }
 0xac0   :  { %2691 = vmatpush.bf16.msra.mxu3 %v7163_v49  ;;  %2651 = vmatpush.bf16.msrb.mxu2 %v7137_v50  ;;  %v1846_v49 = vperm.slane %v8273_v47, 7 }
 0xac2   :  { %2674 = vmatpush.bf16.msrb.mxu1 %v7158_v48 }
 0xac3   :  { %2664 = vmatpush.bf16.msra.mxu0 %v7146_v38 }
 0xac4   :  { %2692 = vmatpush.bf16.msra.mxu3 %v7162_v53  ;;  %2652 = vmatpush.bf16.msrb.mxu2 %v7136_v54 }
 0xac6   :  { %2675 = vmatpush.bf16.msrb.mxu1 %v7157_v52 }
 0xac7   :  { %2665 = vmatpush.bf16.msra.mxu0 %v7145_v51 }
 0xac8   :  { %2693 = vmatpush.bf16.msra.mxu3 %v7161_v57  ;;  %2653 = vmatpush.bf16.msrb.mxu2 %v7135_v58 }
 0xaca   :  { %2676 = vmatpush.bf16.msrb.mxu1 %v7156_v56 }
 0xacb   :  { %2666 = vmatpush.bf16.msra.mxu0 %v7144_v55 }
 0xacc   :  { %2694 = vmatpush.bf16.msra.mxu3 %v7160_v63 }
 0xace   :  { %2677 = vmatpush.bf16.msrb.mxu1 %v7155_v61 }
 0xacf   :  { %2667 = vmatpush.bf16.msra.mxu0 %v7143_v43 }
 0xad0   :  { %2695 = vmatpush.bf16.msra.mxu3 %v7159_v3 }
 0xad2   :  { %2678 = vmatpush.bf16.msrb.mxu1 %v7154_v62 }
 0xad6   :  { %2679 = vmatpush.bf16.msrb.mxu1 %v7153_v5 }
 0xada   :  { %2680 = vmatpush.bf16.msrb.mxu1 %v7152_v9  ;;  %v7297_v9 = vld [vmem:[%s10210_s30] ss:$0 sm:$0xff] }
 0xade   :  { %2681 = vmatpush.bf16.msrb.mxu1 %v7151_v20 }
 0xb0e   :  { %v1947_v41 = vpop.f32.mrf.mxu1  ;;  %v1961_v2 = vpop.f32.mrf.mxu0 }
 0xb0f   :  { %v1948_v0 = vadd.f32 %v1947_v41, %v1839_v46  ;;  %v1962_v6 = vadd.f32 %v1961_v2, %v1840_v4  ;;  %v1845_v41 = vperm.slane %v8273_v47, 6 }
 0xb11   :  { %v2050_v15 = vmax.f32 %v1948_v0, 0.0  ;;  %v2051_v16 = vmax.f32 %v1962_v6, 0.0 }
 0xb15   :  { %v1989_v7 = vpop.f32.mrf.mxu3  ;;  %v2003_v8 = vpop.f32.mrf.mxu2 }
 0xb16   :  { %v1949_v10 = vpop.f32.mrf.mxu1  ;;  %v1963_v11 = vpop.f32.mrf.mxu0  ;;  %v1990_v24 = vadd.f32 %v1989_v7, %v1842_v14  ;;  %v2004_v40 = vadd.f32 %v2003_v8, %v1843_v32 }
 0xb17   :  { %v1950_v12 = vadd.f32 %v1949_v10, %v1839_v46  ;;  %v1964_v13 = vadd.f32 %v1963_v11, %v1840_v4 }
 0xb18   :  { %v2053_v31 = vmax.f32 %v1990_v24, 0.0  ;;  %v2054_v48 = vmax.f32 %v2004_v40, 0.0 }
 0xb19   :  { %v2058_v17 = vmax.f32 %v1950_v12, 0.0  ;;  %v2059_v37 = vmax.f32 %v1964_v13, 0.0 }
 0xb1b   :  { %v2066_v23 = vpack.c.bf16 %v2058_v17, %v2050_v15  ;;  %v2067_v1 = vpack.c.bf16 %v2059_v37, %v2051_v16 }
 0xb1d   :  { %v1991_v25 = vpop.f32.mrf.mxu3  ;;  %2598 = vmatmul.bf16.vlgmr.msra.gmra.mxu2 %v2066_v23  ;;  %2612 = vmatmul.bf16.vlgmr.msrb.gmra.mxu0 %v2067_v1  ;;  %v2005_v34 = vpop.f32.mrf.mxu2 }
 0xb1e   :  { %v1992_v26 = vadd.f32 %v1991_v25, %v1842_v14  ;;  %v1975_v27 = vpop.f32.mrf.mxu1  ;;  %v2017_v30 = vpop.f32.mrf.mxu0  ;;  %v2006_v22 = vadd.f32 %v2005_v34, %v1843_v32 }
 0xb1f   :  { %v1976_v28 = vadd.f32 %v1975_v27, %v1841_v35  ;;  %v2018_v19 = vadd.f32 %v2017_v30, %v1844_v36 }
 0xb20   :  { %v2061_v33 = vmax.f32 %v1992_v26, 0.0  ;;  %v2062_v44 = vmax.f32 %v2006_v22, 0.0 }
 0xb21   :  { %v2052_v50 = vmax.f32 %v1976_v28, 0.0  ;;  %v2055_v51 = vmax.f32 %v2018_v19, 0.0 }
 0xb22   :  { %v2069_v39 = vpack.c.bf16 %v2061_v33, %v2053_v31  ;;  %v2070_v54 = vpack.c.bf16 %v2062_v44, %v2054_v48 }
 0xb24   :  { %2640 = vmatmul.bf16.vlgmr.msrb.gmra.mxu3 %v2069_v39 }
 0xb25   :  { %v2045_v29 = vpop.f32.mrf.mxu3 }
 0xb26   :  { %v1977_v42 = vpop.f32.mrf.mxu1  ;;  %v2019_v21 = vpop.f32.mrf.mxu0  ;;  %v2046_v57 = vadd.f32 %v2045_v29, %v1846_v49 }
 0xb27   :  { %v1978_v45 = vadd.f32 %v1977_v42, %v1841_v35  ;;  %v2020_v38 = vadd.f32 %v2019_v21, %v1844_v36 }
 0xb28   :  { %v2057_v63 = vmax.f32 %v2046_v57, 0.0 }
 0xb29   :  { %v2060_v52 = vmax.f32 %v1978_v45, 0.0  ;;  %v2063_v53 = vmax.f32 %v2020_v38, 0.0 }
 0xb2b   :  { %v2068_v55 = vpack.c.bf16 %v2060_v52, %v2052_v50  ;;  %v2071_v56 = vpack.c.bf16 %v2063_v53, %v2055_v51 }
 0xb2d   :  { %v2047_v58 = vpop.f32.mrf.mxu3  ;;  %2626 = vmatmul.bf16.vlgmr.msra.gmra.mxu1 %v2068_v55  ;;  %2654 = vmatmul.bf16.vlgmr.msrb.gmra.mxu2 %v2070_v54 }
 0xb2e   :  { %v2048_v43 = vadd.f32 %v2047_v58, %v1846_v49  ;;  %2668 = vmatmul.bf16.vlgmr.msra.gmra.mxu0 %v2071_v56  ;;  %v2031_v61 = vpop.f32.mrf.mxu1 }
 0xb2f   :  { %v2032_v3 = vadd.f32 %v2031_v61, %v1845_v41 }
 0xb30   :  { %v2065_v62 = vmax.f32 %v2048_v43, 0.0 }
 0xb31   :  { %v2056_v5 = vmax.f32 %v2032_v3, 0.0 }
 0xb32   :  { %v2073_v2 = vpack.c.bf16 %v2065_v62, %v2057_v63 }
 0xb34   :  { %2696 = vmatmul.bf16.vlgmr.msra.gmra.mxu3 %v2073_v2 }
 0xb36   :  { %v2033_v46 = vpop.f32.mrf.mxu1 }
 0xb37   :  { %v2034_v4 = vadd.f32 %v2033_v46, %v1845_v41 }
 0xb39   :  { %v2064_v0 = vmax.f32 %v2034_v4, 0.0 }
 0xb3b   :  { %v2072_v6 = vpack.c.bf16 %v2064_v0, %v2056_v5  ;;  %v7298_v0 = vld [vmem:[%s10211_s6] ss:$0 sm:$0xff] }
 0xb3d   :  { %2682 = vmatmul.bf16.vlgmr.msrb.gmra.mxu1 %v2072_v6 }
 0xb9a   :  { %v2613_v8 = vpop.f32.mrf.mxu0 }
 0xba0   :  { %v2599_v7 = vpop.f32.mrf.mxu2 }
 0xba1   :  { %v2600_v12 = vadd.f32 %v7297_v9, %v2599_v7 }
 0xba2   :  { %v2615_v14 = vpop.f32.mrf.mxu0 }
 0xba3   :  { %v2614_v15 = vadd.f32 %v2613_v8, %v2600_v12  ;;  %v7299_v8 = vld [vmem:[%s10212_s20] ss:$0 sm:$0xff] }
 0xba7   :  { %v2641_v10 = vpop.f32.mrf.mxu3 }
 0xba8   :  { %v2601_v11 = vpop.f32.mrf.mxu2 }
 0xba9   :  { %v2602_v37 = vadd.f32 %v7297_v9, %v2601_v11 }
 0xbaa   :  { %v2627_v13 = vpop.f32.mrf.mxu1 }
 0xbab   :  { %v2628_v16 = vadd.f32 %v2627_v13, %v2614_v15  ;;  %v2616_v24 = vadd.f32 %v2615_v14, %v2602_v37  ;;  %v2669_v25 = vpop.f32.mrf.mxu0 }
 0xbad   :  { %v2642_v23 = vadd.f32 %v2641_v10, %v2628_v16 }
 0xbaf   :  { %v2643_v47 = vpop.f32.mrf.mxu3 }
 0xbb0   :  { %v2655_v17 = vpop.f32.mrf.mxu2 }
 0xbb1   :  { %v2656_v1 = vadd.f32 %v2655_v17, %v2642_v23 }
 0xbb2   :  { %v2629_v20 = vpop.f32.mrf.mxu1 }
 0xbb3   :  { %v2630_v26 = vadd.f32 %v2629_v20, %v2616_v24  ;;  %v2670_v30 = vadd.f32 %v2669_v25, %v2656_v1  ;;  %v2671_v22 = vpop.f32.mrf.mxu0 }
 0xbb5   :  { %v2644_v33 = vadd.f32 %v2643_v47, %v2630_v26 }
 0xbb7   :  { %v2697_v27 = vpop.f32.mrf.mxu3 }
 0xbb8   :  { %v2657_v31 = vpop.f32.mrf.mxu2 }
 0xbb9   :  { %v2658_v35 = vadd.f32 %v2657_v31, %v2644_v33 }
 0xbba   :  { %v2683_v32 = vpop.f32.mrf.mxu1 }
 0xbbb   :  { %v2684_v34 = vadd.f32 %v2683_v32, %v2670_v30  ;;  %v2672_v40 = vadd.f32 %v2671_v22, %v2658_v35 }
 0xbbd   :  { %v2698_v36 = vadd.f32 %v2697_v27, %v2684_v34 }
 0xbbf   :  { %v2702_v39 = vadd.f32 %v2698_v36, %v8186_v59  ;;  %v2699_v42 = vpop.f32.mrf.mxu3 }
 0xbc1   :  { %v2706_v28 = vsel %vm356_vm0, %v2702_v39, 0.0 }
 0xbc2   :  { %v2685_v19 = vpop.f32.mrf.mxu1  ;;  %2707 = vadd.xlane.f32.xlu2 %v2706_v28 }
 0xbc3   :  { %v2686_v29 = vadd.f32 %v2685_v19, %v2672_v40 }
 0xbc5   :  { %v2700_v21 = vadd.f32 %v2699_v42, %v2686_v29 }
 0xbc7   :  { %v2703_v44 = vadd.f32 %v2700_v21, %v8188_v60 }
 0xbc9   :  { %v2709_v45 = vsel %vm356_vm0, %v2703_v44, 0.0 }
 0xbca   :  { %2710 = vadd.xlane.f32.xlu1 %v2709_v45 }
 0xc35   :  { %v2708_v38 = vpop.xlane.xlu2 %2707 }
 0xc36   :  { %v2712_v48 = vmul.f32 %v2708_v38, %v7948_v18 }
 0xc38   :  { %v2714_v49 = vsub.f32 %v2702_v39, %v2712_v48 }
 0xc3a   :  { %v2716_v50 = vmul.f32 %v2714_v49, %v2714_v49 }
 0xc3c   :  { %v2718_v59 = vsel %vm356_vm0, %v2716_v50, 0.0 }
 0xc3d   :  { %v2711_v51 = vpop.xlane.xlu1 %2710  ;;  %2719 = vadd.xlane.f32.xlu0 %v2718_v59 }
 0xc3e   :  { %v2713_v52 = vmul.f32 %v2711_v51, %v7948_v18 }
 0xc40   :  { %v2715_v53 = vsub.f32 %v2703_v44, %v2713_v52 }
 0xc42   :  { %v2717_v54 = vmul.f32 %v2715_v53, %v2715_v53 }
 0xc44   :  { %v2721_v55 = vsel %vm356_vm0, %v2717_v54, 0.0 }
 0xc45   :  { %2722 = vadd.xlane.f32.xlu2 %v2721_v55 }
 0xcb0   :  { %v2720_v60 = vpop.xlane.xlu0 %2719 }
 0xcb1   :  { %v2724_v56 = vmul.f32 %v2720_v60, %v7948_v18 }
 0xcb3   :  { %v2726_v57 = vadd.f32 1e-05, %v2724_v56 }
 0xcb5   :  { %7338 = vrsqrt.f32 %v2726_v57  ;;  %vm2734_vm9 = vweird.f32 %v2726_v57 }
 0xcb8   :  { %v2723_v58 = vpop.xlane.xlu2 %2722 }
 0xcb9   :  { %v2725_v43 = vmul.f32 %v2723_v58, %v7948_v18 }
 0xcbb   :  { %v7339_v61 = vpop.eup %7338  ;;  %v2727_v63 = vadd.f32 1e-05, %v2725_v43 }
 0xcbc   :  { %v2729_v62 = vmul.f32 %v7339_v61, %v2726_v57  ;;  %vm2735_vm8 = vweird.f32 %v7339_v61 }
 0xcbd   :  { %7340 = vrsqrt.f32 %v2727_v63  ;;  %vm2736_vm10 = vmor %vm2734_vm9, %vm2735_vm8  ;;  %vm2744_vm12 = vweird.f32 %v2727_v63 }
 0xcbe   :  { %v2730_v41 = vmul.f32 %v7339_v61, %v2729_v62 }
 0xcc0   :  { %v2731_v2 = vmul.f32 0.5, %v2730_v41 }
 0xcc2   :  { %v2732_v3 = vsub.f32 1.5, %v2731_v2 }
 0xcc3   :  { %v7341_v46 = vpop.eup %7340 }
 0xcc4   :  { %v2733_v4 = vmul.f32 %v7339_v61, %v2732_v3  ;;  %v2739_v5 = vmul.f32 %v7341_v46, %v2727_v63  ;;  %vm2745_vm11 = vweird.f32 %v7341_v46 }
 0xcc5   :  { %vm2746_vm13 = vmor %vm2744_vm12, %vm2745_vm11 }
 0xcc6   :  { %v2737_v6 = vsel %vm2736_vm10, %v7339_v61, %v2733_v4  ;;  %v2740_v7 = vmul.f32 %v7341_v46, %v2739_v5 }
 0xcc7   :  { %v2748_v9 = vmul.f32 %v2737_v6, %v2714_v49 }
 0xcc8   :  { %v2741_v18 = vmul.f32 0.5, %v2740_v7 }
 0xcc9   :  { %v2753_v10 = vmul.f32 %v7298_v0, %v2748_v9 }
 0xcca   :  { %v2742_v11 = vsub.f32 1.5, %v2741_v18 }
 0xccb   :  { %v2758_v12 = vadd.f32 %v7299_v8, %v2753_v10 }
 0xccc   :  { %v2743_v13 = vmul.f32 %v7341_v46, %v2742_v11 }
 0xcce   :  { %v2747_v14 = vsel %vm2746_vm13, %v7341_v46, %v2743_v13 }
 0xccf   :  { %v2749_v15 = vmul.f32 %v2747_v14, %v2715_v53 }
 0xcd1   :  { %v2754_v16 = vmul.f32 %v7298_v0, %v2749_v15 }
 0xcd3   :  { %v2759_v47 = vadd.f32 %v7299_v8, %v2754_v16 }
 0xcd4   :  { %7599 = dma.done.wait [#allocation4], 2048 }
 0xcd5   :  { %7600 = vsyncadd [#allocation4], 4294965248 }
 0xcd6   :  { %7601 = dma.done.wait [#allocation4 + $0x1], 8192 }
 0xcd7   :  { %7602 = vsyncadd [#allocation4 + $0x1], 4294959104  ;;  %v6591_v17 = vld [vmem:[#allocation2 + $0x40] sm:$0xf]  ;;  %v7175_v20 = vld [vmem:[#allocation2 + $0x44] sm:$0xf]  ;;  %v2850_v45 = vpack.c.bf16 %v2759_v47, %v2758_v12 }
 0xcd8   :  { %v7179_v37 = vld [vmem:[#allocation2 + $0x5c] sm:$0xf0]  ;;  %v6593_v1 = vld [vmem:[#allocation2 + $0x60] sm:$0xf0]  ;;  %v7176_v24 = vld [vmem:[#allocation2 + $0x4c] sm:$0xf] }
 0xcd9   :  { %v6592_v23 = vor.u32 %v7179_v37, %v6591_v17  ;;  %v6601_v25 = vld [vmem:[#allocation2 + $0x68] sm:$0xf0]  ;;  %v6596_v26 = vor.u32 %v7175_v20, %v6593_v1  ;;  %v6559_v30 = vld [vmem:[#allocation2] sm:$0xf]  ;;  %v7167_v32 = vld [vmem:[#allocation2 + $0x4] sm:$0xf] }
 0xcda   :  { %v6604_v27 = vor.u32 %v7176_v24, %v6601_v25  ;;  %v7171_v31 = vld [vmem:[#allocation2 + $0x1c] sm:$0xf0]  ;;  %v6561_v34 = vld [vmem:[#allocation2 + $0x20] sm:$0xf0]  ;;  %v7168_v35 = vld [vmem:[#allocation2 + $0xc] sm:$0xf] }
 0xcdb   :  { %2940 = vmatpush.bf16.msra.mxu2 %v6592_v23  ;;  %v6560_v33 = vor.u32 %v7171_v31, %v6559_v30  ;;  %v6569_v36 = vld [vmem:[#allocation2 + $0x28] sm:$0xf0]  ;;  %2954 = vmatpush.bf16.msrb.mxu0 %v6596_v26  ;;  %v6564_v39 = vor.u32 %v7167_v32, %v6561_v34  ;;  %v6599_v40 = vld [vmem:[#allocation2 + $0x48] sm:$0xf]  ;;  %v6607_v21 = vld [vmem:[#allocation2 + $0x50] sm:$0xf] }
 0xcdc   :  { %2982 = vmatpush.bf16.msrb.mxu3 %v6604_v27  ;;  %v6572_v22 = vor.u32 %v7168_v35, %v6569_v36  ;;  %v7180_v28 = vld [vmem:[#allocation2 + $0x64] sm:$0xf0]  ;;  %v7181_v44 = vld [vmem:[#allocation2 + $0x6c] sm:$0xf0]  ;;  %v7177_v50 = vld [vmem:[#allocation2 + $0x54] sm:$0xf] }
 0xcdd   :  { %v6567_v19 = vld [vmem:[#allocation2 + $0x8] sm:$0xf]  ;;  %v6600_v29 = vor.u32 %v7180_v28, %v6599_v40  ;;  %v6608_v38 = vor.u32 %v7181_v44, %v6607_v21  ;;  %v6575_v48 = vld [vmem:[#allocation2 + $0x10] sm:$0xf]  ;;  %v6609_v59 = vld [vmem:[#allocation2 + $0x70] sm:$0xf0] }
 0xcde   :  { %v7172_v42 = vld [vmem:[#allocation2 + $0x24] sm:$0xf0]  ;;  %v7173_v49 = vld [vmem:[#allocation2 + $0x2c] sm:$0xf0]  ;;  %v7178_v51 = vld [vmem:[#allocation2 + $0x5c] sm:$0xf]  ;;  %v6612_v54 = vor.u32 %v7177_v50, %v6609_v59 }
 0xcdf   :  { %2941 = vmatpush.bf16.msra.mxu2 %v6560_v33  ;;  %2968 = vmatpush.bf16.msra.mxu1 %v6600_v29  ;;  %v6617_v52 = vld [vmem:[#allocation2 + $0x78] sm:$0xf0]  ;;  %v6568_v53 = vor.u32 %v7172_v42, %v6567_v19  ;;  %v7169_v60 = vld [vmem:[#allocation2 + $0x14] sm:$0xf]  ;;  %v6576_v58 = vor.u32 %v7173_v49, %v6575_v48  ;;  %v6615_v61 = vld [vmem:[#allocation2 + $0x58] sm:$0xf] }
 0xce0   :  { %2955 = vmatpush.bf16.msrb.mxu0 %v6564_v39  ;;  %2983 = vmatpush.bf16.msrb.mxu3 %v6572_v22  ;;  %v6620_v55 = vor.u32 %v7178_v51, %v6617_v52  ;;  %v6577_v56 = vld [vmem:[#allocation2 + $0x30] sm:$0xf0]  ;;  %v7170_v57 = vld [vmem:[#allocation2 + $0x1c] sm:$0xf]  ;;  %v7182_v63 = vld [vmem:[#allocation2 + $0x74] sm:$0xf0] }
 0xce1   :  { %v6585_v43 = vld [vmem:[#allocation2 + $0x38] sm:$0xf0]  ;;  %v6580_v62 = vor.u32 %v7169_v60, %v6577_v56  ;;  %v6616_v41 = vor.u32 %v7182_v63, %v6615_v61  ;;  %v6583_v2 = vld [vmem:[#allocation2 + $0x18] sm:$0xf]  ;;  %s10213_s27 = sld [smem:[#allocation9_spill]]  ;;  %vm3072_vm14 = vcmask 130048  }
 0xce2   :  { %6621 = vmatmul.msk.bf16.vlgmr.msra.gmra.mxu2 %vm356_vm0, %v2850_v45  ;;  %v7174_v3 = vld [vmem:[#allocation2 + $0x34] sm:$0xf0]  ;;  %v6588_v46 = vor.u32 %v7170_v57, %v6585_v43  ;;  %v7211_v27 = vld [vmem:[#allocation3 + $0xe4] sm:$0xf]  ;;  %v6809_v30 = vld [vmem:[#allocation3 + $0xf0] sm:$0xf0] }
 0xce3   :  { %2996 = vmatpush.bf16.msrb.mxu2 %v6608_v38  ;;  %6622 = vmatmul.msk.bf16.vlgmr.msrb.gmra.mxu0 %vm356_vm0, %v2850_v45  ;;  %v6584_v4 = vor.u32 %v7174_v3, %v6583_v2  ;;  %v8353_v31 = vor.u32 %v7211_v27, %v6809_v30  ;;  %v7207_v32 = vld [vmem:[#allocation3 + $0xc4] sm:$0xf]  ;;  %v6793_v33 = vld [vmem:[#allocation3 + $0xd0] sm:$0xf0]  ;;  %v7212_v60 = vld [vmem:[#allocation3 + $0xec] sm:$0xf] }
 0xce4   :  { %3010 = vmatpush.bf16.msra.mxu0 %v6612_v54  ;;  %6624 = vmatmul.msk.bf16.vlgmr.msrb.gmra.mxu3 %vm356_vm0, %v2850_v45  ;;  %v8360_v34 = vor.u32 %v7207_v32, %v6793_v33  ;;  %v7203_v36 = vld [vmem:[#allocation3 + $0xa4] sm:$0xf]  ;;  %v6777_v39 = vld [vmem:[#allocation3 + $0xb0] sm:$0xf0]  ;;  %v7213_v54 = vld [vmem:[#allocation3 + $0xec] sm:$0xf0] }
 0xce5   :  { %2969 = vmatpush.bf16.msra.mxu1 %v6568_v53  ;;  %3038 = vmatpush.bf16.msra.mxu3 %v6620_v55  ;;  %10214 = vst [vmem:[#allocation23_spill] sm:$0xff] %v8353_v31  ;;  %v8370_v22 = vor.u32 %v7203_v36, %v6777_v39  ;;  %v7199_v40 = vld [vmem:[#allocation3 + $0x84] sm:$0xf]  ;;  %v6761_v28 = vld [vmem:[#allocation3 + $0x90] sm:$0xf0] }
 0xce6   :  { %10215 = vst [vmem:[#allocation24_spill] sm:$0xff] %v8360_v34  ;;  %v8377_v19 = vor.u32 %v7199_v40, %v6761_v28  ;;  %v7195_v29 = vld [vmem:[#allocation3 + $0x64] sm:$0xf]  ;;  %v6745_v42 = vld [vmem:[#allocation3 + $0x70] sm:$0xf0] }
 0xce7   :  { %2997 = vmatpush.bf16.msrb.mxu2 %v6576_v58  ;;  %v8309_v9 = vld [vmem:[%s10213_s27] sm:$0xff]  ;;  %v8312_v18 = vld [vmem:[%s10213_s27 + $0x18] sm:$0xff]  ;;  %v8321_v14 = vld [vmem:[%s10213_s27 + $0x8] sm:$0xff]  ;;  %10216 = vst [vmem:[#allocation25_spill] sm:$0xff] %v8370_v22  ;;  %v8384_v21 = vor.u32 %v7195_v29, %v6745_v42 }
 0xce8   :  { %3011 = vmatpush.bf16.msra.mxu0 %v6580_v62  ;;  %6623 = vmatmul.msk.bf16.vlgmr.msra.gmra.mxu1 %vm356_vm0, %v2850_v45  ;;  %v8324_v15 = vld [vmem:[%s10213_s27 + $0x20] sm:$0xff]  ;;  %v8335_v20 = vld [vmem:[%s10213_s27 + $0x10] sm:$0xff]  ;;  %v8338_v23 = vld [vmem:[%s10213_s27 + $0x28] sm:$0xff]  ;;  %10217 = vst [vmem:[#allocation26_spill] sm:$0xff] %v8377_v19 }
 0xce9   :  { %3024 = vmatpush.bf16.msrb.mxu1 %v6616_v41  ;;  %3039 = vmatpush.bf16.msra.mxu3 %v6588_v46  ;;  %v8349_v26 = vld [vmem:[%s10213_s27 + $0x30] sm:$0xff]  ;;  %v8365_v35 = vld [vmem:[%s10213_s27 + $0x38] sm:$0xff]  ;;  %10218 = vst [vmem:[#allocation27_spill] sm:$0xff] %v8384_v21  ;;  %v7191_v44 = vld [vmem:[#allocation3 + $0x44] sm:$0xf] }
 0xcea   :  { %v7187_v48 = vld [vmem:[#allocation3 + $0x24] sm:$0xf]  ;;  %v6713_v49 = vld [vmem:[#allocation3 + $0x30] sm:$0xf0]  ;;  %v6807_v53 = vld [vmem:[#allocation3 + $0xe0] sm:$0xf] }
 0xceb   :  { %v8398_v50 = vor.u32 %v7187_v48, %v6713_v49  ;;  %v7183_v59 = vld [vmem:[#allocation3 + $0x4] sm:$0xf]  ;;  %v6697_v51 = vld [vmem:[#allocation3 + $0x10] sm:$0xf0]  ;;  %v8416_v55 = vor.u32 %v7213_v54, %v6807_v53  ;;  %v6817_v56 = vld [vmem:[#allocation3 + $0xf8] sm:$0xf0] }
 0xcec   :  { %v8405_v52 = vor.u32 %v7183_v59, %v6697_v51  ;;  %v8418_v57 = vor.u32 %v7212_v60, %v6817_v56  ;;  %v6791_v58 = vld [vmem:[#allocation3 + $0xc0] sm:$0xf]  ;;  %v7209_v43 = vld [vmem:[#allocation3 + $0xcc] sm:$0xf0]  ;;  %v7208_v61 = vld [vmem:[#allocation3 + $0xcc] sm:$0xf] }
 0xced   :  { %3025 = vmatpush.bf16.msrb.mxu1 %v6584_v4  ;;  %10220 = vst [vmem:[#allocation29_spill] sm:$0xff] %v8398_v50  ;;  %v8422_v63 = vor.u32 %v7209_v43, %v6791_v58  ;;  %v6801_v62 = vld [vmem:[#allocation3 + $0xd8] sm:$0xf0]  ;;  %v7243_v2 = vld [vmem:[#allocation3 + $0x1e4] sm:$0xf] }
 0xcee   :  { %10221 = vst [vmem:[#allocation30_spill] sm:$0xff] %v8405_v52  ;;  %v8426_v41 = vor.u32 %v7208_v61, %v6801_v62  ;;  %v6937_v3 = vld [vmem:[#allocation3 + $0x1f0] sm:$0xf0]  ;;  %v6775_v46 = vld [vmem:[#allocation3 + $0xa0] sm:$0xf] }
 0xcef   :  { %v7205_v4 = vld [vmem:[#allocation3 + $0xac] sm:$0xf0]  ;;  %v6743_v27 = vld [vmem:[#allocation3 + $0x60] sm:$0xf]  ;;  %v7196_v32 = vld [vmem:[#allocation3 + $0x6c] sm:$0xf] }
 0xcf0   :  { %v7197_v30 = vld [vmem:[#allocation3 + $0x6c] sm:$0xf0]  ;;  %v6753_v39 = vld [vmem:[#allocation3 + $0x78] sm:$0xf0]  ;;  %v7231_v28 = vld [vmem:[#allocation3 + $0x184] sm:$0xf] }
 0xcf1   :  { %v8464_v36 = vor.u32 %v7197_v30, %v6743_v27  ;;  %v8466_v40 = vor.u32 %v7196_v32, %v6753_v39  ;;  %v6889_v29 = vld [vmem:[#allocation3 + $0x190] sm:$0xf0]  ;;  %v6727_v42 = vld [vmem:[#allocation3 + $0x40] sm:$0xf]  ;;  %v6737_v59 = vld [vmem:[#allocation3 + $0x58] sm:$0xf0] }
 0xcf2   :  { %6625 = vmatmul.msk.bf16.vlgmr.msrb.gmra.mxu2 %vm356_vm0, %v2850_v45  ;;  %v8471_v48 = vor.u32 %v7231_v28, %v6889_v29  ;;  %v7227_v53 = vld [vmem:[#allocation3 + $0x164] sm:$0xf]  ;;  %v6873_v54 = vld [vmem:[#allocation3 + $0x170] sm:$0xf0]  ;;  %v6711_v60 = vld [vmem:[#allocation3 + $0x20] sm:$0xf] }
 0xcf3   :  { %6626 = vmatmul.msk.bf16.vlgmr.msra.gmra.mxu0 %vm356_vm0, %v2850_v45  ;;  %v7189_v56 = vld [vmem:[#allocation3 + $0x2c] sm:$0xf0]  ;;  %v7188_v58 = vld [vmem:[#allocation3 + $0x2c] sm:$0xf]  ;;  %v8484_v43 = vor.u32 %v7227_v53, %v6873_v54  ;;  %v6721_v62 = vld [vmem:[#allocation3 + $0x38] sm:$0xf0] }
 0xcf4   :  { %6628 = vmatmul.msk.bf16.vlgmr.msra.gmra.mxu3 %vm356_vm0, %v2850_v45  ;;  %10225 = vst [vmem:[#allocation34_spill] sm:$0xff] %v8471_v48  ;;  %v8490_v61 = vor.u32 %v7189_v56, %v6711_v60  ;;  %v7244_v32 = vld [vmem:[#allocation3 + $0x1ec] sm:$0xf]  ;;  %v6945_v39 = vld [vmem:[#allocation3 + $0x1f8] sm:$0xf0] }
 0xcf5   :  { %10226 = vst [vmem:[#allocation35_spill] sm:$0xff] %v8484_v43  ;;  %v8514_v28 = vor.u32 %v7244_v32, %v6945_v39  ;;  %v7219_v29 = vld [vmem:[#allocation3 + $0x124] sm:$0xf]  ;;  %v7241_v53 = vld [vmem:[#allocation3 + $0x1cc] sm:$0xf0] }
 0xcf6   :  { %v7240_v54 = vld [vmem:[#allocation3 + $0x1cc] sm:$0xf]  ;;  %v6929_v56 = vld [vmem:[#allocation3 + $0x1d8] sm:$0xf0]  ;;  %v6887_v39 = vld [vmem:[#allocation3 + $0x180] sm:$0xf] }
 0xcf7   :  { %10228 = vst [vmem:[#allocation37_spill] sm:$0xff] %v8514_v28 }
 0xcf8   :  { %6627 = vmatmul.msk.bf16.vlgmr.msrb.gmra.mxu1 %vm356_vm0, %v2850_v45  ;;  %v6729_v45 = vld [vmem:[#allocation3 + $0x50] sm:$0xf0] }
 0xcf9   :  { %v8391_v38 = vor.u32 %v7191_v44, %v6729_v45  ;;  %v7193_v44 = vld [vmem:[#allocation3 + $0x4c] sm:$0xf0]  ;;  %v7192_v45 = vld [vmem:[#allocation3 + $0x4c] sm:$0xf] }
 0xcfa   :  { %v8473_v49 = vor.u32 %v7193_v44, %v6727_v42  ;;  %v8477_v51 = vor.u32 %v7192_v45, %v6737_v59  ;;  %v6841_v42 = vld [vmem:[#allocation3 + $0x130] sm:$0xf0]  ;;  %v10077_v45 = vmov 0   ;;  %v6919_v59 = vld [vmem:[#allocation3 + $0x1c0] sm:$0xf] }
 0xcfb   :  { %10219 = vst [vmem:[#allocation28_spill] sm:$0xff] %v8391_v38  ;;  %v8518_v44 = vor.u32 %v7219_v29, %v6841_v42  ;;  %v8524_v60 = vor.u32 %v7241_v53, %v6919_v59  ;;  %v7233_v29 = vld [vmem:[#allocation3 + $0x18c] sm:$0xf0]  ;;  %v7232_v42 = vld [vmem:[#allocation3 + $0x18c] sm:$0xf] }
 0xcfc   :  { %v8550_v59 = vor.u32 %v7233_v29, %v6887_v39  ;;  %v6897_v53 = vld [vmem:[#allocation3 + $0x198] sm:$0xf0]  ;;  %v7202_v39 = vld [vmem:[#allocation3 + $0x94] sm:$0xf0] }
 0xcfd   :  { %10229 = vst [vmem:[#allocation38_spill] sm:$0xff] %v8518_v44 }
 0xcfe   :  { %10230 = vst [vmem:[#allocation39_spill] sm:$0xff] %v8524_v60 }
 0xcff   :  { %10235 = vst [vmem:[#allocation44_spill] sm:$0xff] %v8550_v59 }
 0xd60   :  { %v2957_v5 = vpop.f32.mrf.mxu0 }
 0xd65   :  { %v2971_v0 = vpop.f32.mrf.mxu1  ;;  %v2943_v6 = vpop.f32.mrf.mxu2 }
 0xd67   :  { %v2985_v7 = vpop.f32.mrf.mxu3 }
 0xd68   :  { %v2959_v8 = vpop.f32.mrf.mxu0 }
 0xd69   :  { %3152 = vmatpush.msrb.mxu0 %v2959_v8  ;;  %7247 = vmatpush.msra.mxu1 %v2959_v8 }
 0xd6b   :  { %3153 = vmatpush.msrb.mxu0 %v2957_v5  ;;  %7248 = vmatpush.msra.mxu1 %v2957_v5  ;;  %v7204_v5 = vld [vmem:[#allocation3 + $0xac] sm:$0xf] }
 0xd6c   :  { %6637 = vmatmul.msk.f32.vlgmr.msrb.gmra.mxu0 %vm3072_vm14, %v8309_v9  ;;  %6640 = vmatmul.msk.f32.vlgmr.msra.gmra.mxu1 %vm3072_vm14, %v8312_v18 }
 0xd6d   :  { %v2973_v10 = vpop.f32.mrf.mxu1  ;;  %v2945_v11 = vpop.f32.mrf.mxu2 }
 0xd6e   :  { %3193 = vmatpush.msrb.mxu1 %v2973_v10  ;;  %3111 = vmatpush.msra.mxu2 %v2945_v11  ;;  %v7239_v10 = vld [vmem:[#allocation3 + $0x1c4] sm:$0xf]  ;;  %v6921_v11 = vld [vmem:[#allocation3 + $0x1d0] sm:$0xf0] }
 0xd6f   :  { %v2987_v12 = vpop.f32.mrf.mxu3 }
 0xd70   :  { %3234 = vmatpush.msrb.mxu3 %v2987_v12  ;;  %3194 = vmatpush.msrb.mxu1 %v2971_v0  ;;  %v3013_v13 = vpop.f32.mrf.mxu0  ;;  %v8432_v0 = vor.u32 %v7243_v2, %v6937_v3  ;;  %v6759_v12 = vld [vmem:[#allocation3 + $0x80] sm:$0xf]  ;;  %v6815_v2 = vld [vmem:[#allocation3 + $0xe8] sm:$0xf]  ;;  %v7214_v3 = vld [vmem:[#allocation3 + $0xf4] sm:$0xf0] }
 0xd71   :  { %3112 = vmatpush.msra.mxu2 %v2943_v6  ;;  %v8438_v6 = vor.u32 %v7205_v4, %v6775_v46  ;;  %v8492_v46 = vor.u32 %v7188_v58, %v6721_v62  ;;  %v8494_v4 = vor.u32 %v7214_v3, %v6815_v2  ;;  %v8527_v58 = vor.u32 %v7240_v54, %v6929_v56  ;;  %v7215_v62 = vld [vmem:[#allocation3 + $0x104] sm:$0xf]  ;;  %v6825_v2 = vld [vmem:[#allocation3 + $0x110] sm:$0xf0]  ;;  %v6783_v54 = vld [vmem:[#allocation3 + $0xa8] sm:$0xf] }
 0xd72   :  { %3235 = vmatpush.msrb.mxu3 %v2985_v7  ;;  %6629 = vmatmul.msk.f32.vlgmr.msra.gmra.mxu2 %vm3072_vm14, %v8309_v9  ;;  %10222 = vst [vmem:[#allocation31_spill] sm:$0xff] %v8432_v0  ;;  %v6785_v7 = vld [vmem:[#allocation3 + $0xb8] sm:$0xf0]  ;;  %v8530_v3 = vor.u32 %v7215_v62, %v6825_v2  ;;  %v7206_v56 = vld [vmem:[#allocation3 + $0xb4] sm:$0xf0]  ;;  %v8552_v62 = vor.u32 %v7232_v42, %v6897_v53 }
 0xd73   :  { %6653 = vmatmul.msk.f32.vlgmr.msrb.gmra.mxu3 %vm3072_vm14, %v8309_v9  ;;  %v8440_v8 = vor.u32 %v7204_v5, %v6785_v7  ;;  %v7223_v5 = vld [vmem:[#allocation3 + $0x144] sm:$0xf]  ;;  %v6857_v7 = vld [vmem:[#allocation3 + $0x150] sm:$0xf0]  ;;  %10231 = vst [vmem:[#allocation40_spill] sm:$0xff] %v8527_v58  ;;  %v8554_v2 = vor.u32 %v7206_v56, %v6783_v54 }
 0xd74   :  { %6638 = vmatmul.msk.f32.gmra.mxu0 %vm3072_vm14, %v8321_v14  ;;  %6641 = vmatmul.msk.f32.gmra.mxu1 %vm3072_vm14, %v8324_v15  ;;  %10232 = vst [vmem:[#allocation41_spill] sm:$0xff] %v8530_v3  ;;  %v6855_v53 = vld [vmem:[#allocation3 + $0x140] sm:$0xf]  ;;  %v7225_v54 = vld [vmem:[#allocation3 + $0x14c] sm:$0xf0] }
 0xd75   :  { %v3027_v16 = vpop.f32.mrf.mxu1  ;;  %v2999_v47 = vpop.f32.mrf.mxu2  ;;  %10236 = vst [vmem:[#allocation45_spill] sm:$0xff] %v8552_v62  ;;  %v8576_v56 = vor.u32 %v7225_v54, %v6855_v53  ;;  %v6849_v54 = vld [vmem:[#allocation3 + $0x138] sm:$0xf0] }
 0xd77   :  { %v3041_v17 = vpop.f32.mrf.mxu3  ;;  %10239 = vst [vmem:[#allocation48_spill] sm:$0xff] %v8576_v56 }
 0xd78   :  { %v3015_v37 = vpop.f32.mrf.mxu0 }
 0xd79   :  { %3316 = vmatpush.msra.mxu0 %v3015_v37  ;;  %v6769_v37 = vld [vmem:[#allocation3 + $0x98] sm:$0xf0] }
 0xd7a   :  { %6630 = vmatmul.msk.f32.gmra.mxu2 %vm3072_vm14, %v8321_v14 }
 0xd7b   :  { %6654 = vmatmul.msk.f32.gmra.mxu3 %vm3072_vm14, %v8321_v14  ;;  %3317 = vmatpush.msra.mxu0 %v3013_v13  ;;  %v7201_v13 = vld [vmem:[#allocation3 + $0x8c] sm:$0xf0] }
 0xd7c   :  { %6639 = vmatmul.msk.f32.gmra.mxu0 %vm3072_vm14, %v8335_v20  ;;  %6642 = vmatmul.msk.f32.gmra.mxu1 %vm3072_vm14, %v8338_v23 }
 0xd7d   :  { %v3029_v1 = vpop.f32.mrf.mxu1  ;;  %v3001_v24 = vpop.f32.mrf.mxu2  ;;  %3598 = vmatpush.bf16.msrb.mxu0 %v8353_v31 }
 0xd7e   :  { %3357 = vmatpush.msra.mxu1 %v3029_v1  ;;  %3275 = vmatpush.msrb.mxu2 %v3001_v24  ;;  %v7235_v24 = vld [vmem:[#allocation3 + $0x1a4] sm:$0xf] }
 0xd7f   :  { %v3043_v25 = vpop.f32.mrf.mxu3 }
 0xd80   :  { %3398 = vmatpush.msra.mxu3 %v3043_v25  ;;  %3358 = vmatpush.msra.mxu1 %v3027_v16  ;;  %v7200_v16 = vld [vmem:[#allocation3 + $0x8c] sm:$0xf]  ;;  %v6905_v25 = vld [vmem:[#allocation3 + $0x1b0] sm:$0xf0] }
 0xd81   :  { %3276 = vmatpush.msrb.mxu2 %v2999_v47  ;;  %3599 = vmatpush.bf16.msrb.mxu0 %v8360_v34  ;;  %v8445_v47 = vor.u32 %v7239_v10, %v6921_v11  ;;  %v8451_v1 = vor.u32 %v7200_v16, %v6769_v37  ;;  %v8458_v33 = vor.u32 %v7235_v24, %v6905_v25  ;;  %v6695_v10 = vld [vmem:[#allocation3] sm:$0xf]  ;;  %v7185_v11 = vld [vmem:[#allocation3 + $0xc] sm:$0xf0]  ;;  %v6705_v37 = vld [vmem:[#allocation3 + $0x18] sm:$0xf0] }
 0xd82   :  { %6631 = vmatmul.msk.f32.gmra.mxu2 %vm3072_vm14, %v8335_v20  ;;  %3399 = vmatpush.msra.mxu3 %v3041_v17  ;;  %v8447_v17 = vor.u32 %v7201_v13, %v6759_v12  ;;  %v7184_v12 = vld [vmem:[#allocation3 + $0xc] sm:$0xf]  ;;  %v8500_v13 = vor.u32 %v7223_v5, %v6857_v7  ;;  %v8502_v16 = vor.u32 %v7185_v11, %v6695_v10  ;;  %v6935_v24 = vld [vmem:[#allocation3 + $0x1e0] sm:$0xf]  ;;  %v7245_v25 = vld [vmem:[#allocation3 + $0x1ec] sm:$0xf0] }
 0xd83   :  { %6655 = vmatmul.msk.f32.gmra.mxu3 %vm3072_vm14, %v8335_v20  ;;  %3585 = vmatpush.bf16.msra.mxu2 %v8416_v55  ;;  %10223 = vst [vmem:[#allocation32_spill] sm:$0xff] %v8445_v47  ;;  %v8506_v27 = vor.u32 %v7184_v12, %v6705_v37  ;;  %v8508_v30 = vor.u32 %v7245_v25, %v6935_v24  ;;  %v6903_v5 = vld [vmem:[#allocation3 + $0x1a0] sm:$0xf]  ;;  %v7237_v7 = vld [vmem:[#allocation3 + $0x1ac] sm:$0xf0] }
 0xd84   :  { %6643 = vmatmul.msk.f32.gmra.mxu1 %vm3072_vm14, %v8349_v26  ;;  %6669 = vmatmul.msk.f32.vlgmr.msra.gmra.mxu0 %vm3072_vm14, %v8309_v9  ;;  %10224 = vst [vmem:[#allocation33_spill] sm:$0xff] %v8458_v33  ;;  %v7236_v10 = vld [vmem:[#allocation3 + $0x1ac] sm:$0xf]  ;;  %v6799_v11 = vld [vmem:[#allocation3 + $0xc8] sm:$0xf]  ;;  %v8535_v37 = vor.u32 %v7237_v7, %v6903_v5 }
 0xd85   :  { %3600 = vmatpush.bf16.msrb.mxu0 %v8370_v22  ;;  %3624 = vmatpush.bf16.msrb.mxu3 %v8418_v57  ;;  %10227 = vst [vmem:[#allocation36_spill] sm:$0xff] %v8500_v13  ;;  %v7210_v12 = vld [vmem:[#allocation3 + $0xd4] sm:$0xf0]  ;;  %v6913_v24 = vld [vmem:[#allocation3 + $0x1b8] sm:$0xf0] }
 0xd86   :  { %10233 = vst [vmem:[#allocation42_spill] sm:$0xff] %v8535_v37  ;;  %v8539_v25 = vor.u32 %v7210_v12, %v6799_v11  ;;  %v8541_v32 = vor.u32 %v7236_v10, %v6913_v24  ;;  %v6871_v5 = vld [vmem:[#allocation3 + $0x160] sm:$0xf]  ;;  %v7229_v7 = vld [vmem:[#allocation3 + $0x16c] sm:$0xf0] }
 0xd87   :  { %3586 = vmatpush.bf16.msra.mxu2 %v8422_v63  ;;  %v7228_v10 = vld [vmem:[#allocation3 + $0x16c] sm:$0xf]  ;;  %v8561_v11 = vor.u32 %v7229_v7, %v6871_v5  ;;  %v6881_v12 = vld [vmem:[#allocation3 + $0x178] sm:$0xf0]  ;;  %v6767_v24 = vld [vmem:[#allocation3 + $0x88] sm:$0xf] }
 0xd88   :  { %10234 = vst [vmem:[#allocation43_spill] sm:$0xff] %v8541_v32  ;;  %v8566_v29 = vor.u32 %v7228_v10, %v6881_v12  ;;  %v8568_v42 = vor.u32 %v7202_v39, %v6767_v24  ;;  %v7224_v5 = vld [vmem:[#allocation3 + $0x14c] sm:$0xf]  ;;  %v6865_v7 = vld [vmem:[#allocation3 + $0x158] sm:$0xf0] }
 0xd89   :  { %3601 = vmatpush.bf16.msrb.mxu0 %v8377_v19  ;;  %3625 = vmatpush.bf16.msrb.mxu3 %v8426_v41  ;;  %10237 = vst [vmem:[#allocation46_spill] sm:$0xff] %v8561_v11  ;;  %v8579_v10 = vor.u32 %v7224_v5, %v6865_v7  ;;  %v6751_v12 = vld [vmem:[#allocation3 + $0x68] sm:$0xf]  ;;  %v7198_v24 = vld [vmem:[#allocation3 + $0x74] sm:$0xf0] }
 0xd8a   :  { %6632 = vmatmul.msk.f32.gmra.mxu2 %vm3072_vm14, %v8312_v18  ;;  %10238 = vst [vmem:[#allocation47_spill] sm:$0xff] %v8566_v29  ;;  %v8582_v39 = vor.u32 %v7198_v24, %v6751_v12  ;;  %v6735_v5 = vld [vmem:[#allocation3 + $0x48] sm:$0xf]  ;;  %v7194_v7 = vld [vmem:[#allocation3 + $0x54] sm:$0xf0] }
 0xd8b   :  { %6656 = vmatmul.msk.f32.gmra.mxu3 %vm3072_vm14, %v8312_v18  ;;  %3587 = vmatpush.bf16.msra.mxu2 %v8438_v6  ;;  %10240 = vst [vmem:[#allocation49_spill] sm:$0xff] %v8579_v10  ;;  %v8595_v24 = vor.u32 %v7194_v7, %v6735_v5  ;;  %v7186_v7 = vld [vmem:[#allocation3 + $0x14] sm:$0xf0] }
 0xd8c   :  { %6644 = vmatmul.msk.f32.gmra.mxu1 %vm3072_vm14, %v8365_v35  ;;  %6670 = vmatmul.msk.f32.gmra.mxu0 %vm3072_vm14, %v8321_v14  ;;  %10241 = vst [vmem:[#allocation50_spill] sm:$0xff] %v8582_v39 }
 0xd8d   :  { %3602 = vmatpush.bf16.msrb.mxu0 %v8384_v21  ;;  %3626 = vmatpush.bf16.msrb.mxu3 %v8440_v8 }
 0xd8f   :  { %3588 = vmatpush.bf16.msra.mxu2 %v8447_v17 }
 0xd91   :  { %3603 = vmatpush.bf16.msrb.mxu0 %v8391_v38  ;;  %3627 = vmatpush.bf16.msrb.mxu3 %v8451_v1 }
 0xd92   :  { %6633 = vmatmul.msk.f32.gmra.mxu2 %vm3072_vm14, %v8324_v15 }
 0xd93   :  { %6657 = vmatmul.msk.f32.gmra.mxu3 %vm3072_vm14, %v8324_v15  ;;  %3589 = vmatpush.bf16.msra.mxu2 %v8464_v36 }
 0xd94   :  { %6645 = vmatmul.msk.f32.vlgmr.msrb.gmra.mxu1 %vm3072_vm14, %v8309_v9  ;;  %6671 = vmatmul.msk.f32.gmra.mxu0 %vm3072_vm14, %v8335_v20 }
 0xd95   :  { %3604 = vmatpush.bf16.msrb.mxu0 %v8398_v50  ;;  %3628 = vmatpush.bf16.msrb.mxu3 %v8466_v40 }
 0xd96   :  { %3611 = vmatpush.bf16.msrb.mxu1 %v8494_v4 }
 0xd97   :  { %3590 = vmatpush.bf16.msra.mxu2 %v8473_v49 }
 0xd99   :  { %3605 = vmatpush.bf16.msrb.mxu0 %v8405_v52  ;;  %3629 = vmatpush.bf16.msrb.mxu3 %v8477_v51 }
 0xd9a   :  { %6634 = vmatmul.msk.f32.gmra.mxu2 %vm3072_vm14, %v8338_v23  ;;  %3612 = vmatpush.bf16.msrb.mxu1 %v8539_v25 }
 0xd9b   :  { %6658 = vmatmul.msk.f32.gmra.mxu3 %vm3072_vm14, %v8338_v23  ;;  %3591 = vmatpush.bf16.msra.mxu2 %v8490_v61 }
 0xd9c   :  { %6646 = vmatmul.msk.f32.gmra.mxu1 %vm3072_vm14, %v8321_v14  ;;  %6672 = vmatmul.msk.f32.gmra.mxu0 %vm3072_vm14, %v8312_v18 }
 0xd9d   :  { %3810 = vmatpush.bf16.msra.mxu0 %v8432_v0  ;;  %3630 = vmatpush.bf16.msrb.mxu3 %v8492_v46 }
 0xd9e   :  { %3613 = vmatpush.bf16.msrb.mxu1 %v8554_v2 }
 0xd9f   :  { %3592 = vmatpush.bf16.msra.mxu2 %v8502_v16 }
 0xda1   :  { %3811 = vmatpush.bf16.msra.mxu0 %v8445_v47  ;;  %3631 = vmatpush.bf16.msrb.mxu3 %v8506_v27 }
 0xda2   :  { %6635 = vmatmul.msk.f32.gmra.mxu2 %vm3072_vm14, %v8349_v26  ;;  %3614 = vmatpush.bf16.msrb.mxu1 %v8568_v42 }
 0xda3   :  { %6659 = vmatmul.msk.f32.gmra.mxu3 %vm3072_vm14, %v8349_v26 }
 0xda4   :  { %6647 = vmatmul.msk.f32.gmra.mxu1 %vm3072_vm14, %v8335_v20  ;;  %6673 = vmatmul.msk.f32.gmra.mxu0 %vm3072_vm14, %v8324_v15 }
 0xda5   :  { %3812 = vmatpush.bf16.msra.mxu0 %v8458_v33 }
 0xda6   :  { %3615 = vmatpush.bf16.msrb.mxu1 %v8582_v39  ;;  %v6719_v39 = vld [vmem:[#allocation3 + $0x28] sm:$0xf] }
 0xda9   :  { %3813 = vmatpush.bf16.msra.mxu0 %v8471_v48 }
 0xdaa   :  { %6636 = vmatmul.msk.f32.gmra.mxu2 %vm3072_vm14, %v8365_v35  ;;  %3616 = vmatpush.bf16.msrb.mxu1 %v8595_v24 }
 0xdab   :  { %6660 = vmatmul.msk.f32.gmra.mxu3 %vm3072_vm14, %v8365_v35 }
 0xdac   :  { %6648 = vmatmul.msk.f32.gmra.mxu1 %vm3072_vm14, %v8312_v18  ;;  %6674 = vmatmul.msk.f32.gmra.mxu0 %vm3072_vm14, %v8338_v23 }
 0xdad   :  { %3814 = vmatpush.bf16.msra.mxu0 %v8484_v43 }
 0xdb1   :  { %3815 = vmatpush.bf16.msra.mxu0 %v8500_v13 }
 0xdb2   :  { %6661 = vmatmul.msk.f32.vlgmr.msrb.gmra.mxu2 %vm3072_vm14, %v8309_v9 }
 0xdb3   :  { %6685 = vmatmul.msk.f32.vlgmr.msra.gmra.mxu3 %vm3072_vm14, %v8309_v9  ;;  %3797 = vmatpush.bf16.msrb.mxu2 %v8508_v30 }
 0xdb4   :  { %6649 = vmatmul.msk.f32.gmra.mxu1 %vm3072_vm14, %v8324_v15  ;;  %6675 = vmatmul.msk.f32.gmra.mxu0 %vm3072_vm14, %v8349_v26 }
 0xdb5   :  { %3836 = vmatpush.bf16.msra.mxu3 %v8514_v28  ;;  %3816 = vmatpush.bf16.msra.mxu0 %v8518_v44 }
 0xdb7   :  { %3798 = vmatpush.bf16.msrb.mxu2 %v8524_v60 }
 0xdb9   :  { %3837 = vmatpush.bf16.msra.mxu3 %v8527_v58  ;;  %3817 = vmatpush.bf16.msra.mxu0 %v8530_v3 }
 0xdba   :  { %6662 = vmatmul.msk.f32.gmra.mxu2 %vm3072_vm14, %v8321_v14 }
 0xdbb   :  { %6686 = vmatmul.msk.f32.gmra.mxu3 %vm3072_vm14, %v8321_v14  ;;  %3799 = vmatpush.bf16.msrb.mxu2 %v8535_v37 }
 0xdbc   :  { %6650 = vmatmul.msk.f32.gmra.mxu1 %vm3072_vm14, %v8338_v23  ;;  %6676 = vmatmul.msk.f32.gmra.mxu0 %vm3072_vm14, %v8365_v35 }
 0xdbd   :  { %3838 = vmatpush.bf16.msra.mxu3 %v8541_v32 }
 0xdbf   :  { %3800 = vmatpush.bf16.msrb.mxu2 %v8550_v59 }
 0xdc1   :  { %3839 = vmatpush.bf16.msra.mxu3 %v8552_v62 }
 0xdc2   :  { %6663 = vmatmul.msk.f32.gmra.mxu2 %vm3072_vm14, %v8335_v20 }
 0xdc3   :  { %6687 = vmatmul.msk.f32.gmra.mxu3 %vm3072_vm14, %v8335_v20  ;;  %3801 = vmatpush.bf16.msrb.mxu2 %v8561_v11 }
 0xdc4   :  { %6651 = vmatmul.msk.f32.gmra.mxu1 %vm3072_vm14, %v8349_v26  ;;  %3606 = vmatmul.bf16.vlgmr.msrb.gmra.mxu0 %v10077_v45 }
 0xdc5   :  { %3997 = vmatpush.bf16.msrb.mxu0 %v8353_v31  ;;  %3840 = vmatpush.bf16.msra.mxu3 %v8566_v29  ;;  %v6833_v31 = vld [vmem:[#allocation3 + $0x118] sm:$0xf0] }
 0xdc7   :  { %3802 = vmatpush.bf16.msrb.mxu2 %v8576_v56 }
 0xdc9   :  { %3998 = vmatpush.bf16.msrb.mxu0 %v8360_v34  ;;  %3841 = vmatpush.bf16.msra.mxu3 %v8579_v10 }
 0xdca   :  { %6664 = vmatmul.msk.f32.gmra.mxu2 %vm3072_vm14, %v8312_v18 }
 0xdcb   :  { %6688 = vmatmul.msk.f32.gmra.mxu3 %vm3072_vm14, %v8312_v18 }
 0xdcc   :  { %6652 = vmatmul.msk.f32.gmra.mxu1 %vm3072_vm14, %v8365_v35 }
 0xdcd   :  { %3999 = vmatpush.bf16.msrb.mxu0 %v8370_v22  ;;  %v7220_v22 = vld [vmem:[#allocation3 + $0x12c] sm:$0xf] }
 0xdce   :  { %v8593_v12 = vor.u32 %v7220_v22, %v6849_v54  ;;  %v7190_v22 = vld [vmem:[#allocation3 + $0x34] sm:$0xf0] }
 0xdcf   :  { %v8607_v5 = vor.u32 %v7190_v22, %v6719_v39  ;;  %v7246_v39 = vld [vmem:[#allocation3 + $0x1f4] sm:$0xf0] }
 0xdd0   :  { %10243 = vst [vmem:[#allocation52_spill] sm:$0xff] %v8593_v12  ;;  %3842 = vmatpush.bf16.msra.mxu3 %v8593_v12 }
 0xdd1   :  { %4000 = vmatpush.bf16.msrb.mxu0 %v8377_v19  ;;  %v7216_v19 = vld [vmem:[#allocation3 + $0x10c] sm:$0xf]  ;;  %3617 = vmatpush.bf16.msrb.mxu1 %v8607_v5 }
 0xdd2   :  { %6665 = vmatmul.msk.f32.gmra.mxu2 %vm3072_vm14, %v8324_v15  ;;  %v8605_v54 = vor.u32 %v7216_v19, %v6833_v31  ;;  %v6943_v19 = vld [vmem:[#allocation3 + $0x1e8] sm:$0xf] }
 0xdd3   :  { %6689 = vmatmul.msk.f32.gmra.mxu3 %vm3072_vm14, %v8324_v15 }
 0xdd4   :  { %6677 = vmatmul.msk.f32.vlgmr.msra.gmra.mxu1 %vm3072_vm14, %v8309_v9  ;;  %3818 = vmatmul.bf16.vlgmr.msra.gmra.mxu0 %v10077_v45  ;;  %v6839_v9 = vld [vmem:[#allocation3 + $0x120] sm:$0xf]  ;;  %v7221_v45 = vld [vmem:[#allocation3 + $0x12c] sm:$0xf0]  ;;  %10245 = vst [vmem:[#allocation54_spill] sm:$0xff] %v8605_v54 }
 0xdd5   :  { %v8588_v53 = vor.u32 %v7221_v45, %v6839_v9  ;;  %4001 = vmatpush.bf16.msrb.mxu0 %v8384_v21  ;;  %v6823_v45 = vld [vmem:[#allocation3 + $0x100] sm:$0xf]  ;;  %v7217_v9 = vld [vmem:[#allocation3 + $0x10c] sm:$0xf0]  ;;  %3843 = vmatpush.bf16.msra.mxu3 %v8605_v54  ;;  %v7242_v21 = vld [vmem:[#allocation3 + $0x1d4] sm:$0xf0] }
 0xdd6   :  { %v8602_v34 = vor.u32 %v7217_v9, %v6823_v45  ;;  %v8620_v45 = vld [vmem:[%s7788_s12] sm:$0xff]  ;;  %v8622_v9 = vor.u32 %v7246_v39, %v6943_v19  ;;  %v6911_v39 = vld [vmem:[#allocation3 + $0x1a8] sm:$0xf] }
 0xdd7   :  { %10242 = vst [vmem:[#allocation51_spill] sm:$0xff] %v8588_v53  ;;  %3803 = vmatpush.bf16.msrb.mxu2 %v8588_v53  ;;  %v8628_v22 = vperm.slane %v8620_v45, 1 }
 0xdd8   :  { %10244 = vst [vmem:[#allocation53_spill] sm:$0xff] %v8602_v34 }
 0xdd9   :  { %4002 = vmatpush.bf16.msrb.mxu0 %v8391_v38  ;;  %10246 = vst [vmem:[#allocation55_spill] sm:$0xff] %v8622_v9  ;;  %v6927_v38 = vld [vmem:[#allocation3 + $0x1c8] sm:$0xf] }
 0xdda   :  { %6666 = vmatmul.msk.f32.gmra.mxu2 %vm3072_vm14, %v8338_v23  ;;  %10247 = vst [vmem:[#allocation56_spill] sm:$0xff] %v8628_v22 }
 0xddb   :  { %6690 = vmatmul.msk.f32.gmra.mxu3 %vm3072_vm14, %v8338_v23  ;;  %3804 = vmatpush.bf16.msrb.mxu2 %v8602_v34 }
 0xddc   :  { %6678 = vmatmul.msk.f32.gmra.mxu1 %vm3072_vm14, %v8321_v14  ;;  %v6703_v14 = vld [vmem:[#allocation3 + $0x8] sm:$0xf] }
 0xddd   :  { %v8617_v31 = vor.u32 %v7186_v7, %v6703_v14  ;;  %4003 = vmatpush.bf16.msrb.mxu0 %v8398_v50  ;;  %v8632_v14 = vor.u32 %v7242_v21, %v6927_v38  ;;  %v7238_v50 = vld [vmem:[#allocation3 + $0x1b4] sm:$0xf0]  ;;  %v6895_v38 = vld [vmem:[#allocation3 + $0x188] sm:$0xf] }
 0xdde   :  { %v8646_v21 = vor.u32 %v7238_v50, %v6911_v39 }
 0xddf   :  { %3618 = vmatpush.bf16.msrb.mxu1 %v8617_v31  ;;  %10248 = vst [vmem:[#allocation57_spill] sm:$0xff] %v8632_v14 }
 0xde0   :  { %10251 = vst [vmem:[#allocation60_spill] sm:$0xff] %v8646_v21 }
 0xde1   :  { %4004 = vmatpush.bf16.msrb.mxu0 %v8405_v52 }
 0xde2   :  { %6667 = vmatmul.msk.f32.gmra.mxu2 %vm3072_vm14, %v8349_v26 }
 0xde3   :  { %6691 = vmatmul.msk.f32.gmra.mxu3 %vm3072_vm14, %v8349_v26  ;;  %3823 = vmatpush.bf16.msra.mxu1 %v8622_v9 }
 0xde4   :  { %6679 = vmatmul.msk.f32.gmra.mxu1 %vm3072_vm14, %v8335_v20 }
 0xde5   :  { %4050 = vmatpush.bf16.msra.mxu0 %v8432_v0  ;;  %v7234_v0 = vld [vmem:[#allocation3 + $0x194] sm:$0xf0] }
 0xde7   :  { %3824 = vmatpush.bf16.msra.mxu1 %v8632_v14 }
 0xde9   :  { %v8636_v7 = vpop.f32.mrf.mxu0  ;;  %v3164_v19 = vpop.f32.mrf.mxu1  ;;  %4051 = vmatpush.bf16.msra.mxu0 %v8445_v47  ;;  %v7230_v47 = vld [vmem:[#allocation3 + $0x174] sm:$0xf0] }
 0xdea   :  { %10249 = vst [vmem:[#allocation58_spill] sm:$0xff] %v8636_v7  ;;  %6668 = vmatmul.msk.f32.gmra.mxu2 %vm3072_vm14, %v8365_v35  ;;  %v8641_v20 = vadd.f32 %v3164_v19, %v8628_v22  ;;  %v8652_v19 = vor.u32 %v7234_v0, %v6895_v38  ;;  %v10253_v7 = vmov 0   ;;  %v6863_v38 = vld [vmem:[#allocation3 + $0x148] sm:$0xf] }
 0xdeb   :  { %6692 = vmatmul.msk.f32.gmra.mxu3 %vm3072_vm14, %v8365_v35  ;;  %3825 = vmatpush.bf16.msra.mxu1 %v8646_v21 }
 0xdec   :  { %10250 = vst [vmem:[#allocation59_spill] sm:$0xff] %v8641_v20  ;;  %6680 = vmatmul.msk.f32.gmra.mxu1 %vm3072_vm14, %v8312_v18  ;;  %v6879_v18 = vld [vmem:[#allocation3 + $0x168] sm:$0xf] }
 0xded   :  { %10252 = vst [vmem:[#allocation61_spill] sm:$0xff] %v8652_v19  ;;  %4052 = vmatpush.bf16.msra.mxu0 %v8458_v33  ;;  %v8665_v0 = vor.u32 %v7230_v47, %v6879_v18  ;;  %v6847_v18 = vld [vmem:[#allocation3 + $0x128] sm:$0xf] }
 0xdef   :  { %3826 = vmatpush.bf16.msra.mxu1 %v8652_v19  ;;  %10256 = vst [vmem:[#allocation64_spill] sm:$0xff] %v8665_v0 }
 0xdf1   :  { %v3158_v20 = vpop.f32.mrf.mxu0  ;;  %v3167_v52 = vpop.f32.mrf.mxu1  ;;  %4053 = vmatpush.bf16.msra.mxu0 %v8471_v48  ;;  %v7222_v48 = vld [vmem:[#allocation3 + $0x134] sm:$0xf0] }
 0xdf2   :  { %3593 = vmatmul.bf16.vlgmr.msra.gmra.mxu2 %v10253_v7  ;;  %v8657_v50 = vadd.f32 %v3158_v20, %v8628_v22  ;;  %v8660_v39 = vadd.f32 %v3167_v52, %v8628_v22  ;;  %v8687_v33 = vor.u32 %v7222_v48, %v6847_v18 }
 0xdf3   :  { %3632 = vmatmul.bf16.vlgmr.msrb.gmra.mxu3 %v10253_v7  ;;  %3984 = vmatpush.bf16.msra.mxu2 %v8416_v55 }
 0xdf4   :  { %10254 = vst [vmem:[#allocation62_spill] sm:$0xff] %v8657_v50  ;;  %4023 = vmatpush.bf16.msrb.mxu3 %v8418_v57  ;;  %6681 = vmatmul.msk.f32.gmra.mxu1 %vm3072_vm14, %v8324_v15 }
 0xdf5   :  { %10255 = vst [vmem:[#allocation63_spill] sm:$0xff] %v8660_v39  ;;  %v8670_v20 = vpop.f32.mrf.mxu2  ;;  %v7226_v39 = vld [vmem:[#allocation3 + $0x154] sm:$0xf0]  ;;  %3827 = vmatpush.bf16.msra.mxu1 %v8665_v0  ;;  %4054 = vmatpush.bf16.msra.mxu0 %v8484_v43 }
 0xdf6   :  { %v8673_v52 = vpop.f32.mrf.mxu3  ;;  %v8677_v50 = vor.u32 %v7226_v39, %v6863_v38  ;;  %10260 = vst [vmem:[#allocation68_spill] sm:$0xff] %v8687_v33  ;;  %v7218_v43 = vld [vmem:[#allocation3 + $0x114] sm:$0xf0] }
 0xdf7   :  { %3985 = vmatpush.bf16.msra.mxu2 %v8422_v63 }
 0xdf8   :  { %10257 = vst [vmem:[#allocation65_spill] sm:$0xff] %v8677_v50  ;;  %4024 = vmatpush.bf16.msrb.mxu3 %v8426_v41 }
 0xdf9   :  { %v8681_v47 = vpop.f32.mrf.mxu0  ;;  %v8683_v15 = vpop.f32.mrf.mxu1  ;;  %3828 = vmatpush.bf16.msra.mxu1 %v8677_v50  ;;  %4055 = vmatpush.bf16.msra.mxu0 %v8500_v13 }
 0xdfa   :  { %10258 = vst [vmem:[#allocation66_spill] sm:$0xff] %v8681_v47  ;;  %v6831_v47 = vld [vmem:[#allocation3 + $0x108] sm:$0xf] }
 0xdfb   :  { %10259 = vst [vmem:[#allocation67_spill] sm:$0xff] %v8683_v15  ;;  %3986 = vmatpush.bf16.msra.mxu2 %v8438_v6  ;;  %v8698_v15 = vperm.slane %v8620_v45, 5  ;;  %v8702_v48 = vor.u32 %v7218_v43, %v6831_v47  ;;  %v8716_v43 = vperm.slane %v8620_v45, 0  ;;  %v8721_v47 = vperm.slane %v8620_v45, 3 }
 0xdfc   :  { %4025 = vmatpush.bf16.msrb.mxu3 %v8440_v8  ;;  %6682 = vmatmul.msk.f32.gmra.mxu1 %vm3072_vm14, %v8338_v23 }
 0xdfd   :  { %v8692_v39 = vpop.f32.mrf.mxu2  ;;  %10263 = vst [vmem:[#allocation71_spill] sm:$0xff] %v8698_v15  ;;  %3829 = vmatpush.bf16.msra.mxu1 %v8687_v33  ;;  %4056 = vmatpush.bf16.msra.mxu0 %v8518_v44 }
 0xdfe   :  { %10261 = vst [vmem:[#allocation69_spill] sm:$0xff] %v8692_v39  ;;  %v8695_v38 = vpop.f32.mrf.mxu3 }
 0xdff   :  { %10262 = vst [vmem:[#allocation70_spill] sm:$0xff] %v8695_v38  ;;  %3987 = vmatpush.bf16.msra.mxu2 %v8447_v17 }
 0xe00   :  { %10264 = vst [vmem:[#allocation72_spill] sm:$0xff] %v8702_v48  ;;  %4026 = vmatpush.bf16.msrb.mxu3 %v8451_v1 }
 0xe01   :  { %v3173_v23 = vpop.f32.mrf.mxu1  ;;  %v3319_v18 = vpop.f32.mrf.mxu0  ;;  %10267 = vst [vmem:[#allocation75_spill] sm:$0xff] %v8716_v43  ;;  %3830 = vmatpush.bf16.msra.mxu1 %v8702_v48  ;;  %4057 = vmatpush.bf16.msra.mxu0 %v8530_v3 }
 0xe02   :  { %3805 = vmatmul.bf16.vlgmr.msrb.gmra.mxu2 %v10253_v7  ;;  %v8708_v38 = vadd.f32 %v3173_v23, %v8628_v22  ;;  %v8711_v39 = vadd.f32 %v3319_v18, %v8698_v15  ;;  %10268 = vst [vmem:[#allocation76_spill] sm:$0xff] %v8721_v47 }
 0xe03   :  { %3844 = vmatmul.bf16.vlgmr.msra.gmra.mxu3 %v10253_v7  ;;  %3988 = vmatpush.bf16.msra.mxu2 %v8464_v36 }
 0xe04   :  { %10265 = vst [vmem:[#allocation73_spill] sm:$0xff] %v8708_v38  ;;  %4027 = vmatpush.bf16.msrb.mxu3 %v8466_v40  ;;  %6683 = vmatmul.msk.f32.gmra.mxu1 %vm3072_vm14, %v8349_v26 }
 0xe05   :  { %10266 = vst [vmem:[#allocation74_spill] sm:$0xff] %v8711_v39  ;;  %v3120_v23 = vpop.f32.mrf.mxu2 }
 0xe06   :  { %v8727_v18 = vadd.f32 %v3120_v23, %v8716_v43  ;;  %v3243_v39 = vpop.f32.mrf.mxu3 }
 0xe07   :  { %v8730_v38 = vadd.f32 %v3243_v39, %v8721_v47  ;;  %3989 = vmatpush.bf16.msra.mxu2 %v8473_v49 }
 0xe08   :  { %10269 = vst [vmem:[#allocation77_spill] sm:$0xff] %v8727_v18  ;;  %4028 = vmatpush.bf16.msrb.mxu3 %v8477_v51 }
 0xe09   :  { %10270 = vst [vmem:[#allocation78_spill] sm:$0xff] %v8730_v38  ;;  %v8734_v44 = vpop.f32.mrf.mxu1  ;;  %v8736_v13 = vpop.f32.mrf.mxu0 }
 0xe0a   :  { %10271 = vst [vmem:[#allocation79_spill] sm:$0xff] %v8734_v44 }
 0xe0b   :  { %10272 = vst [vmem:[#allocation80_spill] sm:$0xff] %v8736_v13  ;;  %3990 = vmatpush.bf16.msra.mxu2 %v8490_v61 }
 0xe0c   :  { %4029 = vmatpush.bf16.msrb.mxu3 %v8492_v46  ;;  %6684 = vmatmul.msk.f32.gmra.mxu1 %vm3072_vm14, %v8365_v35 }
 0xe0d   :  { %v8742_v26 = vpop.f32.mrf.mxu2 }
 0xe0e   :  { %10273 = vst [vmem:[#allocation81_spill] sm:$0xff] %v8742_v26  ;;  %v8744_v23 = vpop.f32.mrf.mxu3 }
 0xe0f   :  { %10274 = vst [vmem:[#allocation82_spill] sm:$0xff] %v8744_v23  ;;  %3991 = vmatpush.bf16.msra.mxu2 %v8502_v16 }
 0xe10   :  { %4030 = vmatpush.bf16.msrb.mxu3 %v8506_v27 }
 0xe11   :  { %v8750_v39 = vpop.f32.mrf.mxu1  ;;  %v3325_v44 = vpop.f32.mrf.mxu0 }
 0xe12   :  { %v8753_v13 = vadd.f32 %v3325_v44, %v8698_v15 }
 0xe13   :  { %4037 = vmatpush.bf16.msrb.mxu2 %v8508_v30 }
 0xe14   :  { %4076 = vmatpush.bf16.msra.mxu3 %v8514_v28  ;;  %10275 = vst [vmem:[#allocation83_spill] sm:$0xff] %v8753_v13  ;;  %3619 = vmatmul.bf16.vlgmr.msrb.gmra.mxu1 %v10253_v7 }
 0xe15   :  { %v3126_v35 = vpop.f32.mrf.mxu2  ;;  %4010 = vmatpush.bf16.msrb.mxu1 %v8494_v4 }
 0xe16   :  { %v8759_v23 = vadd.f32 %v3126_v35, %v8716_v43  ;;  %v3249_v26 = vpop.f32.mrf.mxu3 }
 0xe17   :  { %4038 = vmatpush.bf16.msrb.mxu2 %v8524_v60  ;;  %v8763_v38 = vadd.f32 %v3249_v26, %v8721_v47  ;;  %v8781_v26 = vperm.slane %v8620_v45, 2 }
 0xe18   :  { %4077 = vmatpush.bf16.msra.mxu3 %v8527_v58  ;;  %10276 = vst [vmem:[#allocation84_spill] sm:$0xff] %v8759_v23 }
 0xe19   :  { %10277 = vst [vmem:[#allocation85_spill] sm:$0xff] %v8763_v38  ;;  %v8767_v44 = vpop.f32.mrf.mxu1  ;;  %v8769_v13 = vpop.f32.mrf.mxu0  ;;  %4011 = vmatpush.bf16.msrb.mxu1 %v8539_v25 }
 0xe1a   :  { %10278 = vst [vmem:[#allocation86_spill] sm:$0xff] %v8767_v44 }
 0xe1b   :  { %4039 = vmatpush.bf16.msrb.mxu2 %v8535_v37  ;;  %10279 = vst [vmem:[#allocation87_spill] sm:$0xff] %v8769_v13 }
 0xe1c   :  { %4078 = vmatpush.bf16.msra.mxu3 %v8541_v32  ;;  %10282 = vst [vmem:[#allocation90_spill] sm:$0xff] %v8781_v26 }
 0xe1d   :  { %v8773_v35 = vpop.f32.mrf.mxu2  ;;  %4012 = vmatpush.bf16.msrb.mxu1 %v8554_v2 }
 0xe1e   :  { %10280 = vst [vmem:[#allocation88_spill] sm:$0xff] %v8773_v35  ;;  %v8776_v23 = vpop.f32.mrf.mxu3 }
 0xe1f   :  { %4040 = vmatpush.bf16.msrb.mxu2 %v8550_v59  ;;  %10281 = vst [vmem:[#allocation89_spill] sm:$0xff] %v8776_v23 }
 0xe20   :  { %4079 = vmatpush.bf16.msra.mxu3 %v8552_v62 }
 0xe21   :  { %v3202_v13 = vpop.f32.mrf.mxu1  ;;  %v3331_v38 = vpop.f32.mrf.mxu0  ;;  %4013 = vmatpush.bf16.msrb.mxu1 %v8568_v42 }
 0xe22   :  { %v8786_v18 = vadd.f32 %v3202_v13, %v8781_v26  ;;  %v8789_v35 = vadd.f32 %v3331_v38, %v8698_v15 }
 0xe23   :  { %4041 = vmatpush.bf16.msrb.mxu2 %v8561_v11 }
 0xe24   :  { %4080 = vmatpush.bf16.msra.mxu3 %v8566_v29  ;;  %10283 = vst [vmem:[#allocation91_spill] sm:$0xff] %v8786_v18  ;;  %3831 = vmatmul.bf16.vlgmr.msra.gmra.mxu1 %v10253_v7  ;;  %v10286_v29 = vld [vmem:[#allocation50_spill] sm:$0xff] }
 0xe25   :  { %10284 = vst [vmem:[#allocation92_spill] sm:$0xff] %v8789_v35  ;;  %v3132_v23 = vpop.f32.mrf.mxu2  ;;  %4014 = vmatpush.bf16.msrb.mxu1 %v10286_v29 }
 0xe26   :  { %v8795_v44 = vadd.f32 %v3132_v23, %v8716_v43  ;;  %v3255_v3 = vpop.f32.mrf.mxu3 }
 0xe27   :  { %4042 = vmatpush.bf16.msrb.mxu2 %v8576_v56  ;;  %v8799_v11 = vadd.f32 %v3255_v3, %v8721_v47 }
 0xe28   :  { %4081 = vmatpush.bf16.msra.mxu3 %v8579_v10  ;;  %10285 = vst [vmem:[#allocation93_spill] sm:$0xff] %v8795_v44  ;;  %v8816_v44 = vperm.slane %v8620_v45, 4 }
 0xe29   :  { %10287 = vst [vmem:[#allocation50_spill] sm:$0xff] %v8799_v11  ;;  %v8803_v13 = vpop.f32.mrf.mxu1  ;;  %v8805_v38 = vpop.f32.mrf.mxu0  ;;  %4015 = vmatpush.bf16.msrb.mxu1 %v8595_v24 }
 0xe2a   :  { %10288 = vst [vmem:[#allocation94_spill] sm:$0xff] %v8803_v13 }
 0xe2b   :  { %4043 = vmatpush.bf16.msrb.mxu2 %v8588_v53  ;;  %10289 = vst [vmem:[#allocation95_spill] sm:$0xff] %v8805_v38 }
 0xe2c   :  { %4082 = vmatpush.bf16.msra.mxu3 %v8593_v12  ;;  %10292 = vst [vmem:[#allocation98_spill] sm:$0xff] %v8816_v44 }
 0xe2d   :  { %v8809_v7 = vpop.f32.mrf.mxu2  ;;  %4016 = vmatpush.bf16.msrb.mxu1 %v8607_v5 }
 0xe2e   :  { %10290 = vst [vmem:[#allocation96_spill] sm:$0xff] %v8809_v7  ;;  %v8812_v23 = vpop.f32.mrf.mxu3  ;;  %v8826_v7 = vperm.slane %v8620_v45, 7 }
 0xe2f   :  { %4044 = vmatpush.bf16.msrb.mxu2 %v8602_v34  ;;  %10291 = vst [vmem:[#allocation97_spill] sm:$0xff] %v8812_v23 }
 0xe30   :  { %4083 = vmatpush.bf16.msra.mxu3 %v8605_v54  ;;  %10295 = vst [vmem:[#allocation101_spill] sm:$0xff] %v8826_v7 }
 0xe31   :  { %v3208_v3 = vpop.f32.mrf.mxu1  ;;  %v3337_v11 = vpop.f32.mrf.mxu0  ;;  %4017 = vmatpush.bf16.msrb.mxu1 %v8617_v31 }
 0xe32   :  { %v8820_v13 = vadd.f32 %v3208_v3, %v8781_v26  ;;  %v8823_v35 = vadd.f32 %v3337_v11, %v8698_v15 }
 0xe34   :  { %10293 = vst [vmem:[#allocation99_spill] sm:$0xff] %v8820_v13 }
 0xe35   :  { %10294 = vst [vmem:[#allocation100_spill] sm:$0xff] %v8823_v35  ;;  %4063 = vmatpush.bf16.msra.mxu1 %v8622_v9  ;;  %v3278_v23 = vpop.f32.mrf.mxu2 }
 0xe36   :  { %v8830_v18 = vadd.f32 %v3278_v23, %v8816_v44  ;;  %v3401_v38 = vpop.f32.mrf.mxu3 }
 0xe37   :  { %v8833_v54 = vadd.f32 %v3401_v38, %v8826_v7 }
 0xe38   :  { %10296 = vst [vmem:[#allocation102_spill] sm:$0xff] %v8830_v18 }
 0xe39   :  { %10297 = vst [vmem:[#allocation103_spill] sm:$0xff] %v8833_v54  ;;  %4064 = vmatpush.bf16.msra.mxu1 %v8632_v14  ;;  %v8836_v3 = vpop.f32.mrf.mxu1  ;;  %v3340_v13 = vpop.f32.mrf.mxu0 }
 0xe3a   :  { %10298 = vst [vmem:[#allocation104_spill] sm:$0xff] %v8836_v3 }
 0xe3d   :  { %4065 = vmatpush.bf16.msra.mxu1 %v8646_v21  ;;  %v8839_v11 = vpop.f32.mrf.mxu2 }
 0xe3e   :  { %10299 = vst [vmem:[#allocation105_spill] sm:$0xff] %v8839_v11  ;;  %v8841_v35 = vpop.f32.mrf.mxu3 }
 0xe3f   :  { %10300 = vst [vmem:[#allocation106_spill] sm:$0xff] %v8841_v35 }
 0xe41   :  { %4066 = vmatpush.bf16.msra.mxu1 %v8652_v19  ;;  %v3214_v34 = vpop.f32.mrf.mxu1  ;;  %v3607_v23 = vpop.f32.mrf.mxu0 }
 0xe42   :  { %v8845_v18 = vadd.f32 %v3214_v34, %v8781_v26 }
 0xe44   :  { %10301 = vst [vmem:[#allocation107_spill] sm:$0xff] %v8845_v18  ;;  %v8863_v18 = vperm.slane %v8620_v45, 6 }
 0xe45   :  { %4067 = vmatpush.bf16.msra.mxu1 %v8665_v0  ;;  %v3284_v38 = vpop.f32.mrf.mxu2 }
 0xe46   :  { %v8849_v54 = vadd.f32 %v3284_v38, %v8816_v44  ;;  %v3407_v3 = vpop.f32.mrf.mxu3  ;;  %10307 = vst [vmem:[#allocation113_spill] sm:$0xff] %v8863_v18 }
 0xe47   :  { %v8852_v12 = vadd.f32 %v3407_v3, %v8826_v7 }
 0xe48   :  { %10302 = vst [vmem:[#allocation108_spill] sm:$0xff] %v8849_v54 }
 0xe49   :  { %10303 = vst [vmem:[#allocation109_spill] sm:$0xff] %v8852_v12  ;;  %4068 = vmatpush.bf16.msra.mxu1 %v8677_v50  ;;  %v8855_v35 = vpop.f32.mrf.mxu1  ;;  %v3609_v11 = vpop.f32.mrf.mxu0 }
 0xe4a   :  { %10304 = vst [vmem:[#allocation110_spill] sm:$0xff] %v8855_v35 }
 0xe4d   :  { %4069 = vmatpush.bf16.msra.mxu1 %v8687_v33  ;;  %v8858_v53 = vpop.f32.mrf.mxu2 }
 0xe4e   :  { %10305 = vst [vmem:[#allocation111_spill] sm:$0xff] %v8858_v53  ;;  %v8860_v34 = vpop.f32.mrf.mxu3 }
 0xe4f   :  { %10306 = vst [vmem:[#allocation112_spill] sm:$0xff] %v8860_v34 }
 0xe51   :  { %4070 = vmatpush.bf16.msra.mxu1 %v8702_v48  ;;  %v3360_v38 = vpop.f32.mrf.mxu1  ;;  %v3819_v54 = vpop.f32.mrf.mxu0 }
 0xe52   :  { %v8867_v3 = vadd.f32 %v3360_v38, %v8863_v18  ;;  %v10315_v38 = vld [vmem:[#allocation58_spill] sm:$0xff] }
 0xe54   :  { %10308 = vst [vmem:[#allocation114_spill] sm:$0xff] %v8867_v3  ;;  %v3156_v3 = vadd.f32 %v10315_v38, %v8628_v22 }
 0xe55   :  { %v3290_v12 = vpop.f32.mrf.mxu2 }
 0xe56   :  { %v8870_v35 = vadd.f32 %v3290_v12, %v8816_v44  ;;  %v3413_v11 = vpop.f32.mrf.mxu3 }
 0xe57   :  { %v8873_v33 = vadd.f32 %v3413_v11, %v8826_v7 }
 0xe58   :  { %10309 = vst [vmem:[#allocation115_spill] sm:$0xff] %v8870_v35  ;;  %v3850_v35 = vadd.f32 %v3607_v23, %v3156_v3  ;;  %v3115_v3 = vadd.f32 %v8670_v20, %v8716_v43 }
 0xe59   :  { %10310 = vst [vmem:[#allocation116_spill] sm:$0xff] %v8873_v33  ;;  %v8875_v53 = vpop.f32.mrf.mxu1  ;;  %v3821_v34 = vpop.f32.mrf.mxu0 }
 0xe5a   :  { %10311 = vst [vmem:[#allocation117_spill] sm:$0xff] %v8875_v53  ;;  %v6950_v34 = vmul.f32 -1.442695, %v3850_v35 }
 0xe5c   :  { %7343 = vpow2.f32 %v6950_v34 }
 0xe5d   :  { %v8877_v45 = vpop.f32.mrf.mxu2 }
 0xe5e   :  { %10312 = vst [vmem:[#allocation118_spill] sm:$0xff] %v8877_v45  ;;  %v8879_v10 = vpop.f32.mrf.mxu3 }
 0xe5f   :  { %10313 = vst [vmem:[#allocation119_spill] sm:$0xff] %v8879_v10 }
 0xe61   :  { %v3366_v48 = vpop.f32.mrf.mxu1 }
 0xe62   :  { %v8882_v50 = vadd.f32 %v3366_v48, %v8863_v18  ;;  %v7344_v23 = vpop.eup %7343 }
 0xe64   :  { %10314 = vst [vmem:[#allocation120_spill] sm:$0xff] %v8882_v50  ;;  %v3341_v50 = vadd.f32 %v3340_v13, %v8698_v15 }
 0xe65   :  { %v3296_v12 = vpop.f32.mrf.mxu2 }
 0xe66   :  { %v8887_v56 = vadd.f32 %v3296_v12, %v8816_v44  ;;  %v3419_v11 = vpop.f32.mrf.mxu3  ;;  %v3238_v12 = vadd.f32 %v8673_v52, %v8721_v47 }
 0xe67   :  { %v8890_v53 = vadd.f32 %v3419_v11, %v8826_v7 }
 0xe68   :  { %10316 = vst [vmem:[#allocation58_spill] sm:$0xff] %v8887_v56 }
 0xe69   :  { %10317 = vst [vmem:[#allocation121_spill] sm:$0xff] %v8890_v53  ;;  %v8892_v33 = vpop.f32.mrf.mxu1  ;;  %v3854_v53 = vadd.f32 %v3819_v54, %v3341_v50 }
 0xe6a   :  { %10318 = vst [vmem:[#allocation122_spill] sm:$0xff] %v8892_v33  ;;  %v8902_v33 = vadd.f32 1.0, %v7344_v23 }
 0xe6c   :  { %vm3885_vm15 = vweird.f32 %v8902_v33 }
 0xe6d   :  { %v3299_v10 = vpop.f32.mrf.mxu2 }
 0xe6e   :  { %v3422_v45 = vpop.f32.mrf.mxu3  ;;  %v3300_v54 = vadd.f32 %v3299_v10, %v8816_v44 }
 0xe71   :  { %v3372_v48 = vpop.f32.mrf.mxu1 }
 0xe72   :  { %v8896_v38 = vadd.f32 %v3372_v48, %v8863_v18  ;;  %v6953_v48 = vmul.f32 -1.442695, %v3854_v53 }
 0xe74   :  { %10319 = vst [vmem:[#allocation123_spill] sm:$0xff] %v8896_v38 }
 0xe75   :  { %v3594_v11 = vpop.f32.mrf.mxu2 }
 0xe76   :  { %v3849_v35 = vadd.f32 %v3594_v11, %v3115_v3  ;;  %v3633_v22 = vpop.f32.mrf.mxu3 }
 0xe77   :  { %v3852_v34 = vadd.f32 %v3633_v22, %v3238_v12 }
 0xe78   :  { %v6949_v56 = vmul.f32 -1.442695, %v3849_v35 }
 0xe79   :  { %v6951_v0 = vmul.f32 -1.442695, %v3852_v34  ;;  %v8904_v13 = vpop.f32.mrf.mxu1 }
 0xe7a   :  { %7345 = vpow2.f32 %v6949_v56  ;;  %10320 = vst [vmem:[#allocation124_spill] sm:$0xff] %v8904_v13 }
 0xe7b   :  { %7347 = vrcp.f32 %v8902_v33 }
 0xe7c   :  { %7349 = vpow2.f32 %v6951_v0  ;;  %v3423_v0 = vadd.f32 %v3422_v45, %v8826_v7 }
 0xe7d   :  { %v3596_v20 = vpop.f32.mrf.mxu2  ;;  %7351 = vpow2.f32 %v6953_v48 }
 0xe7e   :  { %v3635_v38 = vpop.f32.mrf.mxu3 }
 0xe80   :  { %v7346_v52 = vpop.eup %7345 }
 0xe81   :  { %v8907_v15 = vpop.eup %7347  ;;  %v8909_v3 = vadd.f32 1.0, %v7346_v52  ;;  %v3378_v22 = vpop.f32.mrf.mxu1 }
 0xe82   :  { %v7350_v23 = vpop.eup %7349  ;;  %v8913_v56 = vadd.f32 %v3378_v22, %v8863_v18  ;;  %v3881_v53 = vmul.f32 %v8907_v15, %v8902_v33  ;;  %vm3886_vm0 = vweird.f32 %v8907_v15 }
 0xe83   :  { %7353 = vrcp.f32 %v8909_v3  ;;  %v7352_v50 = vpop.eup %7351  ;;  %v8919_v38 = vadd.f32 1.0, %v7350_v23  ;;  %vm8944_vm3 = vmor %vm3885_vm15, %vm3886_vm0  ;;  %vm3866_vm4 = vweird.f32 %v8909_v3 }
 0xe84   :  { %10321 = vst [vmem:[#allocation125_spill] sm:$0xff] %v8913_v56  ;;  %v8921_v48 = vadd.f32 1.0, %v7352_v50  ;;  %v3882_v22 = vsub.f32 1.0, %v3881_v53 }
 0xe85   :  { %v3806_v12 = vpop.f32.mrf.mxu2  ;;  %7355 = vrcp.f32 %v8919_v38  ;;  %vm3905_vm11 = vweird.f32 %v8919_v38 }
 0xe86   :  { %v3853_v11 = vadd.f32 %v3806_v12, %v3300_v54  ;;  %v3845_v35 = vpop.f32.mrf.mxu3  ;;  %v3883_v23 = vmul.f32 %v8907_v15, %v3882_v22  ;;  %vm3948_vm9 = vweird.f32 %v8921_v48 }
 0xe87   :  { %v3856_v34 = vadd.f32 %v3845_v35, %v3423_v0 }
 0xe88   :  { %v6952_v20 = vmul.f32 -1.442695, %v3853_v11  ;;  %v3197_v11 = vadd.f32 %v8750_v39, %v8781_v26 }
 0xe89   :  { %v7354_v52 = vpop.eup %7353  ;;  %v6954_v10 = vmul.f32 -1.442695, %v3856_v34  ;;  %v8925_v44 = vpop.f32.mrf.mxu1  ;;  %v3884_v34 = vadd.f32 %v8907_v15, %v3883_v23 }
 0xe8a   :  { %v3862_v13 = vmul.f32 %v7354_v52, %v8909_v3  ;;  %7357 = vpow2.f32 %v6952_v20  ;;  %vm3867_vm1 = vweird.f32 %v7354_v52 }
 0xe8b   :  { %7359 = vrcp.f32 %v8921_v48  ;;  %v8929_v0 = vpop.eup %7355  ;;  %v3888_v7 = vsel %vm8944_vm3, %v8907_v15, %v3884_v34  ;;  %vm3868_vm5 = vmor %vm3866_vm4, %vm3867_vm1 }
 0xe8c   :  { %v3863_v45 = vsub.f32 1.0, %v3862_v13  ;;  %7361 = vpow2.f32 %v6954_v10  ;;  %v3891_v10 = vand.u32 2147483648, %v8902_v33  ;;  %vm3906_vm8 = vweird.f32 %v8929_v0 }
 0xe8d   :  { %v3808_v54 = vpop.f32.mrf.mxu2  ;;  %vm8979_vm12 = vmor %vm3905_vm11, %vm3906_vm8 }
 0xe8e   :  { %v3847_v50 = vpop.f32.mrf.mxu3  ;;  %v3864_v53 = vmul.f32 %v7354_v52, %v3863_v45  ;;  %v3901_v45 = vmul.f32 %v8929_v0, %v8919_v38 }
 0xe8f   :  { %v3889_v50 = vand.u32 2147483647, %v8902_v33 }
 0xe90   :  { %v7358_v12 = vpop.eup %7357  ;;  %v3865_v54 = vadd.f32 %v7354_v52, %v3864_v53  ;;  %v3870_v53 = vand.u32 2147483647, %v8909_v3 }
 0xe91   :  { %v8933_v35 = vadd.f32 1.0, %v7358_v12  ;;  %v8937_v13 = vpop.eup %7359  ;;  %v3620_v20 = vpop.f32.mrf.mxu1  ;;  %v3872_v12 = vand.u32 2147483648, %v8909_v3  ;;  %vm3890_vm6 = vcmp.eq.f32.partialorder %v3889_v50, 8.507059e+37 }
 0xe92   :  { %v7362_v22 = vpop.eup %7361  ;;  %v3851_v39 = vadd.f32 %v3620_v20, %v3197_v11  ;;  %v3944_v56 = vmul.f32 %v8937_v13, %v8921_v48  ;;  %v3892_v11 = vor.u32 1.1754944e-38, %v3891_v10  ;;  %v3902_v20 = vsub.f32 1.0, %v3901_v45 }
 0xe93   :  { %7363 = vrcp.f32 %v8933_v35  ;;  %v8955_v26 = vadd.f32 1.0, %v7362_v22  ;;  %v3869_v33 = vsel %vm3868_vm5, %v7354_v52, %v3865_v54  ;;  %v3873_v43 = vor.u32 1.1754944e-38, %v3872_v12 }
 0xe94   :  { %7365 = vtanh.f32 %v3851_v39  ;;  %v3893_v62 = vsel %vm3890_vm6, %v3892_v11, %v3888_v7  ;;  %v3945_v23 = vsub.f32 1.0, %v3944_v56  ;;  %vm3871_vm7 = vcmp.eq.f32.partialorder %v3870_v53, 8.507059e+37 }
 0xe95   :  { %7367 = vrcp.f32 %v8955_v26  ;;  %v3903_v39 = vmul.f32 %v8929_v0, %v3902_v20  ;;  %v3874_v19 = vsel %vm3871_vm7, %v3873_v43, %v3869_v33  ;;  %v3915_v10 = vmul.f32 0.0, %v3893_v62 }
 0xe96   :  { %v3946_v52 = vmul.f32 %v8937_v13, %v3945_v23  ;;  %v3954_v56 = vand.u32 2147483648, %v8921_v48  ;;  %v3911_v12 = vand.u32 2147483648, %v8919_v38  ;;  %vm3949_vm10 = vweird.f32 %v8937_v13 }
 0xe97   :  { %v3904_v7 = vadd.f32 %v8929_v0, %v3903_v39  ;;  %v3382_v43 = vadd.f32 %v8925_v44, %v8863_v18  ;;  %v3952_v53 = vand.u32 2147483647, %v8921_v48  ;;  %vm8988_vm13 = vmor %vm3948_vm9, %vm3949_vm10  ;;  %vm3929_vm1 = vweird.f32 %v8933_v35  ;;  %v10357_v18 = vld [vmem:[#allocation41_spill] sm:$0xff] }
 0xe98   :  { %v3947_v33 = vadd.f32 %v8937_v13, %v3946_v52  ;;  %v3933_v48 = vand.u32 2147483647, %v8933_v35  ;;  %vm3968_vm6 = vweird.f32 %v8955_v26 }
 0xe99   :  { %v7364_v47 = vpop.eup %7363  ;;  %v3622_v34 = vpop.f32.mrf.mxu1  ;;  %v3908_v44 = vsel %vm8979_vm12, %v8929_v0, %v3904_v7  ;;  %vm3953_vm15 = vcmp.eq.f32.partialorder %v3952_v53, 8.507059e+37 }
 0xe9a   :  { %v3925_v15 = vmul.f32 %v7364_v47, %v8933_v35  ;;  %v7366_v22 = vpop.eup %7365  ;;  %v3912_v34 = vor.u32 1.1754944e-38, %v3911_v12  ;;  %vm3930_vm14 = vweird.f32 %v7364_v47  ;;  %vm3934_vm4 = vcmp.eq.f32.partialorder %v3933_v48, 8.507059e+37 }
 0xe9b   :  { %v3916_v45 = vmul.f32 %v7366_v22, %v3874_v19  ;;  %v8969_v50 = vpop.eup %7367  ;;  %v3909_v19 = vand.u32 2147483647, %v8919_v38  ;;  %v3955_v22 = vor.u32 1.1754944e-38, %v3954_v56  ;;  %vm3931_vm3 = vmor %vm3929_vm1, %vm3930_vm14  ;;  %v3972_v38 = vand.u32 2147483647, %v8955_v26 }
 0xe9c   :  { %v3926_v3 = vsub.f32 1.0, %v3925_v15  ;;  %v3964_v23 = vmul.f32 %v8969_v50, %v8955_v26  ;;  %vm3969_vm5 = vweird.f32 %v8969_v50 }
 0xe9d   :  { %v8963_v54 = vadd.f32 %v3916_v45, %v3915_v10  ;;  %vm3910_vm0 = vcmp.eq.f32.partialorder %v3909_v19, 8.507059e+37  ;;  %v3951_v45 = vsel %vm8988_vm13, %v8937_v13, %v3947_v33  ;;  %vm3970_vm7 = vmor %vm3968_vm6, %vm3969_vm5  ;;  %vm3973_vm8 = vcmp.eq.f32.partialorder %v3972_v38, 8.507059e+37  ;;  %v10349_v38 = vld [vmem:[#allocation36_spill] sm:$0xff] }
 0xe9e   :  { %v3927_v62 = vmul.f32 %v7364_v47, %v3926_v3  ;;  %v3935_v3 = vand.u32 2147483648, %v8933_v35  ;;  %v3913_v52 = vsel %vm3910_vm0, %v3912_v34, %v3908_v44  ;;  %v3965_v0 = vsub.f32 1.0, %v3964_v23  ;;  %v10330_v44 = vld [vmem:[#allocation24_spill] sm:$0xff] }
 0xe9f   :  { %7369 = vtanh.f32 %v8963_v54 }
 0xea0   :  { %v3928_v39 = vadd.f32 %v7364_v47, %v3927_v62  ;;  %v3936_v12 = vor.u32 1.1754944e-38, %v3935_v3  ;;  %v3956_v62 = vsel %vm3953_vm15, %v3955_v22, %v3951_v45  ;;  %v3966_v35 = vmul.f32 %v8969_v50, %v3965_v0  ;;  %v10334_v45 = vld [vmem:[#allocation27_spill] sm:$0xff]  ;;  %v10336_v0 = vld [vmem:[#allocation29_spill] sm:$0xff] }
 0xea1   :  { %v3832_v20 = vpop.f32.mrf.mxu1  ;;  %v3978_v13 = vmul.f32 0.0, %v3956_v62  ;;  %v10339_v62 = vld [vmem:[#allocation32_spill] sm:$0xff] }
 0xea2   :  { %v3855_v15 = vadd.f32 %v3832_v20, %v3382_v43  ;;  %v3932_v56 = vsel %vm3931_vm3, %v7364_v47, %v3928_v39  ;;  %v10329_v47 = vld [vmem:[#allocation23_spill] sm:$0xff]  ;;  %v3967_v23 = vadd.f32 %v8969_v50, %v3966_v35  ;;  %v10331_v39 = vld [vmem:[#allocation25_spill] sm:$0xff] }
 0xea3   :  { %v3937_v11 = vsel %vm3934_vm4, %v3936_v12, %v3932_v56  ;;  %v10337_v56 = vld [vmem:[#allocation30_spill] sm:$0xff]  ;;  %v10338_v12 = vld [vmem:[#allocation31_spill] sm:$0xff]  ;;  %v10343_v35 = vld [vmem:[#allocation45_spill] sm:$0xff] }
 0xea4   :  { %7371 = vtanh.f32 %v3855_v15  ;;  %v3974_v15 = vand.u32 2147483648, %v8955_v26  ;;  %v3971_v34 = vsel %vm3970_vm7, %v8969_v50, %v3967_v23  ;;  %v10333_v50 = vld [vmem:[#allocation26_spill] sm:$0xff]  ;;  %v10347_v23 = vld [vmem:[#allocation47_spill] sm:$0xff] }
 0xea5   :  { %v7370_v10 = vpop.eup %7369 }
 0xea6   :  { %v9001_v7 = vmul.f32 %v7370_v10, %v3913_v52  ;;  %v3975_v22 = vor.u32 1.1754944e-38, %v3974_v15  ;;  %v10335_v52 = vld [vmem:[#allocation28_spill] sm:$0xff] }
 0xea7   :  { %v10348_v15 = vld [vmem:[#allocation48_spill] sm:$0xff] }
 0xea8   :  { %10328 = vst [vmem:[#allocation126_spill] sm:$0xff] %v9001_v7  ;;  %v3983_v19 = vpack.c.bf16 %v9001_v7, %v9001_v7  ;;  %v3976_v10 = vsel %vm3973_vm8, %v3975_v22, %v3971_v34  ;;  %v10350_v34 = vld [vmem:[#allocation65_spill] sm:$0xff] }
 0xea9   :  { %v3834_v43 = vpop.f32.mrf.mxu1  ;;  %v10351_v22 = vld [vmem:[#allocation49_spill] sm:$0xff] }
 0xeaa   :  { %v7372_v53 = vpop.eup %7371  ;;  %3992 = vmatmul.bf16.vlgmr.msra.gmra.mxu2 %v3983_v19  ;;  %4005 = vmatmul.bf16.vlgmr.msrb.gmra.mxu0 %v3983_v19  ;;  %v10341_v43 = vld [vmem:[#allocation34_spill] sm:$0xff]  ;;  %v10356_v7 = vld [vmem:[#allocation53_spill] sm:$0xff] }
 0xeab   :  { %v3979_v20 = vmul.f32 %v7372_v53, %v3937_v11  ;;  %4018 = vmatmul.bf16.vlgmr.msrb.gmra.mxu1 %v3983_v19  ;;  %4031 = vmatmul.bf16.vlgmr.msrb.gmra.mxu3 %v3983_v19  ;;  %v10340_v19 = vld [vmem:[#allocation33_spill] sm:$0xff]  ;;  %v10344_v11 = vld [vmem:[#allocation46_spill] sm:$0xff] }
 0xeac   :  { %4224 = vmatpush.bf16.msra.mxu2 %v8416_v55  ;;  %4237 = vmatpush.bf16.msrb.mxu0 %v10329_v47  ;;  %v10342_v53 = vld [vmem:[#allocation61_spill] sm:$0xff] }
 0xead   :  { %v9008_v33 = vadd.f32 %v3979_v20, %v3978_v13  ;;  %4250 = vmatpush.bf16.msrb.mxu1 %v8494_v4  ;;  %4263 = vmatpush.bf16.msrb.mxu3 %v8418_v57  ;;  %v10345_v13 = vld [vmem:[#allocation35_spill] sm:$0xff]  ;;  %v10346_v20 = vld [vmem:[#allocation64_spill] sm:$0xff] }
 0xeaf   :  { %7373 = vtanh.f32 %v9008_v33 }
 0xeb0   :  { %4225 = vmatpush.bf16.msra.mxu2 %v8422_v63  ;;  %4238 = vmatpush.bf16.msrb.mxu0 %v10330_v44 }
 0xeb1   :  { %4251 = vmatpush.bf16.msrb.mxu1 %v8539_v25  ;;  %4264 = vmatpush.bf16.msrb.mxu3 %v8426_v41 }
 0xeb4   :  { %4226 = vmatpush.bf16.msra.mxu2 %v8438_v6  ;;  %4239 = vmatpush.bf16.msrb.mxu0 %v10331_v39 }
 0xeb5   :  { %v7374_v3 = vpop.eup %7373  ;;  %4252 = vmatpush.bf16.msrb.mxu1 %v8554_v2  ;;  %4265 = vmatpush.bf16.msrb.mxu3 %v8440_v8 }
 0xeb6   :  { %v9027_v26 = vmul.f32 %v7374_v3, %v3976_v10  ;;  %v10352_v3 = vld [vmem:[#allocation51_spill] sm:$0xff]  ;;  %v10353_v10 = vld [vmem:[#allocation38_spill] sm:$0xff] }
 0xeb8   :  { %10332 = vst [vmem:[#allocation23_spill] sm:$0xff] %v9027_v26  ;;  %v4036_v48 = vpack.c.bf16 %v9027_v26, %v9027_v26  ;;  %4227 = vmatpush.bf16.msra.mxu2 %v8447_v17  ;;  %4240 = vmatpush.bf16.msrb.mxu0 %v10333_v50  ;;  %v10355_v26 = vld [vmem:[#allocation52_spill] sm:$0xff] }
 0xeb9   :  { %4253 = vmatpush.bf16.msrb.mxu1 %v8568_v42  ;;  %4266 = vmatpush.bf16.msrb.mxu3 %v8451_v1 }
 0xeba   :  { %4045 = vmatmul.bf16.vlgmr.msrb.gmra.mxu2 %v4036_v48  ;;  %4058 = vmatmul.bf16.vlgmr.msra.gmra.mxu0 %v4036_v48 }
 0xebb   :  { %4071 = vmatmul.bf16.vlgmr.msra.gmra.mxu1 %v4036_v48  ;;  %4084 = vmatmul.bf16.vlgmr.msra.gmra.mxu3 %v4036_v48  ;;  %v10354_v48 = vld [vmem:[#allocation68_spill] sm:$0xff] }
 0xebc   :  { %4228 = vmatpush.bf16.msra.mxu2 %v8464_v36  ;;  %4241 = vmatpush.bf16.msrb.mxu0 %v10334_v45 }
 0xebd   :  { %4254 = vmatpush.bf16.msrb.mxu1 %v10286_v29  ;;  %4267 = vmatpush.bf16.msrb.mxu3 %v8466_v40 }
 0xec0   :  { %4229 = vmatpush.bf16.msra.mxu2 %v8473_v49  ;;  %4242 = vmatpush.bf16.msrb.mxu0 %v10335_v52 }
 0xec1   :  { %4255 = vmatpush.bf16.msrb.mxu1 %v8595_v24  ;;  %4268 = vmatpush.bf16.msrb.mxu3 %v8477_v51 }
 0xec4   :  { %4230 = vmatpush.bf16.msra.mxu2 %v8490_v61  ;;  %4243 = vmatpush.bf16.msrb.mxu0 %v10336_v0 }
 0xec5   :  { %4256 = vmatpush.bf16.msrb.mxu1 %v8607_v5  ;;  %4269 = vmatpush.bf16.msrb.mxu3 %v8492_v46 }
 0xec8   :  { %4231 = vmatpush.bf16.msra.mxu2 %v8502_v16  ;;  %4244 = vmatpush.bf16.msrb.mxu0 %v10337_v56 }
 0xec9   :  { %4257 = vmatpush.bf16.msrb.mxu1 %v8617_v31  ;;  %4270 = vmatpush.bf16.msrb.mxu3 %v8506_v27 }
 0xecc   :  { %4277 = vmatpush.bf16.msrb.mxu2 %v8508_v30  ;;  %4290 = vmatpush.bf16.msra.mxu0 %v10338_v12 }
 0xecd   :  { %4303 = vmatpush.bf16.msra.mxu1 %v8622_v9  ;;  %4316 = vmatpush.bf16.msra.mxu3 %v8514_v28 }
 0xed0   :  { %4278 = vmatpush.bf16.msrb.mxu2 %v8524_v60  ;;  %4291 = vmatpush.bf16.msra.mxu0 %v10339_v62 }
 0xed1   :  { %4304 = vmatpush.bf16.msra.mxu1 %v8632_v14  ;;  %4317 = vmatpush.bf16.msra.mxu3 %v8527_v58 }
 0xed4   :  { %4279 = vmatpush.bf16.msrb.mxu2 %v8535_v37  ;;  %4292 = vmatpush.bf16.msra.mxu0 %v10340_v19 }
 0xed5   :  { %4305 = vmatpush.bf16.msra.mxu1 %v8646_v21  ;;  %4318 = vmatpush.bf16.msra.mxu3 %v8541_v32 }
 0xed8   :  { %4280 = vmatpush.bf16.msrb.mxu2 %v8550_v59  ;;  %4293 = vmatpush.bf16.msra.mxu0 %v10341_v43 }
 0xed9   :  { %4306 = vmatpush.bf16.msra.mxu1 %v10342_v53  ;;  %4319 = vmatpush.bf16.msra.mxu3 %v10343_v35  ;;  %v10364_v35 = vld [vmem:[#allocation70_spill] sm:$0xff] }
 0xedc   :  { %4281 = vmatpush.bf16.msrb.mxu2 %v10344_v11  ;;  %4294 = vmatpush.bf16.msra.mxu0 %v10345_v13  ;;  %v10362_v11 = vld [vmem:[#allocation69_spill] sm:$0xff] }
 0xedd   :  { %4307 = vmatpush.bf16.msra.mxu1 %v10346_v20  ;;  %4320 = vmatpush.bf16.msra.mxu3 %v10347_v23  ;;  %v10358_v23 = vld [vmem:[#allocation72_spill] sm:$0xff] }
 0xee0   :  { %4282 = vmatpush.bf16.msrb.mxu2 %v10348_v15  ;;  %4295 = vmatpush.bf16.msra.mxu0 %v10349_v38  ;;  %v10359_v15 = vld [vmem:[#allocation54_spill] sm:$0xff] }
 0xee1   :  { %4308 = vmatpush.bf16.msra.mxu1 %v10350_v34  ;;  %4321 = vmatpush.bf16.msra.mxu3 %v10351_v22  ;;  %v10360_v34 = vld [vmem:[#allocation62_spill] sm:$0xff] }
 0xee4   :  { %4283 = vmatpush.bf16.msrb.mxu2 %v10352_v3  ;;  %4296 = vmatpush.bf16.msra.mxu0 %v10353_v10  ;;  %v10361_v3 = vld [vmem:[#allocation75_spill] sm:$0xff] }
 0xee5   :  { %4309 = vmatpush.bf16.msra.mxu1 %v10354_v48  ;;  %4322 = vmatpush.bf16.msra.mxu3 %v10355_v26  ;;  %v3118_v10 = vadd.f32 %v10362_v11, %v10361_v3  ;;  %v10363_v48 = vld [vmem:[#allocation76_spill] sm:$0xff] }
 0xee6   :  { %v3241_v26 = vadd.f32 %v10364_v35, %v10363_v48  ;;  %v10365_v3 = vld [vmem:[#allocation100_spill] sm:$0xff] }
 0xee8   :  { %4284 = vmatpush.bf16.msrb.mxu2 %v10356_v7  ;;  %4297 = vmatpush.bf16.msra.mxu0 %v10357_v18 }
 0xee9   :  { %4310 = vmatpush.bf16.msra.mxu1 %v10358_v23  ;;  %4323 = vmatpush.bf16.msra.mxu3 %v10359_v15 }
 0xf27   :  { %v4006_v38 = vpop.f32.mrf.mxu0 }
 0xf28   :  { %v4090_v20 = vadd.f32 %v4006_v38, %v10360_v34  ;;  %v4019_v22 = vpop.f32.mrf.mxu1 }
 0xf2a   :  { %v6956_v13 = vmul.f32 -1.442695, %v4090_v20 }
 0xf2c   :  { %7375 = vpow2.f32 %v6956_v13 }
 0xf2d   :  { %v3993_v53 = vpop.f32.mrf.mxu2 }
 0xf2e   :  { %v4089_v7 = vadd.f32 %v3993_v53, %v3118_v10  ;;  %v4032_v43 = vpop.f32.mrf.mxu3 }
 0xf2f   :  { %v4092_v18 = vadd.f32 %v4032_v43, %v3241_v26  ;;  %v4008_v59 = vpop.f32.mrf.mxu0  ;;  %v10366_v43 = vld [vmem:[#allocation58_spill] sm:$0xff] }
 0xf30   :  { %v6955_v23 = vmul.f32 -1.442695, %v4089_v7  ;;  %v4021_v32 = vpop.f32.mrf.mxu1 }
 0xf31   :  { %v6957_v15 = vmul.f32 -1.442695, %v4092_v18 }
 0xf32   :  { %v7376_v21 = vpop.eup %7375  ;;  %7377 = vpow2.f32 %v6955_v23 }
 0xf33   :  { %v4119_v38 = vadd.f32 1.0, %v7376_v21  ;;  %7379 = vpow2.f32 %v6957_v15 }
 0xf35   :  { %7381 = vrcp.f32 %v4119_v38  ;;  %v3995_v20 = vpop.f32.mrf.mxu2  ;;  %vm4125_vm10 = vweird.f32 %v4119_v38 }
 0xf36   :  { %v4034_v34 = vpop.f32.mrf.mxu3  ;;  %v10367_v20 = vld [vmem:[#allocation90_spill] sm:$0xff] }
 0xf37   :  { %v4059_v11 = vpop.f32.mrf.mxu0 }
 0xf38   :  { %v7378_v13 = vpop.eup %7377  ;;  %v4094_v19 = vadd.f32 %v4059_v11, %v10365_v3  ;;  %v9089_v35 = vpop.f32.mrf.mxu1  ;;  %v10368_v3 = vld [vmem:[#allocation86_spill] sm:$0xff]  ;;  %v10369_v11 = vld [vmem:[#allocation121_spill] sm:$0xff] }
 0xf39   :  { %v7380_v53 = vpop.eup %7379  ;;  %v4100_v10 = vadd.f32 1.0, %v7378_v13  ;;  %v3200_v34 = vadd.f32 %v10368_v3, %v10367_v20 }
 0xf3a   :  { %v9091_v26 = vadd.f32 1.0, %v7380_v53  ;;  %v6959_v59 = vmul.f32 -1.442695, %v4094_v19 }
 0xf3b   :  { %v7382_v32 = vpop.eup %7381  ;;  %7383 = vrcp.f32 %v4100_v10  ;;  %v4091_v14 = vadd.f32 %v4019_v22, %v3200_v34  ;;  %v4112_v22 = vand.u32 2147483648, %v4100_v10  ;;  %vm4106_vm14 = vweird.f32 %v4100_v10 }
 0xf3c   :  { %v4121_v18 = vmul.f32 %v7382_v32, %v4119_v38  ;;  %7385 = vrcp.f32 %v9091_v26  ;;  %vm4126_vm9 = vweird.f32 %v7382_v32  ;;  %vm4145_vm3 = vweird.f32 %v9091_v26 }
 0xf3d   :  { %v4046_v21 = vpop.f32.mrf.mxu2  ;;  %7387 = vpow2.f32 %v6959_v59  ;;  %vm9102_vm11 = vmor %vm4125_vm10, %vm4126_vm9 }
 0xf3e   :  { %v4122_v7 = vsub.f32 1.0, %v4121_v18  ;;  %v4093_v23 = vadd.f32 %v4046_v21, %v10366_v43  ;;  %v4085_v15 = vpop.f32.mrf.mxu3  ;;  %v4131_v18 = vand.u32 2147483648, %v4119_v38 }
 0xf3f   :  { %v4096_v48 = vadd.f32 %v4085_v15, %v10369_v11  ;;  %v4061_v13 = vpop.f32.mrf.mxu0  ;;  %v4129_v15 = vand.u32 2147483647, %v4119_v38  ;;  %v4110_v11 = vand.u32 2147483647, %v4100_v10 }
 0xf40   :  { %v4123_v53 = vmul.f32 %v7382_v32, %v4122_v7  ;;  %v6958_v37 = vmul.f32 -1.442695, %v4093_v23  ;;  %v4074_v19 = vpop.f32.mrf.mxu1  ;;  %v4132_v13 = vor.u32 1.1754944e-38, %v4131_v18 }
 0xf41   :  { %v7384_v58 = vpop.eup %7383  ;;  %v6960_v62 = vmul.f32 -1.442695, %v4096_v48  ;;  %vm4130_vm13 = vcmp.eq.f32.partialorder %v4129_v15, 8.507059e+37  ;;  %vm4111_vm15 = vcmp.eq.f32.partialorder %v4110_v11, 8.507059e+37  ;;  %v10372_v11 = vld [vmem:[#allocation125_spill] sm:$0xff] }
 0xf42   :  { %v9098_v60 = vpop.eup %7385  ;;  %v4124_v28 = vadd.f32 %v7382_v32, %v4123_v53  ;;  %v4102_v59 = vmul.f32 %v7384_v58, %v4100_v10  ;;  %7389 = vpow2.f32 %v6958_v37  ;;  %vm4107_vm12 = vweird.f32 %v7384_v58 }
 0xf43   :  { %v4141_v21 = vmul.f32 %v9098_v60, %v9091_v26  ;;  %7391 = vpow2.f32 %v6960_v62  ;;  %v7388_v43 = vpop.eup %7387  ;;  %vm4108_vm0 = vmor %vm4106_vm14, %vm4107_vm12  ;;  %vm4146_vm1 = vweird.f32 %v9098_v60 }
 0xf44   :  { %v4103_v7 = vsub.f32 1.0, %v4102_v59  ;;  %7393 = vtanh.f32 %v4091_v14  ;;  %v9106_v48 = vadd.f32 1.0, %v7388_v43  ;;  %v4128_v37 = vsel %vm9102_vm11, %v7382_v32, %v4124_v28  ;;  %vm9129_vm4 = vmor %vm4145_vm3, %vm4146_vm1 }
 0xf45   :  { %v4048_v3 = vpop.f32.mrf.mxu2  ;;  %v4142_v53 = vsub.f32 1.0, %v4141_v21  ;;  %v4133_v59 = vsel %vm4130_vm13, %v4132_v13, %v4128_v37  ;;  %v4113_v43 = vor.u32 1.1754944e-38, %v4112_v22  ;;  %v4151_v37 = vand.u32 2147483648, %v9091_v26 }
 0xf46   :  { %v4104_v34 = vmul.f32 %v7384_v58, %v4103_v7  ;;  %v4087_v62 = vpop.f32.mrf.mxu3  ;;  %7395 = vrcp.f32 %v9106_v48  ;;  %v4155_v21 = vmul.f32 %v4133_v59, %v8963_v54  ;;  %v4149_v54 = vand.u32 2147483647, %v9091_v26 }
 0xf47   :  { %v4143_v18 = vmul.f32 %v9098_v60, %v4142_v53  ;;  %v4095_v62 = vadd.f32 %v9089_v35, %v10372_v11  ;;  %v4194_v59 = vand.u32 2147483648, %v9106_v48  ;;  %vm4188_vm6 = vweird.f32 %v9106_v48 }
 0xf48   :  { %v7390_v38 = vpop.eup %7389  ;;  %v4105_v19 = vadd.f32 %v7384_v58, %v4104_v34  ;;  %vm4150_vm7 = vcmp.eq.f32.partialorder %v4149_v54, 8.507059e+37 }
 0xf49   :  { %v7392_v14 = vpop.eup %7391  ;;  %v4163_v3 = vadd.f32 1.0, %v7390_v38 }
 0xf4a   :  { %v4109_v20 = vsel %vm4108_vm0, %v7384_v58, %v4105_v19  ;;  %v9111_v28 = vadd.f32 1.0, %v7392_v14  ;;  %v7394_v32 = vpop.eup %7393  ;;  %v4144_v58 = vadd.f32 %v9098_v60, %v4143_v18  ;;  %v4152_v14 = vor.u32 1.1754944e-38, %v4151_v37 }
 0xf4b   :  { %v4114_v7 = vsel %vm4111_vm15, %v4113_v43, %v4109_v20  ;;  %7397 = vrcp.f32 %v4163_v3  ;;  %vm4169_vm11 = vweird.f32 %v4163_v3 }
 0xf4c   :  { %v4156_v23 = vmul.f32 %v7394_v32, %v4114_v7  ;;  %7399 = vrcp.f32 %v9111_v28  ;;  %v7396_v10 = vpop.eup %7395  ;;  %v4148_v26 = vsel %vm9129_vm4, %v9098_v60, %v4144_v58  ;;  %v4192_v32 = vand.u32 2147483647, %v9106_v48 }
 0xf4d   :  { %v4184_v22 = vmul.f32 %v7396_v10, %v9106_v48  ;;  %vm4189_vm5 = vweird.f32 %v7396_v10  ;;  %v4153_v60 = vsel %vm4150_vm7, %v4152_v14, %v4148_v26  ;;  %v4195_v58 = vor.u32 1.1754944e-38, %v4194_v59 }
 0xf4e   :  { %v9116_v15 = vadd.f32 %v4156_v23, %v4155_v21  ;;  %vm9141_vm8 = vmor %vm4188_vm6, %vm4189_vm5  ;;  %v4173_v21 = vand.u32 2147483647, %v4163_v3  ;;  %v4175_v23 = vand.u32 2147483648, %v4163_v3  ;;  %vm4193_vm10 = vcmp.eq.f32.partialorder %v4192_v32, 8.507059e+37 }
 0xf4f   :  { %v4185_v20 = vsub.f32 1.0, %v4184_v22  ;;  %vm4208_vm0 = vweird.f32 %v9111_v28 }
 0xf50   :  { %7401 = vtanh.f32 %v9116_v15  ;;  %vm4174_vm13 = vcmp.eq.f32.partialorder %v4173_v21, 8.507059e+37 }
 0xf51   :  { %v7398_v34 = vpop.eup %7397  ;;  %v4186_v38 = vmul.f32 %v7396_v10, %v4185_v20  ;;  %7403 = vtanh.f32 %v4095_v62 }
 0xf52   :  { %v9127_v13 = vpop.eup %7399  ;;  %v4165_v19 = vmul.f32 %v7398_v34, %v4163_v3  ;;  %vm4170_vm9 = vweird.f32 %v7398_v34 }
 0xf53   :  { %v4204_v43 = vmul.f32 %v9127_v13, %v9111_v28  ;;  %v4187_v35 = vadd.f32 %v7396_v10, %v4186_v38  ;;  %vm4171_vm12 = vmor %vm4169_vm11, %vm4170_vm9  ;;  %v4176_v38 = vor.u32 1.1754944e-38, %v4175_v23  ;;  %vm4209_vm14 = vweird.f32 %v9127_v13 }
 0xf54   :  { %v4166_v7 = vsub.f32 1.0, %v4165_v19  ;;  %vm4210_vm15 = vmor %vm4208_vm0, %vm4209_vm14 }
 0xf55   :  { %v4191_v37 = vsel %vm9141_vm8, %v7396_v10, %v4187_v35  ;;  %v4205_v11 = vsub.f32 1.0, %v4204_v43  ;;  %v4214_v43 = vand.u32 2147483648, %v9111_v28 }
 0xf56   :  { %v7402_v22 = vpop.eup %7401  ;;  %v4167_v20 = vmul.f32 %v7398_v34, %v4166_v7  ;;  %v4196_v54 = vsel %vm4193_vm10, %v4195_v58, %v4191_v37  ;;  %v10381_v37 = vld [vmem:[#allocation32_spill] sm:$0xff]  ;;  %v10384_v58 = vld [vmem:[#allocation42_spill] sm:$0xff] }
 0xf57   :  { %v9147_v53 = vmul.f32 %v7402_v22, %v4153_v60  ;;  %v7404_v18 = vpop.eup %7403  ;;  %v4206_v35 = vmul.f32 %v9127_v13, %v4205_v11  ;;  %v4218_v14 = vmul.f32 %v4196_v54, %v9008_v33  ;;  %v4212_v33 = vand.u32 2147483647, %v9111_v28  ;;  %v10380_v22 = vld [vmem:[#allocation39_spill] sm:$0xff]  ;;  %v10383_v60 = vld [vmem:[#allocation40_spill] sm:$0xff]  ;;  %v10385_v11 = vld [vmem:[#allocation33_spill] sm:$0xff] }
 0xf58   :  { %v4168_v48 = vadd.f32 %v7398_v34, %v4167_v20  ;;  %v4215_v32 = vor.u32 1.1754944e-38, %v4214_v43  ;;  %v10382_v20 = vld [vmem:[#allocation57_spill] sm:$0xff]  ;;  %v10387_v54 = vld [vmem:[#allocation43_spill] sm:$0xff]  ;;  %v10397_v43 = vld [vmem:[#allocation36_spill] sm:$0xff] }
 0xf59   :  { %10377 = vst [vmem:[#allocation24_spill] sm:$0xff] %v9147_v53  ;;  %v4223_v62 = vpack.c.bf16 %v9147_v53, %v9147_v53  ;;  %vm4213_vm1 = vcmp.eq.f32.partialorder %v4212_v33, 8.507059e+37  ;;  %v10398_v33 = vld [vmem:[#allocation65_spill] sm:$0xff] }
 0xf5a   :  { %v4172_v19 = vsel %vm4171_vm12, %v7398_v34, %v4168_v48  ;;  %v4207_v34 = vadd.f32 %v9127_v13, %v4206_v35  ;;  %v10386_v48 = vld [vmem:[#allocation60_spill] sm:$0xff]  ;;  %v10393_v35 = vld [vmem:[#allocation35_spill] sm:$0xff]  ;;  %v10405_v53 = vld [vmem:[#allocation41_spill] sm:$0xff] }
 0xf5b   :  { %v4177_v10 = vsel %vm4174_vm13, %v4176_v38, %v4172_v19  ;;  %4232 = vmatmul.bf16.vlgmr.msra.gmra.mxu2 %v4223_v62  ;;  %4245 = vmatmul.bf16.vlgmr.msrb.gmra.mxu0 %v4223_v62  ;;  %v10388_v38 = vld [vmem:[#allocation44_spill] sm:$0xff]  ;;  %v10390_v19 = vld [vmem:[#allocation61_spill] sm:$0xff] }
 0xf5c   :  { %v4219_v59 = vmul.f32 %v7404_v18, %v4177_v10  ;;  %4258 = vmatmul.bf16.vlgmr.msrb.gmra.mxu1 %v4223_v62  ;;  %4271 = vmatmul.bf16.vlgmr.msrb.gmra.mxu3 %v4223_v62  ;;  %v4211_v26 = vsel %vm4210_vm15, %v9127_v13, %v4207_v34  ;;  %v10379_v13 = vld [vmem:[#allocation37_spill] sm:$0xff]  ;;  %v10389_v62 = vld [vmem:[#allocation34_spill] sm:$0xff]  ;;  %v10396_v34 = vld [vmem:[#allocation48_spill] sm:$0xff] }
 0xf5d   :  { %4464 = vmatpush.bf16.msra.mxu2 %v8416_v55  ;;  %4477 = vmatpush.bf16.msrb.mxu0 %v10329_v47  ;;  %v4216_v21 = vsel %vm4213_vm1, %v4215_v32, %v4211_v26  ;;  %v10391_v18 = vld [vmem:[#allocation45_spill] sm:$0xff]  ;;  %v10392_v10 = vld [vmem:[#allocation46_spill] sm:$0xff]  ;;  %v10400_v32 = vld [vmem:[#allocation51_spill] sm:$0xff] }
 0xf5e   :  { %v9155_v3 = vadd.f32 %v4219_v59, %v4218_v14  ;;  %4490 = vmatpush.bf16.msrb.mxu1 %v8494_v4  ;;  %4503 = vmatpush.bf16.msrb.mxu3 %v8418_v57  ;;  %v10394_v14 = vld [vmem:[#allocation64_spill] sm:$0xff]  ;;  %v10395_v59 = vld [vmem:[#allocation47_spill] sm:$0xff]  ;;  %v10399_v26 = vld [vmem:[#allocation49_spill] sm:$0xff] }
 0xf60   :  { %7405 = vtanh.f32 %v9155_v3 }
 0xf61   :  { %4465 = vmatpush.bf16.msra.mxu2 %v8422_v63  ;;  %4478 = vmatpush.bf16.msrb.mxu0 %v10330_v44 }
 0xf62   :  { %4491 = vmatpush.bf16.msrb.mxu1 %v8539_v25  ;;  %4504 = vmatpush.bf16.msrb.mxu3 %v8426_v41 }
 0xf65   :  { %4466 = vmatpush.bf16.msra.mxu2 %v8438_v6  ;;  %4479 = vmatpush.bf16.msrb.mxu0 %v10331_v39 }
 0xf66   :  { %v7406_v7 = vpop.eup %7405  ;;  %4492 = vmatpush.bf16.msrb.mxu1 %v8554_v2  ;;  %4505 = vmatpush.bf16.msrb.mxu3 %v8440_v8 }
 0xf67   :  { %v9174_v28 = vmul.f32 %v7406_v7, %v4216_v21  ;;  %v10401_v7 = vld [vmem:[#allocation38_spill] sm:$0xff]  ;;  %v10402_v21 = vld [vmem:[#allocation68_spill] sm:$0xff] }
 0xf69   :  { %10378 = vst [vmem:[#allocation25_spill] sm:$0xff] %v9174_v28  ;;  %v4276_v23 = vpack.c.bf16 %v9174_v28, %v9174_v28  ;;  %4467 = vmatpush.bf16.msra.mxu2 %v8447_v17  ;;  %4480 = vmatpush.bf16.msrb.mxu0 %v10333_v50  ;;  %v10404_v28 = vld [vmem:[#allocation53_spill] sm:$0xff] }
 0xf6a   :  { %4493 = vmatpush.bf16.msrb.mxu1 %v8568_v42  ;;  %4506 = vmatpush.bf16.msrb.mxu3 %v8451_v1 }
 0xf6b   :  { %4285 = vmatmul.bf16.vlgmr.msrb.gmra.mxu2 %v4276_v23  ;;  %4298 = vmatmul.bf16.vlgmr.msra.gmra.mxu0 %v4276_v23 }
 0xf6c   :  { %4311 = vmatmul.bf16.vlgmr.msra.gmra.mxu1 %v4276_v23  ;;  %4324 = vmatmul.bf16.vlgmr.msra.gmra.mxu3 %v4276_v23  ;;  %v10403_v23 = vld [vmem:[#allocation52_spill] sm:$0xff] }
 0xf6d   :  { %4468 = vmatpush.bf16.msra.mxu2 %v8464_v36  ;;  %4481 = vmatpush.bf16.msrb.mxu0 %v10334_v45 }
 0xf6e   :  { %4494 = vmatpush.bf16.msrb.mxu1 %v10286_v29  ;;  %4507 = vmatpush.bf16.msrb.mxu3 %v8466_v40 }
 0xf71   :  { %4469 = vmatpush.bf16.msra.mxu2 %v8473_v49  ;;  %4482 = vmatpush.bf16.msrb.mxu0 %v10335_v52 }
 0xf72   :  { %4495 = vmatpush.bf16.msrb.mxu1 %v8595_v24  ;;  %4508 = vmatpush.bf16.msrb.mxu3 %v8477_v51 }
 0xf75   :  { %4470 = vmatpush.bf16.msra.mxu2 %v8490_v61  ;;  %4483 = vmatpush.bf16.msrb.mxu0 %v10336_v0 }
 0xf76   :  { %4496 = vmatpush.bf16.msrb.mxu1 %v8607_v5  ;;  %4509 = vmatpush.bf16.msrb.mxu3 %v8492_v46 }
 0xf79   :  { %4471 = vmatpush.bf16.msra.mxu2 %v8502_v16  ;;  %4484 = vmatpush.bf16.msrb.mxu0 %v10337_v56 }
 0xf7a   :  { %4497 = vmatpush.bf16.msrb.mxu1 %v8617_v31  ;;  %4510 = vmatpush.bf16.msrb.mxu3 %v8506_v27 }
 0xf7d   :  { %4517 = vmatpush.bf16.msrb.mxu2 %v8508_v30  ;;  %4530 = vmatpush.bf16.msra.mxu0 %v10338_v12 }
 0xf7e   :  { %4543 = vmatpush.bf16.msra.mxu1 %v8622_v9  ;;  %4556 = vmatpush.bf16.msra.mxu3 %v10379_v13 }
 0xf81   :  { %4518 = vmatpush.bf16.msrb.mxu2 %v10380_v22  ;;  %4531 = vmatpush.bf16.msra.mxu0 %v10381_v37  ;;  %v10418_v37 = vld [vmem:[#allocation91_spill] sm:$0xff] }
 0xf82   :  { %4544 = vmatpush.bf16.msra.mxu1 %v10382_v20  ;;  %4557 = vmatpush.bf16.msra.mxu3 %v10383_v60 }
 0xf85   :  { %4519 = vmatpush.bf16.msrb.mxu2 %v10384_v58  ;;  %4532 = vmatpush.bf16.msra.mxu0 %v10385_v11 }
 0xf86   :  { %4545 = vmatpush.bf16.msra.mxu1 %v10386_v48  ;;  %4558 = vmatpush.bf16.msra.mxu3 %v10387_v54 }
 0xf89   :  { %4520 = vmatpush.bf16.msrb.mxu2 %v10388_v38  ;;  %4533 = vmatpush.bf16.msra.mxu0 %v10389_v62 }
 0xf8a   :  { %4546 = vmatpush.bf16.msra.mxu1 %v10390_v19  ;;  %4559 = vmatpush.bf16.msra.mxu3 %v10391_v18  ;;  %v10411_v19 = vld [vmem:[#allocation78_spill] sm:$0xff] }
 0xf8d   :  { %4521 = vmatpush.bf16.msrb.mxu2 %v10392_v10  ;;  %4534 = vmatpush.bf16.msra.mxu0 %v10393_v35 }
 0xf8e   :  { %4547 = vmatpush.bf16.msra.mxu1 %v10394_v14  ;;  %4560 = vmatpush.bf16.msra.mxu3 %v10395_v59  ;;  %v10406_v59 = vld [vmem:[#allocation72_spill] sm:$0xff] }
 0xf91   :  { %4522 = vmatpush.bf16.msrb.mxu2 %v10396_v34  ;;  %4535 = vmatpush.bf16.msra.mxu0 %v10397_v43  ;;  %v10407_v34 = vld [vmem:[#allocation54_spill] sm:$0xff]  ;;  %v10408_v43 = vld [vmem:[#allocation56_spill] sm:$0xff] }
 0xf92   :  { %4548 = vmatpush.bf16.msra.mxu1 %v10398_v33  ;;  %4561 = vmatpush.bf16.msra.mxu3 %v10399_v26  ;;  %v10409_v33 = vld [vmem:[#allocation66_spill] sm:$0xff] }
 0xf93   :  { %v3162_v14 = vadd.f32 %v10409_v33, %v10408_v43 }
 0xf95   :  { %4523 = vmatpush.bf16.msrb.mxu2 %v10400_v32  ;;  %4536 = vmatpush.bf16.msra.mxu0 %v10401_v7 }
 0xf96   :  { %4549 = vmatpush.bf16.msra.mxu1 %v10402_v21  ;;  %4562 = vmatpush.bf16.msra.mxu3 %v10403_v23  ;;  %v10410_v21 = vld [vmem:[#allocation77_spill] sm:$0xff] }
 0xf99   :  { %4524 = vmatpush.bf16.msrb.mxu2 %v10404_v28  ;;  %4537 = vmatpush.bf16.msra.mxu0 %v10405_v53 }
 0xf9a   :  { %4550 = vmatpush.bf16.msra.mxu1 %v10406_v59  ;;  %4563 = vmatpush.bf16.msra.mxu3 %v10407_v34 }
 0xfd8   :  { %v4246_v26 = vpop.f32.mrf.mxu0 }
 0xfd9   :  { %v4330_v35 = vadd.f32 %v4246_v26, %v3162_v14  ;;  %v4259_v32 = vpop.f32.mrf.mxu1  ;;  %v10412_v14 = vld [vmem:[#allocation71_spill] sm:$0xff] }
 0xfda   :  { %v10413_v26 = vld [vmem:[#allocation95_spill] sm:$0xff]  ;;  %v4331_v22 = vadd.f32 %v4259_v32, %v10418_v37 }
 0xfdb   :  { %v6962_v10 = vmul.f32 -1.442695, %v4330_v35  ;;  %v3335_v35 = vadd.f32 %v10413_v26, %v10412_v14  ;;  %v10417_v26 = vld [vmem:[#allocation119_spill] sm:$0xff] }
 0xfdd   :  { %7407 = vpow2.f32 %v6962_v10 }
 0xfde   :  { %v4233_v7 = vpop.f32.mrf.mxu2 }
 0xfdf   :  { %v4329_v18 = vadd.f32 %v4233_v7, %v10410_v21  ;;  %v4272_v23 = vpop.f32.mrf.mxu3 }
 0xfe0   :  { %v4332_v28 = vadd.f32 %v4272_v23, %v10411_v19  ;;  %v4248_v62 = vpop.f32.mrf.mxu0 }
 0xfe1   :  { %v6961_v53 = vmul.f32 -1.442695, %v4329_v18  ;;  %v4261_v38 = vpop.f32.mrf.mxu1 }
 0xfe2   :  { %v6963_v59 = vmul.f32 -1.442695, %v4332_v28 }
 0xfe3   :  { %v7408_v54 = vpop.eup %7407  ;;  %7409 = vpow2.f32 %v6961_v53  ;;  %v10414_v53 = vld [vmem:[#allocation98_spill] sm:$0xff] }
 0xfe4   :  { %v4359_v34 = vadd.f32 1.0, %v7408_v54  ;;  %7411 = vpow2.f32 %v6963_v59  ;;  %v10415_v54 = vld [vmem:[#allocation118_spill] sm:$0xff] }
 0xfe5   :  { %v3294_v59 = vadd.f32 %v10415_v54, %v10414_v53 }
 0xfe6   :  { %7413 = vrcp.f32 %v4359_v34  ;;  %v4235_v33 = vpop.f32.mrf.mxu2  ;;  %vm4365_vm4 = vweird.f32 %v4359_v34 }
 0xfe7   :  { %v4274_v10 = vpop.f32.mrf.mxu3  ;;  %v10416_v33 = vld [vmem:[#allocation101_spill] sm:$0xff] }
 0xfe8   :  { %v4299_v43 = vpop.f32.mrf.mxu0  ;;  %v3417_v10 = vadd.f32 %v10417_v26, %v10416_v33  ;;  %v4371_v26 = vand.u32 2147483648, %v4359_v34  ;;  %v10456_v33 = vld [vmem:[#allocation41_spill] sm:$0xff] }
 0xfe9   :  { %v7410_v48 = vpop.eup %7409  ;;  %v4334_v7 = vadd.f32 %v4299_v43, %v3335_v35  ;;  %v9236_v21 = vpop.f32.mrf.mxu1 }
 0xfea   :  { %v7412_v19 = vpop.eup %7411  ;;  %v4340_v62 = vadd.f32 1.0, %v7410_v48 }
 0xfeb   :  { %v9238_v18 = vadd.f32 1.0, %v7412_v19  ;;  %v6965_v28 = vmul.f32 -1.442695, %v4334_v7 }
 0xfec   :  { %v7414_v38 = vpop.eup %7413  ;;  %7415 = vrcp.f32 %v4340_v62  ;;  %v4352_v37 = vand.u32 2147483648, %v4340_v62  ;;  %vm4346_vm8 = vweird.f32 %v4340_v62 }
 0xfed   :  { %v4361_v23 = vmul.f32 %v7414_v38, %v4359_v34  ;;  %7417 = vrcp.f32 %v9238_v18  ;;  %vm4366_vm3 = vweird.f32 %v7414_v38  ;;  %vm4385_vm12 = vweird.f32 %v9238_v18 }
 0xfee   :  { %v4286_v14 = vpop.f32.mrf.mxu2  ;;  %7419 = vpow2.f32 %v6965_v28  ;;  %v4369_v28 = vand.u32 2147483647, %v4359_v34  ;;  %vm9250_vm5 = vmor %vm4365_vm4, %vm4366_vm3 }
 0xfef   :  { %v4362_v43 = vsub.f32 1.0, %v4361_v23  ;;  %v4333_v35 = vadd.f32 %v4286_v14, %v3294_v59  ;;  %v4325_v11 = vpop.f32.mrf.mxu3 }
 0xff0   :  { %v4336_v48 = vadd.f32 %v4325_v11, %v3417_v10  ;;  %v4301_v19 = vpop.f32.mrf.mxu0  ;;  %vm4370_vm7 = vcmp.eq.f32.partialorder %v4369_v28, 8.507059e+37 }
 0xff1   :  { %v4363_v58 = vmul.f32 %v7414_v38, %v4362_v43  ;;  %v6964_v7 = vmul.f32 -1.442695, %v4333_v35  ;;  %v4314_v60 = vpop.f32.mrf.mxu1  ;;  %v4350_v43 = vand.u32 2147483647, %v4340_v62 }
 0xff2   :  { %v7416_v20 = vpop.eup %7415  ;;  %v6966_v54 = vmul.f32 -1.442695, %v4336_v48  ;;  %v4372_v48 = vor.u32 1.1754944e-38, %v4371_v26 }
 0xff3   :  { %v9246_v53 = vpop.eup %7417  ;;  %v4364_v13 = vadd.f32 %v7414_v38, %v4363_v58  ;;  %v4342_v9 = vmul.f32 %v7416_v20, %v4340_v62  ;;  %7421 = vpow2.f32 %v6964_v7  ;;  %vm4347_vm6 = vweird.f32 %v7416_v20 }
 0xff4   :  { %v4381_v14 = vmul.f32 %v9246_v53, %v9238_v18  ;;  %7423 = vpow2.f32 %v6966_v54  ;;  %v7420_v11 = vpop.eup %7419  ;;  %vm4348_vm9 = vmor %vm4346_vm8, %vm4347_vm6  ;;  %v4353_v54 = vor.u32 1.1754944e-38, %v4352_v37  ;;  %vm4351_vm10 = vcmp.eq.f32.partialorder %v4350_v43, 8.507059e+37 }
 0xff5   :  { %v4343_v59 = vsub.f32 1.0, %v4342_v9  ;;  %7425 = vtanh.f32 %v4331_v22  ;;  %v9254_v32 = vadd.f32 1.0, %v7420_v11  ;;  %v4368_v23 = vsel %vm9250_vm5, %v7414_v38, %v4364_v13 }
 0xff6   :  { %v4288_v58 = vpop.f32.mrf.mxu2  ;;  %v4382_v19 = vsub.f32 1.0, %v4381_v14  ;;  %v4373_v7 = vsel %vm4370_vm7, %v4372_v48, %v4368_v23  ;;  %v10421_v23 = vld [vmem:[#allocation113_spill] sm:$0xff]  ;;  %vm4386_vm11 = vweird.f32 %v9246_v53 }
 0xff7   :  { %v4344_v10 = vmul.f32 %v7416_v20, %v4343_v59  ;;  %v4327_v35 = vpop.f32.mrf.mxu3  ;;  %7427 = vrcp.f32 %v9254_v32  ;;  %v4395_v14 = vmul.f32 %v4373_v7, %v9116_v15  ;;  %vm9278_vm13 = vmor %vm4385_vm12, %vm4386_vm11  ;;  %vm4428_vm0 = vweird.f32 %v9254_v32 }
 0xff8   :  { %v4383_v26 = vmul.f32 %v9246_v53, %v4382_v19  ;;  %v4391_v35 = vand.u32 2147483648, %v9238_v18  ;;  %v4389_v19 = vand.u32 2147483647, %v9238_v18 }
 0xff9   :  { %v7422_v9 = vpop.eup %7421  ;;  %v4345_v34 = vadd.f32 %v7416_v20, %v4344_v10 }
 0xffa   :  { %v7424_v22 = vpop.eup %7423  ;;  %v4403_v11 = vadd.f32 1.0, %v7422_v9  ;;  %v4384_v43 = vadd.f32 %v9246_v53, %v4383_v26  ;;  %v4432_v26 = vand.u32 2147483647, %v9254_v32  ;;  %vm4390_vm15 = vcmp.eq.f32.partialorder %v4389_v19, 8.507059e+37 }
 0xffb   :  { %v4349_v58 = vsel %vm4348_vm9, %v7416_v20, %v4345_v34  ;;  %v9259_v13 = vadd.f32 1.0, %v7424_v22  ;;  %v7426_v38 = vpop.eup %7425  ;;  %v10422_v20 = vld [vmem:[#allocation124_spill] sm:$0xff] }
 0xffc   :  { %v4354_v59 = vsel %vm4351_vm10, %v4353_v54, %v4349_v58  ;;  %7429 = vrcp.f32 %v4403_v11  ;;  %v3376_v10 = vadd.f32 %v10422_v20, %v10421_v23  ;;  %v4392_v58 = vor.u32 1.1754944e-38, %v4391_v35 }
 0xffd   :  { %v4396_v60 = vmul.f32 %v7426_v38, %v4354_v59  ;;  %7431 = vrcp.f32 %v9259_v13  ;;  %v7428_v62 = vpop.eup %7427  ;;  %v4434_v38 = vand.u32 2147483648, %v9254_v32  ;;  %v4388_v18 = vsel %vm9278_vm13, %v9246_v53, %v4384_v43 }
 0xffe   :  { %v4424_v37 = vmul.f32 %v7428_v62, %v9254_v32  ;;  %v4335_v9 = vadd.f32 %v9236_v21, %v3376_v10  ;;  %vm4429_vm14 = vweird.f32 %v7428_v62  ;;  %v4415_v20 = vand.u32 2147483648, %v4403_v11 }
 0xfff   :  { %v9264_v28 = vadd.f32 %v4396_v60, %v4395_v14  ;;  %vm9290_vm1 = vmor %vm4428_vm0, %vm4429_vm14  ;;  %v4393_v53 = vsel %vm4390_vm15, %v4392_v58, %v4388_v18  ;;  %v4435_v43 = vor.u32 1.1754944e-38, %v4434_v38  ;;  %vm4433_vm4 = vcmp.eq.f32.partialorder %v4432_v26, 8.507059e+37 }
0x1000   :  { %v4425_v48 = vsub.f32 1.0, %v4424_v37  ;;  %v4413_v37 = vand.u32 2147483647, %v4403_v11  ;;  %vm4409_vm5 = vweird.f32 %v4403_v11  ;;  %vm4448_vm9 = vweird.f32 %v9259_v13 }
0x1001   :  { %7433 = vtanh.f32 %v9264_v28 }
0x1002   :  { %v7430_v15 = vpop.eup %7429  ;;  %v4426_v7 = vmul.f32 %v7428_v62, %v4425_v48  ;;  %7435 = vtanh.f32 %v4335_v9  ;;  %vm4414_vm7 = vcmp.eq.f32.partialorder %v4413_v37, 8.507059e+37 }
0x1003   :  { %v9276_v34 = vpop.eup %7431  ;;  %v4405_v54 = vmul.f32 %v7430_v15, %v4403_v11  ;;  %vm4410_vm3 = vweird.f32 %v7430_v15 }
0x1004   :  { %v4444_v59 = vmul.f32 %v9276_v34, %v9259_v13  ;;  %v4427_v21 = vadd.f32 %v7428_v62, %v4426_v7  ;;  %vm4411_vm6 = vmor %vm4409_vm5, %vm4410_vm3  ;;  %vm4449_vm8 = vweird.f32 %v9276_v34 }
0x1005   :  { %v4406_v14 = vsub.f32 1.0, %v4405_v54  ;;  %v4416_v54 = vor.u32 1.1754944e-38, %v4415_v20  ;;  %vm4450_vm10 = vmor %vm4448_vm9, %vm4449_vm8  ;;  %v10430_v20 = vld [vmem:[#allocation37_spill] sm:$0xff] }
0x1006   :  { %v4431_v35 = vsel %vm9290_vm1, %v7428_v62, %v4427_v21  ;;  %v4445_v22 = vsub.f32 1.0, %v4444_v59 }
0x1007   :  { %v7434_v10 = vpop.eup %7433  ;;  %v4407_v48 = vmul.f32 %v7430_v15, %v4406_v14  ;;  %v4436_v19 = vsel %vm4433_vm4, %v4435_v43, %v4431_v35  ;;  %v10432_v35 = vld [vmem:[#allocation32_spill] sm:$0xff]  ;;  %v10435_v43 = vld [vmem:[#allocation42_spill] sm:$0xff] }
0x1008   :  { %v9296_v7 = vmul.f32 %v7434_v10, %v4393_v53  ;;  %v7436_v60 = vpop.eup %7435  ;;  %v4446_v21 = vmul.f32 %v9276_v34, %v4445_v22  ;;  %v4458_v58 = vmul.f32 %v4436_v19, %v9155_v3  ;;  %v4452_v3 = vand.u32 2147483647, %v9259_v13  ;;  %v10431_v10 = vld [vmem:[#allocation39_spill] sm:$0xff]  ;;  %v10434_v53 = vld [vmem:[#allocation40_spill] sm:$0xff]  ;;  %v10436_v22 = vld [vmem:[#allocation33_spill] sm:$0xff] }
0x1009   :  { %v4408_v32 = vadd.f32 %v7430_v15, %v4407_v48  ;;  %v10433_v48 = vld [vmem:[#allocation57_spill] sm:$0xff]  ;;  %v10438_v19 = vld [vmem:[#allocation43_spill] sm:$0xff] }
0x100a   :  { %10427 = vst [vmem:[#allocation26_spill] sm:$0xff] %v9296_v7  ;;  %v4463_v9 = vpack.c.bf16 %v9296_v7, %v9296_v7  ;;  %vm4453_vm11 = vcmp.eq.f32.partialorder %v4452_v3, 8.507059e+37  ;;  %v10448_v3 = vld [vmem:[#allocation36_spill] sm:$0xff]  ;;  %v10455_v7 = vld [vmem:[#allocation53_spill] sm:$0xff] }
0x100b   :  { %v4412_v23 = vsel %vm4411_vm6, %v7430_v15, %v4408_v32  ;;  %v4454_v15 = vand.u32 2147483648, %v9259_v13  ;;  %v10437_v32 = vld [vmem:[#allocation60_spill] sm:$0xff] }
0x100c   :  { %v4417_v62 = vsel %vm4414_vm7, %v4416_v54, %v4412_v23  ;;  %4472 = vmatmul.bf16.vlgmr.msra.gmra.mxu2 %v4463_v9  ;;  %4485 = vmatmul.bf16.vlgmr.msrb.gmra.mxu0 %v4463_v9  ;;  %v4447_v23 = vadd.f32 %v9276_v34, %v4446_v21  ;;  %v10439_v54 = vld [vmem:[#allocation44_spill] sm:$0xff]  ;;  %v10443_v21 = vld [vmem:[#allocation46_spill] sm:$0xff] }
0x100d   :  { %v4459_v38 = vmul.f32 %v7436_v60, %v4417_v62  ;;  %4498 = vmatmul.bf16.vlgmr.msrb.gmra.mxu1 %v4463_v9  ;;  %4511 = vmatmul.bf16.vlgmr.msrb.gmra.mxu3 %v4463_v9  ;;  %v4455_v18 = vor.u32 1.1754944e-38, %v4454_v15  ;;  %v10440_v9 = vld [vmem:[#allocation34_spill] sm:$0xff]  ;;  %v10441_v60 = vld [vmem:[#allocation61_spill] sm:$0xff]  ;;  %v10447_v15 = vld [vmem:[#allocation48_spill] sm:$0xff] }
0x100e   :  { %4704 = vmatpush.bf16.msra.mxu2 %v8416_v55  ;;  %4717 = vmatpush.bf16.msrb.mxu0 %v10329_v47  ;;  %v4451_v59 = vsel %vm4450_vm10, %v9276_v34, %v4447_v23  ;;  %v10429_v34 = vld [vmem:[#allocation55_spill] sm:$0xff]  ;;  %v10442_v62 = vld [vmem:[#allocation45_spill] sm:$0xff] }
0x100f   :  { %v9304_v11 = vadd.f32 %v4459_v38, %v4458_v58  ;;  %4730 = vmatpush.bf16.msrb.mxu1 %v8494_v4  ;;  %4743 = vmatpush.bf16.msrb.mxu3 %v8418_v57  ;;  %v4456_v14 = vsel %vm4453_vm11, %v4455_v18, %v4451_v59  ;;  %v10444_v58 = vld [vmem:[#allocation35_spill] sm:$0xff]  ;;  %v10445_v38 = vld [vmem:[#allocation64_spill] sm:$0xff]  ;;  %v10449_v59 = vld [vmem:[#allocation65_spill] sm:$0xff] }
0x1010   :  { %v10446_v23 = vld [vmem:[#allocation47_spill] sm:$0xff]  ;;  %v10450_v18 = vld [vmem:[#allocation49_spill] sm:$0xff] }
0x1011   :  { %7437 = vtanh.f32 %v9304_v11 }
0x1012   :  { %4705 = vmatpush.bf16.msra.mxu2 %v8422_v63  ;;  %4718 = vmatpush.bf16.msrb.mxu0 %v10330_v44 }
0x1013   :  { %4731 = vmatpush.bf16.msrb.mxu1 %v8539_v25  ;;  %4744 = vmatpush.bf16.msrb.mxu3 %v8426_v41 }
0x1016   :  { %4706 = vmatpush.bf16.msra.mxu2 %v8438_v6  ;;  %4719 = vmatpush.bf16.msrb.mxu0 %v10331_v39 }
0x1017   :  { %v7438_v26 = vpop.eup %7437  ;;  %4732 = vmatpush.bf16.msrb.mxu1 %v8554_v2  ;;  %4745 = vmatpush.bf16.msrb.mxu3 %v8440_v8 }
0x1018   :  { %v9323_v13 = vmul.f32 %v7438_v26, %v4456_v14  ;;  %v10451_v26 = vld [vmem:[#allocation51_spill] sm:$0xff]  ;;  %v10452_v14 = vld [vmem:[#allocation38_spill] sm:$0xff] }
0x101a   :  { %10428 = vst [vmem:[#allocation27_spill] sm:$0xff] %v9323_v13  ;;  %v4516_v37 = vpack.c.bf16 %v9323_v13, %v9323_v13  ;;  %4707 = vmatpush.bf16.msra.mxu2 %v8447_v17  ;;  %4720 = vmatpush.bf16.msrb.mxu0 %v10333_v50  ;;  %v10454_v13 = vld [vmem:[#allocation52_spill] sm:$0xff] }
0x101b   :  { %4733 = vmatpush.bf16.msrb.mxu1 %v8568_v42  ;;  %4746 = vmatpush.bf16.msrb.mxu3 %v8451_v1 }
0x101c   :  { %4525 = vmatmul.bf16.vlgmr.msrb.gmra.mxu2 %v4516_v37  ;;  %4538 = vmatmul.bf16.vlgmr.msra.gmra.mxu0 %v4516_v37 }
0x101d   :  { %4551 = vmatmul.bf16.vlgmr.msra.gmra.mxu1 %v4516_v37  ;;  %4564 = vmatmul.bf16.vlgmr.msra.gmra.mxu3 %v4516_v37  ;;  %v10453_v37 = vld [vmem:[#allocation68_spill] sm:$0xff] }
0x101e   :  { %4708 = vmatpush.bf16.msra.mxu2 %v8464_v36  ;;  %4721 = vmatpush.bf16.msrb.mxu0 %v10334_v45 }
0x101f   :  { %4734 = vmatpush.bf16.msrb.mxu1 %v10286_v29  ;;  %4747 = vmatpush.bf16.msrb.mxu3 %v8466_v40 }
0x1022   :  { %4709 = vmatpush.bf16.msra.mxu2 %v8473_v49  ;;  %4722 = vmatpush.bf16.msrb.mxu0 %v10335_v52 }
0x1023   :  { %4735 = vmatpush.bf16.msrb.mxu1 %v8595_v24  ;;  %4748 = vmatpush.bf16.msrb.mxu3 %v8477_v51 }
0x1026   :  { %4710 = vmatpush.bf16.msra.mxu2 %v8490_v61  ;;  %4723 = vmatpush.bf16.msrb.mxu0 %v10336_v0 }
0x1027   :  { %4736 = vmatpush.bf16.msrb.mxu1 %v8607_v5  ;;  %4749 = vmatpush.bf16.msrb.mxu3 %v8492_v46 }
0x102a   :  { %4711 = vmatpush.bf16.msra.mxu2 %v8502_v16  ;;  %4724 = vmatpush.bf16.msrb.mxu0 %v10337_v56 }
0x102b   :  { %4737 = vmatpush.bf16.msrb.mxu1 %v8617_v31  ;;  %4750 = vmatpush.bf16.msrb.mxu3 %v8506_v27 }
0x102e   :  { %4757 = vmatpush.bf16.msrb.mxu2 %v8508_v30  ;;  %4770 = vmatpush.bf16.msra.mxu0 %v10338_v12 }
0x102f   :  { %4783 = vmatpush.bf16.msra.mxu1 %v10429_v34  ;;  %4796 = vmatpush.bf16.msra.mxu3 %v10430_v20 }
0x1032   :  { %4758 = vmatpush.bf16.msrb.mxu2 %v10431_v10  ;;  %4771 = vmatpush.bf16.msra.mxu0 %v10432_v35 }
0x1033   :  { %4784 = vmatpush.bf16.msra.mxu1 %v10433_v48  ;;  %4797 = vmatpush.bf16.msra.mxu3 %v10434_v53 }
0x1036   :  { %4759 = vmatpush.bf16.msrb.mxu2 %v10435_v43  ;;  %4772 = vmatpush.bf16.msra.mxu0 %v10436_v22 }
0x1037   :  { %4785 = vmatpush.bf16.msra.mxu1 %v10437_v32  ;;  %4798 = vmatpush.bf16.msra.mxu3 %v10438_v19 }
0x103a   :  { %4760 = vmatpush.bf16.msrb.mxu2 %v10439_v54  ;;  %4773 = vmatpush.bf16.msra.mxu0 %v10440_v9 }
0x103b   :  { %4786 = vmatpush.bf16.msra.mxu1 %v10441_v60  ;;  %4799 = vmatpush.bf16.msra.mxu3 %v10442_v62  ;;  %v10463_v62 = vld [vmem:[#allocation82_spill] sm:$0xff] }
0x103e   :  { %4761 = vmatpush.bf16.msrb.mxu2 %v10443_v21  ;;  %4774 = vmatpush.bf16.msra.mxu0 %v10444_v58  ;;  %v10461_v21 = vld [vmem:[#allocation81_spill] sm:$0xff] }
0x103f   :  { %4787 = vmatpush.bf16.msra.mxu1 %v10445_v38  ;;  %4800 = vmatpush.bf16.msra.mxu3 %v10446_v23  ;;  %v10457_v23 = vld [vmem:[#allocation72_spill] sm:$0xff] }
0x1042   :  { %4762 = vmatpush.bf16.msrb.mxu2 %v10447_v15  ;;  %4775 = vmatpush.bf16.msra.mxu0 %v10448_v3  ;;  %v10458_v15 = vld [vmem:[#allocation54_spill] sm:$0xff] }
0x1043   :  { %4788 = vmatpush.bf16.msra.mxu1 %v10449_v59  ;;  %4801 = vmatpush.bf16.msra.mxu3 %v10450_v18  ;;  %v10459_v59 = vld [vmem:[#allocation59_spill] sm:$0xff] }
0x1046   :  { %4763 = vmatpush.bf16.msrb.mxu2 %v10451_v26  ;;  %4776 = vmatpush.bf16.msra.mxu0 %v10452_v14  ;;  %v10460_v26 = vld [vmem:[#allocation75_spill] sm:$0xff] }
0x1047   :  { %4789 = vmatpush.bf16.msra.mxu1 %v10453_v37  ;;  %4802 = vmatpush.bf16.msra.mxu3 %v10454_v13  ;;  %v3124_v14 = vadd.f32 %v10461_v21, %v10460_v26  ;;  %v10462_v37 = vld [vmem:[#allocation76_spill] sm:$0xff] }
0x1048   :  { %v3247_v13 = vadd.f32 %v10463_v62, %v10462_v37  ;;  %v10464_v26 = vld [vmem:[#allocation92_spill] sm:$0xff] }
0x104a   :  { %4764 = vmatpush.bf16.msrb.mxu2 %v10455_v7  ;;  %4777 = vmatpush.bf16.msra.mxu0 %v10456_v33 }
0x104b   :  { %4790 = vmatpush.bf16.msra.mxu1 %v10457_v23  ;;  %4803 = vmatpush.bf16.msra.mxu3 %v10458_v15 }
0x1089   :  { %v4486_v3 = vpop.f32.mrf.mxu0 }
0x108a   :  { %v4570_v38 = vadd.f32 %v4486_v3, %v10459_v59  ;;  %v4499_v18 = vpop.f32.mrf.mxu1 }
0x108c   :  { %v6968_v58 = vmul.f32 -1.442695, %v4570_v38 }
0x108e   :  { %7439 = vpow2.f32 %v6968_v58 }
0x108f   :  { %v4473_v60 = vpop.f32.mrf.mxu2 }
0x1090   :  { %v4569_v7 = vadd.f32 %v4473_v60, %v3124_v14  ;;  %v4512_v9 = vpop.f32.mrf.mxu3 }
0x1091   :  { %v4572_v33 = vadd.f32 %v4512_v9, %v3247_v13  ;;  %v4488_v54 = vpop.f32.mrf.mxu0  ;;  %v10465_v9 = vld [vmem:[#allocation115_spill] sm:$0xff] }
0x1092   :  { %v6967_v23 = vmul.f32 -1.442695, %v4569_v7  ;;  %v4501_v19 = vpop.f32.mrf.mxu1 }
0x1093   :  { %v6969_v15 = vmul.f32 -1.442695, %v4572_v33 }
0x1094   :  { %v7440_v32 = vpop.eup %7439  ;;  %7441 = vpow2.f32 %v6967_v23 }
0x1095   :  { %v4599_v3 = vadd.f32 1.0, %v7440_v32  ;;  %7443 = vpow2.f32 %v6969_v15 }
0x1097   :  { %7445 = vrcp.f32 %v4599_v3  ;;  %v4475_v38 = vpop.f32.mrf.mxu2  ;;  %vm4605_vm13 = vweird.f32 %v4599_v3 }
0x1098   :  { %v4514_v59 = vpop.f32.mrf.mxu3  ;;  %v10466_v38 = vld [vmem:[#allocation90_spill] sm:$0xff] }
0x1099   :  { %v4539_v21 = vpop.f32.mrf.mxu0 }
0x109a   :  { %v7442_v58 = vpop.eup %7441  ;;  %v4574_v22 = vadd.f32 %v4539_v21, %v10464_v26  ;;  %v9385_v62 = vpop.f32.mrf.mxu1  ;;  %v10467_v26 = vld [vmem:[#allocation94_spill] sm:$0xff]  ;;  %v10468_v21 = vld [vmem:[#allocation116_spill] sm:$0xff] }
0x109b   :  { %v7444_v60 = vpop.eup %7443  ;;  %v4580_v14 = vadd.f32 1.0, %v7442_v58  ;;  %v3206_v59 = vadd.f32 %v10467_v26, %v10466_v38 }
0x109c   :  { %v9387_v13 = vadd.f32 1.0, %v7444_v60  ;;  %v6971_v7 = vmul.f32 -1.442695, %v4574_v22 }
0x109d   :  { %v7446_v19 = vpop.eup %7445  ;;  %7447 = vrcp.f32 %v4580_v14  ;;  %v4571_v48 = vadd.f32 %v4499_v18, %v3206_v59  ;;  %v4592_v18 = vand.u32 2147483648, %v4580_v14  ;;  %vm4586_vm1 = vweird.f32 %v4580_v14 }
0x109e   :  { %v4601_v33 = vmul.f32 %v7446_v19, %v4599_v3  ;;  %7449 = vrcp.f32 %v9387_v13  ;;  %vm4606_vm12 = vweird.f32 %v7446_v19  ;;  %vm4625_vm6 = vweird.f32 %v9387_v13 }
0x109f   :  { %v4526_v32 = vpop.f32.mrf.mxu2  ;;  %7451 = vpow2.f32 %v6971_v7  ;;  %vm9398_vm14 = vmor %vm4605_vm13, %vm4606_vm12 }
0x10a0   :  { %v4602_v54 = vsub.f32 1.0, %v4601_v33  ;;  %v4573_v23 = vadd.f32 %v4526_v32, %v10465_v9  ;;  %v4565_v15 = vpop.f32.mrf.mxu3  ;;  %v4611_v33 = vand.u32 2147483648, %v4599_v3 }
0x10a1   :  { %v4576_v37 = vadd.f32 %v4565_v15, %v10468_v21  ;;  %v4541_v58 = vpop.f32.mrf.mxu0  ;;  %v4609_v15 = vand.u32 2147483647, %v4599_v3  ;;  %v4590_v21 = vand.u32 2147483647, %v4580_v14 }
0x10a2   :  { %v4603_v60 = vmul.f32 %v7446_v19, %v4602_v54  ;;  %v6970_v43 = vmul.f32 -1.442695, %v4573_v23  ;;  %v4554_v22 = vpop.f32.mrf.mxu1  ;;  %v4612_v58 = vor.u32 1.1754944e-38, %v4611_v33 }
0x10a3   :  { %v7448_v53 = vpop.eup %7447  ;;  %v6972_v35 = vmul.f32 -1.442695, %v4576_v37  ;;  %vm4610_vm15 = vcmp.eq.f32.partialorder %v4609_v15, 8.507059e+37  ;;  %vm4591_vm4 = vcmp.eq.f32.partialorder %v4590_v21, 8.507059e+37  ;;  %v10471_v21 = vld [vmem:[#allocation123_spill] sm:$0xff] }
0x10a4   :  { %v9394_v10 = vpop.eup %7449  ;;  %v4604_v20 = vadd.f32 %v7446_v19, %v4603_v60  ;;  %v4582_v7 = vmul.f32 %v7448_v53, %v4580_v14  ;;  %7453 = vpow2.f32 %v6970_v43  ;;  %vm4587_vm0 = vweird.f32 %v7448_v53 }
0x10a5   :  { %v4621_v32 = vmul.f32 %v9394_v10, %v9387_v13  ;;  %7455 = vpow2.f32 %v6972_v35  ;;  %v7452_v9 = vpop.eup %7451  ;;  %vm4588_vm3 = vmor %vm4586_vm1, %vm4587_vm0  ;;  %vm4626_vm5 = vweird.f32 %v9394_v10 }
0x10a6   :  { %v4583_v54 = vsub.f32 1.0, %v4582_v7  ;;  %7457 = vtanh.f32 %v4571_v48  ;;  %v9402_v37 = vadd.f32 1.0, %v7452_v9  ;;  %v4608_v43 = vsel %vm9398_vm14, %v7446_v19, %v4604_v20  ;;  %vm9425_vm7 = vmor %vm4625_vm6, %vm4626_vm5 }
0x10a7   :  { %v4528_v26 = vpop.f32.mrf.mxu2  ;;  %v4622_v60 = vsub.f32 1.0, %v4621_v32  ;;  %v4613_v7 = vsel %vm4610_vm15, %v4612_v58, %v4608_v43  ;;  %v4593_v9 = vor.u32 1.1754944e-38, %v4592_v18  ;;  %v4631_v43 = vand.u32 2147483648, %v9387_v13 }
0x10a8   :  { %v4584_v59 = vmul.f32 %v7448_v53, %v4583_v54  ;;  %v4567_v35 = vpop.f32.mrf.mxu3  ;;  %7459 = vrcp.f32 %v9402_v37  ;;  %v4635_v32 = vmul.f32 %v4613_v7, %v9264_v28  ;;  %v4629_v28 = vand.u32 2147483647, %v9387_v13 }
0x10a9   :  { %v4623_v33 = vmul.f32 %v9394_v10, %v4622_v60  ;;  %v4575_v35 = vadd.f32 %v9385_v62, %v10471_v21  ;;  %v4674_v7 = vand.u32 2147483648, %v9402_v37  ;;  %vm4668_vm9 = vweird.f32 %v9402_v37 }
0x10aa   :  { %v7454_v3 = vpop.eup %7453  ;;  %v4585_v22 = vadd.f32 %v7448_v53, %v4584_v59  ;;  %vm4630_vm10 = vcmp.eq.f32.partialorder %v4629_v28, 8.507059e+37 }
0x10ab   :  { %v7456_v48 = vpop.eup %7455  ;;  %v4643_v26 = vadd.f32 1.0, %v7454_v3 }
0x10ac   :  { %v4589_v38 = vsel %vm4588_vm3, %v7448_v53, %v4585_v22  ;;  %v9407_v20 = vadd.f32 1.0, %v7456_v48  ;;  %v7458_v19 = vpop.eup %7457  ;;  %v4624_v53 = vadd.f32 %v9394_v10, %v4623_v33  ;;  %v4632_v48 = vor.u32 1.1754944e-38, %v4631_v43 }
0x10ad   :  { %v4594_v54 = vsel %vm4591_vm4, %v4593_v9, %v4589_v38  ;;  %7461 = vrcp.f32 %v4643_v26  ;;  %vm4649_vm14 = vweird.f32 %v4643_v26 }
0x10ae   :  { %v4636_v23 = vmul.f32 %v7458_v19, %v4594_v54  ;;  %7463 = vrcp.f32 %v9407_v20  ;;  %v7460_v14 = vpop.eup %7459  ;;  %v4628_v13 = vsel %vm9425_vm7, %v9394_v10, %v4624_v53  ;;  %v4672_v19 = vand.u32 2147483647, %v9402_v37 }
0x10af   :  { %v4664_v18 = vmul.f32 %v7460_v14, %v9402_v37  ;;  %vm4669_vm8 = vweird.f32 %v7460_v14  ;;  %v4633_v10 = vsel %vm4630_vm10, %v4632_v48, %v4628_v13  ;;  %v4675_v53 = vor.u32 1.1754944e-38, %v4674_v7 }
0x10b0   :  { %v9412_v15 = vadd.f32 %v4636_v23, %v4635_v32  ;;  %vm9437_vm11 = vmor %vm4668_vm9, %vm4669_vm8  ;;  %v4653_v32 = vand.u32 2147483647, %v4643_v26  ;;  %v4655_v23 = vand.u32 2147483648, %v4643_v26  ;;  %vm4673_vm13 = vcmp.eq.f32.partialorder %v4672_v19, 8.507059e+37 }
0x10b1   :  { %v4665_v38 = vsub.f32 1.0, %v4664_v18  ;;  %vm4688_vm3 = vweird.f32 %v9407_v20 }
0x10b2   :  { %7465 = vtanh.f32 %v9412_v15  ;;  %vm4654_vm15 = vcmp.eq.f32.partialorder %v4653_v32, 8.507059e+37 }
0x10b3   :  { %v7462_v59 = vpop.eup %7461  ;;  %v4666_v3 = vmul.f32 %v7460_v14, %v4665_v38  ;;  %7467 = vtanh.f32 %v4575_v35 }
0x10b4   :  { %v9423_v58 = vpop.eup %7463  ;;  %v4645_v22 = vmul.f32 %v7462_v59, %v4643_v26  ;;  %vm4650_vm12 = vweird.f32 %v7462_v59 }
0x10b5   :  { %v4684_v9 = vmul.f32 %v9423_v58, %v9407_v20  ;;  %v4667_v62 = vadd.f32 %v7460_v14, %v4666_v3  ;;  %vm4651_vm0 = vmor %vm4649_vm14, %vm4650_vm12  ;;  %v4656_v3 = vor.u32 1.1754944e-38, %v4655_v23  ;;  %vm4689_vm1 = vweird.f32 %v9423_v58 }
0x10b6   :  { %v4646_v54 = vsub.f32 1.0, %v4645_v22  ;;  %vm4690_vm4 = vmor %vm4688_vm3, %vm4689_vm1 }
0x10b7   :  { %v4671_v43 = vsel %vm9437_vm11, %v7460_v14, %v4667_v62  ;;  %v4685_v21 = vsub.f32 1.0, %v4684_v9  ;;  %v4694_v9 = vand.u32 2147483648, %v9407_v20 }
0x10b8   :  { %v7466_v18 = vpop.eup %7465  ;;  %v4647_v38 = vmul.f32 %v7462_v59, %v4646_v54  ;;  %v4676_v28 = vsel %vm4673_vm13, %v4675_v53, %v4671_v43  ;;  %v10480_v43 = vld [vmem:[#allocation32_spill] sm:$0xff]  ;;  %v10483_v53 = vld [vmem:[#allocation42_spill] sm:$0xff] }
0x10b9   :  { %v9443_v60 = vmul.f32 %v7466_v18, %v4633_v10  ;;  %v7468_v33 = vpop.eup %7467  ;;  %v4686_v62 = vmul.f32 %v9423_v58, %v4685_v21  ;;  %v4698_v48 = vmul.f32 %v4676_v28, %v9304_v11  ;;  %v4692_v11 = vand.u32 2147483647, %v9407_v20  ;;  %v10479_v18 = vld [vmem:[#allocation39_spill] sm:$0xff]  ;;  %v10482_v10 = vld [vmem:[#allocation40_spill] sm:$0xff]  ;;  %v10484_v21 = vld [vmem:[#allocation33_spill] sm:$0xff] }
0x10ba   :  { %v4648_v37 = vadd.f32 %v7462_v59, %v4647_v38  ;;  %v4695_v19 = vor.u32 1.1754944e-38, %v4694_v9  ;;  %v10481_v38 = vld [vmem:[#allocation57_spill] sm:$0xff]  ;;  %v10486_v28 = vld [vmem:[#allocation43_spill] sm:$0xff]  ;;  %v10496_v9 = vld [vmem:[#allocation36_spill] sm:$0xff] }
0x10bb   :  { %10476 = vst [vmem:[#allocation28_spill] sm:$0xff] %v9443_v60  ;;  %v4703_v35 = vpack.c.bf16 %v9443_v60, %v9443_v60  ;;  %vm4693_vm5 = vcmp.eq.f32.partialorder %v4692_v11, 8.507059e+37  ;;  %v10497_v11 = vld [vmem:[#allocation65_spill] sm:$0xff] }
0x10bc   :  { %v4652_v22 = vsel %vm4651_vm0, %v7462_v59, %v4648_v37  ;;  %v4687_v59 = vadd.f32 %v9423_v58, %v4686_v62  ;;  %v10485_v37 = vld [vmem:[#allocation60_spill] sm:$0xff]  ;;  %v10492_v62 = vld [vmem:[#allocation35_spill] sm:$0xff]  ;;  %v10504_v60 = vld [vmem:[#allocation41_spill] sm:$0xff] }
0x10bd   :  { %v4657_v14 = vsel %vm4654_vm15, %v4656_v3, %v4652_v22  ;;  %4712 = vmatmul.bf16.vlgmr.msra.gmra.mxu2 %v4703_v35  ;;  %4725 = vmatmul.bf16.vlgmr.msrb.gmra.mxu0 %v4703_v35  ;;  %v10487_v3 = vld [vmem:[#allocation44_spill] sm:$0xff]  ;;  %v10489_v22 = vld [vmem:[#allocation61_spill] sm:$0xff] }
0x10be   :  { %v4699_v7 = vmul.f32 %v7468_v33, %v4657_v14  ;;  %4738 = vmatmul.bf16.vlgmr.msrb.gmra.mxu1 %v4703_v35  ;;  %4751 = vmatmul.bf16.vlgmr.msrb.gmra.mxu3 %v4703_v35  ;;  %v4691_v13 = vsel %vm4690_vm4, %v9423_v58, %v4687_v59  ;;  %v10478_v58 = vld [vmem:[#allocation37_spill] sm:$0xff]  ;;  %v10488_v35 = vld [vmem:[#allocation34_spill] sm:$0xff]  ;;  %v10495_v59 = vld [vmem:[#allocation48_spill] sm:$0xff] }
0x10bf   :  { %4944 = vmatpush.bf16.msra.mxu2 %v8416_v55  ;;  %4957 = vmatpush.bf16.msrb.mxu0 %v10329_v47  ;;  %v4696_v32 = vsel %vm4693_vm5, %v4695_v19, %v4691_v13  ;;  %v10490_v33 = vld [vmem:[#allocation45_spill] sm:$0xff]  ;;  %v10491_v14 = vld [vmem:[#allocation46_spill] sm:$0xff]  ;;  %v10499_v19 = vld [vmem:[#allocation51_spill] sm:$0xff] }
0x10c0   :  { %v9451_v26 = vadd.f32 %v4699_v7, %v4698_v48  ;;  %4970 = vmatpush.bf16.msrb.mxu1 %v8494_v4  ;;  %4983 = vmatpush.bf16.msrb.mxu3 %v8418_v57  ;;  %v10493_v48 = vld [vmem:[#allocation64_spill] sm:$0xff]  ;;  %v10494_v7 = vld [vmem:[#allocation47_spill] sm:$0xff]  ;;  %v10498_v13 = vld [vmem:[#allocation49_spill] sm:$0xff] }
0x10c2   :  { %7469 = vtanh.f32 %v9451_v26 }
0x10c3   :  { %4945 = vmatpush.bf16.msra.mxu2 %v8422_v63  ;;  %4958 = vmatpush.bf16.msrb.mxu0 %v10330_v44 }
0x10c4   :  { %4971 = vmatpush.bf16.msrb.mxu1 %v8539_v25  ;;  %4984 = vmatpush.bf16.msrb.mxu3 %v8426_v41 }
0x10c7   :  { %4946 = vmatpush.bf16.msra.mxu2 %v8438_v6  ;;  %4959 = vmatpush.bf16.msrb.mxu0 %v10331_v39 }
0x10c8   :  { %v7470_v54 = vpop.eup %7469  ;;  %4972 = vmatpush.bf16.msrb.mxu1 %v8554_v2  ;;  %4985 = vmatpush.bf16.msrb.mxu3 %v8440_v8 }
0x10c9   :  { %v9470_v20 = vmul.f32 %v7470_v54, %v4696_v32  ;;  %v10500_v54 = vld [vmem:[#allocation38_spill] sm:$0xff]  ;;  %v10501_v32 = vld [vmem:[#allocation68_spill] sm:$0xff] }
0x10cb   :  { %10477 = vst [vmem:[#allocation29_spill] sm:$0xff] %v9470_v20  ;;  %v4756_v23 = vpack.c.bf16 %v9470_v20, %v9470_v20  ;;  %4947 = vmatpush.bf16.msra.mxu2 %v8447_v17  ;;  %4960 = vmatpush.bf16.msrb.mxu0 %v10333_v50  ;;  %v10503_v20 = vld [vmem:[#allocation53_spill] sm:$0xff] }
0x10cc   :  { %4973 = vmatpush.bf16.msrb.mxu1 %v8568_v42  ;;  %4986 = vmatpush.bf16.msrb.mxu3 %v8451_v1 }
0x10cd   :  { %4765 = vmatmul.bf16.vlgmr.msrb.gmra.mxu2 %v4756_v23  ;;  %4778 = vmatmul.bf16.vlgmr.msra.gmra.mxu0 %v4756_v23 }
0x10ce   :  { %4791 = vmatmul.bf16.vlgmr.msra.gmra.mxu1 %v4756_v23  ;;  %4804 = vmatmul.bf16.vlgmr.msra.gmra.mxu3 %v4756_v23  ;;  %v10502_v23 = vld [vmem:[#allocation52_spill] sm:$0xff] }
0x10cf   :  { %4948 = vmatpush.bf16.msra.mxu2 %v8464_v36  ;;  %4961 = vmatpush.bf16.msrb.mxu0 %v10334_v45 }
0x10d0   :  { %4974 = vmatpush.bf16.msrb.mxu1 %v10286_v29  ;;  %4987 = vmatpush.bf16.msrb.mxu3 %v8466_v40 }
0x10d3   :  { %4949 = vmatpush.bf16.msra.mxu2 %v8473_v49  ;;  %4962 = vmatpush.bf16.msrb.mxu0 %v10335_v52 }
0x10d4   :  { %4975 = vmatpush.bf16.msrb.mxu1 %v8595_v24  ;;  %4988 = vmatpush.bf16.msrb.mxu3 %v8477_v51 }
0x10d7   :  { %4950 = vmatpush.bf16.msra.mxu2 %v8490_v61  ;;  %4963 = vmatpush.bf16.msrb.mxu0 %v10336_v0 }
0x10d8   :  { %4976 = vmatpush.bf16.msrb.mxu1 %v8607_v5  ;;  %4989 = vmatpush.bf16.msrb.mxu3 %v8492_v46 }
0x10db   :  { %4951 = vmatpush.bf16.msra.mxu2 %v8502_v16  ;;  %4964 = vmatpush.bf16.msrb.mxu0 %v10337_v56 }
0x10dc   :  { %4977 = vmatpush.bf16.msrb.mxu1 %v8617_v31  ;;  %4990 = vmatpush.bf16.msrb.mxu3 %v8506_v27 }
0x10df   :  { %4997 = vmatpush.bf16.msrb.mxu2 %v8508_v30  ;;  %5010 = vmatpush.bf16.msra.mxu0 %v10338_v12 }
0x10e0   :  { %5023 = vmatpush.bf16.msra.mxu1 %v10429_v34  ;;  %5036 = vmatpush.bf16.msra.mxu3 %v10478_v58 }
0x10e3   :  { %4998 = vmatpush.bf16.msrb.mxu2 %v10479_v18  ;;  %5011 = vmatpush.bf16.msra.mxu0 %v10480_v43  ;;  %v10516_v43 = vld [vmem:[#allocation99_spill] sm:$0xff] }
0x10e4   :  { %5024 = vmatpush.bf16.msra.mxu1 %v10481_v38  ;;  %5037 = vmatpush.bf16.msra.mxu3 %v10482_v10 }
0x10e7   :  { %4999 = vmatpush.bf16.msrb.mxu2 %v10483_v53  ;;  %5012 = vmatpush.bf16.msra.mxu0 %v10484_v21 }
0x10e8   :  { %5025 = vmatpush.bf16.msra.mxu1 %v10485_v37  ;;  %5038 = vmatpush.bf16.msra.mxu3 %v10486_v28 }
0x10eb   :  { %5000 = vmatpush.bf16.msrb.mxu2 %v10487_v3  ;;  %5013 = vmatpush.bf16.msra.mxu0 %v10488_v35 }
0x10ec   :  { %5026 = vmatpush.bf16.msra.mxu1 %v10489_v22  ;;  %5039 = vmatpush.bf16.msra.mxu3 %v10490_v33  ;;  %v10509_v33 = vld [vmem:[#allocation85_spill] sm:$0xff] }
0x10ef   :  { %5001 = vmatpush.bf16.msrb.mxu2 %v10491_v14  ;;  %5014 = vmatpush.bf16.msra.mxu0 %v10492_v62 }
0x10f0   :  { %5027 = vmatpush.bf16.msra.mxu1 %v10493_v48  ;;  %5040 = vmatpush.bf16.msra.mxu3 %v10494_v7  ;;  %v10505_v7 = vld [vmem:[#allocation72_spill] sm:$0xff] }
0x10f3   :  { %5002 = vmatpush.bf16.msrb.mxu2 %v10495_v59  ;;  %5015 = vmatpush.bf16.msra.mxu0 %v10496_v9  ;;  %v10506_v59 = vld [vmem:[#allocation54_spill] sm:$0xff] }
0x10f4   :  { %5028 = vmatpush.bf16.msra.mxu1 %v10497_v11  ;;  %5041 = vmatpush.bf16.msra.mxu3 %v10498_v13  ;;  %v10507_v11 = vld [vmem:[#allocation63_spill] sm:$0xff] }
0x10f7   :  { %5003 = vmatpush.bf16.msrb.mxu2 %v10499_v19  ;;  %5016 = vmatpush.bf16.msra.mxu0 %v10500_v54  ;;  %v10508_v54 = vld [vmem:[#allocation84_spill] sm:$0xff] }
0x10f8   :  { %5029 = vmatpush.bf16.msra.mxu1 %v10501_v32  ;;  %5042 = vmatpush.bf16.msra.mxu3 %v10502_v23 }
0x10fb   :  { %5004 = vmatpush.bf16.msrb.mxu2 %v10503_v20  ;;  %5017 = vmatpush.bf16.msra.mxu0 %v10504_v60 }
0x10fc   :  { %5030 = vmatpush.bf16.msra.mxu1 %v10505_v7  ;;  %5043 = vmatpush.bf16.msra.mxu3 %v10506_v59 }
0x113a   :  { %v4726_v9 = vpop.f32.mrf.mxu0 }
0x113b   :  { %v4810_v48 = vadd.f32 %v4726_v9, %v10507_v11  ;;  %v4739_v13 = vpop.f32.mrf.mxu1  ;;  %v10510_v9 = vld [vmem:[#allocation71_spill] sm:$0xff] }
0x113c   :  { %v10511_v11 = vld [vmem:[#allocation87_spill] sm:$0xff]  ;;  %v4811_v18 = vadd.f32 %v4739_v13, %v10516_v43 }
0x113d   :  { %v6974_v62 = vmul.f32 -1.442695, %v4810_v48  ;;  %v3329_v48 = vadd.f32 %v10511_v11, %v10510_v9  ;;  %v10515_v11 = vld [vmem:[#allocation112_spill] sm:$0xff] }
0x113f   :  { %7471 = vpow2.f32 %v6974_v62 }
0x1140   :  { %v4713_v19 = vpop.f32.mrf.mxu2 }
0x1141   :  { %v4809_v14 = vadd.f32 %v4713_v19, %v10508_v54  ;;  %v4752_v32 = vpop.f32.mrf.mxu3 }
0x1142   :  { %v4812_v23 = vadd.f32 %v4752_v32, %v10509_v33  ;;  %v4728_v22 = vpop.f32.mrf.mxu0 }
0x1143   :  { %v6973_v20 = vmul.f32 -1.442695, %v4809_v14  ;;  %v4741_v35 = vpop.f32.mrf.mxu1 }
0x1144   :  { %v6975_v60 = vmul.f32 -1.442695, %v4812_v23  ;;  %v10514_v23 = vld [vmem:[#allocation101_spill] sm:$0xff] }
0x1145   :  { %v7472_v3 = vpop.eup %7471  ;;  %7473 = vpow2.f32 %v6973_v20  ;;  %v10512_v20 = vld [vmem:[#allocation98_spill] sm:$0xff] }
0x1146   :  { %v4839_v7 = vadd.f32 1.0, %v7472_v3  ;;  %7475 = vpow2.f32 %v6975_v60  ;;  %v10513_v60 = vld [vmem:[#allocation111_spill] sm:$0xff] }
0x1147   :  { %v3288_v3 = vadd.f32 %v10513_v60, %v10512_v20 }
0x1148   :  { %7477 = vrcp.f32 %v4839_v7  ;;  %v4715_v59 = vpop.f32.mrf.mxu2  ;;  %vm4845_vm7 = vweird.f32 %v4839_v7 }
0x1149   :  { %v4754_v62 = vpop.f32.mrf.mxu3 }
0x114a   :  { %v4779_v28 = vpop.f32.mrf.mxu0  ;;  %v3411_v62 = vadd.f32 %v10515_v11, %v10514_v23  ;;  %v4851_v11 = vand.u32 2147483648, %v4839_v7  ;;  %v10554_v23 = vld [vmem:[#allocation41_spill] sm:$0xff] }
0x114b   :  { %v7474_v37 = vpop.eup %7473  ;;  %v4814_v19 = vadd.f32 %v4779_v28, %v3329_v48  ;;  %v9531_v54 = vpop.f32.mrf.mxu1 }
0x114c   :  { %v7476_v33 = vpop.eup %7475  ;;  %v4820_v22 = vadd.f32 1.0, %v7474_v37 }
0x114d   :  { %v9533_v14 = vadd.f32 1.0, %v7476_v33  ;;  %v6977_v35 = vmul.f32 -1.442695, %v4814_v19 }
0x114e   :  { %v7478_v32 = vpop.eup %7477  ;;  %7479 = vrcp.f32 %v4820_v22  ;;  %v4832_v43 = vand.u32 2147483648, %v4820_v22  ;;  %vm4826_vm11 = vweird.f32 %v4820_v22 }
0x114f   :  { %v4841_v59 = vmul.f32 %v7478_v32, %v4839_v7  ;;  %7481 = vrcp.f32 %v9533_v14  ;;  %vm4846_vm6 = vweird.f32 %v7478_v32  ;;  %vm4865_vm0 = vweird.f32 %v9533_v14 }
0x1150   :  { %v4766_v9 = vpop.f32.mrf.mxu2  ;;  %7483 = vpow2.f32 %v6977_v35  ;;  %v4849_v35 = vand.u32 2147483647, %v4839_v7  ;;  %vm9545_vm8 = vmor %vm4845_vm7, %vm4846_vm6 }
0x1151   :  { %v4842_v28 = vsub.f32 1.0, %v4841_v59  ;;  %v4813_v48 = vadd.f32 %v4766_v9, %v3288_v3  ;;  %v4805_v21 = vpop.f32.mrf.mxu3 }
0x1152   :  { %v4816_v37 = vadd.f32 %v4805_v21, %v3411_v62  ;;  %v4781_v33 = vpop.f32.mrf.mxu0  ;;  %vm4850_vm10 = vcmp.eq.f32.partialorder %v4849_v35, 8.507059e+37 }
0x1153   :  { %v4843_v53 = vmul.f32 %v7478_v32, %v4842_v28  ;;  %v6976_v19 = vmul.f32 -1.442695, %v4813_v48  ;;  %v4794_v10 = vpop.f32.mrf.mxu1  ;;  %v4830_v28 = vand.u32 2147483647, %v4820_v22 }
0x1154   :  { %v7480_v38 = vpop.eup %7479  ;;  %v6978_v60 = vmul.f32 -1.442695, %v4816_v37  ;;  %v4852_v37 = vor.u32 1.1754944e-38, %v4851_v11 }
0x1155   :  { %v9541_v20 = vpop.eup %7481  ;;  %v4844_v58 = vadd.f32 %v7478_v32, %v4843_v53  ;;  %v4822_v34 = vmul.f32 %v7480_v38, %v4820_v22  ;;  %7485 = vpow2.f32 %v6976_v19  ;;  %vm4827_vm9 = vweird.f32 %v7480_v38 }
0x1156   :  { %v4861_v9 = vmul.f32 %v9541_v20, %v9533_v14  ;;  %7487 = vpow2.f32 %v6978_v60  ;;  %v7484_v21 = vpop.eup %7483  ;;  %vm4828_vm12 = vmor %vm4826_vm11, %vm4827_vm9  ;;  %v4833_v60 = vor.u32 1.1754944e-38, %v4832_v43  ;;  %vm4831_vm13 = vcmp.eq.f32.partialorder %v4830_v28, 8.507059e+37 }
0x1157   :  { %v4823_v3 = vsub.f32 1.0, %v4822_v34  ;;  %7489 = vtanh.f32 %v4811_v18  ;;  %v9549_v13 = vadd.f32 1.0, %v7484_v21  ;;  %v4848_v59 = vsel %vm9545_vm8, %v7478_v32, %v4844_v58 }
0x1158   :  { %v4768_v53 = vpop.f32.mrf.mxu2  ;;  %v4862_v33 = vsub.f32 1.0, %v4861_v9  ;;  %v4853_v19 = vsel %vm4850_vm10, %v4852_v37, %v4848_v59  ;;  %v10519_v59 = vld [vmem:[#allocation113_spill] sm:$0xff]  ;;  %vm4866_vm14 = vweird.f32 %v9541_v20 }
0x1159   :  { %v4824_v62 = vmul.f32 %v7480_v38, %v4823_v3  ;;  %v4807_v48 = vpop.f32.mrf.mxu3  ;;  %7491 = vrcp.f32 %v9549_v13  ;;  %v4875_v9 = vmul.f32 %v4853_v19, %v9412_v15  ;;  %vm9573_vm15 = vmor %vm4865_vm0, %vm4866_vm14  ;;  %vm4908_vm3 = vweird.f32 %v9549_v13 }
0x115a   :  { %v4863_v11 = vmul.f32 %v9541_v20, %v4862_v33  ;;  %v4871_v48 = vand.u32 2147483648, %v9533_v14  ;;  %v4869_v33 = vand.u32 2147483647, %v9533_v14 }
0x115b   :  { %v7486_v34 = vpop.eup %7485  ;;  %v4825_v7 = vadd.f32 %v7480_v38, %v4824_v62 }
0x115c   :  { %v7488_v18 = vpop.eup %7487  ;;  %v4883_v21 = vadd.f32 1.0, %v7486_v34  ;;  %v4864_v28 = vadd.f32 %v9541_v20, %v4863_v11  ;;  %v4912_v11 = vand.u32 2147483647, %v9549_v13  ;;  %vm4870_vm4 = vcmp.eq.f32.partialorder %v4869_v33, 8.507059e+37 }
0x115d   :  { %v4829_v53 = vsel %vm4828_vm12, %v7480_v38, %v4825_v7  ;;  %v9554_v58 = vadd.f32 1.0, %v7488_v18  ;;  %v7490_v32 = vpop.eup %7489  ;;  %v10520_v38 = vld [vmem:[#allocation122_spill] sm:$0xff] }
0x115e   :  { %v4834_v3 = vsel %vm4831_vm13, %v4833_v60, %v4829_v53  ;;  %7493 = vrcp.f32 %v4883_v21  ;;  %v3370_v62 = vadd.f32 %v10520_v38, %v10519_v59  ;;  %v4872_v53 = vor.u32 1.1754944e-38, %v4871_v48 }
0x115f   :  { %v4876_v10 = vmul.f32 %v7490_v32, %v4834_v3  ;;  %7495 = vrcp.f32 %v9554_v58  ;;  %v7492_v22 = vpop.eup %7491  ;;  %v4914_v32 = vand.u32 2147483648, %v9549_v13  ;;  %v4868_v14 = vsel %vm9573_vm15, %v9541_v20, %v4864_v28 }
0x1160   :  { %v4904_v43 = vmul.f32 %v7492_v22, %v9549_v13  ;;  %v4815_v34 = vadd.f32 %v9531_v54, %v3370_v62  ;;  %vm4909_vm1 = vweird.f32 %v7492_v22  ;;  %v4895_v38 = vand.u32 2147483648, %v4883_v21 }
0x1161   :  { %v9559_v35 = vadd.f32 %v4876_v10, %v4875_v9  ;;  %vm9585_vm5 = vmor %vm4908_vm3, %vm4909_vm1  ;;  %v4873_v20 = vsel %vm4870_vm4, %v4872_v53, %v4868_v14  ;;  %v4915_v28 = vor.u32 1.1754944e-38, %v4914_v32  ;;  %vm4913_vm7 = vcmp.eq.f32.partialorder %v4912_v11, 8.507059e+37 }
0x1162   :  { %v4905_v37 = vsub.f32 1.0, %v4904_v43  ;;  %v4893_v43 = vand.u32 2147483647, %v4883_v21  ;;  %vm4889_vm8 = vweird.f32 %v4883_v21  ;;  %vm4928_vm12 = vweird.f32 %v9554_v58 }
0x1163   :  { %7497 = vtanh.f32 %v9559_v35 }
0x1164   :  { %v7494_v15 = vpop.eup %7493  ;;  %v4906_v19 = vmul.f32 %v7492_v22, %v4905_v37  ;;  %7499 = vtanh.f32 %v4815_v34  ;;  %vm4894_vm10 = vcmp.eq.f32.partialorder %v4893_v43, 8.507059e+37 }
0x1165   :  { %v9571_v7 = vpop.eup %7495  ;;  %v4885_v60 = vmul.f32 %v7494_v15, %v4883_v21  ;;  %vm4890_vm6 = vweird.f32 %v7494_v15 }
0x1166   :  { %v4924_v3 = vmul.f32 %v9571_v7, %v9554_v58  ;;  %v4907_v54 = vadd.f32 %v7492_v22, %v4906_v19  ;;  %vm4891_vm9 = vmor %vm4889_vm8, %vm4890_vm6  ;;  %vm4929_vm11 = vweird.f32 %v9571_v7 }
0x1167   :  { %v4886_v9 = vsub.f32 1.0, %v4885_v60  ;;  %v4896_v60 = vor.u32 1.1754944e-38, %v4895_v38  ;;  %vm4930_vm13 = vmor %vm4928_vm12, %vm4929_vm11  ;;  %v10528_v38 = vld [vmem:[#allocation37_spill] sm:$0xff] }
0x1168   :  { %v4911_v48 = vsel %vm9585_vm5, %v7492_v22, %v4907_v54  ;;  %v4925_v18 = vsub.f32 1.0, %v4924_v3 }
0x1169   :  { %v7498_v62 = vpop.eup %7497  ;;  %v4887_v37 = vmul.f32 %v7494_v15, %v4886_v9  ;;  %v4916_v33 = vsel %vm4913_vm7, %v4915_v28, %v4911_v48  ;;  %v10530_v48 = vld [vmem:[#allocation32_spill] sm:$0xff]  ;;  %v10533_v28 = vld [vmem:[#allocation42_spill] sm:$0xff] }
0x116a   :  { %v9591_v19 = vmul.f32 %v7498_v62, %v4873_v20  ;;  %v7500_v10 = vpop.eup %7499  ;;  %v4926_v54 = vmul.f32 %v9571_v7, %v4925_v18  ;;  %v4938_v53 = vmul.f32 %v4916_v33, %v9451_v26  ;;  %v4932_v26 = vand.u32 2147483647, %v9554_v58  ;;  %v10529_v62 = vld [vmem:[#allocation39_spill] sm:$0xff]  ;;  %v10532_v20 = vld [vmem:[#allocation40_spill] sm:$0xff]  ;;  %v10534_v18 = vld [vmem:[#allocation33_spill] sm:$0xff] }
0x116b   :  { %v4888_v13 = vadd.f32 %v7494_v15, %v4887_v37  ;;  %v10531_v37 = vld [vmem:[#allocation57_spill] sm:$0xff]  ;;  %v10536_v33 = vld [vmem:[#allocation43_spill] sm:$0xff] }
0x116c   :  { %10525 = vst [vmem:[#allocation30_spill] sm:$0xff] %v9591_v19  ;;  %v4943_v34 = vpack.c.bf16 %v9591_v19, %v9591_v19  ;;  %vm4933_vm14 = vcmp.eq.f32.partialorder %v4932_v26, 8.507059e+37  ;;  %v10546_v26 = vld [vmem:[#allocation36_spill] sm:$0xff]  ;;  %v10553_v19 = vld [vmem:[#allocation53_spill] sm:$0xff] }
0x116d   :  { %v4892_v59 = vsel %vm4891_vm9, %v7494_v15, %v4888_v13  ;;  %v4934_v15 = vand.u32 2147483648, %v9554_v58  ;;  %v10535_v13 = vld [vmem:[#allocation60_spill] sm:$0xff] }
0x116e   :  { %v4897_v22 = vsel %vm4894_vm10, %v4896_v60, %v4892_v59  ;;  %4952 = vmatmul.bf16.vlgmr.msra.gmra.mxu2 %v4943_v34  ;;  %4965 = vmatmul.bf16.vlgmr.msrb.gmra.mxu0 %v4943_v34  ;;  %v4927_v59 = vadd.f32 %v9571_v7, %v4926_v54  ;;  %v10537_v60 = vld [vmem:[#allocation44_spill] sm:$0xff]  ;;  %v10541_v54 = vld [vmem:[#allocation46_spill] sm:$0xff] }
0x116f   :  { %v4939_v32 = vmul.f32 %v7500_v10, %v4897_v22  ;;  %4978 = vmatmul.bf16.vlgmr.msrb.gmra.mxu1 %v4943_v34  ;;  %4991 = vmatmul.bf16.vlgmr.msrb.gmra.mxu3 %v4943_v34  ;;  %v4935_v14 = vor.u32 1.1754944e-38, %v4934_v15  ;;  %v10538_v34 = vld [vmem:[#allocation34_spill] sm:$0xff]  ;;  %v10539_v10 = vld [vmem:[#allocation61_spill] sm:$0xff]  ;;  %v10545_v15 = vld [vmem:[#allocation48_spill] sm:$0xff] }
0x1170   :  { %5184 = vmatpush.bf16.msra.mxu2 %v8416_v55  ;;  %5197 = vmatpush.bf16.msrb.mxu0 %v10329_v47  ;;  %v4931_v3 = vsel %vm4930_vm13, %v9571_v7, %v4927_v59  ;;  %v10527_v7 = vld [vmem:[#allocation55_spill] sm:$0xff]  ;;  %v10540_v22 = vld [vmem:[#allocation45_spill] sm:$0xff] }
0x1171   :  { %v9599_v21 = vadd.f32 %v4939_v32, %v4938_v53  ;;  %5210 = vmatpush.bf16.msrb.mxu1 %v8494_v4  ;;  %5223 = vmatpush.bf16.msrb.mxu3 %v8418_v57  ;;  %v4936_v9 = vsel %vm4933_vm14, %v4935_v14, %v4931_v3  ;;  %v10542_v53 = vld [vmem:[#allocation35_spill] sm:$0xff]  ;;  %v10543_v32 = vld [vmem:[#allocation64_spill] sm:$0xff]  ;;  %v10547_v3 = vld [vmem:[#allocation65_spill] sm:$0xff] }
0x1172   :  { %v10544_v59 = vld [vmem:[#allocation47_spill] sm:$0xff]  ;;  %v10548_v14 = vld [vmem:[#allocation49_spill] sm:$0xff] }
0x1173   :  { %7501 = vtanh.f32 %v9599_v21 }
0x1174   :  { %5185 = vmatpush.bf16.msra.mxu2 %v8422_v63  ;;  %5198 = vmatpush.bf16.msrb.mxu0 %v10330_v44 }
0x1175   :  { %5211 = vmatpush.bf16.msrb.mxu1 %v8539_v25  ;;  %5224 = vmatpush.bf16.msrb.mxu3 %v8426_v41 }
0x1178   :  { %5186 = vmatpush.bf16.msra.mxu2 %v8438_v6  ;;  %5199 = vmatpush.bf16.msrb.mxu0 %v10331_v39 }
0x1179   :  { %v7502_v11 = vpop.eup %7501  ;;  %5212 = vmatpush.bf16.msrb.mxu1 %v8554_v2  ;;  %5225 = vmatpush.bf16.msrb.mxu3 %v8440_v8 }
0x117a   :  { %v9618_v58 = vmul.f32 %v7502_v11, %v4936_v9  ;;  %v10549_v11 = vld [vmem:[#allocation51_spill] sm:$0xff]  ;;  %v10550_v9 = vld [vmem:[#allocation38_spill] sm:$0xff] }
0x117c   :  { %10526 = vst [vmem:[#allocation31_spill] sm:$0xff] %v9618_v58  ;;  %v4996_v43 = vpack.c.bf16 %v9618_v58, %v9618_v58  ;;  %5187 = vmatpush.bf16.msra.mxu2 %v8447_v17  ;;  %5200 = vmatpush.bf16.msrb.mxu0 %v10333_v50  ;;  %v10552_v58 = vld [vmem:[#allocation52_spill] sm:$0xff] }
0x117d   :  { %5213 = vmatpush.bf16.msrb.mxu1 %v8568_v42  ;;  %5226 = vmatpush.bf16.msrb.mxu3 %v8451_v1 }
0x117e   :  { %5005 = vmatmul.bf16.vlgmr.msrb.gmra.mxu2 %v4996_v43  ;;  %5018 = vmatmul.bf16.vlgmr.msra.gmra.mxu0 %v4996_v43 }
0x117f   :  { %5031 = vmatmul.bf16.vlgmr.msra.gmra.mxu1 %v4996_v43  ;;  %5044 = vmatmul.bf16.vlgmr.msra.gmra.mxu3 %v4996_v43  ;;  %v10551_v43 = vld [vmem:[#allocation68_spill] sm:$0xff] }
0x1180   :  { %5188 = vmatpush.bf16.msra.mxu2 %v8464_v36  ;;  %5201 = vmatpush.bf16.msrb.mxu0 %v10334_v45 }
0x1181   :  { %5214 = vmatpush.bf16.msrb.mxu1 %v10286_v29  ;;  %5227 = vmatpush.bf16.msrb.mxu3 %v8466_v40 }
0x1184   :  { %5189 = vmatpush.bf16.msra.mxu2 %v8473_v49  ;;  %5202 = vmatpush.bf16.msrb.mxu0 %v10335_v52 }
0x1185   :  { %5215 = vmatpush.bf16.msrb.mxu1 %v8595_v24  ;;  %5228 = vmatpush.bf16.msrb.mxu3 %v8477_v51 }
0x1188   :  { %5190 = vmatpush.bf16.msra.mxu2 %v8490_v61  ;;  %5203 = vmatpush.bf16.msrb.mxu0 %v10336_v0 }
0x1189   :  { %5216 = vmatpush.bf16.msrb.mxu1 %v8607_v5  ;;  %5229 = vmatpush.bf16.msrb.mxu3 %v8492_v46 }
0x118c   :  { %5191 = vmatpush.bf16.msra.mxu2 %v8502_v16  ;;  %5204 = vmatpush.bf16.msrb.mxu0 %v10337_v56 }
0x118d   :  { %5217 = vmatpush.bf16.msrb.mxu1 %v8617_v31  ;;  %5230 = vmatpush.bf16.msrb.mxu3 %v8506_v27 }
0x1190   :  { %5237 = vmatpush.bf16.msrb.mxu2 %v8508_v30  ;;  %5250 = vmatpush.bf16.msra.mxu0 %v10338_v12 }
0x1191   :  { %5263 = vmatpush.bf16.msra.mxu1 %v10527_v7  ;;  %5276 = vmatpush.bf16.msra.mxu3 %v10528_v38 }
0x1194   :  { %5238 = vmatpush.bf16.msrb.mxu2 %v10529_v62  ;;  %5251 = vmatpush.bf16.msra.mxu0 %v10530_v48 }
0x1195   :  { %5264 = vmatpush.bf16.msra.mxu1 %v10531_v37  ;;  %5277 = vmatpush.bf16.msra.mxu3 %v10532_v20 }
0x1198   :  { %5239 = vmatpush.bf16.msrb.mxu2 %v10533_v28  ;;  %5252 = vmatpush.bf16.msra.mxu0 %v10534_v18 }
0x1199   :  { %5265 = vmatpush.bf16.msra.mxu1 %v10535_v13  ;;  %5278 = vmatpush.bf16.msra.mxu3 %v10536_v33 }
0x119c   :  { %5240 = vmatpush.bf16.msrb.mxu2 %v10537_v60  ;;  %5253 = vmatpush.bf16.msra.mxu0 %v10538_v34 }
0x119d   :  { %5266 = vmatpush.bf16.msra.mxu1 %v10539_v10  ;;  %5279 = vmatpush.bf16.msra.mxu3 %v10540_v22  ;;  %v10560_v22 = vld [vmem:[#allocation88_spill] sm:$0xff]  ;;  %v10562_v10 = vld [vmem:[#allocation89_spill] sm:$0xff] }
0x11a0   :  { %5241 = vmatpush.bf16.msrb.mxu2 %v10541_v54  ;;  %5254 = vmatpush.bf16.msra.mxu0 %v10542_v53 }
0x11a1   :  { %5267 = vmatpush.bf16.msra.mxu1 %v10543_v32  ;;  %5280 = vmatpush.bf16.msra.mxu3 %v10544_v59  ;;  %v10555_v59 = vld [vmem:[#allocation72_spill] sm:$0xff] }
0x11a4   :  { %5242 = vmatpush.bf16.msrb.mxu2 %v10545_v15  ;;  %5255 = vmatpush.bf16.msra.mxu0 %v10546_v26  ;;  %v10556_v15 = vld [vmem:[#allocation54_spill] sm:$0xff]  ;;  %v10557_v26 = vld [vmem:[#allocation56_spill] sm:$0xff] }
0x11a5   :  { %5268 = vmatpush.bf16.msra.mxu1 %v10547_v3  ;;  %5281 = vmatpush.bf16.msra.mxu3 %v10548_v14  ;;  %v10558_v3 = vld [vmem:[#allocation67_spill] sm:$0xff] }
0x11a6   :  { %v3171_v32 = vadd.f32 %v10558_v3, %v10557_v26 }
0x11a8   :  { %5243 = vmatpush.bf16.msrb.mxu2 %v10549_v11  ;;  %5256 = vmatpush.bf16.msra.mxu0 %v10550_v9  ;;  %v10559_v9 = vld [vmem:[#allocation75_spill] sm:$0xff] }
0x11a9   :  { %5269 = vmatpush.bf16.msra.mxu1 %v10551_v43  ;;  %5282 = vmatpush.bf16.msra.mxu3 %v10552_v58  ;;  %v3130_v43 = vadd.f32 %v10560_v22, %v10559_v9  ;;  %v10561_v58 = vld [vmem:[#allocation76_spill] sm:$0xff]  ;;  %v10563_v9 = vld [vmem:[#allocation83_spill] sm:$0xff] }
0x11ac   :  { %5244 = vmatpush.bf16.msrb.mxu2 %v10553_v19  ;;  %5257 = vmatpush.bf16.msra.mxu0 %v10554_v23  ;;  %v3253_v19 = vadd.f32 %v10562_v10, %v10561_v58 }
0x11ad   :  { %5270 = vmatpush.bf16.msra.mxu1 %v10555_v59  ;;  %5283 = vmatpush.bf16.msra.mxu3 %v10556_v15 }
0x11eb   :  { %v4966_v14 = vpop.f32.mrf.mxu0 }
0x11ec   :  { %v5050_v53 = vadd.f32 %v4966_v14, %v3171_v32  ;;  %v4979_v11 = vpop.f32.mrf.mxu1 }
0x11ee   :  { %v6980_v54 = vmul.f32 -1.442695, %v5050_v53 }
0x11f0   :  { %7503 = vpow2.f32 %v6980_v54 }
0x11f1   :  { %v4953_v34 = vpop.f32.mrf.mxu2 }
0x11f2   :  { %v5049_v23 = vadd.f32 %v4953_v34, %v3130_v43  ;;  %v4992_v60 = vpop.f32.mrf.mxu3 }
0x11f3   :  { %v5052_v59 = vadd.f32 %v4992_v60, %v3253_v19  ;;  %v4968_v33 = vpop.f32.mrf.mxu0 }
0x11f4   :  { %v6979_v15 = vmul.f32 -1.442695, %v5049_v23  ;;  %v4981_v13 = vpop.f32.mrf.mxu1 }
0x11f5   :  { %v6981_v18 = vmul.f32 -1.442695, %v5052_v59  ;;  %v10564_v59 = vld [vmem:[#allocation108_spill] sm:$0xff] }
0x11f6   :  { %v7504_v3 = vpop.eup %7503  ;;  %7505 = vpow2.f32 %v6979_v15 }
0x11f7   :  { %v5079_v32 = vadd.f32 1.0, %v7504_v3  ;;  %7507 = vpow2.f32 %v6981_v18 }
0x11f9   :  { %7509 = vrcp.f32 %v5079_v32  ;;  %v4955_v53 = vpop.f32.mrf.mxu2  ;;  %vm5085_vm15 = vweird.f32 %v5079_v32 }
0x11fa   :  { %v4994_v14 = vpop.f32.mrf.mxu3  ;;  %v10565_v53 = vld [vmem:[#allocation90_spill] sm:$0xff] }
0x11fb   :  { %v5019_v22 = vpop.f32.mrf.mxu0 }
0x11fc   :  { %v7506_v54 = vpop.eup %7505  ;;  %v5054_v26 = vadd.f32 %v5019_v22, %v10563_v9  ;;  %v9681_v10 = vpop.f32.mrf.mxu1  ;;  %v10566_v9 = vld [vmem:[#allocation104_spill] sm:$0xff]  ;;  %v10567_v22 = vld [vmem:[#allocation109_spill] sm:$0xff] }
0x11fd   :  { %v7508_v34 = vpop.eup %7507  ;;  %v5060_v43 = vadd.f32 1.0, %v7506_v54  ;;  %v3212_v14 = vadd.f32 %v10566_v9, %v10565_v53 }
0x11fe   :  { %v9683_v19 = vadd.f32 1.0, %v7508_v34  ;;  %v6983_v23 = vmul.f32 -1.442695, %v5054_v26 }
0x11ff   :  { %v7510_v13 = vpop.eup %7509  ;;  %7511 = vrcp.f32 %v5060_v43  ;;  %v5051_v37 = vadd.f32 %v4979_v11, %v3212_v14  ;;  %vm5066_vm5 = vweird.f32 %v5060_v43 }
0x1200   :  { %v5081_v33 = vmul.f32 %v7510_v13, %v5079_v32  ;;  %7513 = vrcp.f32 %v9683_v19  ;;  %vm5086_vm0 = vweird.f32 %v7510_v13  ;;  %vm5105_vm9 = vweird.f32 %v9683_v19 }
0x1201   :  { %v5006_v18 = vpop.f32.mrf.mxu2  ;;  %7515 = vpow2.f32 %v6983_v23  ;;  %vm9694_vm1 = vmor %vm5085_vm15, %vm5086_vm0 }
0x1202   :  { %v5082_v60 = vsub.f32 1.0, %v5081_v33  ;;  %v5053_v15 = vadd.f32 %v5006_v18, %v10564_v59  ;;  %v5045_v3 = vpop.f32.mrf.mxu3  ;;  %v5091_v33 = vand.u32 2147483648, %v5079_v32 }
0x1203   :  { %v5056_v58 = vadd.f32 %v5045_v3, %v10567_v22  ;;  %v5021_v54 = vpop.f32.mrf.mxu0  ;;  %v5089_v3 = vand.u32 2147483647, %v5079_v32  ;;  %v5070_v22 = vand.u32 2147483647, %v5060_v43 }
0x1204   :  { %v5083_v34 = vmul.f32 %v7510_v13, %v5082_v60  ;;  %v6982_v28 = vmul.f32 -1.442695, %v5053_v15  ;;  %v5034_v26 = vpop.f32.mrf.mxu1  ;;  %v5092_v54 = vor.u32 1.1754944e-38, %v5091_v33 }
0x1205   :  { %v7512_v20 = vpop.eup %7511  ;;  %v6984_v48 = vmul.f32 -1.442695, %v5056_v58  ;;  %v5072_v58 = vand.u32 2147483648, %v5060_v43  ;;  %vm5090_vm4 = vcmp.eq.f32.partialorder %v5089_v3, 8.507059e+37  ;;  %vm5071_vm7 = vcmp.eq.f32.partialorder %v5070_v22, 8.507059e+37  ;;  %v10570_v22 = vld [vmem:[#allocation120_spill] sm:$0xff] }
0x1206   :  { %v9690_v62 = vpop.eup %7513  ;;  %v5084_v38 = vadd.f32 %v7510_v13, %v5083_v34  ;;  %v5062_v23 = vmul.f32 %v7512_v20, %v5060_v43  ;;  %7517 = vpow2.f32 %v6982_v28  ;;  %vm5067_vm3 = vweird.f32 %v7512_v20 }
0x1207   :  { %v5101_v18 = vmul.f32 %v9690_v62, %v9683_v19  ;;  %7519 = vpow2.f32 %v6984_v48  ;;  %v7516_v59 = vpop.eup %7515  ;;  %vm5068_vm6 = vmor %vm5066_vm5, %vm5067_vm3  ;;  %vm5106_vm8 = vweird.f32 %v9690_v62 }
0x1208   :  { %v5063_v60 = vsub.f32 1.0, %v5062_v23  ;;  %7521 = vtanh.f32 %v5051_v37  ;;  %v9698_v11 = vadd.f32 1.0, %v7516_v59  ;;  %v5088_v28 = vsel %vm9694_vm1, %v7510_v13, %v5084_v38  ;;  %vm9721_vm10 = vmor %vm5105_vm9, %vm5106_vm8 }
0x1209   :  { %v5008_v9 = vpop.f32.mrf.mxu2  ;;  %v5102_v34 = vsub.f32 1.0, %v5101_v18  ;;  %v5093_v23 = vsel %vm5090_vm4, %v5092_v54, %v5088_v28  ;;  %v5073_v59 = vor.u32 1.1754944e-38, %v5072_v58  ;;  %v5111_v28 = vand.u32 2147483648, %v9683_v19 }
0x120a   :  { %v5064_v14 = vmul.f32 %v7512_v20, %v5063_v60  ;;  %v5047_v48 = vpop.f32.mrf.mxu3  ;;  %7523 = vrcp.f32 %v9698_v11  ;;  %v5115_v18 = vmul.f32 %v5093_v23, %v9559_v35  ;;  %v5109_v35 = vand.u32 2147483647, %v9683_v19 }
0x120b   :  { %v5103_v33 = vmul.f32 %v9690_v62, %v5102_v34  ;;  %v5055_v48 = vadd.f32 %v9681_v10, %v10570_v22  ;;  %v5154_v23 = vand.u32 2147483648, %v9698_v11  ;;  %vm5148_vm12 = vweird.f32 %v9698_v11 }
0x120c   :  { %v7518_v32 = vpop.eup %7517  ;;  %v5065_v26 = vadd.f32 %v7512_v20, %v5064_v14  ;;  %vm5110_vm13 = vcmp.eq.f32.partialorder %v5109_v35, 8.507059e+37 }
0x120d   :  { %v7520_v37 = vpop.eup %7519  ;;  %v5123_v9 = vadd.f32 1.0, %v7518_v32 }
0x120e   :  { %v5069_v53 = vsel %vm5068_vm6, %v7512_v20, %v5065_v26  ;;  %v9703_v38 = vadd.f32 1.0, %v7520_v37  ;;  %v7522_v13 = vpop.eup %7521  ;;  %v5104_v20 = vadd.f32 %v9690_v62, %v5103_v33  ;;  %v5112_v37 = vor.u32 1.1754944e-38, %v5111_v28 }
0x120f   :  { %v5074_v60 = vsel %vm5071_vm7, %v5073_v59, %v5069_v53  ;;  %7525 = vrcp.f32 %v5123_v9  ;;  %vm5129_vm1 = vweird.f32 %v5123_v9 }
0x1210   :  { %v5116_v15 = vmul.f32 %v7522_v13, %v5074_v60  ;;  %7527 = vrcp.f32 %v9703_v38  ;;  %v7524_v43 = vpop.eup %7523  ;;  %v5108_v19 = vsel %vm9721_vm10, %v9690_v62, %v5104_v20  ;;  %v5152_v13 = vand.u32 2147483647, %v9698_v11 }
0x1211   :  { %v5144_v58 = vmul.f32 %v7524_v43, %v9698_v11  ;;  %vm5149_vm11 = vweird.f32 %v7524_v43  ;;  %v5113_v62 = vsel %vm5110_vm13, %v5112_v37, %v5108_v19  ;;  %v5155_v20 = vor.u32 1.1754944e-38, %v5154_v23 }
0x1212   :  { %v9708_v3 = vadd.f32 %v5116_v15, %v5115_v18  ;;  %vm9733_vm14 = vmor %vm5148_vm12, %vm5149_vm11  ;;  %v5133_v18 = vand.u32 2147483647, %v5123_v9  ;;  %v5135_v15 = vand.u32 2147483648, %v5123_v9  ;;  %vm5153_vm15 = vcmp.eq.f32.partialorder %v5152_v13, 8.507059e+37 }
0x1213   :  { %v5145_v53 = vsub.f32 1.0, %v5144_v58  ;;  %vm5168_vm6 = vweird.f32 %v9703_v38 }
0x1214   :  { %7529 = vtanh.f32 %v9708_v3  ;;  %vm5134_vm4 = vcmp.eq.f32.partialorder %v5133_v18, 8.507059e+37 }
0x1215   :  { %v7526_v14 = vpop.eup %7525  ;;  %v5146_v32 = vmul.f32 %v7524_v43, %v5145_v53  ;;  %7531 = vtanh.f32 %v5055_v48 }
0x1216   :  { %v9719_v54 = vpop.eup %7527  ;;  %v5125_v26 = vmul.f32 %v7526_v14, %v5123_v9  ;;  %vm5130_vm0 = vweird.f32 %v7526_v14 }
0x1217   :  { %v5164_v59 = vmul.f32 %v9719_v54, %v9703_v38  ;;  %v5147_v10 = vadd.f32 %v7524_v43, %v5146_v32  ;;  %vm5131_vm3 = vmor %vm5129_vm1, %vm5130_vm0  ;;  %v5136_v32 = vor.u32 1.1754944e-38, %v5135_v15  ;;  %vm5169_vm5 = vweird.f32 %v9719_v54  ;;  %v10605_v15 = vld [vmem:[#allocation93_spill] sm:$0xff] }
0x1218   :  { %v5126_v60 = vsub.f32 1.0, %v5125_v26  ;;  %vm5170_vm7 = vmor %vm5168_vm6, %vm5169_vm5 }
0x1219   :  { %v5151_v28 = vsel %vm9733_vm14, %v7524_v43, %v5147_v10  ;;  %v5165_v22 = vsub.f32 1.0, %v5164_v59  ;;  %v5174_v59 = vand.u32 2147483648, %v9703_v38 }
0x121a   :  { %v7530_v58 = vpop.eup %7529  ;;  %v5127_v53 = vmul.f32 %v7526_v14, %v5126_v60  ;;  %v5156_v35 = vsel %vm5153_vm15, %v5155_v20, %v5151_v28 }
0x121b   :  { %v9739_v34 = vmul.f32 %v7530_v58, %v5113_v62  ;;  %v7532_v33 = vpop.eup %7531  ;;  %v5166_v10 = vmul.f32 %v9719_v54, %v5165_v22  ;;  %v5178_v37 = vmul.f32 %v5156_v35, %v9599_v21 }
0x121c   :  { %v5128_v11 = vadd.f32 %v7526_v14, %v5127_v53  ;;  %v10606_v53 = vld [vmem:[#allocation50_spill] sm:$0xff] }
0x121d   :  { %v5183_v48 = vpack.c.bf16 %v9739_v34, %v9739_v34 }
0x121e   :  { %v5132_v26 = vsel %vm5131_vm3, %v7526_v14, %v5128_v11  ;;  %v5167_v14 = vadd.f32 %v9719_v54, %v5166_v10 }
0x121f   :  { %v5137_v43 = vsel %vm5134_vm4, %v5136_v32, %v5132_v26  ;;  %5192 = vmatmul.bf16.vlgmr.msra.gmra.mxu2 %v5183_v48  ;;  %5205 = vmatmul.bf16.vlgmr.msrb.gmra.mxu0 %v5183_v48 }
0x1220   :  { %v5179_v23 = vmul.f32 %v7532_v33, %v5137_v43  ;;  %5218 = vmatmul.bf16.vlgmr.msrb.gmra.mxu1 %v5183_v48  ;;  %5231 = vmatmul.bf16.vlgmr.msrb.gmra.mxu3 %v5183_v48  ;;  %v10607_v33 = vld [vmem:[#allocation71_spill] sm:$0xff]  ;;  %v10608_v43 = vld [vmem:[#allocation80_spill] sm:$0xff] }
0x1221   :  { %5424 = vmatpush.bf16.msra.mxu2 %v8416_v55  ;;  %5437 = vmatpush.bf16.msrb.mxu0 %v10329_v47  ;;  %v5172_v55 = vand.u32 2147483647, %v9703_v38  ;;  %v3323_v10 = vadd.f32 %v10608_v43, %v10607_v33 }
0x1222   :  { %v9747_v9 = vadd.f32 %v5179_v23, %v5178_v37  ;;  %5450 = vmatpush.bf16.msrb.mxu1 %v8494_v4  ;;  %5463 = vmatpush.bf16.msrb.mxu3 %v8418_v57  ;;  %v5171_v57 = vsel %vm5170_vm7, %v9719_v54, %v5167_v14  ;;  %v5175_v4 = vor.u32 1.1754944e-38, %v5174_v59  ;;  %v10604_v54 = vld [vmem:[#allocation73_spill] sm:$0xff] }
0x1223   :  { %vm5173_vm8 = vcmp.eq.f32.partialorder %v5172_v55, 8.507059e+37 }
0x1224   :  { %7533 = vtanh.f32 %v9747_v9  ;;  %v5176_v21 = vsel %vm5173_vm8, %v5175_v4, %v5171_v57 }
0x1225   :  { %5425 = vmatpush.bf16.msra.mxu2 %v8422_v63  ;;  %5438 = vmatpush.bf16.msrb.mxu0 %v10330_v44  ;;  %v10595_v44 = vld [vmem:[#allocation49_spill] sm:$0xff] }
0x1226   :  { %5451 = vmatpush.bf16.msrb.mxu1 %v8539_v25  ;;  %5464 = vmatpush.bf16.msrb.mxu3 %v8426_v41  ;;  %v10575_v41 = vld [vmem:[#allocation37_spill] sm:$0xff] }
0x1229   :  { %5426 = vmatpush.bf16.msra.mxu2 %v8438_v6  ;;  %5439 = vmatpush.bf16.msrb.mxu0 %v10331_v39  ;;  %v10576_v6 = vld [vmem:[#allocation39_spill] sm:$0xff] }
0x122a   :  { %v7534_v47 = vpop.eup %7533  ;;  %5452 = vmatpush.bf16.msrb.mxu1 %v8554_v2  ;;  %5465 = vmatpush.bf16.msrb.mxu3 %v8440_v8  ;;  %v10577_v8 = vld [vmem:[#allocation32_spill] sm:$0xff]  ;;  %v10589_v2 = vld [vmem:[#allocation35_spill] sm:$0xff] }
0x122b   :  { %v9766_v63 = vmul.f32 %v7534_v47, %v5176_v21  ;;  %v10596_v39 = vld [vmem:[#allocation51_spill] sm:$0xff] }
0x122d   :  { %v5236_v25 = vpack.c.bf16 %v9766_v63, %v9766_v63  ;;  %5427 = vmatpush.bf16.msra.mxu2 %v8447_v17  ;;  %5440 = vmatpush.bf16.msrb.mxu0 %v10333_v50  ;;  %v10578_v17 = vld [vmem:[#allocation57_spill] sm:$0xff]  ;;  %v10597_v50 = vld [vmem:[#allocation38_spill] sm:$0xff] }
0x122e   :  { %5453 = vmatpush.bf16.msrb.mxu1 %v8568_v42  ;;  %5466 = vmatpush.bf16.msrb.mxu3 %v8451_v1  ;;  %v10579_v1 = vld [vmem:[#allocation40_spill] sm:$0xff]  ;;  %v10591_v42 = vld [vmem:[#allocation47_spill] sm:$0xff] }
0x122f   :  { %5245 = vmatmul.bf16.vlgmr.msrb.gmra.mxu2 %v5236_v25  ;;  %5258 = vmatmul.bf16.vlgmr.msra.gmra.mxu0 %v5236_v25 }
0x1230   :  { %5271 = vmatmul.bf16.vlgmr.msra.gmra.mxu1 %v5236_v25  ;;  %5284 = vmatmul.bf16.vlgmr.msra.gmra.mxu3 %v5236_v25 }
0x1231   :  { %5428 = vmatpush.bf16.msra.mxu2 %v8464_v36  ;;  %5441 = vmatpush.bf16.msrb.mxu0 %v10334_v45  ;;  %v10580_v36 = vld [vmem:[#allocation42_spill] sm:$0xff]  ;;  %v10598_v45 = vld [vmem:[#allocation68_spill] sm:$0xff] }
0x1232   :  { %5454 = vmatpush.bf16.msrb.mxu1 %v10286_v29  ;;  %5467 = vmatpush.bf16.msrb.mxu3 %v8466_v40  ;;  %v10581_v40 = vld [vmem:[#allocation33_spill] sm:$0xff]  ;;  %v10590_v29 = vld [vmem:[#allocation64_spill] sm:$0xff] }
0x1235   :  { %5429 = vmatpush.bf16.msra.mxu2 %v8473_v49  ;;  %5442 = vmatpush.bf16.msrb.mxu0 %v10335_v52  ;;  %v10582_v49 = vld [vmem:[#allocation60_spill] sm:$0xff] }
0x1236   :  { %5455 = vmatpush.bf16.msrb.mxu1 %v8595_v24  ;;  %5468 = vmatpush.bf16.msrb.mxu3 %v8477_v51  ;;  %v10583_v51 = vld [vmem:[#allocation43_spill] sm:$0xff]  ;;  %v10592_v24 = vld [vmem:[#allocation48_spill] sm:$0xff] }
0x1237   :  { %v10599_v52 = vld [vmem:[#allocation52_spill] sm:$0xff] }
0x1239   :  { %5430 = vmatpush.bf16.msra.mxu2 %v8490_v61  ;;  %5443 = vmatpush.bf16.msrb.mxu0 %v10336_v0  ;;  %v10584_v61 = vld [vmem:[#allocation44_spill] sm:$0xff]  ;;  %v10600_v0 = vld [vmem:[#allocation53_spill] sm:$0xff] }
0x123a   :  { %5456 = vmatpush.bf16.msrb.mxu1 %v8607_v5  ;;  %5469 = vmatpush.bf16.msrb.mxu3 %v8492_v46  ;;  %v10585_v46 = vld [vmem:[#allocation34_spill] sm:$0xff]  ;;  %v10593_v5 = vld [vmem:[#allocation36_spill] sm:$0xff] }
0x123d   :  { %5431 = vmatpush.bf16.msra.mxu2 %v8502_v16  ;;  %5444 = vmatpush.bf16.msrb.mxu0 %v10337_v56  ;;  %v10586_v16 = vld [vmem:[#allocation61_spill] sm:$0xff] }
0x123e   :  { %5457 = vmatpush.bf16.msrb.mxu1 %v8617_v31  ;;  %5470 = vmatpush.bf16.msrb.mxu3 %v8506_v27  ;;  %v10587_v27 = vld [vmem:[#allocation45_spill] sm:$0xff] }
0x123f   :  { %v10594_v31 = vld [vmem:[#allocation65_spill] sm:$0xff] }
0x1240   :  { %v10601_v56 = vld [vmem:[#allocation41_spill] sm:$0xff] }
0x1241   :  { %5477 = vmatpush.bf16.msrb.mxu2 %v8508_v30  ;;  %5490 = vmatpush.bf16.msra.mxu0 %v10338_v12  ;;  %v10588_v30 = vld [vmem:[#allocation46_spill] sm:$0xff]  ;;  %v10602_v12 = vld [vmem:[#allocation72_spill] sm:$0xff] }
0x1242   :  { %5503 = vmatpush.bf16.msra.mxu1 %v10527_v7  ;;  %5516 = vmatpush.bf16.msra.mxu3 %v10575_v41  ;;  %v10603_v7 = vld [vmem:[#allocation54_spill] sm:$0xff] }
0x1243   :  { %v10609_v41 = vld [vmem:[#allocation98_spill] sm:$0xff] }
0x1245   :  { %5478 = vmatpush.bf16.msrb.mxu2 %v10576_v6  ;;  %5491 = vmatpush.bf16.msra.mxu0 %v10577_v8  ;;  %v10610_v6 = vld [vmem:[#allocation105_spill] sm:$0xff] }
0x1246   :  { %5504 = vmatpush.bf16.msra.mxu1 %v10578_v17  ;;  %5517 = vmatpush.bf16.msra.mxu3 %v10579_v1  ;;  %v3282_v8 = vadd.f32 %v10610_v6, %v10609_v41  ;;  %v10611_v1 = vld [vmem:[#allocation101_spill] sm:$0xff] }
0x1249   :  { %5479 = vmatpush.bf16.msrb.mxu2 %v10580_v36  ;;  %5492 = vmatpush.bf16.msra.mxu0 %v10581_v40  ;;  %v10612_v36 = vld [vmem:[#allocation106_spill] sm:$0xff] }
0x124a   :  { %5505 = vmatpush.bf16.msra.mxu1 %v10582_v49  ;;  %5518 = vmatpush.bf16.msra.mxu3 %v10583_v51  ;;  %v3405_v40 = vadd.f32 %v10612_v36, %v10611_v1  ;;  %v10627_v36 = vld [vmem:[#allocation56_spill] sm:$0xff] }
0x124d   :  { %5480 = vmatpush.bf16.msrb.mxu2 %v10584_v61  ;;  %5493 = vmatpush.bf16.msra.mxu0 %v10585_v46 }
0x124e   :  { %5506 = vmatpush.bf16.msra.mxu1 %v10586_v16  ;;  %5519 = vmatpush.bf16.msra.mxu3 %v10587_v27 }
0x1251   :  { %5481 = vmatpush.bf16.msrb.mxu2 %v10588_v30  ;;  %5494 = vmatpush.bf16.msra.mxu0 %v10589_v2 }
0x1252   :  { %5507 = vmatpush.bf16.msra.mxu1 %v10590_v29  ;;  %5520 = vmatpush.bf16.msra.mxu3 %v10591_v42 }
0x1255   :  { %5482 = vmatpush.bf16.msrb.mxu2 %v10592_v24  ;;  %5495 = vmatpush.bf16.msra.mxu0 %v10593_v5  ;;  %v10613_v24 = vld [vmem:[#allocation107_spill] sm:$0xff] }
0x1256   :  { %5508 = vmatpush.bf16.msra.mxu1 %v10594_v31  ;;  %5521 = vmatpush.bf16.msra.mxu3 %v10595_v44 }
0x1259   :  { %5483 = vmatpush.bf16.msrb.mxu2 %v10596_v39  ;;  %5496 = vmatpush.bf16.msra.mxu0 %v10597_v50 }
0x125a   :  { %5509 = vmatpush.bf16.msra.mxu1 %v10598_v45  ;;  %5522 = vmatpush.bf16.msra.mxu3 %v10599_v52 }
0x125d   :  { %5484 = vmatpush.bf16.msrb.mxu2 %v10600_v0  ;;  %5497 = vmatpush.bf16.msra.mxu0 %v10601_v56 }
0x125e   :  { %5510 = vmatpush.bf16.msra.mxu1 %v10602_v12  ;;  %5523 = vmatpush.bf16.msra.mxu3 %v10603_v7  ;;  %v5678_v7 = vld [vmem:[%s7793_s4 + $0x78] sm:$0xff] }
0x129c   :  { %v5206_v38 = vpop.f32.mrf.mxu0 }
0x129d   :  { %v5290_v19 = vadd.f32 %v5206_v38, %v10604_v54  ;;  %v5219_v13 = vpop.f32.mrf.mxu1 }
0x129e   :  { %v5291_v5 = vadd.f32 %v5219_v13, %v10613_v24 }
0x129f   :  { %v6986_v60 = vmul.f32 -1.442695, %v5290_v19 }
0x12a1   :  { %7535 = vpow2.f32 %v6986_v60 }
0x12a2   :  { %v5193_v18 = vpop.f32.mrf.mxu2 }
0x12a3   :  { %v5289_v58 = vadd.f32 %v5193_v18, %v10605_v15  ;;  %v5232_v28 = vpop.f32.mrf.mxu3 }
0x12a4   :  { %v5292_v62 = vadd.f32 %v5232_v28, %v10606_v53  ;;  %v5208_v20 = vpop.f32.mrf.mxu0 }
0x12a5   :  { %v6985_v22 = vmul.f32 -1.442695, %v5289_v58  ;;  %v5221_v11 = vpop.f32.mrf.mxu1 }
0x12a6   :  { %v6987_v35 = vmul.f32 -1.442695, %v5292_v62 }
0x12a7   :  { %v7536_v32 = vpop.eup %7535  ;;  %7537 = vpow2.f32 %v6985_v22 }
0x12a8   :  { %v5319_v48 = vadd.f32 1.0, %v7536_v32  ;;  %7539 = vpow2.f32 %v6987_v35 }
0x12aa   :  { %7541 = vrcp.f32 %v5319_v48  ;;  %v5195_v26 = vpop.f32.mrf.mxu2  ;;  %v5331_v45 = vand.u32 2147483648, %v5319_v48  ;;  %vm5325_vm10 = vweird.f32 %v5319_v48  ;;  %v5329_v56 = vand.u32 2147483647, %v5319_v48 }
0x12ab   :  { %v5234_v37 = vpop.f32.mrf.mxu3 }
0x12ac   :  { %v5259_v23 = vpop.f32.mrf.mxu0  ;;  %v5332_v58 = vor.u32 1.1754944e-38, %v5331_v45  ;;  %vm5330_vm13 = vcmp.eq.f32.partialorder %v5329_v56, 8.507059e+37 }
0x12ad   :  { %v7538_v14 = vpop.eup %7537  ;;  %v5294_v59 = vadd.f32 %v5259_v23, %v3323_v10  ;;  %v9827_v55 = vpop.f32.mrf.mxu1 }
0x12ae   :  { %v7540_v57 = vpop.eup %7539  ;;  %v5300_v4 = vadd.f32 1.0, %v7538_v14 }
0x12af   :  { %v9829_v47 = vadd.f32 1.0, %v7540_v57  ;;  %v6989_v21 = vmul.f32 -1.442695, %v5294_v59  ;;  %v10616_v57 = vld [vmem:[#allocation113_spill] sm:$0xff] }
0x12b0   :  { %v7542_v25 = vpop.eup %7541  ;;  %7543 = vrcp.f32 %v5300_v4  ;;  %v5312_v38 = vand.u32 2147483648, %v5300_v4  ;;  %v5310_v18 = vand.u32 2147483647, %v5300_v4  ;;  %vm5306_vm14 = vweird.f32 %v5300_v4 }
0x12b1   :  { %v5321_v17 = vmul.f32 %v7542_v25, %v5319_v48  ;;  %7545 = vrcp.f32 %v9829_v47  ;;  %vm5326_vm9 = vweird.f32 %v7542_v25  ;;  %v5351_v41 = vand.u32 2147483648, %v9829_v47 }
0x12b2   :  { %v5246_v49 = vpop.f32.mrf.mxu2  ;;  %7547 = vpow2.f32 %v6989_v21  ;;  %vm9841_vm11 = vmor %vm5325_vm10, %vm5326_vm9  ;;  %v5313_v11 = vor.u32 1.1754944e-38, %v5312_v38  ;;  %vm5311_vm15 = vcmp.eq.f32.partialorder %v5310_v18, 8.507059e+37  ;;  %vm5345_vm3 = vweird.f32 %v9829_v47  ;;  %v5677_v18 = vld [vmem:[%s7793_s4 + $0x70] sm:$0xff] }
0x12b3   :  { %v5322_v51 = vsub.f32 1.0, %v5321_v17  ;;  %v5293_v61 = vadd.f32 %v5246_v49, %v3282_v8  ;;  %v5285_v46 = vpop.f32.mrf.mxu3  ;;  %v5349_v8 = vand.u32 2147483647, %v9829_v47 }
0x12b4   :  { %v5296_v16 = vadd.f32 %v5285_v46, %v3405_v40  ;;  %v5261_v27 = vpop.f32.mrf.mxu0 }
0x12b5   :  { %v5323_v30 = vmul.f32 %v7542_v25, %v5322_v51  ;;  %v6988_v2 = vmul.f32 -1.442695, %v5293_v61  ;;  %v5274_v29 = vpop.f32.mrf.mxu1  ;;  %v5352_v51 = vor.u32 1.1754944e-38, %v5351_v41  ;;  %vm5350_vm7 = vcmp.eq.f32.partialorder %v5349_v8, 8.507059e+37  ;;  %v5663_v41 = vld [vmem:[%s7793_s4] sm:$0xff]  ;;  %v10624_v8 = vld [vmem:[#allocation26_spill] sm:$0xff] }
0x12b6   :  { %v7544_v42 = vpop.eup %7543  ;;  %v6990_v31 = vmul.f32 -1.442695, %v5296_v16 }
0x12b7   :  { %v9837_v44 = vpop.eup %7545  ;;  %v5324_v39 = vadd.f32 %v7542_v25, %v5323_v30  ;;  %v5302_v50 = vmul.f32 %v7544_v42, %v5300_v4  ;;  %7549 = vpow2.f32 %v6988_v2  ;;  %vm5307_vm12 = vweird.f32 %v7544_v42  ;;  %v10617_v4 = vld [vmem:[#allocation117_spill] sm:$0xff]  ;;  %v10631_v30 = vld [vmem:[#allocation76_spill] sm:$0xff] }
0x12b8   :  { %v5341_v52 = vmul.f32 %v9837_v44, %v9829_v47  ;;  %7551 = vpow2.f32 %v6990_v31  ;;  %v7548_v0 = vpop.eup %7547  ;;  %vm5308_vm0 = vmor %vm5306_vm14, %vm5307_vm12  ;;  %v3364_v21 = vadd.f32 %v10617_v4, %v10616_v57  ;;  %vm5346_vm1 = vweird.f32 %v9837_v44  ;;  %v5667_v57 = vld [vmem:[%s7793_s4 + $0x20] sm:$0xff]  ;;  %v5666_v4 = vld [vmem:[%s7793_s4 + $0x18] sm:$0xff] }
0x12b9   :  { %v5303_v12 = vsub.f32 1.0, %v5302_v50  ;;  %7553 = vtanh.f32 %v5291_v5  ;;  %v9845_v54 = vadd.f32 1.0, %v7548_v0  ;;  %v5328_v13 = vsel %vm9841_vm11, %v7542_v25, %v5324_v39  ;;  %vm9869_vm4 = vmor %vm5345_vm3, %vm5346_vm1 }
0x12ba   :  { %v5248_v19 = vpop.f32.mrf.mxu2  ;;  %v5342_v28 = vsub.f32 1.0, %v5341_v52  ;;  %v5333_v22 = vsel %vm5330_vm13, %v5332_v58, %v5328_v13  ;;  %v5295_v17 = vadd.f32 %v9827_v55, %v3364_v21  ;;  %v5676_v58 = vld [vmem:[%s7793_s4 + $0x68] sm:$0xff]  ;;  %v5665_v21 = vld [vmem:[%s7793_s4 + $0x10] sm:$0xff] }
0x12bb   :  { %v5304_v60 = vmul.f32 %v7544_v42, %v5303_v12  ;;  %v5287_v15 = vpop.f32.mrf.mxu3  ;;  %7555 = vrcp.f32 %v9845_v54  ;;  %v5355_v10 = vmul.f32 %v5333_v22, %v9708_v3  ;;  %v5394_v61 = vand.u32 2147483648, %v9845_v54 }
0x12bc   :  { %v5343_v43 = vmul.f32 %v9837_v44, %v5342_v28  ;;  %vm5388_vm6 = vweird.f32 %v9845_v54  ;;  %v5392_v16 = vand.u32 2147483647, %v9845_v54 }
0x12bd   :  { %v7550_v53 = vpop.eup %7549  ;;  %v5305_v62 = vadd.f32 %v7544_v42, %v5304_v60 }
0x12be   :  { %v7552_v20 = vpop.eup %7551  ;;  %v5363_v35 = vadd.f32 1.0, %v7550_v53  ;;  %v5344_v25 = vadd.f32 %v9837_v44, %v5343_v43  ;;  %vm5393_vm10 = vcmp.eq.f32.partialorder %v5392_v16, 8.507059e+37  ;;  %v10630_v16 = vld [vmem:[#allocation96_spill] sm:$0xff] }
0x12bf   :  { %v5309_v32 = vsel %vm5308_vm0, %v7544_v42, %v5305_v62  ;;  %v9850_v48 = vadd.f32 1.0, %v7552_v20  ;;  %v7554_v26 = vpop.eup %7553  ;;  %v5675_v62 = vld [vmem:[%s7793_s4 + $0x60] sm:$0xff]  ;;  %v5674_v20 = vld [vmem:[%s7793_s4 + $0x58] sm:$0xff] }
0x12c0   :  { %v5314_v33 = vsel %vm5311_vm15, %v5313_v11, %v5309_v32  ;;  %7557 = vrcp.f32 %v5363_v35  ;;  %v5348_v47 = vsel %vm9869_vm4, %v9837_v44, %v5344_v25  ;;  %v5373_v2 = vand.u32 2147483647, %v5363_v35  ;;  %v5664_v25 = vld [vmem:[%s7793_s4 + $0x8] sm:$0xff] }
0x12c1   :  { %v5356_v37 = vmul.f32 %v7554_v26, %v5314_v33  ;;  %7559 = vrcp.f32 %v9850_v48  ;;  %v7556_v23 = vpop.eup %7555  ;;  %v5375_v29 = vand.u32 2147483648, %v5363_v35  ;;  %v5353_v31 = vsel %vm5350_vm7, %v5352_v51, %v5348_v47  ;;  %v5672_v26 = vld [vmem:[%s7793_s4 + $0x48] sm:$0xff] }
0x12c2   :  { %v5384_v59 = vmul.f32 %v7556_v23, %v9845_v54  ;;  %vm5389_vm5 = vweird.f32 %v7556_v23  ;;  %v5395_v44 = vor.u32 1.1754944e-38, %v5394_v61  ;;  %vm5369_vm11 = vweird.f32 %v5363_v35 }
0x12c3   :  { %v9855_v14 = vadd.f32 %v5356_v37, %v5355_v10  ;;  %vm9881_vm8 = vmor %vm5388_vm6, %vm5389_vm5  ;;  %v5376_v0 = vor.u32 1.1754944e-38, %v5375_v29  ;;  %vm5374_vm13 = vcmp.eq.f32.partialorder %v5373_v2, 8.507059e+37  ;;  %v5414_v53 = vand.u32 2147483648, %v9850_v48  ;;  %v5670_v37 = vld [vmem:[%s7793_s4 + $0x38] sm:$0xff]  ;;  %v10632_v2 = vld [vmem:[#allocation97_spill] sm:$0xff] }
0x12c4   :  { %v5385_v6 = vsub.f32 1.0, %v5384_v59  ;;  %vm5408_vm0 = vweird.f32 %v9850_v48  ;;  %v5668_v59 = vld [vmem:[%s7793_s4 + $0x28] sm:$0xff]  ;;  %v3259_v29 = vadd.f32 %v10632_v2, %v10631_v30  ;;  %v5682_v2 = vld [vmem:[%s7793_s4 + $0x98] sm:$0xff] }
0x12c5   :  { %7561 = vtanh.f32 %v9855_v14  ;;  %v5415_v11 = vor.u32 1.1754944e-38, %v5414_v53  ;;  %v5689_v53 = vld [vmem:[%s7793_s4 + $0xd0] sm:$0xff] }
0x12c6   :  { %v7558_v3 = vpop.eup %7557  ;;  %v5386_v40 = vmul.f32 %v7556_v23, %v5385_v6  ;;  %7563 = vtanh.f32 %v5295_v17  ;;  %v10622_v6 = vld [vmem:[#allocation126_spill] sm:$0xff]  ;;  %v10625_v17 = vld [vmem:[#allocation28_spill] sm:$0xff] }
0x12c7   :  { %v9867_v1 = vpop.eup %7559  ;;  %v5365_v49 = vmul.f32 %v7558_v3, %v5363_v35  ;;  %vm5370_vm9 = vweird.f32 %v7558_v3  ;;  %v5673_v35 = vld [vmem:[%s7793_s4 + $0x50] sm:$0xff] }
0x12c8   :  { %v5404_v46 = vmul.f32 %v9867_v1, %v9850_v48  ;;  %v5387_v55 = vadd.f32 %v7556_v23, %v5386_v40  ;;  %vm5371_vm12 = vmor %vm5369_vm11, %vm5370_vm9  ;;  %vm5409_vm14 = vweird.f32 %v9867_v1  ;;  %v10628_v40 = vld [vmem:[#allocation79_spill] sm:$0xff] }
0x12c9   :  { %v5366_v27 = vsub.f32 1.0, %v5365_v49  ;;  %vm5410_vm15 = vmor %vm5408_vm0, %vm5409_vm14  ;;  %v3177_v49 = vadd.f32 %v10628_v40, %v10627_v36  ;;  %v10636_v36 = vld [vmem:[#allocation90_spill] sm:$0xff] }
0x12ca   :  { %v5391_v24 = vsel %vm9881_vm8, %v7556_v23, %v5387_v55  ;;  %v5405_v39 = vsub.f32 1.0, %v5404_v46  ;;  %v5669_v23 = vld [vmem:[%s7793_s4 + $0x30] sm:$0xff]  ;;  %v10629_v55 = vld [vmem:[#allocation75_spill] sm:$0xff]  ;;  %v10637_v40 = vld [vmem:[#allocation110_spill] sm:$0xff] }
0x12cb   :  { %v7562_v42 = vpop.eup %7561  ;;  %v5367_v5 = vmul.f32 %v7558_v3, %v5366_v27  ;;  %v5396_v52 = vsel %vm5393_vm10, %v5395_v44, %v5391_v24  ;;  %v3136_v27 = vadd.f32 %v10630_v16, %v10629_v55 }
0x12cc   :  { %v9887_v50 = vmul.f32 %v7562_v42, %v5353_v31  ;;  %v7564_v38 = vpop.eup %7563  ;;  %v5406_v19 = vmul.f32 %v9867_v1, %v5405_v39  ;;  %v5418_v13 = vmul.f32 %v5396_v52, %v9747_v9  ;;  %v5412_v9 = vand.u32 2147483647, %v9850_v48  ;;  %v5671_v48 = vld [vmem:[%s7793_s4 + $0x40] sm:$0xff] }
0x12cd   :  { %v5368_v45 = vadd.f32 %v7558_v3, %v5367_v5  ;;  %v5694_v5 = vld [vmem:[%s7793_s4 + $0xf8] sm:$0xff] }
0x12ce   :  { %v5423_v56 = vpack.c.bf16 %v9887_v50, %v9887_v50  ;;  %v5407_v28 = vadd.f32 %v9867_v1, %v5406_v19  ;;  %vm5413_vm1 = vcmp.eq.f32.partialorder %v5412_v9, 8.507059e+37  ;;  %v5690_v19 = vld [vmem:[%s7793_s4 + $0xd8] sm:$0xff] }
0x12cf   :  { %v5372_v12 = vsel %vm5371_vm12, %v7558_v3, %v5368_v45  ;;  %v10623_v3 = vld [vmem:[#allocation24_spill] sm:$0xff]  ;;  %v5693_v45 = vld [vmem:[%s7793_s4 + $0xf0] sm:$0xff] }
0x12d0   :  { %v5377_v54 = vsel %vm5374_vm13, %v5376_v0, %v5372_v12  ;;  %5432 = vmatmul.bf16.vlgmr.msra.gmra.mxu2 %v5423_v56  ;;  %5445 = vmatmul.bf16.vlgmr.msrb.gmra.mxu0 %v5423_v56  ;;  %v5411_v22 = vsel %vm5410_vm15, %v9867_v1, %v5407_v28  ;;  %v10626_v1 = vld [vmem:[#allocation30_spill] sm:$0xff] }
0x12d1   :  { %v5419_v60 = vmul.f32 %v7564_v38, %v5377_v54  ;;  %5458 = vmatmul.bf16.vlgmr.msrb.gmra.mxu1 %v5423_v56  ;;  %5471 = vmatmul.bf16.vlgmr.msrb.gmra.mxu3 %v5423_v56  ;;  %v5416_v33 = vsel %vm5413_vm1, %v5415_v11, %v5411_v22  ;;  %v5692_v56 = vld [vmem:[%s7793_s4 + $0xe8] sm:$0xff] }
0x12d2   :  { %5699 = vmatpush.msra.mxu2 %v5678_v7  ;;  %5740 = vmatpush.msrb.mxu0 %v5694_v5  ;;  %v5691_v7 = vld [vmem:[%s7793_s4 + $0xe0] sm:$0xff]  ;;  %v5688_v11 = vld [vmem:[%s7793_s4 + $0xc8] sm:$0xff] }
0x12d3   :  { %v9895_v15 = vadd.f32 %v5419_v60, %v5418_v13 }
0x12d4   :  { %5700 = vmatpush.msra.mxu2 %v5677_v18  ;;  %5741 = vmatpush.msrb.mxu0 %v5693_v45  ;;  %v10633_v18 = vld [vmem:[#allocation74_spill] sm:$0xff] }
0x12d5   :  { %7565 = vtanh.f32 %v9895_v15 }
0x12d6   :  { %5701 = vmatpush.msra.mxu2 %v5676_v58  ;;  %5742 = vmatpush.msrb.mxu0 %v5692_v56 }
0x12d8   :  { %5702 = vmatpush.msra.mxu2 %v5675_v62  ;;  %5743 = vmatpush.msrb.mxu0 %v5691_v7 }
0x12da   :  { %5703 = vmatpush.msra.mxu2 %v5674_v20  ;;  %5744 = vmatpush.msrb.mxu0 %v5690_v19 }
0x12db   :  { %v7566_v32 = vpop.eup %7565 }
0x12dc   :  { %5704 = vmatpush.msra.mxu2 %v5673_v35  ;;  %v9909_v43 = vmul.f32 %v7566_v32, %v5416_v33  ;;  %5745 = vmatpush.msrb.mxu0 %v5689_v53  ;;  %v5686_v33 = vld [vmem:[%s7793_s4 + $0xb8] sm:$0xff] }
0x12de   :  { %5705 = vmatpush.msra.mxu2 %v5672_v26  ;;  %v5476_v10 = vpack.c.bf16 %v9909_v43, %v9909_v43  ;;  %5746 = vmatpush.msrb.mxu0 %v5688_v11  ;;  %v5687_v26 = vld [vmem:[%s7793_s4 + $0xc0] sm:$0xff] }
0x12e0   :  { %5706 = vmatpush.msra.mxu2 %v5671_v48  ;;  %5498 = vmatmul.bf16.vlgmr.msra.gmra.mxu0 %v5476_v10 }
0x12e1   :  { %5485 = vmatmul.bf16.vlgmr.msrb.gmra.mxu2 %v5476_v10  ;;  %5511 = vmatmul.bf16.vlgmr.msra.gmra.mxu1 %v5476_v10 }
0x12e2   :  { %5524 = vmatmul.bf16.vlgmr.msra.gmra.mxu3 %v5476_v10  ;;  %5707 = vmatpush.msra.mxu2 %v5670_v37  ;;  %v5685_v37 = vld [vmem:[%s7793_s4 + $0xb0] sm:$0xff] }
0x12e3   :  { %5747 = vmatpush.msrb.mxu0 %v5687_v26 }
0x12e4   :  { %5708 = vmatpush.msra.mxu2 %v5669_v23  ;;  %v10634_v23 = vld [vmem:[#allocation102_spill] sm:$0xff] }
0x12e5   :  { %5748 = vmatpush.msrb.mxu0 %v5686_v33 }
0x12e6   :  { %5709 = vmatpush.msra.mxu2 %v5668_v59 }
0x12e7   :  { %5749 = vmatpush.msrb.mxu0 %v5685_v37 }
0x12e8   :  { %5710 = vmatpush.msra.mxu2 %v5667_v57 }
0x12ea   :  { %5711 = vmatpush.msra.mxu2 %v5666_v4 }
0x12ec   :  { %5712 = vmatpush.msra.mxu2 %v5665_v21  ;;  %v10635_v21 = vld [vmem:[#allocation103_spill] sm:$0xff] }
0x12ee   :  { %5713 = vmatpush.msra.mxu2 %v5664_v25 }
0x12f0   :  { %5714 = vmatpush.msra.mxu2 %v5663_v41 }
0x12f1   :  { %5715 = vmatmul.f32.vlgmr.msra.gmra.mxu2 %v10622_v6  ;;  %v5684_v6 = vld [vmem:[%s7793_s4 + $0xa8] sm:$0xff] }
0x12f2   :  { %5750 = vmatpush.msrb.mxu0 %v5684_v6 }
0x12f9   :  { %5718 = vmatmul.f32.gmra.mxu2 %v10623_v3 }
0x1301   :  { %5721 = vmatmul.f32.gmra.mxu2 %v10624_v8 }
0x1309   :  { %5724 = vmatmul.f32.gmra.mxu2 %v10625_v17 }
0x1311   :  { %5727 = vmatmul.f32.gmra.mxu2 %v10626_v1 }
0x1319   :  { %5730 = vmatmul.f32.gmra.mxu2 %v9739_v34 }
0x1321   :  { %5733 = vmatmul.f32.gmra.mxu2 %v9887_v50 }
0x134d   :  { %v5446_v51 = vpop.f32.mrf.mxu0 }
0x134e   :  { %v5530_v61 = vadd.f32 %v5446_v51, %v3177_v49  ;;  %v9931_v46 = vpop.f32.mrf.mxu1  ;;  %v3218_v49 = vadd.f32 %v10637_v40, %v10636_v36 }
0x1350   :  { %v6992_v47 = vmul.f32 -1.442695, %v5530_v61  ;;  %v5531_v16 = vadd.f32 %v9931_v46, %v3218_v49 }
0x1352   :  { %7567 = vpow2.f32 %v6992_v47  ;;  %v5683_v47 = vld [vmem:[%s7793_s4 + $0xa0] sm:$0xff] }
0x1353   :  { %v5433_v34 = vpop.f32.mrf.mxu2  ;;  %5751 = vmatpush.msrb.mxu0 %v5683_v47 }
0x1354   :  { %v5529_v42 = vadd.f32 %v5433_v34, %v3136_v27  ;;  %v5472_v24 = vpop.f32.mrf.mxu3 }
0x1355   :  { %v5532_v31 = vadd.f32 %v5472_v24, %v3259_v29  ;;  %v5448_v44 = vpop.f32.mrf.mxu0  ;;  %5752 = vmatpush.msrb.mxu0 %v5682_v2 }
0x1356   :  { %v6991_v39 = vmul.f32 -1.442695, %v5529_v42  ;;  %v5461_v50 = vpop.f32.mrf.mxu1 }
0x1357   :  { %v6993_v52 = vmul.f32 -1.442695, %v5532_v31  ;;  %v5681_v31 = vld [vmem:[%s7793_s4 + $0x90] sm:$0xff] }
0x1358   :  { %v7568_v0 = vpop.eup %7567  ;;  %7569 = vpow2.f32 %v6991_v39  ;;  %5753 = vmatpush.msrb.mxu0 %v5681_v31 }
0x1359   :  { %v9940_v12 = vadd.f32 1.0, %v7568_v0  ;;  %7571 = vpow2.f32 %v6993_v52  ;;  %v5680_v0 = vld [vmem:[%s7793_s4 + $0x88] sm:$0xff] }
0x135a   :  { %5754 = vmatpush.msrb.mxu0 %v5680_v0 }
0x135b   :  { %7573 = vrcp.f32 %v9940_v12  ;;  %v5435_v38 = vpop.f32.mrf.mxu2  ;;  %v5571_v34 = vand.u32 2147483648, %v9940_v12  ;;  %vm5565_vm5 = vweird.f32 %v9940_v12  ;;  %v5569_v44 = vand.u32 2147483647, %v9940_v12 }
0x135c   :  { %v5474_v54 = vpop.f32.mrf.mxu3 }
0x135d   :  { %v5499_v13 = vpop.f32.mrf.mxu0  ;;  %v5572_v7 = vor.u32 1.1754944e-38, %v5571_v34  ;;  %vm5570_vm9 = vcmp.eq.f32.partialorder %v5569_v44, 8.507059e+37 }
0x135e   :  { %v7570_v60 = vpop.eup %7569  ;;  %v5534_v58 = vadd.f32 %v5499_v13, %v10633_v18  ;;  %v9946_v28 = vpop.f32.mrf.mxu1 }
0x135f   :  { %v7572_v62 = vpop.eup %7571  ;;  %v9949_v9 = vadd.f32 1.0, %v7570_v60 }
0x1360   :  { %v9951_v20 = vadd.f32 1.0, %v7572_v62  ;;  %v6995_v22 = vmul.f32 -1.442695, %v5534_v58  ;;  %v5679_v58 = vld [vmem:[%s7793_s4 + $0x80] sm:$0xff] }
0x1361   :  { %v9954_v35 = vpop.eup %7573  ;;  %7575 = vrcp.f32 %v9949_v9  ;;  %v5552_v42 = vand.u32 2147483648, %v9949_v9  ;;  %v5550_v39 = vand.u32 2147483647, %v9949_v9  ;;  %vm5546_vm7 = vweird.f32 %v9949_v9  ;;  %5755 = vmatpush.msrb.mxu0 %v5679_v58 }
0x1362   :  { %v5561_v32 = vmul.f32 %v9954_v35, %v9940_v12  ;;  %7577 = vrcp.f32 %v9951_v20  ;;  %vm5566_vm3 = vweird.f32 %v9954_v35  ;;  %vm5585_vm13 = vweird.f32 %v9951_v20 }
0x1363   :  { %7579 = vpow2.f32 %v6995_v22  ;;  %vm9990_vm6 = vmor %vm5565_vm5, %vm5566_vm3  ;;  %v5553_v19 = vor.u32 1.1754944e-38, %v5552_v42  ;;  %vm5551_vm10 = vcmp.eq.f32.partialorder %v5550_v39, 8.507059e+37 }
0x1364   :  { %v5562_v48 = vsub.f32 1.0, %v5561_v32  ;;  %v5486_v10 = vpop.f32.mrf.mxu2 }
0x1365   :  { %v5533_v59 = vadd.f32 %v5486_v10, %v10634_v23  ;;  %v5525_v57 = vpop.f32.mrf.mxu3  ;;  %v5501_v4 = vpop.f32.mrf.mxu0 }
0x1366   :  { %v5536_v25 = vadd.f32 %v5525_v57, %v10635_v21  ;;  %v5514_v41 = vpop.f32.mrf.mxu1  ;;  %v5563_v8 = vmul.f32 %v9954_v35, %v5562_v48  ;;  %v5591_v21 = vand.u32 2147483648, %v9951_v20 }
0x1367   :  { %v7576_v3 = vpop.eup %7575  ;;  %v6994_v17 = vmul.f32 -1.442695, %v5533_v59  ;;  %v10642_v59 = vld [vmem:[#allocation114_spill] sm:$0xff] }
0x1368   :  { %v9967_v1 = vpop.eup %7577  ;;  %v5542_v51 = vmul.f32 %v7576_v3, %v9949_v9  ;;  %v6996_v61 = vmul.f32 -1.442695, %v5536_v25  ;;  %v5564_v29 = vadd.f32 %v9954_v35, %v5563_v8  ;;  %vm5547_vm4 = vweird.f32 %v7576_v3 }
0x1369   :  { %v7580_v55 = vpop.eup %7579  ;;  %7581 = vpow2.f32 %v6994_v17  ;;  %v5581_v46 = vmul.f32 %v9967_v1, %v9951_v20  ;;  %vm9997_vm8 = vmor %vm5546_vm7, %vm5547_vm4  ;;  %v5535_v57 = vadd.f32 %v9946_v28, %v10642_v59  ;;  %vm5586_vm11 = vweird.f32 %v9967_v1 }
0x136a   :  { %v5543_v27 = vsub.f32 1.0, %v5542_v51  ;;  %v9974_v30 = vadd.f32 1.0, %v7580_v55  ;;  %7583 = vpow2.f32 %v6996_v61  ;;  %v5568_v38 = vsel %vm9990_vm6, %v9954_v35, %v5564_v29  ;;  %vm10028_vm0 = vmor %vm5585_vm13, %vm5586_vm11 }
0x136b   :  { %v5582_v18 = vsub.f32 1.0, %v5581_v46  ;;  %v5573_v22 = vsel %vm5570_vm9, %v5572_v7, %v5568_v38  ;;  %v5589_v28 = vand.u32 2147483647, %v9951_v20  ;;  %v5592_v51 = vor.u32 1.1754944e-38, %v5591_v21 }
0x136c   :  { %v5544_v24 = vmul.f32 %v7576_v3, %v5543_v27  ;;  %7585 = vrcp.f32 %v9974_v30  ;;  %v5488_v5 = vpop.f32.mrf.mxu2  ;;  %v5595_v33 = vmul.f32 %v5573_v22, %v9855_v14  ;;  %v5634_v14 = vand.u32 2147483648, %v9974_v30 }
0x136d   :  { %v5527_v50 = vpop.f32.mrf.mxu3  ;;  %7587 = vtanh.f32 %v5531_v16  ;;  %v5583_v32 = vmul.f32 %v9967_v1, %v5582_v18  ;;  %vm5628_vm14 = vweird.f32 %v9974_v30  ;;  %v5632_v8 = vand.u32 2147483647, %v9974_v30  ;;  %v10651_v18 = vld [vmem:[#allocation23_spill] sm:$0xff] }
0x136e   :  { %v5545_v52 = vadd.f32 %v7576_v3, %v5544_v24  ;;  %v5635_v16 = vor.u32 1.1754944e-38, %v5634_v14  ;;  %vm5590_vm3 = vcmp.eq.f32.partialorder %v5589_v28, 8.507059e+37 }
0x136f   :  { %v7582_v56 = vpop.eup %7581  ;;  %v5584_v4 = vadd.f32 %v9967_v1, %v5583_v32  ;;  %vm5633_vm4 = vcmp.eq.f32.partialorder %v5632_v8, 8.507059e+37 }
0x1370   :  { %v7584_v54 = vpop.eup %7583  ;;  %v10004_v13 = vadd.f32 1.0, %v7582_v56  ;;  %v5549_v60 = vsel %vm9997_vm8, %v7576_v3, %v5545_v52 }
0x1371   :  { %v10009_v53 = vadd.f32 1.0, %v7584_v54  ;;  %v5554_v9 = vsel %vm5551_vm10, %v5553_v19, %v5549_v60  ;;  %v5588_v20 = vsel %vm10028_vm0, %v9967_v1, %v5584_v4  ;;  %v10647_v54 = vld [vmem:[#allocation31_spill] sm:$0xff]  ;;  %v10648_v19 = vld [vmem:[#allocation29_spill] sm:$0xff] }
0x1372   :  { %v7586_v62 = vpop.eup %7585  ;;  %7589 = vrcp.f32 %v10004_v13  ;;  %v5615_v49 = vand.u32 2147483648, %v10004_v13  ;;  %v5613_v55 = vand.u32 2147483647, %v10004_v13  ;;  %vm5609_vm5 = vweird.f32 %v10004_v13  ;;  %v10650_v60 = vld [vmem:[#allocation25_spill] sm:$0xff] }
0x1373   :  { %v5624_v11 = vmul.f32 %v7586_v62, %v9974_v30  ;;  %7591 = vrcp.f32 %v10009_v53  ;;  %v7588_v35 = vpop.eup %7587  ;;  %vm5629_vm12 = vweird.f32 %v7586_v62  ;;  %v5593_v29 = vsel %vm5590_vm3, %v5592_v51, %v5588_v20 }
0x1374   :  { %v5596_v48 = vmul.f32 %v7588_v35, %v5554_v9  ;;  %vm10032_vm15 = vmor %vm5628_vm14, %vm5629_vm12  ;;  %v5616_v1 = vor.u32 1.1754944e-38, %v5615_v49  ;;  %vm5614_vm7 = vcmp.eq.f32.partialorder %v5613_v55, 8.507059e+37  ;;  %v5654_v52 = vand.u32 2147483648, %v10009_v53  ;;  %v5716_v58 = vpop.f32.mrf.mxu2 }
0x1375   :  { %v5625_v26 = vsub.f32 1.0, %v5624_v11  ;;  %vm5648_vm9 = vweird.f32 %v10009_v53  ;;  %v5652_v0 = vand.u32 2147483647, %v10009_v53 }
0x1376   :  { %v5597_v37 = vadd.f32 %v5596_v48, %v5595_v33  ;;  %v5655_v7 = vor.u32 1.1754944e-38, %v5654_v52 }
0x1377   :  { %v5626_v10 = vmul.f32 %v7586_v62, %v5625_v26  ;;  %vm5653_vm11 = vcmp.eq.f32.partialorder %v5652_v0, 8.507059e+37 }
0x1378   :  { %v7590_v23 = vpop.eup %7589  ;;  %7593 = vtanh.f32 %v5597_v37 }
0x1379   :  { %v7592_v25 = vpop.eup %7591  ;;  %v5627_v41 = vadd.f32 %v7586_v62, %v5626_v10  ;;  %v5605_v6 = vmul.f32 %v7590_v23, %v10004_v13  ;;  %7595 = vtanh.f32 %v5535_v57  ;;  %vm5610_vm1 = vweird.f32 %v7590_v23  ;;  %v10649_v13 = vld [vmem:[#allocation27_spill] sm:$0xff] }
0x137a   :  { %v5644_v3 = vmul.f32 %v7592_v25, %v10009_v53  ;;  %vm5611_vm6 = vmor %vm5609_vm5, %vm5610_vm1  ;;  %vm5649_vm8 = vweird.f32 %v7592_v25 }
0x137b   :  { %v5606_v17 = vsub.f32 1.0, %v5605_v6  ;;  %v5631_v61 = vsel %vm10032_vm15, %v7586_v62, %v5627_v41  ;;  %vm5650_vm10 = vmor %vm5648_vm9, %vm5649_vm8  ;;  %v7342_v62 = vld [vmem:[%s7798_s9] ss:$0 sm:$0xff] }
0x137c   :  { %v5645_v27 = vsub.f32 1.0, %v5644_v3  ;;  %v5636_v34 = vsel %vm5633_vm4, %v5635_v16, %v5631_v61  ;;  %v5719_v53 = vpop.f32.mrf.mxu2  ;;  %v5717_v9 = vadd.f32 %v7342_v62, %v5716_v58 }
0x137d   :  { %v5607_v47 = vmul.f32 %v7590_v23, %v5606_v17  ;;  %v5658_v44 = vmul.f32 %v5636_v34, %v9895_v15  ;;  %v5720_v11 = vadd.f32 %v7342_v62, %v5719_v53 }
0x137e   :  { %v7594_v30 = vpop.eup %7593  ;;  %v5646_v31 = vmul.f32 %v7592_v25, %v5645_v27 }
0x137f   :  { %v5608_v2 = vadd.f32 %v7590_v23, %v5607_v47  ;;  %v5599_v42 = vmul.f32 %v7594_v30, %v5593_v29  ;;  %v7596_v46 = vpop.eup %7595 }
0x1380   :  { %v5647_v45 = vadd.f32 %v7592_v25, %v5646_v31 }
0x1381   :  { %v5612_v24 = vsel %vm5611_vm6, %v7590_v23, %v5608_v2  ;;  %5736 = vmatmul.f32.gmra.mxu2 %v5599_v42 }
0x1382   :  { %v5617_v5 = vsel %vm5614_vm7, %v5616_v1, %v5612_v24  ;;  %v5651_v56 = vsel %vm5650_vm10, %v7592_v25, %v5647_v45 }
0x1383   :  { %v5659_v39 = vmul.f32 %v7596_v46, %v5617_v5  ;;  %v5656_v38 = vsel %vm5653_vm11, %v5655_v7, %v5651_v56 }
0x1385   :  { %v5660_v50 = vadd.f32 %v5659_v39, %v5658_v44 }
0x1387   :  { %7597 = vtanh.f32 %v5660_v50 }
0x138d   :  { %v7598_v12 = vpop.eup %7597 }
0x138e   :  { %v5662_v15 = vmul.f32 %v7598_v12, %v5656_v38 }
0x1390   :  { %5756 = vmatmul.f32.vlgmr.msrb.gmra.mxu0 %v5662_v15 }
0x1398   :  { %5759 = vmatmul.f32.gmra.mxu0 %v9909_v43 }
0x13a0   :  { %5762 = vmatmul.f32.gmra.mxu0 %v9766_v63  ;;  %v5722_v63 = vpop.f32.mrf.mxu2 }
0x13a1   :  { %v5723_v33 = vadd.f32 %v7342_v62, %v5722_v63 }
0x13a8   :  { %5765 = vmatmul.f32.gmra.mxu0 %v10647_v54  ;;  %v5725_v26 = vpop.f32.mrf.mxu2 }
0x13a9   :  { %v5726_v37 = vadd.f32 %v7342_v62, %v5725_v26 }
0x13b0   :  { %5768 = vmatmul.f32.gmra.mxu0 %v10648_v19  ;;  %v5728_v23 = vpop.f32.mrf.mxu2 }
0x13b1   :  { %v5729_v4 = vadd.f32 %v7342_v62, %v5728_v23 }
0x13b8   :  { %5771 = vmatmul.f32.gmra.mxu0 %v10649_v13  ;;  %v5731_v41 = vpop.f32.mrf.mxu2 }
0x13b9   :  { %v5732_v6 = vadd.f32 %v7342_v62, %v5731_v41 }
0x13c0   :  { %5774 = vmatmul.f32.gmra.mxu0 %v10650_v60  ;;  %v5734_v28 = vpop.f32.mrf.mxu2 }
0x13c1   :  { %v5735_v8 = vadd.f32 %v7342_v62, %v5734_v28 }
0x13c8   :  { %5777 = vmatmul.f32.gmra.mxu0 %v10651_v18 }
0x1404   :  { %v5737_v40 = vpop.f32.mrf.mxu2 }
0x1405   :  { %v5738_v49 = vadd.f32 %v7342_v62, %v5737_v40 }
0x140d   :  { %v5757_v22 = vpop.f32.mrf.mxu0 }
0x140e   :  { %v5758_v43 = vadd.f32 %v5757_v22, %v5717_v9 }
0x1410   :  { %5781 = vst.msk [vmem:[%s7813_s10] sm:$0xff] %vm453_vm2, %v5758_v43 }
0x1415   :  { %v5760_v35 = vpop.f32.mrf.mxu0 }
0x1416   :  { %v5761_v32 = vadd.f32 %v5760_v35, %v5720_v11 }
0x1418   :  { %5782 = vst.msk [vmem:[%s7813_s10 + $0x8] sm:$0xff] %vm453_vm2, %v5761_v32 }
0x141d   :  { %v5763_v48 = vpop.f32.mrf.mxu0 }
0x141e   :  { %v5764_v10 = vadd.f32 %v5763_v48, %v5723_v33 }
0x1420   :  { %5783 = vst.msk [vmem:[%s7813_s10 + $0x10] sm:$0xff] %vm453_vm2, %v5764_v10 }
0x1425   :  { %v5766_v59 = vpop.f32.mrf.mxu0 }
0x1426   :  { %v5767_v57 = vadd.f32 %v5766_v59, %v5726_v37 }
0x1428   :  { %5784 = vst.msk [vmem:[%s7813_s10 + $0x18] sm:$0xff] %vm453_vm2, %v5767_v57 }
0x142d   :  { %v5769_v21 = vpop.f32.mrf.mxu0 }
0x142e   :  { %v5770_v25 = vadd.f32 %v5769_v21, %v5729_v4 }
0x1430   :  { %5785 = vst.msk [vmem:[%s7813_s10 + $0x20] sm:$0xff] %vm453_vm2, %v5770_v25 }
0x1435   :  { %v5772_v14 = vpop.f32.mrf.mxu0 }
0x1436   :  { %v5773_v3 = vadd.f32 %v5772_v14, %v5732_v6 }
0x1438   :  { %5786 = vst.msk [vmem:[%s7813_s10 + $0x28] sm:$0xff] %vm453_vm2, %v5773_v3 }
0x143d   :  { %v5775_v17 = vpop.f32.mrf.mxu0 }
0x143e   :  { %v5776_v36 = vadd.f32 %v5775_v17, %v5735_v8 }
0x1440   :  { %5787 = vst.msk [vmem:[%s7813_s10 + $0x30] sm:$0xff] %vm453_vm2, %v5776_v36 }
0x1445   :  { %v5778_v20 = vpop.f32.mrf.mxu0 }
0x1446   :  { %v5779_v51 = vadd.f32 %v5778_v20, %v5738_v49 }
0x1448   :  { %5788 = vst.msk [vmem:[%s7813_s10 + $0x38] sm:$0xff] %vm453_vm2, %v5779_v51 }
0x1449   :  { %5793 = vsyncmov [#allocation4] }
0x144c   :  { %s5794_s9 = vpop.sfrf %5793 }
0x144d   :  { %p6997_p0 = scmp.ne.s32.totalorder %s5794_s9, 0 }
0x144f   :  { %5798 = shalt.err (%p6997_p0)  }
0x1450   :  { %5800 = vsyncmov [#allocation4 + $0x1] }
0x1453   :  { %s5801_s12 = vpop.sfrf %5800 }
0x1454   :  { %p6998_p1 = scmp.ne.s32.totalorder %s5801_s12, 0 }
0x1456   :  { %5805 = shalt.err (%p6998_p1)  }

</bundles_post_ra>
